<compile_context>
chip_gen: v7x
topology: tpu7x:2x2x1
jax: 0.10.0
libtpu: 0.0.40
codegen_flags: <defaults>
</compile_context>

<pallas_src>
import jax
import jax.numpy as jnp
from jax.experimental import pallas as pl
from jax.experimental.pallas import tpu as pltpu

NZ = 16     # latent dim (input_dim of _netG)
NGF = 8     # generator feature maps (opt.ngf), kept small
NC = 1      # output channels (MNIST)
BATCH = 2
BN_EPS = 1e-5

LAYER_CFG = [
    # (stride, pad, activation, has_batchnorm)
    (1, 0, "relu", True),    # nz    -> ngf*8 : 1x1  ->  4x4
    (2, 1, "relu", True),    # ngf*8 -> ngf*4 : 4x4  ->  8x8
    (2, 1, "relu", True),    # ngf*4 -> ngf*2 : 8x8  -> 16x16
    (2, 1, "relu", True),    # ngf*2 -> ngf   : 16   -> 32
    (2, 1, "tanh", False),   # ngf   -> nc    : 32   -> 64
]


# ----------------------------------------------------------------------------
# Fused kernel: the entire generator forward for one image.
# ----------------------------------------------------------------------------
def _netg_fused_kernel(zk_ref, m1_ref, s1_ref,
                       m2_ref, c2_ref, s2_ref,
                       m3_ref, c3_ref, s3_ref,
                       m4_ref, c4_ref, s4_ref,
                       m5_ref, c5_ref,
                       out_ref):
    # ---- layer 1: ConvTranspose(nz, ngf*8, 4, 1, 0) + BN + ReLU (1x1 -> 4x4)
    # single direct GEMM: (ngf*8*4, 4*nz) @ (4*nz, 4) -> (ngf*8*4, 4)
    x = jnp.dot(m1_ref[...], zk_ref[0], preferred_element_type=jnp.float32)
    x = jnp.maximum(x + s1_ref[...], 0.0)

    # ---- layers 2..5: ConvTranspose(4, 2, 1) (+BN) + act as 4 GEMM pairs
    def up_block(x_in, m_ref, c_ref, s_ref, act):
        xb = x_in.astype(jnp.bfloat16)
        acc = None
        for k in range(4):                       # kernel column taps kx
            t = jnp.dot(m_ref[k], xb, preferred_element_type=jnp.float32)
            term = jnp.dot(t, c_ref[k], preferred_element_type=jnp.float32)
            acc = term if acc is None else acc + term
        if s_ref is not None:
            acc = acc + s_ref[...]               # folded BN shift, per channel
        return jnp.maximum(acc, 0.0) if act == "relu" else jnp.tanh(acc)

    x = up_block(x, m2_ref, c2_ref, s2_ref, "relu")   # (32*8 , 8)
    x = up_block(x, m3_ref, c3_ref, s3_ref, "relu")   # (16*16, 16)
    x = up_block(x, m4_ref, c4_ref, s4_ref, "relu")   # (8*32 , 32)
    x = up_block(x, m5_ref, c5_ref, None, "tanh")     # (1*64 , 64)

    out_ref[0] = x.astype(out_ref.dtype)              # (64, 64) image


def _netg_pallas(zk, ops):
    """One pallas_call for the whole network.  zk: (N, 4*nz, 4) bf16."""
    n = zk.shape[0]

    def whole(shape):
        nd = len(shape)
        return pl.BlockSpec(shape, lambda i, nd=nd: (0,) * nd)

    in_specs = [pl.BlockSpec((1, 4 * NZ, 4), lambda i: (i, 0, 0))]
    in_specs += [whole(a.shape) for a in ops]

    return pl.pallas_call(
        _netg_fused_kernel,
        out_shape=jax.ShapeDtypeStruct((n, 64, 64), jnp.float32),
        grid_spec=pltpu.PrefetchScalarGridSpec(
            num_scalar_prefetch=0,
            grid=(n,),
            in_specs=in_specs,
            out_specs=pl.BlockSpec((1, 64, 64), lambda i: (i, 0, 0)),
        ),
        compiler_params=pltpu.CompilerParams(
            dimension_semantics=("parallel",)),   # 2-way batch: both v7x cores
    )(zk, *ops)


# ----------------------------------------------------------------------------
# One-time weight preprocessing (plain JAX): fold ConvTranspose + BN into GEMMs
# ----------------------------------------------------------------------------
def fold_params(params):
    ops = []
    # Layer 1 (1x1 input): out[co, y, x] = sum_ci z[ci] * W[ci, co, y, x]
    w, scale, shift = params[0]
    cin, cout, kh, kw = w.shape
    w_s = w * scale[None, :, None, None]                       # fold BN scale
    m1 = jnp.transpose(w_s, (1, 2, 3, 0)).reshape(cout * kh, kw * cin)
    s1 = jnp.repeat(shift, kh)[:, None]
    ops += [m1.astype(jnp.bfloat16), s1.astype(jnp.float32)]

    h_in = kh                                                  # 4x4 after layer 1
    for li in range(1, len(params)):
        w, scale, shift = params[li]
        stride, pad, _, has_bn = LAYER_CFG[li]
        cin, cout, kh, kw = w.shape
        h_out = (h_in - 1) * stride - 2 * pad + kh
        k_idx = jnp.arange(kh)
        t_idx = jnp.arange(h_in)
        y_idx = jnp.arange(h_out)
        # R[ky, y, t] = 1  iff  y == stride*t - pad + ky   (row scatter)
        R = (y_idx[None, :, None]
             == (stride * t_idx[None, None, :] - pad + k_idx[:, None, None])
             ).astype(jnp.float32)
        # M[kx][co*Hout+y, ci*Hin+t] = sum_ky W[ci,co,ky,kx] * R[ky,y,t] * scale[co]
        M = jnp.einsum("ioab,ayt->boyit", w.astype(jnp.float32), R)
        M = M.reshape(kw, cout * h_out, cin * h_in)
        M = M * jnp.repeat(scale, h_out)[None, :, None]
        # C[kx, t, x] = 1  iff  x == stride*t - pad + kx   (column scatter)
        C = (y_idx[None, None, :]
             == (stride * t_idx[None, :, None] - pad + k_idx[:, None, None])
             ).astype(jnp.float32)
        ops += [M.astype(jnp.bfloat16), C]
        if has_bn:
            ops.append(jnp.repeat(shift, h_out)[:, None].astype(jnp.float32))
        h_in = h_out
    return tuple(ops)


@jax.jit
def netG_forward(z_nchw, folded_ops):
    """_netG.forward: 4x (ConvT -> BN -> ReLU) -> ConvT -> Tanh, fully fused."""
    n = z_nchw.shape[0]
    z2 = z_nchw.reshape(n, NZ)
    # zk[n] = kron(I4, z_n):  (4*nz, 4) block-diagonal latent for layer-1 GEMM
    zk = jnp.einsum("nc,kx->nkcx", z2, jnp.eye(4, dtype=z2.dtype))
    zk = zk.reshape(n, 4 * NZ, 4).astype(jnp.bfloat16)
    img = _netg_pallas(zk, folded_ops)          # (N, 64, 64) f32
    return img.reshape(n, NC, 64, 64)           # NCHW


# ----------------------------------------------------------------------------
# Reference (plain JAX, dilated-conv formulation) and synthetic parameters
# ----------------------------------------------------------------------------
def _convt_ref(x, w, stride, pad):
    kh, kw = w.shape[2], w.shape[3]
    return jax.lax.conv_general_dilated(
        x, jnp.flip(w, (2, 3)),
        window_strides=(1, 1),
        padding=[(kh - 1 - pad, kh - 1 - pad), (kw - 1 - pad, kw - 1 - pad)],
        lhs_dilation=(stride, stride),
        dimension_numbers=("NCHW", "IOHW", "NCHW"))


def netG_reference(z, params):
    x = z
    for (w, scale, shift), (s, p, act, _) in zip(params, LAYER_CFG):
        x = _convt_ref(x, w, s, p)
        x = x * scale[None, :, None, None] + shift[None, :, None, None]
        x = jnp.maximum(x, 0.0) if act == "relu" else jnp.tanh(x)
    return x


def init_params(key, nz=NZ, ngf=NGF, nc=NC):
    """Deterministic synthetic parameters (scaled so activations stay O(1))."""
    chans = [nz, ngf * 8, ngf * 4, ngf * 2, ngf, nc]
    params = []
    for li, (_, _, _, has_bn) in enumerate(LAYER_CFG):
        cin, cout = chans[li], chans[li + 1]
        key, kw_, kg, kb, km, kv = jax.random.split(key, 6)
        w_std = 1.0 / jnp.sqrt(2.0 * cin)
        # PyTorch ConvTranspose2d weight layout: (Cin, Cout, KH, KW), bias=False.
        w_t = w_std * jax.random.normal(kw_, (cin, cout, 4, 4), jnp.float32)
        if has_bn:
            gamma = 1.0 + 0.05 * jax.random.normal(kg, (cout,), jnp.float32)
            beta = 0.05 * jax.random.normal(kb, (cout,), jnp.float32)
            r_mean = 0.05 * jax.random.normal(km, (cout,), jnp.float32)
            r_var = 0.8 + 0.4 * jax.random.uniform(kv, (cout,), jnp.float32)
            scale = gamma / jnp.sqrt(r_var + BN_EPS)
            shift = beta - r_mean * scale
        else:
            scale = jnp.ones((cout,), jnp.float32)
            shift = jnp.zeros((cout,), jnp.float32)
        params.append((w_t, scale, shift))
    return params


if __name__ == "__main__":
    key = jax.random.PRNGKey(0)
    k_z, k_p = jax.random.split(key)
    z = jax.random.normal(k_z, (BATCH, NZ, 1, 1), jnp.float32)  # latent, NCHW
    params = init_params(k_p)

    folded = fold_params(params)            # one-time weight preprocessing
    out = netG_forward(z, folded)
    jax.block_until_ready(out)

    assert out.shape == (BATCH, NC, 64, 64), out.shape
    assert bool(jnp.all(jnp.isfinite(out)))
    assert bool(jnp.all(jnp.abs(out) <= 1.0))       # tanh output range

    # Numerical check against a plain-JAX dilated-conv reference (f32 weights
    # vs. bf16 kernel weights -> loose-but-meaningful tolerance).
    ref = jax.jit(netG_reference)(z, params)
    err = float(jnp.max(jnp.abs(out - ref)))
    assert err < 8e-2, f"mismatch vs reference: {err}"

    print("KERNEL_OK")
</pallas_src>

<mosaic_0001>
module attributes {stable_mosaic.version = 11 : i64} {
  func.func @_netg_fused_kernel(%arg0: i32, %arg1: memref<1x64x4xbf16, #tpu.memory_space<vmem>>, %arg2: memref<256x64xbf16, #tpu.memory_space<vmem>>, %arg3: memref<256x1xf32, #tpu.memory_space<vmem>>, %arg4: memref<4x256x256xbf16, #tpu.memory_space<vmem>>, %arg5: memref<4x4x8xf32, #tpu.memory_space<vmem>>, %arg6: memref<256x1xf32, #tpu.memory_space<vmem>>, %arg7: memref<4x256x256xbf16, #tpu.memory_space<vmem>>, %arg8: memref<4x8x16xf32, #tpu.memory_space<vmem>>, %arg9: memref<256x1xf32, #tpu.memory_space<vmem>>, %arg10: memref<4x256x256xbf16, #tpu.memory_space<vmem>>, %arg11: memref<4x16x32xf32, #tpu.memory_space<vmem>>, %arg12: memref<256x1xf32, #tpu.memory_space<vmem>>, %arg13: memref<4x64x256xbf16, #tpu.memory_space<vmem>>, %arg14: memref<4x32x64xf32, #tpu.memory_space<vmem>>, %arg15: memref<1x64x64xf32, #tpu.memory_space<vmem>>) attributes {dimension_semantics = [#tpu.dimension_semantics<parallel>], iteration_bounds = array<i64: 2>, scalar_prefetch = 0 : i64, scratch_operands = 0 : i64, tpu.core_type = #tpu.core_type<tc>, window_params = [{transform_indices = @transform_0, window_bounds = array<i64: 1, 64, 4>}, {pipeline_mode = #tpu.pipeline_mode<synchronous>, transform_indices = @transform_1, window_bounds = array<i64: 256, 64>}, {pipeline_mode = #tpu.pipeline_mode<synchronous>, transform_indices = @transform_2, window_bounds = array<i64: 256, 1>}, {pipeline_mode = #tpu.pipeline_mode<synchronous>, transform_indices = @transform_3, window_bounds = array<i64: 4, 256, 256>}, {pipeline_mode = #tpu.pipeline_mode<synchronous>, transform_indices = @transform_4, window_bounds = array<i64: 4, 4, 8>}, {pipeline_mode = #tpu.pipeline_mode<synchronous>, transform_indices = @transform_5, window_bounds = array<i64: 256, 1>}, {pipeline_mode = #tpu.pipeline_mode<synchronous>, transform_indices = @transform_6, window_bounds = array<i64: 4, 256, 256>}, {pipeline_mode = #tpu.pipeline_mode<synchronous>, transform_indices = @transform_7, window_bounds = array<i64: 4, 8, 16>}, {pipeline_mode = #tpu.pipeline_mode<synchronous>, transform_indices = @transform_8, window_bounds = array<i64: 256, 1>}, {pipeline_mode = #tpu.pipeline_mode<synchronous>, transform_indices = @transform_9, window_bounds = array<i64: 4, 256, 256>}, {pipeline_mode = #tpu.pipeline_mode<synchronous>, transform_indices = @transform_10, window_bounds = array<i64: 4, 16, 32>}, {pipeline_mode = #tpu.pipeline_mode<synchronous>, transform_indices = @transform_11, window_bounds = array<i64: 256, 1>}, {pipeline_mode = #tpu.pipeline_mode<synchronous>, transform_indices = @transform_12, window_bounds = array<i64: 4, 64, 256>}, {pipeline_mode = #tpu.pipeline_mode<synchronous>, transform_indices = @transform_13, window_bounds = array<i64: 4, 32, 64>}, {transform_indices = @transform_14, window_bounds = array<i64: 1, 64, 64>}]} {
    %c0 = arith.constant 0 : index
    %c0_0 = arith.constant 0 : index
    %0 = vector.load %arg2[%c0, %c0_0] : memref<256x64xbf16, #tpu.memory_space<vmem>>, vector<256x64xbf16>
    %c0_1 = arith.constant 0 : index
    %c0_2 = arith.constant 0 : index
    %c0_3 = arith.constant 0 : index
    %1 = vector.load %arg1[%c0_1, %c0_2, %c0_3] : memref<1x64x4xbf16, #tpu.memory_space<vmem>>, vector<1x64x4xbf16>
    %2 = vector.shape_cast %1 : vector<1x64x4xbf16> to vector<64x4xbf16>
    %cst = arith.constant dense<0.000000e+00> : vector<256x4xf32>
    %3 = tpu.matmul %0, %2, %cst {dimension_numbers = #tpu.dot_dimension_numbers<[1], [0], [0], [1], [0, 0, 1, 1], [], []>} : vector<256x64xbf16>, vector<64x4xbf16>, vector<256x4xf32> -> vector<256x4xf32>
    %c0_4 = arith.constant 0 : index
    %c0_5 = arith.constant 0 : index
    %4 = vector.load %arg3[%c0_4, %c0_5] : memref<256x1xf32, #tpu.memory_space<vmem>>, vector<256x1xf32>
    %5 = vector.broadcast %4 : vector<256x1xf32> to vector<256x4xf32>
    %6 = arith.addf %3, %5 : vector<256x4xf32>
    %cst_6 = arith.constant 0.000000e+00 : f32
    %7 = vector.broadcast %cst_6 : f32 to vector<256x4xf32>
    %8 = arith.maximumf %6, %7 : vector<256x4xf32>
    %9 = arith.truncf %8 : vector<256x4xf32> to vector<256x4xbf16>
    %c0_7 = arith.constant 0 : index
    %c0_8 = arith.constant 0 : index
    %c0_9 = arith.constant 0 : index
    %10 = vector.load %arg4[%c0_7, %c0_8, %c0_9] : memref<4x256x256xbf16, #tpu.memory_space<vmem>>, vector<1x256x256xbf16>
    %11 = vector.shape_cast %10 : vector<1x256x256xbf16> to vector<256x256xbf16>
    %cst_10 = arith.constant dense<0.000000e+00> : vector<256x4xf32>
    %12 = tpu.matmul %11, %9, %cst_10 {dimension_numbers = #tpu.dot_dimension_numbers<[1], [0], [0], [1], [0, 0, 1, 1], [], []>} : vector<256x256xbf16>, vector<256x4xbf16>, vector<256x4xf32> -> vector<256x4xf32>
    %c0_11 = arith.constant 0 : index
    %c0_12 = arith.constant 0 : index
    %c0_13 = arith.constant 0 : index
    %13 = vector.load %arg5[%c0_11, %c0_12, %c0_13] : memref<4x4x8xf32, #tpu.memory_space<vmem>>, vector<1x4x8xf32>
    %14 = vector.shape_cast %13 : vector<1x4x8xf32> to vector<4x8xf32>
    %cst_14 = arith.constant dense<0.000000e+00> : vector<256x8xf32>
    %15 = tpu.matmul %12, %14, %cst_14 {dimension_numbers = #tpu.dot_dimension_numbers<[1], [0], [0], [1], [0, 0, 1, 1], [], []>} : vector<256x4xf32>, vector<4x8xf32>, vector<256x8xf32> -> vector<256x8xf32>
    %c1 = arith.constant 1 : index
    %c0_15 = arith.constant 0 : index
    %c0_16 = arith.constant 0 : index
    %16 = vector.load %arg4[%c1, %c0_15, %c0_16] : memref<4x256x256xbf16, #tpu.memory_space<vmem>>, vector<1x256x256xbf16>
    %17 = vector.shape_cast %16 : vector<1x256x256xbf16> to vector<256x256xbf16>
    %cst_17 = arith.constant dense<0.000000e+00> : vector<256x4xf32>
    %18 = tpu.matmul %17, %9, %cst_17 {dimension_numbers = #tpu.dot_dimension_numbers<[1], [0], [0], [1], [0, 0, 1, 1], [], []>} : vector<256x256xbf16>, vector<256x4xbf16>, vector<256x4xf32> -> vector<256x4xf32>
    %c1_18 = arith.constant 1 : index
    %c0_19 = arith.constant 0 : index
    %c0_20 = arith.constant 0 : index
    %19 = vector.load %arg5[%c1_18, %c0_19, %c0_20] : memref<4x4x8xf32, #tpu.memory_space<vmem>>, vector<1x4x8xf32>
    %20 = vector.shape_cast %19 : vector<1x4x8xf32> to vector<4x8xf32>
    %cst_21 = arith.constant dense<0.000000e+00> : vector<256x8xf32>
    %21 = tpu.matmul %18, %20, %cst_21 {dimension_numbers = #tpu.dot_dimension_numbers<[1], [0], [0], [1], [0, 0, 1, 1], [], []>} : vector<256x4xf32>, vector<4x8xf32>, vector<256x8xf32> -> vector<256x8xf32>
    %22 = arith.addf %15, %21 : vector<256x8xf32>
    %c2 = arith.constant 2 : index
    %c0_22 = arith.constant 0 : index
    %c0_23 = arith.constant 0 : index
    %23 = vector.load %arg4[%c2, %c0_22, %c0_23] : memref<4x256x256xbf16, #tpu.memory_space<vmem>>, vector<1x256x256xbf16>
    %24 = vector.shape_cast %23 : vector<1x256x256xbf16> to vector<256x256xbf16>
    %cst_24 = arith.constant dense<0.000000e+00> : vector<256x4xf32>
    %25 = tpu.matmul %24, %9, %cst_24 {dimension_numbers = #tpu.dot_dimension_numbers<[1], [0], [0], [1], [0, 0, 1, 1], [], []>} : vector<256x256xbf16>, vector<256x4xbf16>, vector<256x4xf32> -> vector<256x4xf32>
    %c2_25 = arith.constant 2 : index
    %c0_26 = arith.constant 0 : index
    %c0_27 = arith.constant 0 : index
    %26 = vector.load %arg5[%c2_25, %c0_26, %c0_27] : memref<4x4x8xf32, #tpu.memory_space<vmem>>, vector<1x4x8xf32>
    %27 = vector.shape_cast %26 : vector<1x4x8xf32> to vector<4x8xf32>
    %cst_28 = arith.constant dense<0.000000e+00> : vector<256x8xf32>
    %28 = tpu.matmul %25, %27, %cst_28 {dimension_numbers = #tpu.dot_dimension_numbers<[1], [0], [0], [1], [0, 0, 1, 1], [], []>} : vector<256x4xf32>, vector<4x8xf32>, vector<256x8xf32> -> vector<256x8xf32>
    %29 = arith.addf %22, %28 : vector<256x8xf32>
    %c3 = arith.constant 3 : index
    %c0_29 = arith.constant 0 : index
    %c0_30 = arith.constant 0 : index
    %30 = vector.load %arg4[%c3, %c0_29, %c0_30] : memref<4x256x256xbf16, #tpu.memory_space<vmem>>, vector<1x256x256xbf16>
    %31 = vector.shape_cast %30 : vector<1x256x256xbf16> to vector<256x256xbf16>
    %cst_31 = arith.constant dense<0.000000e+00> : vector<256x4xf32>
    %32 = tpu.matmul %31, %9, %cst_31 {dimension_numbers = #tpu.dot_dimension_numbers<[1], [0], [0], [1], [0, 0, 1, 1], [], []>} : vector<256x256xbf16>, vector<256x4xbf16>, vector<256x4xf32> -> vector<256x4xf32>
    %c3_32 = arith.constant 3 : index
    %c0_33 = arith.constant 0 : index
    %c0_34 = arith.constant 0 : index
    %33 = vector.load %arg5[%c3_32, %c0_33, %c0_34] : memref<4x4x8xf32, #tpu.memory_space<vmem>>, vector<1x4x8xf32>
    %34 = vector.shape_cast %33 : vector<1x4x8xf32> to vector<4x8xf32>
    %cst_35 = arith.constant dense<0.000000e+00> : vector<256x8xf32>
    %35 = tpu.matmul %32, %34, %cst_35 {dimension_numbers = #tpu.dot_dimension_numbers<[1], [0], [0], [1], [0, 0, 1, 1], [], []>} : vector<256x4xf32>, vector<4x8xf32>, vector<256x8xf32> -> vector<256x8xf32>
    %36 = arith.addf %29, %35 : vector<256x8xf32>
    %c0_36 = arith.constant 0 : index
    %c0_37 = arith.constant 0 : index
    %37 = vector.load %arg6[%c0_36, %c0_37] : memref<256x1xf32, #tpu.memory_space<vmem>>, vector<256x1xf32>
    %38 = vector.broadcast %37 : vector<256x1xf32> to vector<256x8xf32>
    %39 = arith.addf %36, %38 : vector<256x8xf32>
    %cst_38 = arith.constant 0.000000e+00 : f32
    %40 = vector.broadcast %cst_38 : f32 to vector<256x8xf32>
    %41 = arith.maximumf %39, %40 : vector<256x8xf32>
    %42 = arith.truncf %41 : vector<256x8xf32> to vector<256x8xbf16>
    %c0_39 = arith.constant 0 : index
    %c0_40 = arith.constant 0 : index
    %c0_41 = arith.constant 0 : index
    %43 = vector.load %arg7[%c0_39, %c0_40, %c0_41] : memref<4x256x256xbf16, #tpu.memory_space<vmem>>, vector<1x256x256xbf16>
    %44 = vector.shape_cast %43 : vector<1x256x256xbf16> to vector<256x256xbf16>
    %cst_42 = arith.constant dense<0.000000e+00> : vector<256x8xf32>
    %45 = tpu.matmul %44, %42, %cst_42 {dimension_numbers = #tpu.dot_dimension_numbers<[1], [0], [0], [1], [0, 0, 1, 1], [], []>} : vector<256x256xbf16>, vector<256x8xbf16>, vector<256x8xf32> -> vector<256x8xf32>
    %c0_43 = arith.constant 0 : index
    %c0_44 = arith.constant 0 : index
    %c0_45 = arith.constant 0 : index
    %46 = vector.load %arg8[%c0_43, %c0_44, %c0_45] : memref<4x8x16xf32, #tpu.memory_space<vmem>>, vector<1x8x16xf32>
    %47 = vector.shape_cast %46 : vector<1x8x16xf32> to vector<8x16xf32>
    %cst_46 = arith.constant dense<0.000000e+00> : vector<256x16xf32>
    %48 = tpu.matmul %45, %47, %cst_46 {dimension_numbers = #tpu.dot_dimension_numbers<[1], [0], [0], [1], [0, 0, 1, 1], [], []>} : vector<256x8xf32>, vector<8x16xf32>, vector<256x16xf32> -> vector<256x16xf32>
    %c1_47 = arith.constant 1 : index
    %c0_48 = arith.constant 0 : index
    %c0_49 = arith.constant 0 : index
    %49 = vector.load %arg7[%c1_47, %c0_48, %c0_49] : memref<4x256x256xbf16, #tpu.memory_space<vmem>>, vector<1x256x256xbf16>
    %50 = vector.shape_cast %49 : vector<1x256x256xbf16> to vector<256x256xbf16>
    %cst_50 = arith.constant dense<0.000000e+00> : vector<256x8xf32>
    %51 = tpu.matmul %50, %42, %cst_50 {dimension_numbers = #tpu.dot_dimension_numbers<[1], [0], [0], [1], [0, 0, 1, 1], [], []>} : vector<256x256xbf16>, vector<256x8xbf16>, vector<256x8xf32> -> vector<256x8xf32>
    %c1_51 = arith.constant 1 : index
    %c0_52 = arith.constant 0 : index
    %c0_53 = arith.constant 0 : index
    %52 = vector.load %arg8[%c1_51, %c0_52, %c0_53] : memref<4x8x16xf32, #tpu.memory_space<vmem>>, vector<1x8x16xf32>
    %53 = vector.shape_cast %52 : vector<1x8x16xf32> to vector<8x16xf32>
    %cst_54 = arith.constant dense<0.000000e+00> : vector<256x16xf32>
    %54 = tpu.matmul %51, %53, %cst_54 {dimension_numbers = #tpu.dot_dimension_numbers<[1], [0], [0], [1], [0, 0, 1, 1], [], []>} : vector<256x8xf32>, vector<8x16xf32>, vector<256x16xf32> -> vector<256x16xf32>
    %55 = arith.addf %48, %54 : vector<256x16xf32>
    %c2_55 = arith.constant 2 : index
    %c0_56 = arith.constant 0 : index
    %c0_57 = arith.constant 0 : index
    %56 = vector.load %arg7[%c2_55, %c0_56, %c0_57] : memref<4x256x256xbf16, #tpu.memory_space<vmem>>, vector<1x256x256xbf16>
    %57 = vector.shape_cast %56 : vector<1x256x256xbf16> to vector<256x256xbf16>
    %cst_58 = arith.constant dense<0.000000e+00> : vector<256x8xf32>
    %58 = tpu.matmul %57, %42, %cst_58 {dimension_numbers = #tpu.dot_dimension_numbers<[1], [0], [0], [1], [0, 0, 1, 1], [], []>} : vector<256x256xbf16>, vector<256x8xbf16>, vector<256x8xf32> -> vector<256x8xf32>
    %c2_59 = arith.constant 2 : index
    %c0_60 = arith.constant 0 : index
    %c0_61 = arith.constant 0 : index
    %59 = vector.load %arg8[%c2_59, %c0_60, %c0_61] : memref<4x8x16xf32, #tpu.memory_space<vmem>>, vector<1x8x16xf32>
    %60 = vector.shape_cast %59 : vector<1x8x16xf32> to vector<8x16xf32>
    %cst_62 = arith.constant dense<0.000000e+00> : vector<256x16xf32>
    %61 = tpu.matmul %58, %60, %cst_62 {dimension_numbers = #tpu.dot_dimension_numbers<[1], [0], [0], [1], [0, 0, 1, 1], [], []>} : vector<256x8xf32>, vector<8x16xf32>, vector<256x16xf32> -> vector<256x16xf32>
    %62 = arith.addf %55, %61 : vector<256x16xf32>
    %c3_63 = arith.constant 3 : index
    %c0_64 = arith.constant 0 : index
    %c0_65 = arith.constant 0 : index
    %63 = vector.load %arg7[%c3_63, %c0_64, %c0_65] : memref<4x256x256xbf16, #tpu.memory_space<vmem>>, vector<1x256x256xbf16>
    %64 = vector.shape_cast %63 : vector<1x256x256xbf16> to vector<256x256xbf16>
    %cst_66 = arith.constant dense<0.000000e+00> : vector<256x8xf32>
    %65 = tpu.matmul %64, %42, %cst_66 {dimension_numbers = #tpu.dot_dimension_numbers<[1], [0], [0], [1], [0, 0, 1, 1], [], []>} : vector<256x256xbf16>, vector<256x8xbf16>, vector<256x8xf32> -> vector<256x8xf32>
    %c3_67 = arith.constant 3 : index
    %c0_68 = arith.constant 0 : index
    %c0_69 = arith.constant 0 : index
    %66 = vector.load %arg8[%c3_67, %c0_68, %c0_69] : memref<4x8x16xf32, #tpu.memory_space<vmem>>, vector<1x8x16xf32>
    %67 = vector.shape_cast %66 : vector<1x8x16xf32> to vector<8x16xf32>
    %cst_70 = arith.constant dense<0.000000e+00> : vector<256x16xf32>
    %68 = tpu.matmul %65, %67, %cst_70 {dimension_numbers = #tpu.dot_dimension_numbers<[1], [0], [0], [1], [0, 0, 1, 1], [], []>} : vector<256x8xf32>, vector<8x16xf32>, vector<256x16xf32> -> vector<256x16xf32>
    %69 = arith.addf %62, %68 : vector<256x16xf32>
    %c0_71 = arith.constant 0 : index
    %c0_72 = arith.constant 0 : index
    %70 = vector.load %arg9[%c0_71, %c0_72] : memref<256x1xf32, #tpu.memory_space<vmem>>, vector<256x1xf32>
    %71 = vector.broadcast %70 : vector<256x1xf32> to vector<256x16xf32>
    %72 = arith.addf %69, %71 : vector<256x16xf32>
    %cst_73 = arith.constant 0.000000e+00 : f32
    %73 = vector.broadcast %cst_73 : f32 to vector<256x16xf32>
    %74 = arith.maximumf %72, %73 : vector<256x16xf32>
    %75 = arith.truncf %74 : vector<256x16xf32> to vector<256x16xbf16>
    %c0_74 = arith.constant 0 : index
    %c0_75 = arith.constant 0 : index
    %c0_76 = arith.constant 0 : index
    %76 = vector.load %arg10[%c0_74, %c0_75, %c0_76] : memref<4x256x256xbf16, #tpu.memory_space<vmem>>, vector<1x256x256xbf16>
    %77 = vector.shape_cast %76 : vector<1x256x256xbf16> to vector<256x256xbf16>
    %cst_77 = arith.constant dense<0.000000e+00> : vector<256x16xf32>
    %78 = tpu.matmul %77, %75, %cst_77 {dimension_numbers = #tpu.dot_dimension_numbers<[1], [0], [0], [1], [0, 0, 1, 1], [], []>} : vector<256x256xbf16>, vector<256x16xbf16>, vector<256x16xf32> -> vector<256x16xf32>
    %c0_78 = arith.constant 0 : index
    %c0_79 = arith.constant 0 : index
    %c0_80 = arith.constant 0 : index
    %79 = vector.load %arg11[%c0_78, %c0_79, %c0_80] : memref<4x16x32xf32, #tpu.memory_space<vmem>>, vector<1x16x32xf32>
    %80 = vector.shape_cast %79 : vector<1x16x32xf32> to vector<16x32xf32>
    %cst_81 = arith.constant dense<0.000000e+00> : vector<256x32xf32>
    %81 = tpu.matmul %78, %80, %cst_81 {dimension_numbers = #tpu.dot_dimension_numbers<[1], [0], [0], [1], [0, 0, 1, 1], [], []>} : vector<256x16xf32>, vector<16x32xf32>, vector<256x32xf32> -> vector<256x32xf32>
    %c1_82 = arith.constant 1 : index
    %c0_83 = arith.constant 0 : index
    %c0_84 = arith.constant 0 : index
    %82 = vector.load %arg10[%c1_82, %c0_83, %c0_84] : memref<4x256x256xbf16, #tpu.memory_space<vmem>>, vector<1x256x256xbf16>
    %83 = vector.shape_cast %82 : vector<1x256x256xbf16> to vector<256x256xbf16>
    %cst_85 = arith.constant dense<0.000000e+00> : vector<256x16xf32>
    %84 = tpu.matmul %83, %75, %cst_85 {dimension_numbers = #tpu.dot_dimension_numbers<[1], [0], [0], [1], [0, 0, 1, 1], [], []>} : vector<256x256xbf16>, vector<256x16xbf16>, vector<256x16xf32> -> vector<256x16xf32>
    %c1_86 = arith.constant 1 : index
    %c0_87 = arith.constant 0 : index
    %c0_88 = arith.constant 0 : index
    %85 = vector.load %arg11[%c1_86, %c0_87, %c0_88] : memref<4x16x32xf32, #tpu.memory_space<vmem>>, vector<1x16x32xf32>
    %86 = vector.shape_cast %85 : vector<1x16x32xf32> to vector<16x32xf32>
    %cst_89 = arith.constant dense<0.000000e+00> : vector<256x32xf32>
    %87 = tpu.matmul %84, %86, %cst_89 {dimension_numbers = #tpu.dot_dimension_numbers<[1], [0], [0], [1], [0, 0, 1, 1], [], []>} : vector<256x16xf32>, vector<16x32xf32>, vector<256x32xf32> -> vector<256x32xf32>
    %88 = arith.addf %81, %87 : vector<256x32xf32>
    %c2_90 = arith.constant 2 : index
    %c0_91 = arith.constant 0 : index
    %c0_92 = arith.constant 0 : index
    %89 = vector.load %arg10[%c2_90, %c0_91, %c0_92] : memref<4x256x256xbf16, #tpu.memory_space<vmem>>, vector<1x256x256xbf16>
    %90 = vector.shape_cast %89 : vector<1x256x256xbf16> to vector<256x256xbf16>
    %cst_93 = arith.constant dense<0.000000e+00> : vector<256x16xf32>
    %91 = tpu.matmul %90, %75, %cst_93 {dimension_numbers = #tpu.dot_dimension_numbers<[1], [0], [0], [1], [0, 0, 1, 1], [], []>} : vector<256x256xbf16>, vector<256x16xbf16>, vector<256x16xf32> -> vector<256x16xf32>
    %c2_94 = arith.constant 2 : index
    %c0_95 = arith.constant 0 : index
    %c0_96 = arith.constant 0 : index
    %92 = vector.load %arg11[%c2_94, %c0_95, %c0_96] : memref<4x16x32xf32, #tpu.memory_space<vmem>>, vector<1x16x32xf32>
    %93 = vector.shape_cast %92 : vector<1x16x32xf32> to vector<16x32xf32>
    %cst_97 = arith.constant dense<0.000000e+00> : vector<256x32xf32>
    %94 = tpu.matmul %91, %93, %cst_97 {dimension_numbers = #tpu.dot_dimension_numbers<[1], [0], [0], [1], [0, 0, 1, 1], [], []>} : vector<256x16xf32>, vector<16x32xf32>, vector<256x32xf32> -> vector<256x32xf32>
    %95 = arith.addf %88, %94 : vector<256x32xf32>
    %c3_98 = arith.constant 3 : index
    %c0_99 = arith.constant 0 : index
    %c0_100 = arith.constant 0 : index
    %96 = vector.load %arg10[%c3_98, %c0_99, %c0_100] : memref<4x256x256xbf16, #tpu.memory_space<vmem>>, vector<1x256x256xbf16>
    %97 = vector.shape_cast %96 : vector<1x256x256xbf16> to vector<256x256xbf16>
    %cst_101 = arith.constant dense<0.000000e+00> : vector<256x16xf32>
    %98 = tpu.matmul %97, %75, %cst_101 {dimension_numbers = #tpu.dot_dimension_numbers<[1], [0], [0], [1], [0, 0, 1, 1], [], []>} : vector<256x256xbf16>, vector<256x16xbf16>, vector<256x16xf32> -> vector<256x16xf32>
    %c3_102 = arith.constant 3 : index
    %c0_103 = arith.constant 0 : index
    %c0_104 = arith.constant 0 : index
    %99 = vector.load %arg11[%c3_102, %c0_103, %c0_104] : memref<4x16x32xf32, #tpu.memory_space<vmem>>, vector<1x16x32xf32>
    %100 = vector.shape_cast %99 : vector<1x16x32xf32> to vector<16x32xf32>
    %cst_105 = arith.constant dense<0.000000e+00> : vector<256x32xf32>
    %101 = tpu.matmul %98, %100, %cst_105 {dimension_numbers = #tpu.dot_dimension_numbers<[1], [0], [0], [1], [0, 0, 1, 1], [], []>} : vector<256x16xf32>, vector<16x32xf32>, vector<256x32xf32> -> vector<256x32xf32>
    %102 = arith.addf %95, %101 : vector<256x32xf32>
    %c0_106 = arith.constant 0 : index
    %c0_107 = arith.constant 0 : index
    %103 = vector.load %arg12[%c0_106, %c0_107] : memref<256x1xf32, #tpu.memory_space<vmem>>, vector<256x1xf32>
    %104 = vector.broadcast %103 : vector<256x1xf32> to vector<256x32xf32>
    %105 = arith.addf %102, %104 : vector<256x32xf32>
    %cst_108 = arith.constant 0.000000e+00 : f32
    %106 = vector.broadcast %cst_108 : f32 to vector<256x32xf32>
    %107 = arith.maximumf %105, %106 : vector<256x32xf32>
    %108 = arith.truncf %107 : vector<256x32xf32> to vector<256x32xbf16>
    %c0_109 = arith.constant 0 : index
    %c0_110 = arith.constant 0 : index
    %c0_111 = arith.constant 0 : index
    %109 = vector.load %arg13[%c0_109, %c0_110, %c0_111] : memref<4x64x256xbf16, #tpu.memory_space<vmem>>, vector<1x64x256xbf16>
    %110 = vector.shape_cast %109 : vector<1x64x256xbf16> to vector<64x256xbf16>
    %cst_112 = arith.constant dense<0.000000e+00> : vector<64x32xf32>
    %111 = tpu.matmul %110, %108, %cst_112 {dimension_numbers = #tpu.dot_dimension_numbers<[1], [0], [0], [1], [0, 0, 1, 1], [], []>} : vector<64x256xbf16>, vector<256x32xbf16>, vector<64x32xf32> -> vector<64x32xf32>
    %c0_113 = arith.constant 0 : index
    %c0_114 = arith.constant 0 : index
    %c0_115 = arith.constant 0 : index
    %112 = vector.load %arg14[%c0_113, %c0_114, %c0_115] : memref<4x32x64xf32, #tpu.memory_space<vmem>>, vector<1x32x64xf32>
    %113 = vector.shape_cast %112 : vector<1x32x64xf32> to vector<32x64xf32>
    %cst_116 = arith.constant dense<0.000000e+00> : vector<64x64xf32>
    %114 = tpu.matmul %111, %113, %cst_116 {dimension_numbers = #tpu.dot_dimension_numbers<[1], [0], [0], [1], [0, 0, 1, 1], [], []>} : vector<64x32xf32>, vector<32x64xf32>, vector<64x64xf32> -> vector<64x64xf32>
    %c1_117 = arith.constant 1 : index
    %c0_118 = arith.constant 0 : index
    %c0_119 = arith.constant 0 : index
    %115 = vector.load %arg13[%c1_117, %c0_118, %c0_119] : memref<4x64x256xbf16, #tpu.memory_space<vmem>>, vector<1x64x256xbf16>
    %116 = vector.shape_cast %115 : vector<1x64x256xbf16> to vector<64x256xbf16>
    %cst_120 = arith.constant dense<0.000000e+00> : vector<64x32xf32>
    %117 = tpu.matmul %116, %108, %cst_120 {dimension_numbers = #tpu.dot_dimension_numbers<[1], [0], [0], [1], [0, 0, 1, 1], [], []>} : vector<64x256xbf16>, vector<256x32xbf16>, vector<64x32xf32> -> vector<64x32xf32>
    %c1_121 = arith.constant 1 : index
    %c0_122 = arith.constant 0 : index
    %c0_123 = arith.constant 0 : index
    %118 = vector.load %arg14[%c1_121, %c0_122, %c0_123] : memref<4x32x64xf32, #tpu.memory_space<vmem>>, vector<1x32x64xf32>
    %119 = vector.shape_cast %118 : vector<1x32x64xf32> to vector<32x64xf32>
    %cst_124 = arith.constant dense<0.000000e+00> : vector<64x64xf32>
    %120 = tpu.matmul %117, %119, %cst_124 {dimension_numbers = #tpu.dot_dimension_numbers<[1], [0], [0], [1], [0, 0, 1, 1], [], []>} : vector<64x32xf32>, vector<32x64xf32>, vector<64x64xf32> -> vector<64x64xf32>
    %121 = arith.addf %114, %120 : vector<64x64xf32>
    %c2_125 = arith.constant 2 : index
    %c0_126 = arith.constant 0 : index
    %c0_127 = arith.constant 0 : index
    %122 = vector.load %arg13[%c2_125, %c0_126, %c0_127] : memref<4x64x256xbf16, #tpu.memory_space<vmem>>, vector<1x64x256xbf16>
    %123 = vector.shape_cast %122 : vector<1x64x256xbf16> to vector<64x256xbf16>
    %cst_128 = arith.constant dense<0.000000e+00> : vector<64x32xf32>
    %124 = tpu.matmul %123, %108, %cst_128 {dimension_numbers = #tpu.dot_dimension_numbers<[1], [0], [0], [1], [0, 0, 1, 1], [], []>} : vector<64x256xbf16>, vector<256x32xbf16>, vector<64x32xf32> -> vector<64x32xf32>
    %c2_129 = arith.constant 2 : index
    %c0_130 = arith.constant 0 : index
    %c0_131 = arith.constant 0 : index
    %125 = vector.load %arg14[%c2_129, %c0_130, %c0_131] : memref<4x32x64xf32, #tpu.memory_space<vmem>>, vector<1x32x64xf32>
    %126 = vector.shape_cast %125 : vector<1x32x64xf32> to vector<32x64xf32>
    %cst_132 = arith.constant dense<0.000000e+00> : vector<64x64xf32>
    %127 = tpu.matmul %124, %126, %cst_132 {dimension_numbers = #tpu.dot_dimension_numbers<[1], [0], [0], [1], [0, 0, 1, 1], [], []>} : vector<64x32xf32>, vector<32x64xf32>, vector<64x64xf32> -> vector<64x64xf32>
    %128 = arith.addf %121, %127 : vector<64x64xf32>
    %c3_133 = arith.constant 3 : index
    %c0_134 = arith.constant 0 : index
    %c0_135 = arith.constant 0 : index
    %129 = vector.load %arg13[%c3_133, %c0_134, %c0_135] : memref<4x64x256xbf16, #tpu.memory_space<vmem>>, vector<1x64x256xbf16>
    %130 = vector.shape_cast %129 : vector<1x64x256xbf16> to vector<64x256xbf16>
    %cst_136 = arith.constant dense<0.000000e+00> : vector<64x32xf32>
    %131 = tpu.matmul %130, %108, %cst_136 {dimension_numbers = #tpu.dot_dimension_numbers<[1], [0], [0], [1], [0, 0, 1, 1], [], []>} : vector<64x256xbf16>, vector<256x32xbf16>, vector<64x32xf32> -> vector<64x32xf32>
    %c3_137 = arith.constant 3 : index
    %c0_138 = arith.constant 0 : index
    %c0_139 = arith.constant 0 : index
    %132 = vector.load %arg14[%c3_137, %c0_138, %c0_139] : memref<4x32x64xf32, #tpu.memory_space<vmem>>, vector<1x32x64xf32>
    %133 = vector.shape_cast %132 : vector<1x32x64xf32> to vector<32x64xf32>
    %cst_140 = arith.constant dense<0.000000e+00> : vector<64x64xf32>
    %134 = tpu.matmul %131, %133, %cst_140 {dimension_numbers = #tpu.dot_dimension_numbers<[1], [0], [0], [1], [0, 0, 1, 1], [], []>} : vector<64x32xf32>, vector<32x64xf32>, vector<64x64xf32> -> vector<64x64xf32>
    %135 = arith.addf %128, %134 : vector<64x64xf32>
    %136 = math.tanh %135 : vector<64x64xf32>
    %c0_141 = arith.constant 0 : index
    %c0_142 = arith.constant 0 : index
    %c0_143 = arith.constant 0 : index
    %137 = vector.load %arg15[%c0_141, %c0_142, %c0_143] : memref<1x64x64xf32, #tpu.memory_space<vmem>>, vector<1x64x64xf32>
    %138 = vector.shape_cast %137 : vector<1x64x64xf32> to vector<64x64xf32>
    %139 = vector.shape_cast %136 : vector<64x64xf32> to vector<1x64x64xf32>
    tpu.vector_store %arg15[%c0_141, %c0_142, %c0_143], %139 {strides = array<i32>} : memref<1x64x64xf32, #tpu.memory_space<vmem>>, vector<1x64x64xf32>,
    return
  }
  func.func @transform_0(%arg0: i32) -> (i32, i32, i32) {
    %c0_i32 = arith.constant 0 : i32
    %c0_i32_0 = arith.constant 0 : i32
    %c0_i32_1 = arith.constant 0 : i32
    return %arg0, %c0_i32, %c0_i32_0 : i32, i32, i32
  }
  func.func @transform_1(%arg0: i32) -> (i32, i32) {
    %c0_i32 = arith.constant 0 : i32
    %c0_i32_0 = arith.constant 0 : i32
    %c0_i32_1 = arith.constant 0 : i32
    return %c0_i32, %c0_i32_0 : i32, i32
  }
  func.func @transform_2(%arg0: i32) -> (i32, i32) {
    %c0_i32 = arith.constant 0 : i32
    %c0_i32_0 = arith.constant 0 : i32
    %c0_i32_1 = arith.constant 0 : i32
    return %c0_i32, %c0_i32_0 : i32, i32
  }
  func.func @transform_3(%arg0: i32) -> (i32, i32, i32) {
    %c0_i32 = arith.constant 0 : i32
    %c0_i32_0 = arith.constant 0 : i32
    %c0_i32_1 = arith.constant 0 : i32
    %c0_i32_2 = arith.constant 0 : i32
    return %c0_i32, %c0_i32_0, %c0_i32_1 : i32, i32, i32
  }
  func.func @transform_4(%arg0: i32) -> (i32, i32, i32) {
    %c0_i32 = arith.constant 0 : i32
    %c0_i32_0 = arith.constant 0 : i32
    %c0_i32_1 = arith.constant 0 : i32
    %c0_i32_2 = arith.constant 0 : i32
    return %c0_i32, %c0_i32_0, %c0_i32_1 : i32, i32, i32
  }
  func.func @transform_5(%arg0: i32) -> (i32, i32) {
    %c0_i32 = arith.constant 0 : i32
    %c0_i32_0 = arith.constant 0 : i32
    %c0_i32_1 = arith.constant 0 : i32
    return %c0_i32, %c0_i32_0 : i32, i32
  }
  func.func @transform_6(%arg0: i32) -> (i32, i32, i32) {
    %c0_i32 = arith.constant 0 : i32
    %c0_i32_0 = arith.constant 0 : i32
    %c0_i32_1 = arith.constant 0 : i32
    %c0_i32_2 = arith.constant 0 : i32
    return %c0_i32, %c0_i32_0, %c0_i32_1 : i32, i32, i32
  }
  func.func @transform_7(%arg0: i32) -> (i32, i32, i32) {
    %c0_i32 = arith.constant 0 : i32
    %c0_i32_0 = arith.constant 0 : i32
    %c0_i32_1 = arith.constant 0 : i32
    %c0_i32_2 = arith.constant 0 : i32
    return %c0_i32, %c0_i32_0, %c0_i32_1 : i32, i32, i32
  }
  func.func @transform_8(%arg0: i32) -> (i32, i32) {
    %c0_i32 = arith.constant 0 : i32
    %c0_i32_0 = arith.constant 0 : i32
    %c0_i32_1 = arith.constant 0 : i32
    return %c0_i32, %c0_i32_0 : i32, i32
  }
  func.func @transform_9(%arg0: i32) -> (i32, i32, i32) {
    %c0_i32 = arith.constant 0 : i32
    %c0_i32_0 = arith.constant 0 : i32
    %c0_i32_1 = arith.constant 0 : i32
    %c0_i32_2 = arith.constant 0 : i32
    return %c0_i32, %c0_i32_0, %c0_i32_1 : i32, i32, i32
  }
  func.func @transform_10(%arg0: i32) -> (i32, i32, i32) {
    %c0_i32 = arith.constant 0 : i32
    %c0_i32_0 = arith.constant 0 : i32
    %c0_i32_1 = arith.constant 0 : i32
    %c0_i32_2 = arith.constant 0 : i32
    return %c0_i32, %c0_i32_0, %c0_i32_1 : i32, i32, i32
  }
  func.func @transform_11(%arg0: i32) -> (i32, i32) {
    %c0_i32 = arith.constant 0 : i32
    %c0_i32_0 = arith.constant 0 : i32
    %c0_i32_1 = arith.constant 0 : i32
    return %c0_i32, %c0_i32_0 : i32, i32
  }
  func.func @transform_12(%arg0: i32) -> (i32, i32, i32) {
    %c0_i32 = arith.constant 0 : i32
    %c0_i32_0 = arith.constant 0 : i32
    %c0_i32_1 = arith.constant 0 : i32
    %c0_i32_2 = arith.constant 0 : i32
    return %c0_i32, %c0_i32_0, %c0_i32_1 : i32, i32, i32
  }
  func.func @transform_13(%arg0: i32) -> (i32, i32, i32) {
    %c0_i32 = arith.constant 0 : i32
    %c0_i32_0 = arith.constant 0 : i32
    %c0_i32_1 = arith.constant 0 : i32
    %c0_i32_2 = arith.constant 0 : i32
    return %c0_i32, %c0_i32_0, %c0_i32_1 : i32, i32, i32
  }
  func.func @transform_14(%arg0: i32) -> (i32, i32, i32) {
    %c0_i32 = arith.constant 0 : i32
    %c0_i32_0 = arith.constant 0 : i32
    %c0_i32_1 = arith.constant 0 : i32
    return %arg0, %c0_i32, %c0_i32_0 : i32, i32, i32
  }
}

</mosaic_0001>

<bundles_post_ra>
// kernel: netG_forward.1
= control target key start
LH: loop header
LB: loop body
LE: loop exit
PB: predicated region body
PF: predicated region fallthrough
CT: control target
= control target key end

     0   :  { %s19217_s0 = inlined_call_operand.vmem [shape: bf16[2,64,4], index: 0, kind: input, shape index: {}]   ;;  %s19218_s1 = inlined_call_operand.vmem [shape: bf16[256,64], index: 1, kind: input, shape index: {}]   ;;  %s19219_s2 = inlined_call_operand.vmem [shape: f32[256,1], index: 2, kind: input, shape index: {}]   ;;  %s19220_s3 = inlined_call_operand.vmem [shape: bf16[4,256,256], index: 3, kind: input, shape index: {}]   ;;  %s19221_s4 = inlined_call_operand.hbm [shape: f32[4,4,8], index: 4, kind: input, shape index: {}]   ;;  %s19222_s5 = inlined_call_operand.vmem [shape: f32[256,1], index: 5, kind: input, shape index: {}]   ;;  %s19223_s6 = inlined_call_operand.hbm [shape: bf16[4,256,256], index: 6, kind: input, shape index: {}]   ;;  %s19224_s7 = inlined_call_operand.vmem [shape: f32[4,8,16], index: 7, kind: input, shape index: {}]   ;;  %s19225_s8 = inlined_call_operand.vmem [shape: f32[256,1], index: 8, kind: input, shape index: {}]   ;;  %s19226_s9 = inlined_call_operand.hbm [shape: bf16[4,256,256], index: 9, kind: input, shape index: {}]   ;;  %s19227_s10 = inlined_call_operand.hbm [shape: f32[4,16,32], index: 10, kind: input, shape index: {}]   ;;  %s19228_s11 = inlined_call_operand.vmem [shape: f32[256,1], index: 11, kind: input, shape index: {}]   ;;  %s19229_s12 = inlined_call_operand.vmem [shape: bf16[4,64,256], index: 12, kind: input, shape index: {}]   ;;  %s19230_s13 = inlined_call_operand.hbm [shape: f32[4,32,64], index: 13, kind: input, shape index: {}]   ;;  %s19231_s14 = inlined_call_operand.hbm [shape: f32[2,64,64], index: 14, kind: output, shape index: {}]  }
   0x1   :  { %19251 = sst [smem:[#allocation24_spill]] %s19223_s6 }
   0x2   :  { %19252 = sst [smem:[#allocation25_spill]] %s19227_s10 }
   0x3   :  { %19253 = sst [smem:[#allocation26_spill]] %s19229_s12 }
   0x4   :  { %19254 = sst [smem:[#allocation27_spill]] %s19231_s14 }
   0x5   :  { %19 = vsyncpa [#allocation3], 0 }
   0x6   :  { %20 = vsyncpa [#allocation6], 0 }
   0x7   :  { %21 = vsyncpa [#allocation9], 0 }
   0x8   :  { %22 = vsyncpa [#allocation4], 0 }
   0x9   :  { %24 = vsyncpa [#allocation4 + $0x1], 0  ;;  %s16573_s29 = smov 0   ;;  %s16575_s30 = smov 0  }
   0xa   :  { %s16577_s15 = smov 0   ;;  %s16579_s16 = smov 0  }
   0xb LB: > { %19255 = sst [smem:[#allocation16_spill]] %s16471_s29  ;;  %s16594_s17 = sadd.s32 4294967295, %s16483_s16   ;;  %s16483_s16 = sphi %s16579_s16, %s19288_s16   ;;  %s16479_s15 = sphi %s16577_s15, %s19291_s15   ;;  %s16475_s30 = sphi %s16575_s30, %s19290_s30   ;;  %s16471_s29 = sphi %s16573_s29, %s19289_s29  }
   0xc   : > { %19256 = sst [smem:[#allocation17_spill]] %s16475_s30  ;;  %s11429_s18 = sadd.s32 4294967294, %s16483_s16  }
   0xd   : > { %19257 = sst [smem:[#allocation18_spill]] %s16479_s15  ;;  %s16598_s19 = sadd.s32 1, %s16483_s16  }
   0xe   : > { %19258 = sst [smem:[#allocation19_spill]] %s16483_s16  ;;  %s336_s20 = sadd.s32 1, %s16479_s15 }
   0xf   : > { %19259 = sst [smem:[#allocation20_spill]] %s16598_s19  ;;  %s333_s21 = ssub.s32 %s16483_s16, %s16598_s19 }
  0x10   : > { %p346_p0 = scmp.ne.s32.totalorder %s16479_s15, %s16475_s30  ;;  %p334_p1 = scmp.eq.s32.totalorder %s333_s21, 0 }
  0x11   : > { %p347_p2 = scmp.eq.s32.totalorder %s16594_s17, 1  ;;  %p352_p3 = scmp.ne.s32.totalorder %s16475_s30, %s16471_s29 }
  0x12   : > { %p353_p4 = scmp.eq.s32.totalorder %s11429_s18, 1  ;;  %p11430_p7 = scmp.ge.s32.totalorder %s16483_s16, 1 }
  0x13   : > { %s16609_s22 = scalar_select %p334_p1, %s16479_s15, %s336_s20  }
  0x14   : > { %p16611_p5 = por %p347_p2, %p346_p0  ;;  %p16615_p6 = por %p353_p4, %p352_p3 }
  0x15   : > { %19260 = sst [smem:[#allocation21_spill]] %s16609_s22  ;;  %p360_p8 = scmp.lt.s32.totalorder %s16483_s16, 3 }
  0x16   : > { %s19261_s23 = scalar_select %p16611_p5, 1, 0 }
  0x17   : > { %s19263_s24 = scalar_select %p16615_p6, 1, 0 }
  0x18   : > { %19262 = sst [smem:[#allocation22_spill]] %s19261_s23  ;;  %p19238_p9 = scmp.eq.s32.totalorder %s16594_s17, 0 }
  0x19   : > { %19264 = sst [smem:[#allocation23_spill]] %s19263_s24  ;;  %p16622_p10 = pnand %p11430_p7, %p360_p8 }
  0x1a   : > { %s16485_s26 = smov [#allocation5]   ;;  %s16486_s18 = smov [#allocation8]  }
  0x1b   : > { %s19265_s25 = scalar_select %p16622_p10, 1, 0 }
  0x1c   : > { %s397_s27 = sshll.u32 %s16485_s26, 4  ;;  %p15532_p11 = pneg %p16622_p10  ;;  %s16628_s27 = int_to_ptr.vmem [resolvable:$true] %s397_s27 }
  0x1d   : > { %s429_s20 = sshll.u32 %s16486_s18, 4  ;;  %s16487_s21 = smov [#allocation2]   ;;  %s16636_s20 = int_to_ptr.vmem [resolvable:$true] %s429_s20 }
  0x1e   : > { %p16632_p12 = pnand %p19238_p9, %p15532_p11  ;;  %s16638_s22 = sshll.u32 %s16487_s21, 4  ;;  %s382_s22 = int_to_ptr.vmem [resolvable:$true] %s16638_s22 }
  0x1f   : > { %s19267_s6 = sld [smem:[#allocation24_spill]] }
  0x20   : > { %p16648_p0 = pneg %p16632_p12 }
  0x25   : > { %s16269_s26 = scalar_lea.hbm %s19267_s6, 16384 }
  0x26   : > { %p16270_p13 = scmp.ne.s32.totalorder %s19267_s6, %s16269_s26  ;;  %p16276_p3 = scmp.lt.u32.totalorder %s16269_s26, %s19267_s6 }
  0x28   : > { %p16272_p1 = pnand %p16648_p0, %p16270_p13 }
  0x2a   : > { %p16273_p2 = pneg %p16272_p1 }
  0x2c   : > { %p16278_p4 = pnand %p16276_p3, %p16273_p2 }
  0x2e   : > { %16281 = shalt.err (!%p16278_p4)
}
  0x2f   : > { %s16282_s29 = scalar_lea.vmem %s16628_s27, 16384  ;;  %p16290_p9 = scmp.lt.s32.totalorder %s16628_s27, %s16628_s27 }
  0x30   : > { %p16283_p7 = scmp.ne.s32.totalorder %s16628_s27, %s16282_s29  ;;  %p16291_p6 = scmp.lt.s32.totalorder %s16282_s29, %s16282_s29 }
  0x32   : > { %p16285_p8 = pnand %p16283_p7, %p16648_p0  ;;  %p16292_p13 = por %p16291_p6, %p16290_p9 }
  0x34   : > { %p16286_p11 = pneg %p16285_p8 }
  0x36   : > { %p16293_p1 = pnand %p16292_p13, %p16286_p11 }
  0x38   : > { %16296 = shalt.err (!%p16293_p1)
}
  0x39   : > { %s19247_s15 = smov 128   ;;  %s19249_s19 = smov 8  }
  0x3a   : > { %15538 = dma.hbm_to_vmem [thread:$0]  (!%p16632_p12), %s19267_s6, 16384, %s16628_s27, [#allocation6], %s19247_s15, %s19247_s15, %s19249_s19  }
  0x3b   : > { %s19269_s10 = sld [smem:[#allocation25_spill]] }
  0x41   : > { %s16297_s29 = scalar_lea.hbm %s19269_s10, 1024 }
  0x42   : > { %p16298_p6 = scmp.ne.s32.totalorder %s19269_s10, %s16297_s29  ;;  %p16304_p3 = scmp.lt.u32.totalorder %s16297_s29, %s19269_s10 }
  0x44   : > { %p16300_p9 = pnand %p16298_p6, %p16648_p0 }
  0x46   : > { %p16301_p2 = pneg %p16300_p9 }
  0x48   : > { %p16306_p4 = pnand %p16304_p3, %p16301_p2 }
  0x4a   : > { %16309 = shalt.err (!%p16306_p4)
}
  0x4b   : > { %s16310_s27 = scalar_lea.vmem %s16636_s20, 1024  ;;  %p16318_p13 = scmp.lt.s32.totalorder %s16636_s20, %s16636_s20 }
  0x4c   : > { %p16311_p7 = scmp.ne.s32.totalorder %s16636_s20, %s16310_s27  ;;  %p16319_p1 = scmp.lt.s32.totalorder %s16310_s27, %s16310_s27 }
  0x4e   : > { %p16313_p8 = pnand %p16311_p7, %p16648_p0  ;;  %p16320_p6 = por %p16319_p1, %p16318_p13 }
  0x50   : > { %p16314_p11 = pneg %p16313_p8 }
  0x52   : > { %p16321_p9 = pnand %p16320_p6, %p16314_p11 }
  0x54   : > { %16324 = shalt.err (!%p16321_p9)
}
  0x55   : > { %15544 = dma.hbm_to_vmem [thread:$0]  (!%p16632_p12), %s19269_s10, 1024, %s16636_s20, [#allocation9], %s19247_s15, %s19247_s15, %s19249_s19  }
  0x56   : > { %s16325_s24 = scalar_lea.hbm %s19221_s4, 256 }
  0x57   : > { %p16326_p2 = scmp.ne.s32.totalorder %s19221_s4, %s16325_s24  ;;  %p16332_p7 = scmp.lt.u32.totalorder %s16325_s24, %s19221_s4 }
  0x59   : > { %p16328_p3 = pnand %p16326_p2, %p16648_p0 }
  0x5b   : > { %p16329_p4 = pneg %p16328_p3 }
  0x5d   : > { %p16334_p8 = pnand %p16332_p7, %p16329_p4 }
  0x5f   : > { %16337 = shalt.err (!%p16334_p8)
}
  0x60   : > { %s16338_s27 = scalar_lea.vmem %s382_s22, 256  ;;  %p16346_p6 = scmp.lt.s32.totalorder %s382_s22, %s382_s22 }
  0x61   : > { %p16339_p11 = scmp.ne.s32.totalorder %s382_s22, %s16338_s27  ;;  %p16347_p9 = scmp.lt.s32.totalorder %s16338_s27, %s16338_s27 }
  0x63   : > { %p16341_p13 = pnand %p16339_p11, %p16648_p0  ;;  %p16348_p5 = por %p16347_p9, %p16346_p6 }
  0x65   : > { %p16342_p1 = pneg %p16341_p13 }
  0x67   : > { %p16349_p10 = pnand %p16348_p5, %p16342_p1 }
  0x69   : > { %16352 = shalt.err (!%p16349_p10)
}
  0x6a   : > { %s16490_s20 = smov 64   ;;  %s16491_s12 = smov 4  }
  0x6b   : > { %15535 = dma.hbm_to_vmem [thread:$0]  (!%p16632_p12), %s19221_s4, 256, %s382_s22, [#allocation3], %s16490_s20, %s16490_s20, %s16491_s12  }
  0x6c   : > { %s16492_s23 = smov [#allocation7]   ;;  %s16493_s26 = smov [#allocation10]  }
  0x6d   : > { %s416_s24 = sshll.u32 %s16492_s23, 4  ;;  %s448_s18 = sshll.u32 %s16493_s26, 4  ;;  %s417_s24 = int_to_ptr.vmem [resolvable:$true] %s416_s24  ;;  %s449_s18 = int_to_ptr.vmem [resolvable:$true] %s448_s18 }
  0x6e   : > { %s16353_s27 = scalar_lea.hbm %s19226_s9, 16384 }
  0x6f   : > { %p16354_p5 = scmp.ne.s32.totalorder %s19226_s9, %s16353_s27  ;;  %p16360_p3 = scmp.lt.u32.totalorder %s16353_s27, %s19226_s9 }
  0x71   : > { %p16356_p10 = pnand %p16354_p5, %p16648_p0 }
  0x73   : > { %p16357_p2 = pneg %p16356_p10 }
  0x75   : > { %p16362_p4 = pnand %p16360_p3, %p16357_p2 }
  0x77   : > { %16365 = shalt.err (!%p16362_p4)
}
  0x78   : > { %s16366_s22 = scalar_lea.vmem %s417_s24, 16384  ;;  %p16374_p13 = scmp.lt.s32.totalorder %s417_s24, %s417_s24 }
  0x79   : > { %p16367_p7 = scmp.ne.s32.totalorder %s417_s24, %s16366_s22  ;;  %p16375_p1 = scmp.lt.s32.totalorder %s16366_s22, %s16366_s22 }
  0x7b   : > { %p16369_p8 = pnand %p16367_p7, %p16648_p0  ;;  %p16376_p6 = por %p16375_p1, %p16374_p13 }
  0x7d   : > { %p16370_p11 = pneg %p16369_p8 }
  0x7f   : > { %p16377_p9 = pnand %p16376_p6, %p16370_p11 }
  0x81   : > { %16380 = shalt.err (!%p16377_p9)
}
  0x82   : > { %s19270_s15 = smov 8   ;;  %s19271_s19 = smov 128  }
  0x83   : > { %15541 = dma.hbm_to_vmem [thread:$0]  (!%p16632_p12), %s19226_s9, 16384, %s417_s24, [#allocation6], %s19271_s19, %s19271_s19, %s19270_s15  }
  0x84   : > { %s16381_s14 = scalar_lea.hbm %s19230_s13, 2048 }
  0x85   : > { %p16382_p5 = scmp.ne.s32.totalorder %s19230_s13, %s16381_s14  ;;  %p16388_p3 = scmp.lt.u32.totalorder %s16381_s14, %s19230_s13 }
  0x87   : > { %p16384_p10 = pnand %p16382_p5, %p16648_p0 }
  0x89   : > { %p16385_p2 = pneg %p16384_p10 }
  0x8b   : > { %p16390_p4 = pnand %p16388_p3, %p16385_p2 }
  0x8d   : > { %16393 = shalt.err (!%p16390_p4)
}
  0x8e   : > { %s16394_s29 = scalar_lea.vmem %s449_s18, 2048  ;;  %p16402_p13 = scmp.lt.s32.totalorder %s449_s18, %s449_s18 }
  0x8f   : > { %p16395_p7 = scmp.ne.s32.totalorder %s449_s18, %s16394_s29  ;;  %p16403_p1 = scmp.lt.s32.totalorder %s16394_s29, %s16394_s29 }
  0x91   : > { %p16397_p8 = pnand %p16395_p7, %p16648_p0  ;;  %p16404_p6 = por %p16403_p1, %p16402_p13 }
  0x93   : > { %p16398_p11 = pneg %p16397_p8 }
  0x95   : > { %p16405_p9 = pnand %p16404_p6, %p16398_p11 }
  0x97   : > { %16408 = shalt.err (!%p16405_p9)
}
  0x98   : > { %15547 = dma.hbm_to_vmem [thread:$0]  (!%p16632_p12), %s19230_s13, 2048, %s449_s18, [#allocation9], %s19271_s19, %s19271_s19, %s19270_s15  }
  0x99   : > { %p19272_p5 = scmp.ne.s32.totalorder %s19265_s25, 0 }
  0x9a   : > { %p19273_p0 = scmp.eq.s32.totalorder (!%p19272_p5), %s16594_s17, 0 }
  0x9b   : > { %472 = sbr.rel (%p19272_p5) target bundleno = 3501 (0xdad), region = 76 }
  0xa2   : > { %16454 = dma.done.wait (%p19273_p0), [#allocation3], 256   ;;  %p19274_p10 = pmov %p19273_p0 }
  0xa3   : > { %p19275_p2 = pmov %p19273_p0 }
  0xa4   : > { %16456 = vsyncadd (%p19274_p10), [#allocation3], 4294967040 }
  0xa5   : > { %16458 = dma.done.wait (%p19275_p2), [#allocation6], 32768   ;;  %p19276_p3 = pmov %p19273_p0 }
  0xa6   : > { %p19277_p4 = pmov %p19273_p0 }
  0xa7   : > { %16460 = vsyncadd (%p19276_p3), [#allocation6], 4294934528 }
  0xa8   : > { %16462 = dma.done.wait (%p19277_p4), [#allocation9], 3072   ;;  %p19278_p12 = pmov %p19273_p0 }
  0xa9   : > { %p534_p7 = scmp.lt.s32.totalorder %s16594_s17, 1  ;;  %v16494_v0 = vmov 0   ;;  %v596_v1 = vld [vmem:[%s19219_s2 + $0x80] sm:$0xff]  ;;  %v597_v4 = vld [vmem:[%s19219_s2 + $0x88] sm:$0xff]  ;;  %v598_v7 = vld [vmem:[%s19219_s2 + $0x90] sm:$0xff]  ;;  %vm876_vm0 = vcmask 523264  }
  0xaa   : > { %16464 = vsyncadd (%p19278_p12), [#allocation9], 4294964224  ;;  %15608 = vset.pattern.permute.xlu1 %v16494_v0  ;;  %15607 = vset.pattern.permute.xlu0 %v16494_v0  ;;  %v580_v2 = vld [vmem:[%s19219_s2] sm:$0xff]  ;;  %v581_v5 = vld [vmem:[%s19219_s2 + $0x8] sm:$0xff]  ;;  %vm1941_vm1 = vcmask 1043456   ;;  %vm1844_vm2 = vcmask 31744  }
  0xab   : > { %s535_s16 = scalar_select %p534_p7, %s16594_s17, 1  ;;  %694 = vperm.xlu0 %15607, %v596_v1   ;;  %614 = vperm.xlu1 %15608, %v580_v2   ;;  %v599_v8 = vld [vmem:[%s19219_s2 + $0x98] sm:$0xff]  ;;  %v15613_v10 = vld [vmem:[%s19218_s1] sm:$0xff]   ;;  %v582_v11 = vld [vmem:[%s19219_s2 + $0x10] sm:$0xff]  ;;  %vm4900_vm3 = vcmask 64512   ;;  %vm7945_vm4 = vcmask 130048  }
  0xac   : > { %v583_v12 = vld [vmem:[%s19219_s2 + $0x18] sm:$0xff]  ;;  %14428 = vmatprep.mubr.msk.bf16.mxu0 %vm876_vm0, %v15613_v10  ;;  %v600_v14 = vld [vmem:[%s19219_s2 + $0xa0] sm:$0xff]  ;;  %v601_v15 = vld [vmem:[%s19219_s2 + $0xa8] sm:$0xff]  ;;  %s19279_s20 = sld [smem:[#allocation26_spill]]  ;;  %vm10516_vm5 = vcmask 261120   ;;  %s19280_s24 = sld [smem:[#allocation17_spill]] }
  0xad   : > { %s12446_s25 = sshll.u32 %s535_s16, 5  ;;  %v15614_v16 = vld [vmem:[%s19218_s1 + $0x8] sm:$0xff]   ;;  %v15615_v17 = vld [vmem:[%s19218_s1 + $0x10] sm:$0xff]   ;;  %v584_v18 = vld [vmem:[%s19219_s2 + $0x20] sm:$0xff]  ;;  %s19281_s28 = sld [smem:[#allocation22_spill]] }
  0xae   : > { %s538_s22 = scalar_lea.vmem %s19217_s0, %s12446_s25  ;;  %v585_v19 = vld [vmem:[%s19219_s2 + $0x28] sm:$0xff]  ;;  %v602_v20 = vld [vmem:[%s19219_s2 + $0xb0] sm:$0xff]  ;;  %v603_v21 = vld [vmem:[%s19219_s2 + $0xb8] sm:$0xff]  ;;  %s12447_s18 = sshll.u32 %s16594_s17, 10 }
  0xaf   : > { %v15609_v3 = vld [vmem:[%s538_s22] sm:$0xff]   ;;  %v15610_v6 = vld [vmem:[%s538_s22 + $0x8] sm:$0xff]   ;;  %699 = vperm.xlu0 %15607, %v597_v4   ;;  %619 = vperm.xlu1 %15608, %v581_v5   ;;  %v15611_v9 = vld [vmem:[%s538_s22 + $0x10] sm:$0xff]   ;;  %s19282_s10 = sld [smem:[#allocation27_spill]]  ;;  %s16495_s14 = smov [#allocation11]  }
  0xb0   : > { %14420 = vmatprep.subr.bf16.mxu0 %v15609_v3  ;;  %v15612_v13 = vld [vmem:[%s538_s22 + $0x18] sm:$0xff]   ;;  %v15617_v23 = vld [vmem:[%s19218_s1 + $0x20] sm:$0xff]   ;;  %v586_v24 = vld [vmem:[%s19219_s2 + $0x30] sm:$0xff]  ;;  %s16413_s30 = sshll.u32 %s16495_s14, 4  ;;  %s16414_s30 = int_to_ptr.vmem [resolvable:$false] %s16413_s30 }
  0xb1   : > { %14421 = vmatpush3.bf16.msra.mxu0 %v15609_v3  ;;  %v15616_v22 = vld [vmem:[%s19218_s1 + $0x18] sm:$0xff]   ;;  %v604_v26 = vld [vmem:[%s19219_s2 + $0xc0] sm:$0xff]  ;;  %v605_v27 = vld [vmem:[%s19219_s2 + $0xc8] sm:$0xff]  ;;  %s16415_s23 = scalar_lea.vmem %s16414_s30, 2048 }
  0xb2   : > { %14422 = vmatprep.subr.bf16.mxu0 %v15610_v6  ;;  %v587_v25 = vld [vmem:[%s19219_s2 + $0x38] sm:$0xff]  ;;  %v15618_v28 = vld [vmem:[%s19218_s1 + $0x28] sm:$0xff]   ;;  %v15619_v29 = vld [vmem:[%s19218_s1 + $0x30] sm:$0xff]   ;;  %s531_s27 = sand.u32 1, %s19280_s24  }
  0xb3   : > { %704 = vperm.xlu0 %15607, %v598_v7   ;;  %709 = vperm.xlu1 %15608, %v599_v8   ;;  %v588_v30 = vld [vmem:[%s19219_s2 + $0x40] sm:$0xff]  ;;  %v589_v31 = vld [vmem:[%s19219_s2 + $0x48] sm:$0xff]  ;;  %v606_v32 = vld [vmem:[%s19219_s2 + $0xd0] sm:$0xff]  ;;  %s11443_s16 = sshll.u32 %s531_s27, 6  ;;  %s19176_s22 = scalar_lea.sflag [#allocation4], %s531_s27 }
  0xb4   : > { %v607_v33 = vld [vmem:[%s19219_s2 + $0xd8] sm:$0xff]  ;;  %v15621_v35 = vld [vmem:[%s19218_s1 + $0x40] sm:$0xff]   ;;  %v590_v36 = vld [vmem:[%s19219_s2 + $0x50] sm:$0xff]  ;;  %s533_s25 = scalar_lea.vmem [#allocation11], %s11443_s16  ;;  %p19283_p11 = scmp.ne.s32.totalorder %s19281_s28, 0 }
  0xb5   : > { %14423 = vmatpush3.bf16.msra.mxu0 %v15610_v6  ;;  %v15620_v34 = vld [vmem:[%s19218_s1 + $0x38] sm:$0xff]   ;;  %v608_v38 = vld [vmem:[%s19219_s2 + $0xe0] sm:$0xff]  ;;  %v609_v39 = vld [vmem:[%s19219_s2 + $0xe8] sm:$0xff]  ;;  %s11317_s15 = sshll.u32 %s533_s25, 4  ;;  %s19168_s12 = scalar_lea.hbm %s19282_s10, %s12447_s18  ;;  %s19170_s15 = int_to_ptr.vmem [resolvable:$true] %s11317_s15 }
  0xb6   : > { %14424 = vmatprep.subr.bf16.mxu0 %v15611_v9  ;;  %v591_v37 = vld [vmem:[%s19219_s2 + $0x58] sm:$0xff]  ;;  %v15622_v40 = vld [vmem:[%s19218_s1 + $0x48] sm:$0xff]   ;;  %v15623_v41 = vld [vmem:[%s19218_s1 + $0x50] sm:$0xff]   ;;  %s16409_s17 = scalar_lea.vmem %s19170_s15, 1024  ;;  %p16416_p6 = scmp.lt.s32.totalorder %s19170_s15, %s16414_s30 }
  0xb7   : > { %624 = vperm.xlu0 %15607, %v582_v11   ;;  %629 = vperm.xlu1 %15608, %v583_v12   ;;  %v592_v42 = vld [vmem:[%s19219_s2 + $0x60] sm:$0xff]  ;;  %v593_v43 = vld [vmem:[%s19219_s2 + $0x68] sm:$0xff]  ;;  %v610_v44 = vld [vmem:[%s19219_s2 + $0xf0] sm:$0xff]  ;;  %p16410_p8 = scmp.ne.s32.totalorder %s19170_s15, %s16409_s17  ;;  %p16417_p9 = scmp.lt.s32.totalorder %s16415_s23, %s16409_s17 }
  0xb8   : > { %v611_v45 = vld [vmem:[%s19219_s2 + $0xf8] sm:$0xff]  ;;  %v594_v47 = vld [vmem:[%s19219_s2 + $0x70] sm:$0xff]  ;;  %v15625_v48 = vld [vmem:[%s19218_s1 + $0x60] sm:$0xff]  }
  0xb9   : > { %14425 = vmatpush3.bf16.msra.mxu0 %v15611_v9  ;;  %v15624_v46 = vld [vmem:[%s19218_s1 + $0x58] sm:$0xff]   ;;  %v3934_v50 = vld [vmem:[%s19222_s5 + $0x80] sm:$0xff]  ;;  %v3935_v51 = vld [vmem:[%s19222_s5 + $0x88] sm:$0xff]  ;;  %p16411_p13 = pnand %p16410_p8, %p19283_p11  ;;  %p16418_p5 = por %p16417_p9, %p16416_p6 }
  0xba   : > { %14426 = vmatprep.subr.bf16.mxu0 %v15612_v13  ;;  %v595_v49 = vld [vmem:[%s19219_s2 + $0x78] sm:$0xff]  ;;  %v15626_v52 = vld [vmem:[%s19218_s1 + $0x68] sm:$0xff]   ;;  %v3918_v53 = vld [vmem:[%s19222_s5] sm:$0xff] }
  0xbb   : > { %714 = vperm.xlu0 %15607, %v600_v14   ;;  %719 = vperm.xlu1 %15608, %v601_v15   ;;  %v15627_v54 = vld [vmem:[%s19218_s1 + $0x70] sm:$0xff]   ;;  %v3919_v55 = vld [vmem:[%s19222_s5 + $0x8] sm:$0xff]  ;;  %v3937_v57 = vld [vmem:[%s19222_s5 + $0x98] sm:$0xff]  ;;  %p16412_p1 = pneg %p16411_p13 }
  0xbc   : > { %v3936_v56 = vld [vmem:[%s19222_s5 + $0x90] sm:$0xff]  ;;  %v15628_v58 = vld [vmem:[%s19218_s1 + $0x78] sm:$0xff]   ;;  %v3938_v61 = vld [vmem:[%s19222_s5 + $0xa0] sm:$0xff] }
  0xbd   : > { %14427 = vmatpush3.bf16.msra.mxu0 %v15612_v13  ;;  %v3920_v59 = vld [vmem:[%s19222_s5 + $0x10] sm:$0xff]  ;;  %v3921_v60 = vld [vmem:[%s19222_s5 + $0x18] sm:$0xff]  ;;  %v3939_v62 = vld [vmem:[%s19222_s5 + $0xa8] sm:$0xff]  ;;  %p16419_p0 = pnand %p16418_p5, %p16412_p1 }
  0xbe   : > { %v3922_v63 = vld [vmem:[%s19222_s5 + $0x20] sm:$0xff]  ;;  %v3923_v0 = vld [vmem:[%s19222_s5 + $0x28] sm:$0xff]  ;;  %v3940_v1 = vld [vmem:[%s19222_s5 + $0xb0] sm:$0xff] }
  0xbf   : > { %634 = vperm.xlu0 %15607, %v584_v18   ;;  %639 = vperm.xlu1 %15608, %v585_v19   ;;  %v3941_v2 = vld [vmem:[%s19222_s5 + $0xb8] sm:$0xff]  ;;  %v3924_v3 = vld [vmem:[%s19222_s5 + $0x30] sm:$0xff]  ;;  %v3942_v5 = vld [vmem:[%s19222_s5 + $0xc0] sm:$0xff] }
  0xc0   : > { %14429 = vmatmul.mubr.msk.bf16.vlgmr.msra.gmra.mrb[0].mxu0 %vm876_vm0, %v15614_v16  ;;  %v3925_v4 = vld [vmem:[%s19222_s5 + $0x38] sm:$0xff]  ;;  %v3943_v6 = vld [vmem:[%s19222_s5 + $0xc8] sm:$0xff]  ;;  %v3926_v7 = vld [vmem:[%s19222_s5 + $0x40] sm:$0xff] }
  0xc1   : > { %14432 = vmatprep.mubr.msk.bf16.mxu0 %vm876_vm0, %v15615_v17  ;;  %v3927_v8 = vld [vmem:[%s19222_s5 + $0x48] sm:$0xff]  ;;  %v3944_v9 = vld [vmem:[%s19222_s5 + $0xd0] sm:$0xff]  ;;  %v3945_v10 = vld [vmem:[%s19222_s5 + $0xd8] sm:$0xff] }
  0xc2   : > { %v3928_v11 = vld [vmem:[%s19222_s5 + $0x50] sm:$0xff]  ;;  %v3929_v12 = vld [vmem:[%s19222_s5 + $0x58] sm:$0xff]  ;;  %v3946_v13 = vld [vmem:[%s19222_s5 + $0xe0] sm:$0xff] }
  0xc3   : > { %724 = vperm.xlu0 %15607, %v602_v20   ;;  %729 = vperm.xlu1 %15608, %v603_v21   ;;  %v3947_v14 = vld [vmem:[%s19222_s5 + $0xe8] sm:$0xff]  ;;  %v3930_v15 = vld [vmem:[%s19222_s5 + $0x60] sm:$0xff]  ;;  %v3948_v17 = vld [vmem:[%s19222_s5 + $0xf0] sm:$0xff] }
  0xc4   : > { %v3931_v16 = vld [vmem:[%s19222_s5 + $0x68] sm:$0xff]  ;;  %v3949_v18 = vld [vmem:[%s19222_s5 + $0xf8] sm:$0xff]  ;;  %v3932_v19 = vld [vmem:[%s19222_s5 + $0x70] sm:$0xff] }
  0xc5   : > { %v3933_v20 = vld [vmem:[%s19222_s5 + $0x78] sm:$0xff]  ;;  %v6977_v21 = vld [vmem:[%s19225_s8 + $0x80] sm:$0xff] }
  0xc7   : > { %644 = vperm.xlu0 %15607, %v586_v24   ;;  %649 = vperm.xlu1 %15608, %v587_v25   ;;  %v6962_v24 = vld [vmem:[%s19225_s8 + $0x8] sm:$0xff]  ;;  %v6979_v25 = vld [vmem:[%s19225_s8 + $0x90] sm:$0xff] }
  0xc8   : > { %14433 = vmatmul.mubr.msk.bf16.gmra.mrb[4].mxu0 %vm876_vm0, %v15616_v22  ;;  %v6978_v22 = vld [vmem:[%s19225_s8 + $0x88] sm:$0xff] }
  0xc9   : > { %14436 = vmatprep.mubr.msk.bf16.mxu0 %vm876_vm0, %v15617_v23  ;;  %v6961_v23 = vld [vmem:[%s19225_s8] sm:$0xff] }
  0xcb   : > { %734 = vperm.xlu0 %15607, %v604_v26   ;;  %739 = vperm.xlu1 %15608, %v605_v27   ;;  %v6980_v26 = vld [vmem:[%s19225_s8 + $0x98] sm:$0xff]  ;;  %v6963_v27 = vld [vmem:[%s19225_s8 + $0x10] sm:$0xff] }
  0xcf   : > { %654 = vperm.xlu0 %15607, %v588_v30   ;;  %659 = vperm.xlu1 %15608, %v589_v31   ;;  %v6982_v30 = vld [vmem:[%s19225_s8 + $0xa8] sm:$0xff]  ;;  %v6965_v31 = vld [vmem:[%s19225_s8 + $0x20] sm:$0xff] }
  0xd0   : > { %14437 = vmatmul.mubr.msk.bf16.gmra.mrb[8].mxu0 %vm876_vm0, %v15618_v28  ;;  %v6964_v28 = vld [vmem:[%s19225_s8 + $0x18] sm:$0xff] }
  0xd1   : > { %14440 = vmatprep.mubr.msk.bf16.mxu0 %vm876_vm0, %v15619_v29  ;;  %v6981_v29 = vld [vmem:[%s19225_s8 + $0xa0] sm:$0xff] }
  0xd3   : > { %744 = vperm.xlu0 %15607, %v606_v32   ;;  %749 = vperm.xlu1 %15608, %v607_v33   ;;  %v6966_v32 = vld [vmem:[%s19225_s8 + $0x28] sm:$0xff]  ;;  %v6983_v33 = vld [vmem:[%s19225_s8 + $0xb0] sm:$0xff] }
  0xd7   : > { %664 = vperm.xlu0 %15607, %v590_v36   ;;  %669 = vperm.xlu1 %15608, %v591_v37   ;;  %v6968_v36 = vld [vmem:[%s19225_s8 + $0x38] sm:$0xff]  ;;  %v6985_v37 = vld [vmem:[%s19225_s8 + $0xc0] sm:$0xff] }
  0xd8   : > { %14441 = vmatmul.mubr.msk.bf16.gmra.mrb[12].mxu0 %vm876_vm0, %v15620_v34  ;;  %v6984_v34 = vld [vmem:[%s19225_s8 + $0xb8] sm:$0xff] }
  0xd9   : > { %14444 = vmatprep.mubr.msk.bf16.mxu0 %vm876_vm0, %v15621_v35  ;;  %v6967_v35 = vld [vmem:[%s19225_s8 + $0x30] sm:$0xff] }
  0xdb   : > { %754 = vperm.xlu0 %15607, %v608_v38   ;;  %759 = vperm.xlu1 %15608, %v609_v39   ;;  %v6986_v38 = vld [vmem:[%s19225_s8 + $0xc8] sm:$0xff]  ;;  %v6969_v39 = vld [vmem:[%s19225_s8 + $0x40] sm:$0xff] }
  0xdf   : > { %674 = vperm.xlu0 %15607, %v592_v42   ;;  %679 = vperm.xlu1 %15608, %v593_v43   ;;  %v6988_v42 = vld [vmem:[%s19225_s8 + $0xd8] sm:$0xff] }
  0xe0   : > { %14445 = vmatmul.mubr.msk.bf16.gmra.mrb[16].mxu0 %vm876_vm0, %v15622_v40  ;;  %v6970_v40 = vld [vmem:[%s19225_s8 + $0x48] sm:$0xff] }
  0xe1   : > { %14448 = vmatprep.mubr.msk.bf16.mxu0 %vm876_vm0, %v15623_v41  ;;  %v6987_v41 = vld [vmem:[%s19225_s8 + $0xd0] sm:$0xff] }
  0xe3   : > { %764 = vperm.xlu0 %15607, %v610_v44   ;;  %769 = vperm.xlu1 %15608, %v611_v45   ;;  %v6971_v45 = vld [vmem:[%s19225_s8 + $0x50] sm:$0xff] }
  0xe7   : > { %684 = vperm.xlu0 %15607, %v594_v47   ;;  %689 = vperm.xlu1 %15608, %v595_v49   ;;  %v6990_v49 = vld [vmem:[%s19225_s8 + $0xe8] sm:$0xff] }
  0xe8   : > { %14449 = vmatmul.mubr.msk.bf16.gmra.mrb[20].mxu0 %vm876_vm0, %v15624_v46  ;;  %v6972_v46 = vld [vmem:[%s19225_s8 + $0x58] sm:$0xff] }
  0xe9   : > { %14452 = vmatprep.mubr.msk.bf16.mxu0 %vm876_vm0, %v15625_v48  ;;  %v6989_v48 = vld [vmem:[%s19225_s8 + $0xe0] sm:$0xff] }
  0xeb   : > { %4032 = vperm.xlu0 %15607, %v3934_v50   ;;  %4037 = vperm.xlu1 %15608, %v3935_v51   ;;  %v15631_v51 = vld [vmem:[%s19220_s3 + $0x104] ss:$8 sps:$4 sm:$0xff]  }
  0xef   : > { %3952 = vperm.xlu0 %15607, %v3918_v53   ;;  %3957 = vperm.xlu1 %15608, %v3919_v55   ;;  %v6974_v53 = vld [vmem:[%s19225_s8 + $0x68] sm:$0xff] }
  0xf0   : > { %14453 = vmatmul.mubr.msk.bf16.gmra.mrb[24].mxu0 %vm876_vm0, %v15626_v52  ;;  %v6973_v52 = vld [vmem:[%s19225_s8 + $0x60] sm:$0xff] }
  0xf1   : > { %14456 = vmatprep.mubr.msk.bf16.mxu0 %vm876_vm0, %v15627_v54 }
  0xf3   : > { %4042 = vperm.xlu0 %15607, %v3936_v56   ;;  %4047 = vperm.xlu1 %15608, %v3937_v57   ;;  %v6991_v56 = vld [vmem:[%s19225_s8 + $0xf0] sm:$0xff]  ;;  %v6992_v57 = vld [vmem:[%s19225_s8 + $0xf8] sm:$0xff] }
  0xf7   : > { %3962 = vperm.xlu0 %15607, %v3920_v59   ;;  %3967 = vperm.xlu1 %15608, %v3921_v60   ;;  %v6975_v59 = vld [vmem:[%s19225_s8 + $0x70] sm:$0xff]  ;;  %v6976_v60 = vld [vmem:[%s19225_s8 + $0x78] sm:$0xff] }
  0xf8   : > { %14457 = vmatmul.mubr.msk.bf16.gmra.mrb[28].mxu0 %vm876_vm0, %v15628_v58 }
  0xf9   : > { %1713 = vmatprep.mubr.bf16.mxu0 %v15631_v51 }
  0xfb   : > { %4052 = vperm.xlu0 %15607, %v3938_v61   ;;  %4057 = vperm.xlu1 %15608, %v3939_v62   ;;  %v10024_v62 = vld [vmem:[%s19228_s11 + $0x80] sm:$0xff] }
  0xff   : > { %3972 = vperm.xlu0 %15607, %v3922_v63   ;;  %3977 = vperm.xlu1 %15608, %v3923_v0   ;;  %v10025_v0 = vld [vmem:[%s19228_s11 + $0x88] sm:$0xff] }
 0x103   : > { %4062 = vperm.xlu0 %15607, %v3940_v1   ;;  %4067 = vperm.xlu1 %15608, %v3941_v2   ;;  %v10008_v2 = vld [vmem:[%s19228_s11] sm:$0xff] }
 0x107   : > { %3982 = vperm.xlu0 %15607, %v3924_v3   ;;  %3987 = vperm.xlu1 %15608, %v3925_v4   ;;  %v10009_v3 = vld [vmem:[%s19228_s11 + $0x8] sm:$0xff] }
 0x10b   : > { %4072 = vperm.xlu0 %15607, %v3942_v5   ;;  %4077 = vperm.xlu1 %15608, %v3943_v6   ;;  %v10026_v5 = vld [vmem:[%s19228_s11 + $0x90] sm:$0xff] }
 0x10f   : > { %3992 = vperm.xlu0 %15607, %v3926_v7   ;;  %3997 = vperm.xlu1 %15608, %v3927_v8   ;;  %v10027_v7 = vld [vmem:[%s19228_s11 + $0x98] sm:$0xff]  ;;  %v10010_v8 = vld [vmem:[%s19228_s11 + $0x10] sm:$0xff] }
 0x113   : > { %4082 = vperm.xlu0 %15607, %v3944_v9   ;;  %4087 = vperm.xlu1 %15608, %v3945_v10   ;;  %v10011_v9 = vld [vmem:[%s19228_s11 + $0x18] sm:$0xff] }
 0x117   : > { %4002 = vperm.xlu0 %15607, %v3928_v11   ;;  %4007 = vperm.xlu1 %15608, %v3929_v12   ;;  %v10028_v12 = vld [vmem:[%s19228_s11 + $0xa0] sm:$0xff] }
 0x11b   : > { %4092 = vperm.xlu0 %15607, %v3946_v13   ;;  %4097 = vperm.xlu1 %15608, %v3947_v14   ;;  %v10029_v13 = vld [vmem:[%s19228_s11 + $0xa8] sm:$0xff] }
 0x11f   : > { %4012 = vperm.xlu0 %15607, %v3930_v15   ;;  %4017 = vperm.xlu1 %15608, %v3931_v16   ;;  %v10012_v16 = vld [vmem:[%s19228_s11 + $0x20] sm:$0xff] }
 0x123   : > { %4102 = vperm.xlu0 %15607, %v3948_v17   ;;  %4107 = vperm.xlu1 %15608, %v3949_v18   ;;  %v10013_v17 = vld [vmem:[%s19228_s11 + $0x28] sm:$0xff] }
 0x127   : > { %4022 = vperm.xlu0 %15607, %v3932_v19   ;;  %4027 = vperm.xlu1 %15608, %v3933_v20   ;;  %v10030_v19 = vld [vmem:[%s19228_s11 + $0xb0] sm:$0xff]  ;;  %v10031_v20 = vld [vmem:[%s19228_s11 + $0xb8] sm:$0xff] }
 0x12a   : > { %v17100_v43 = vpop.permute.xlu0 %694  ;;  %v17102_v44 = vpop.permute.xlu1 %614 }
 0x12b   : > { %7075 = vperm.xlu0 %15607, %v6977_v21   ;;  %7080 = vperm.xlu1 %15608, %v6978_v22   ;;  %v10014_v22 = vld [vmem:[%s19228_s11 + $0x30] sm:$0xff] }
 0x12e   : > { %v17110_v47 = vpop.permute.xlu0 %699  ;;  %v17118_v50 = vpop.permute.xlu1 %619 }
 0x12f   : > { %6995 = vperm.xlu0 %15607, %v6961_v23   ;;  %7000 = vperm.xlu1 %15608, %v6962_v24   ;;  %v10015_v23 = vld [vmem:[%s19228_s11 + $0x38] sm:$0xff] }
 0x132   : > { %v17129_v54 = vpop.permute.xlu0 %704  ;;  %v17131_v55 = vpop.permute.xlu1 %709 }
 0x133   : > { %7085 = vperm.xlu0 %15607, %v6979_v25   ;;  %7090 = vperm.xlu1 %15608, %v6980_v26   ;;  %v10032_v26 = vld [vmem:[%s19228_s11 + $0xc0] sm:$0xff] }
 0x136   : > { %v17139_v58 = vpop.permute.xlu0 %624  ;;  %v17147_v61 = vpop.permute.xlu1 %629 }
 0x137   : > { %7005 = vperm.xlu0 %15607, %v6963_v27   ;;  %7010 = vperm.xlu1 %15608, %v6964_v28   ;;  %v10033_v27 = vld [vmem:[%s19228_s11 + $0xc8] sm:$0xff] }
 0x13a   : > { %v17152_v63 = vpop.permute.xlu0 %714  ;;  %v17157_v1 = vpop.permute.xlu1 %719 }
 0x13b   : > { %7095 = vperm.xlu0 %15607, %v6981_v29   ;;  %7100 = vperm.xlu1 %15608, %v6982_v30   ;;  %v10016_v29 = vld [vmem:[%s19228_s11 + $0x40] sm:$0xff]  ;;  %v10017_v30 = vld [vmem:[%s19228_s11 + $0x48] sm:$0xff] }
 0x13e   : > { %v17165_v4 = vpop.permute.xlu0 %634  ;;  %v17170_v6 = vpop.permute.xlu1 %639 }
 0x13f   : > { %7015 = vperm.xlu0 %15607, %v6965_v31   ;;  %7020 = vperm.xlu1 %15608, %v6966_v32  }
 0x142   : > { %v17181_v10 = vpop.permute.xlu0 %724  ;;  %v17183_v11 = vpop.permute.xlu1 %729 }
 0x143   : > { %7105 = vperm.xlu0 %15607, %v6983_v33   ;;  %7110 = vperm.xlu1 %15608, %v6984_v34   ;;  %v10034_v33 = vld [vmem:[%s19228_s11 + $0xd0] sm:$0xff]  ;;  %v10035_v34 = vld [vmem:[%s19228_s11 + $0xd8] sm:$0xff] }
 0x146   : > { %v645_v14 = vpop.permute.xlu0 %644  ;;  %v17191_v15 = vpop.permute.xlu1 %649 }
 0x147   : > { %7025 = vperm.xlu0 %15607, %v6967_v35   ;;  %7030 = vperm.xlu1 %15608, %v6968_v36  }
 0x14a   : > { %v17199_v18 = vpop.permute.xlu0 %734  ;;  %v17207_v21 = vpop.permute.xlu1 %739 }
 0x14b   : > { %7115 = vperm.xlu0 %15607, %v6985_v37   ;;  %7120 = vperm.xlu1 %15608, %v6986_v38  }
 0x14e   : > { %v17215_v24 = vpop.permute.xlu0 %654  ;;  %v17217_v25 = vpop.permute.xlu1 %659 }
 0x14f   : > { %7035 = vperm.xlu0 %15607, %v6969_v39   ;;  %7040 = vperm.xlu1 %15608, %v6970_v40  }
 0x152   : > { %v17225_v28 = vpop.permute.xlu0 %744  ;;  %v17233_v31 = vpop.permute.xlu1 %749 }
 0x153   : > { %7125 = vperm.xlu0 %15607, %v6987_v41   ;;  %7130 = vperm.xlu1 %15608, %v6988_v42  }
 0x156   : > { %v665_v35 = vpop.permute.xlu0 %664  ;;  %v670_v38 = vpop.permute.xlu1 %669 }
 0x157   : > { %7045 = vperm.xlu0 %15607, %v6971_v45   ;;  %7050 = vperm.xlu1 %15608, %v6972_v46   ;;  %v10018_v45 = vld [vmem:[%s19228_s11 + $0x50] sm:$0xff]  ;;  %v10019_v46 = vld [vmem:[%s19228_s11 + $0x58] sm:$0xff] }
 0x15b   : > { %7135 = vperm.xlu0 %15607, %v6989_v48   ;;  %7140 = vperm.xlu1 %15608, %v6990_v49  }
 0x15f   : > { %7055 = vperm.xlu0 %15607, %v6973_v52   ;;  %7060 = vperm.xlu1 %15608, %v6974_v53   ;;  %v17254_v52 = vpop.permute.xlu0 %754 }
 0x163   : > { %7145 = vperm.xlu0 %15607, %v6991_v56   ;;  %7150 = vperm.xlu1 %15608, %v6992_v57  }
 0x167   : > { %7065 = vperm.xlu0 %15607, %v6975_v59   ;;  %7070 = vperm.xlu1 %15608, %v6976_v60   ;;  %v10036_v59 = vld [vmem:[%s19228_s11 + $0xe0] sm:$0xff]  ;;  %v17264_v60 = vpop.permute.xlu1 %759 }
 0x16b   : > { %10122 = vperm.xlu0 %15607, %v10024_v62   ;;  %10127 = vperm.xlu1 %15608, %v10025_v0  }
 0x16f   : > { %10042 = vperm.xlu0 %15607, %v10008_v2   ;;  %10047 = vperm.xlu1 %15608, %v10009_v3  }
 0x173   : > { %10132 = vperm.xlu0 %15607, %v10026_v5   ;;  %10137 = vperm.xlu1 %15608, %v10027_v7  }
 0x177   : > { %10052 = vperm.xlu0 %15607, %v10010_v8   ;;  %10057 = vperm.xlu1 %15608, %v10011_v9   ;;  %v10020_v8 = vld [vmem:[%s19228_s11 + $0x60] sm:$0xff]  ;;  %v10021_v9 = vld [vmem:[%s19228_s11 + $0x68] sm:$0xff] }
 0x17b   : > { %10142 = vperm.xlu0 %15607, %v10028_v12   ;;  %10147 = vperm.xlu1 %15608, %v10029_v13   ;;  %v675_v12 = vpop.permute.xlu0 %674 }
 0x17f   : > { %10062 = vperm.xlu0 %15607, %v10012_v16   ;;  %10067 = vperm.xlu1 %15608, %v10013_v17  }
 0x183   : > { %10152 = vperm.xlu0 %15607, %v10030_v19   ;;  %10157 = vperm.xlu1 %15608, %v10031_v20  }
 0x187   : > { %10072 = vperm.xlu0 %15607, %v10014_v22   ;;  %10077 = vperm.xlu1 %15608, %v10015_v23   ;;  %v10038_v22 = vld [vmem:[%s19228_s11 + $0xf0] sm:$0xff]  ;;  %v10039_v23 = vld [vmem:[%s19228_s11 + $0xf8] sm:$0xff] }
 0x18b   : > { %10162 = vperm.xlu0 %15607, %v10032_v26   ;;  %10167 = vperm.xlu1 %15608, %v10033_v27  }
 0x18f   : > { %10082 = vperm.xlu0 %15607, %v10016_v29   ;;  %10087 = vperm.xlu1 %15608, %v10017_v30   ;;  %v17287_v29 = vpop.permute.xlu0 %764 }
 0x193   : > { %v14430_v32 = vpop.f32.mrb[0].mxu0  ;;  %10172 = vperm.xlu0 %15607, %v10034_v33   ;;  %10177 = vperm.xlu1 %15608, %v10035_v34  }
 0x194   : > { %v959_v36 = vpop.f32.mrb[1].mxu0  ;;  %v968_v37 = vadd.f32 %v14430_v32, %v17139_v58 }
 0x195   : > { %v960_v39 = vadd.f32 %v959_v36, %v17102_v44  ;;  %v14431_v40 = vpop.f32.mrb[2].mxu0  ;;  %v15655_v44 = vld [vmem:[%s19220_s3 + $0x4] ss:$8 sps:$4 sm:$0xff]   ;;  %v10022_v36 = vld [vmem:[%s19228_s11 + $0x70] sm:$0xff] }
 0x196   : > { %v971_v41 = vadd.f32 %v14431_v40, %v17147_v61  ;;  %v962_v42 = vpop.f32.mrb[3].mxu0  ;;  %v1088_v49 = vmax.f32 %v968_v37, 0.0  ;;  %1358 = vmatprep.mubr.bf16.mxu1 %v15655_v44  ;;  %v10023_v37 = vld [vmem:[%s19228_s11 + $0x78] sm:$0xff] }
 0x197   : > { %v963_v48 = vadd.f32 %v962_v42, %v17118_v50  ;;  %v1086_v53 = vmax.f32 %v960_v39, 0.0  ;;  %10092 = vperm.xlu0 %15607, %v10018_v45   ;;  %10097 = vperm.xlu1 %15608, %v10019_v46   ;;  %v10037_v50 = vld [vmem:[%s19228_s11 + $0xe8] sm:$0xff]  ;;  %v685_v46 = vpop.permute.xlu0 %684 }
 0x198   : > { %v1089_v51 = vmax.f32 %v971_v41, 0.0 }
 0x199   : > { %v1087_v56 = vmax.f32 %v963_v48, 0.0 }
 0x19a   : > { %v17256_v57 = vpack.c.bf16 %v1089_v51, %v1088_v49 }
 0x19b   : > { %v14434_v58 = vpop.f32.mrb[4].mxu0  ;;  %v17266_v61 = vpack.c.bf16 %v1087_v56, %v1086_v53  ;;  %10182 = vperm.xlu0 %15607, %v10036_v59   ;;  %10187 = vperm.xlu1 %15608, %v10037_v50  }
 0x19c   : > { %v975_v62 = vpop.f32.mrb[5].mxu0  ;;  %v984_v0 = vadd.f32 %v14434_v58, %v645_v14 }
 0x19d   : > { %v976_v2 = vadd.f32 %v975_v62, %v17165_v4  ;;  %v14435_v3 = vpop.f32.mrb[6].mxu0  ;;  %v680_v4 = vpop.permute.xlu1 %679 }
 0x19e   : > { %v987_v5 = vadd.f32 %v14435_v3, %v17191_v15  ;;  %v978_v7 = vpop.f32.mrb[7].mxu0  ;;  %v1092_v14 = vmax.f32 %v984_v0, 0.0 }
 0x19f   : > { %v979_v13 = vadd.f32 %v978_v7, %v17170_v6  ;;  %v1090_v17 = vmax.f32 %v976_v2, 0.0  ;;  %10102 = vperm.xlu0 %15607, %v10020_v8   ;;  %10107 = vperm.xlu1 %15608, %v10021_v9  }
 0x1a0   : > { %v1093_v16 = vmax.f32 %v987_v5, 0.0 }
 0x1a1   : > { %v1091_v19 = vmax.f32 %v979_v13, 0.0  ;;  %v17296_v39 = vpop.permute.xlu1 %769 }
 0x1a2   : > { %v17277_v15 = vpack.c.bf16 %v1093_v16, %v1092_v14 }
 0x1a3   : > { %v14438_v20 = vpop.f32.mrb[8].mxu0  ;;  %v17285_v26 = vpack.c.bf16 %v1091_v19, %v1090_v17  ;;  %10192 = vperm.xlu0 %15607, %v10038_v22   ;;  %10197 = vperm.xlu1 %15608, %v10039_v23  }
 0x1a4   : > { %v991_v6 = vpop.f32.mrb[9].mxu0  ;;  %v1000_v27 = vadd.f32 %v14438_v20, %v665_v35 }
 0x1a5   : > { %v992_v30 = vadd.f32 %v991_v6, %v17215_v24  ;;  %v14439_v32 = vpop.f32.mrb[10].mxu0  ;;  %v690_v44 = vpop.permute.xlu1 %689 }
 0x1a6   : > { %v1003_v33 = vadd.f32 %v14439_v32, %v670_v38  ;;  %v994_v34 = vpop.f32.mrb[11].mxu0  ;;  %v1096_v40 = vmax.f32 %v1000_v27, 0.0 }
 0x1a7   : > { %v995_v35 = vadd.f32 %v994_v34, %v17217_v25  ;;  %v1094_v24 = vmax.f32 %v992_v30, 0.0  ;;  %10112 = vperm.xlu0 %15607, %v10022_v36   ;;  %10117 = vperm.xlu1 %15608, %v10023_v37  }
 0x1a8   : > { %v1097_v41 = vmax.f32 %v1003_v33, 0.0 }
 0x1a9   : > { %v1095_v42 = vmax.f32 %v995_v35, 0.0 }
 0x1aa   : > { %v17299_v38 = vpack.c.bf16 %v1097_v41, %v1096_v40 }
 0x1ab   : > { %v14442_v45 = vpop.f32.mrb[12].mxu0  ;;  %v17301_v48 = vpack.c.bf16 %v1095_v42, %v1094_v24 }
 0x1ac   : > { %v1007_v49 = vpop.f32.mrb[13].mxu0  ;;  %v1016_v51 = vadd.f32 %v14442_v45, %v685_v46 }
 0x1ad   : > { %v1008_v53 = vadd.f32 %v1007_v49, %v675_v12  ;;  %v14443_v56 = vpop.f32.mrb[14].mxu0 }
 0x1ae   : > { %v1019_v58 = vadd.f32 %v14443_v56, %v690_v44  ;;  %v1010_v59 = vpop.f32.mrb[15].mxu0  ;;  %v1100_v50 = vmax.f32 %v1016_v51, 0.0 }
 0x1af   : > { %v1011_v25 = vadd.f32 %v1010_v59, %v680_v4  ;;  %v1098_v0 = vmax.f32 %v1008_v53, 0.0 }
 0x1b0   : > { %v1101_v62 = vmax.f32 %v1019_v58, 0.0 }
 0x1b1   : > { %v1099_v2 = vmax.f32 %v1011_v25, 0.0 }
 0x1b2   : > { %v17303_v3 = vpack.c.bf16 %v1101_v62, %v1100_v50 }
 0x1b3   : > { %v14446_v5 = vpop.f32.mrb[16].mxu0  ;;  %v17305_v7 = vpack.c.bf16 %v1099_v2, %v1098_v0 }
 0x1b4   : > { %v1023_v8 = vpop.f32.mrb[17].mxu0  ;;  %v1032_v9 = vadd.f32 %v14446_v5, %v17129_v54 }
 0x1b5   : > { %v1024_v13 = vadd.f32 %v1023_v8, %v17100_v43  ;;  %v14447_v14 = vpop.f32.mrb[18].mxu0  ;;  %v15653_v8 = vld [vmem:[%s19220_s3] ss:$8 sps:$4 sm:$0xff]  }
 0x1b6   : > { %v1035_v12 = vadd.f32 %v14447_v14, %v17131_v55  ;;  %v1026_v16 = vpop.f32.mrb[19].mxu0  ;;  %v1104_v17 = vmax.f32 %v1032_v9, 0.0  ;;  %v15632_v9 = vld [vmem:[%s19220_s3 + $0x114] ss:$8 sps:$4 sm:$0xff]   ;;  %v15634_v14 = vld [vmem:[%s19220_s3 + $0x110] ss:$8 sps:$4 sm:$0xff]  }
 0x1b7   : > { %v1027_v4 = vadd.f32 %v1026_v16, %v17110_v47  ;;  %v1102_v20 = vmax.f32 %v1024_v13, 0.0  ;;  %v15659_v13 = vld [vmem:[%s19220_s3 + $0x14] ss:$8 sps:$4 sm:$0xff]   ;;  %v15635_v16 = vld [vmem:[%s19220_s3 + $0x124] ss:$8 sps:$4 sm:$0xff]  }
 0x1b8   : > { %v1105_v19 = vmax.f32 %v1035_v12, 0.0  ;;  %v15663_v12 = vld [vmem:[%s19220_s3 + $0x10] ss:$8 sps:$4 sm:$0xff]  }
 0x1b9   : > { %v1103_v22 = vmax.f32 %v1027_v4, 0.0  ;;  %v15665_v4 = vld [vmem:[%s19220_s3 + $0x24] ss:$8 sps:$4 sm:$0xff]  }
 0x1ba   : > { %v17311_v23 = vpack.c.bf16 %v1105_v19, %v1104_v17  ;;  %v15637_v17 = vld [vmem:[%s19220_s3 + $0x120] ss:$8 sps:$4 sm:$0xff]  }
 0x1bb   : > { %v14450_v6 = vpop.f32.mrb[20].mxu0  ;;  %v17313_v27 = vpack.c.bf16 %v1103_v22, %v1102_v20  ;;  %v15669_v19 = vld [vmem:[%s19220_s3 + $0x20] ss:$8 sps:$4 sm:$0xff]   ;;  %v15638_v20 = vld [vmem:[%s19220_s3 + $0x134] ss:$8 sps:$4 sm:$0xff]  }
 0x1bc   : > { %v1039_v30 = vpop.f32.mrb[21].mxu0  ;;  %v1048_v54 = vadd.f32 %v14450_v6, %v17181_v10  ;;  %v15671_v22 = vld [vmem:[%s19220_s3 + $0x34] ss:$8 sps:$4 sm:$0xff]   ;;  %v15640_v6 = vld [vmem:[%s19220_s3 + $0x130] ss:$8 sps:$4 sm:$0xff]  }
 0x1bd   : > { %v1040_v43 = vadd.f32 %v1039_v30, %v17152_v63  ;;  %v14451_v32 = vpop.f32.mrb[22].mxu0  ;;  %12468 = vmatprep.subr.bf16.mxu1 %v17313_v27  ;;  %12580 = vmatprep.subr.bf16.mxu0 %v17313_v27  ;;  %v15675_v30 = vld [vmem:[%s19220_s3 + $0x30] ss:$8 sps:$4 sm:$0xff]  }
 0x1be   : > { %v1051_v47 = vadd.f32 %v14451_v32, %v17183_v11  ;;  %v1042_v55 = vpop.f32.mrb[23].mxu0  ;;  %12469 = vmatpush3.bf16.msra.mxu1 %v17266_v61  ;;  %12581 = vmatpush3.bf16.msra.mxu0 %v17266_v61  ;;  %v1108_v10 = vmax.f32 %v1048_v54, 0.0  ;;  %v15641_v54 = vld [vmem:[%s19220_s3 + $0x144] ss:$8 sps:$4 sm:$0xff]   ;;  %v15643_v32 = vld [vmem:[%s19220_s3 + $0x140] ss:$8 sps:$4 sm:$0xff]  }
 0x1bf   : > { %v1043_v33 = vadd.f32 %v1042_v55, %v17157_v1  ;;  %12470 = vmatprep.subr.bf16.mxu1 %v17311_v23  ;;  %12582 = vmatprep.subr.bf16.mxu0 %v17311_v23  ;;  %v1106_v34 = vmax.f32 %v1040_v43, 0.0  ;;  %v15677_v43 = vld [vmem:[%s19220_s3 + $0x44] ss:$8 sps:$4 sm:$0xff]   ;;  %v15644_v55 = vld [vmem:[%s19220_s3 + $0x154] ss:$8 sps:$4 sm:$0xff]  }
 0x1c0   : > { %v1109_v63 = vmax.f32 %v1051_v47, 0.0  ;;  %v15681_v47 = vld [vmem:[%s19220_s3 + $0x40] ss:$8 sps:$4 sm:$0xff]  }
 0x1c1   : > { %v1107_v36 = vmax.f32 %v1043_v33, 0.0  ;;  %v15683_v33 = vld [vmem:[%s19220_s3 + $0x54] ss:$8 sps:$4 sm:$0xff]  }
 0x1c2   : > { %v17325_v37 = vpack.c.bf16 %v1109_v63, %v1108_v10  ;;  %12471 = vmatpush3.bf16.msra.mxu1 %v17256_v57  ;;  %12583 = vmatpush3.bf16.msra.mxu0 %v17256_v57  ;;  %v15646_v10 = vld [vmem:[%s19220_s3 + $0x150] ss:$8 sps:$4 sm:$0xff]  }
 0x1c3   : > { %v14454_v11 = vpop.f32.mrb[24].mxu0  ;;  %v17329_v35 = vpack.c.bf16 %v1107_v36, %v1106_v34  ;;  %v15687_v63 = vld [vmem:[%s19220_s3 + $0x50] ss:$8 sps:$4 sm:$0xff]   ;;  %v15647_v34 = vld [vmem:[%s19220_s3 + $0x164] ss:$8 sps:$4 sm:$0xff]  }
 0x1c4   : > { %v1055_v40 = vpop.f32.mrb[25].mxu0  ;;  %v1064_v1 = vadd.f32 %v14454_v11, %v17225_v28  ;;  %v15649_v36 = vld [vmem:[%s19220_s3 + $0x160] ss:$8 sps:$4 sm:$0xff]  }
 0x1c5   : > { %v1056_v41 = vadd.f32 %v1055_v40, %v17199_v18  ;;  %v14455_v24 = vpop.f32.mrb[26].mxu0  ;;  %12472 = vmatprep.subr.bf16.mxu1 %v17329_v35  ;;  %12584 = vmatprep.subr.bf16.mxu0 %v17329_v35  ;;  %v15693_v11 = vld [vmem:[%s19220_s3 + $0x60] ss:$8 sps:$4 sm:$0xff]   ;;  %v15650_v40 = vld [vmem:[%s19220_s3 + $0x174] ss:$8 sps:$4 sm:$0xff]  }
 0x1c6   : > { %v1067_v42 = vadd.f32 %v14455_v24, %v17233_v31  ;;  %v1058_v45 = vpop.f32.mrb[27].mxu0  ;;  %12473 = vmatpush3.bf16.msra.mxu1 %v17285_v26  ;;  %12585 = vmatpush3.bf16.msra.mxu0 %v17285_v26  ;;  %v1112_v28 = vmax.f32 %v1064_v1, 0.0  ;;  %v15695_v1 = vld [vmem:[%s19220_s3 + $0x74] ss:$8 sps:$4 sm:$0xff]   ;;  %v15699_v24 = vld [vmem:[%s19220_s3 + $0x70] ss:$8 sps:$4 sm:$0xff]  }
 0x1c7   : > { %v1059_v46 = vadd.f32 %v1058_v45, %v17207_v21  ;;  %12474 = vmatprep.subr.bf16.mxu1 %v17325_v37  ;;  %12586 = vmatprep.subr.bf16.mxu0 %v17325_v37  ;;  %v1110_v49 = vmax.f32 %v1056_v41, 0.0  ;;  %v15652_v41 = vld [vmem:[%s19220_s3 + $0x170] ss:$8 sps:$4 sm:$0xff]   ;;  %v15701_v45 = vld [vmem:[%s19220_s3 + $0x84] ss:$8 sps:$4 sm:$0xff]  }
 0x1c8   : > { %v1113_v18 = vmax.f32 %v1067_v42, 0.0  ;;  %v15656_v42 = vld [vmem:[%s19220_s3 + $0x184] ss:$8 sps:$4 sm:$0xff]  }
 0x1c9   : > { %v1111_v51 = vmax.f32 %v1059_v46, 0.0  ;;  %v15658_v46 = vld [vmem:[%s19220_s3 + $0x180] ss:$8 sps:$4 sm:$0xff]  }
 0x1ca   : > { %v17341_v44 = vpack.c.bf16 %v1113_v18, %v1112_v28  ;;  %12475 = vmatpush3.bf16.msra.mxu1 %v17277_v15  ;;  %12587 = vmatpush3.bf16.msra.mxu0 %v17277_v15  ;;  %v15706_v28 = vld [vmem:[%s19220_s3 + $0x80] ss:$8 sps:$4 sm:$0xff]   ;;  %v15661_v18 = vld [vmem:[%s19220_s3 + $0x194] ss:$8 sps:$4 sm:$0xff]  }
 0x1cb   : > { %v14458_v31 = vpop.f32.mrb[28].mxu0  ;;  %v17345_v53 = vpack.c.bf16 %v1111_v51, %v1110_v49  ;;  %v15707_v49 = vld [vmem:[%s19220_s3 + $0x94] ss:$8 sps:$4 sm:$0xff]   ;;  %v15664_v51 = vld [vmem:[%s19220_s3 + $0x190] ss:$8 sps:$4 sm:$0xff]  }
 0x1cc   : > { %v1071_v56 = vpop.f32.mrb[29].mxu0  ;;  %v1080_v21 = vadd.f32 %v14458_v31, %v17287_v29  ;;  %v15711_v31 = vld [vmem:[%s19220_s3 + $0x90] ss:$8 sps:$4 sm:$0xff]  }
 0x1cd   : > { %v1072_v58 = vadd.f32 %v1071_v56, %v17254_v52  ;;  %v14459_v59 = vpop.f32.mrb[30].mxu0  ;;  %12476 = vmatprep.subr.bf16.mxu1 %v17345_v53  ;;  %12588 = vmatprep.subr.bf16.mxu0 %v17345_v53  ;;  %v15667_v56 = vld [vmem:[%s19220_s3 + $0x1a4] ss:$8 sps:$4 sm:$0xff]  }
 0x1ce   : > { %v1083_v25 = vadd.f32 %v14459_v59, %v17296_v39  ;;  %v1074_v50 = vpop.f32.mrb[31].mxu0  ;;  %12477 = vmatpush3.bf16.msra.mxu1 %v17301_v48  ;;  %12589 = vmatpush3.bf16.msra.mxu0 %v17301_v48  ;;  %v1116_v29 = vmax.f32 %v1080_v21, 0.0  ;;  %v15713_v21 = vld [vmem:[%s19220_s3 + $0xa4] ss:$8 sps:$4 sm:$0xff]   ;;  %v15717_v59 = vld [vmem:[%s19220_s3 + $0xa0] ss:$8 sps:$4 sm:$0xff]  }
 0x1cf   : > { %v1075_v62 = vadd.f32 %v1074_v50, %v17264_v60  ;;  %12478 = vmatprep.subr.bf16.mxu1 %v17341_v44  ;;  %12590 = vmatprep.subr.bf16.mxu0 %v17341_v44  ;;  %v1114_v0 = vmax.f32 %v1072_v58, 0.0  ;;  %v15629_v60 = vld [vmem:[%s19220_s3 + $0x100] ss:$8 sps:$4 sm:$0xff]   ;;  %v15719_v50 = vld [vmem:[%s19220_s3 + $0xb4] ss:$8 sps:$4 sm:$0xff]  }
 0x1d0   : > { %v1117_v52 = vmax.f32 %v1083_v25, 0.0  ;;  %v15670_v58 = vld [vmem:[%s19220_s3 + $0x1a0] ss:$8 sps:$4 sm:$0xff]   ;;  %v15673_v25 = vld [vmem:[%s19220_s3 + $0x1b4] ss:$8 sps:$4 sm:$0xff]  }
 0x1d1   : > { %v1115_v2 = vmax.f32 %v1075_v62, 0.0  ;;  %v15676_v62 = vld [vmem:[%s19220_s3 + $0x1b0] ss:$8 sps:$4 sm:$0xff]  }
 0x1d2   : > { %v17357_v5 = vpack.c.bf16 %v1117_v52, %v1116_v29  ;;  %12479 = vmatpush3.bf16.msra.mxu1 %v17299_v38  ;;  %12591 = vmatpush3.bf16.msra.mxu0 %v17299_v38  ;;  %v15723_v29 = vld [vmem:[%s19220_s3 + $0xb0] ss:$8 sps:$4 sm:$0xff]   ;;  %v15679_v52 = vld [vmem:[%s19220_s3 + $0x1c4] ss:$8 sps:$4 sm:$0xff]  }
 0x1d3   : > { %v17361_v39 = vpack.c.bf16 %v1115_v2, %v1114_v0  ;;  %v15725_v0 = vld [vmem:[%s19220_s3 + $0xc4] ss:$8 sps:$4 sm:$0xff]  }
 0x1d4   : > { %v1843_v2 = vld [vmem:[#allocation2 + $0x4] sm:$0xf] }
 0x1d5   : > { %12480 = vmatprep.subr.bf16.mxu1 %v17361_v39  ;;  %12592 = vmatprep.subr.bf16.mxu0 %v17361_v39 }
 0x1d6   : > { %12481 = vmatpush3.bf16.msra.mxu1 %v17305_v7  ;;  %12593 = vmatpush3.bf16.msra.mxu0 %v17305_v7 }
 0x1d7   : > { %12482 = vmatprep.subr.bf16.mxu1 %v17357_v5  ;;  %12594 = vmatprep.subr.bf16.mxu0 %v17357_v5 }
 0x1da   : > { %12483 = vmatpush3.bf16.msra.mxu1 %v17303_v3  ;;  %12595 = vmatpush3.bf16.msra.mxu0 %v17303_v3 }
 0x1db   : > { %12758 = vmatprep.subr.bf16.mxu0 %v17313_v27  ;;  %14460 = vmatprep.subr.msk.mxu1 %vm1941_vm1, %v1843_v2 }
 0x1dd   : > { %1714 = vmatmul.mubr.bf16.vlgmr.msra.gmra.mrb[32].mxu0 %v15629_v60  ;;  %1359 = vmatmul.mubr.bf16.vlgmr.msra.gmra.mrb[0].mxu1 %v15653_v8  ;;  %v15682_v60 = vld [vmem:[%s19220_s3 + $0x1c0] ss:$8 sps:$4 sm:$0xff]  }
 0x1de   : > { %12759 = vmatpush3.bf16.msra.mxu0 %v17266_v61  ;;  %1721 = vmatprep.mubr.bf16.mxu0 %v15632_v9  ;;  %v15729_v8 = vld [vmem:[%s19220_s3 + $0xc0] ss:$8 sps:$4 sm:$0xff]   ;;  %v15685_v9 = vld [vmem:[%s19220_s3 + $0x1d4] ss:$8 sps:$4 sm:$0xff]  }
 0x1df   : > { %12760 = vmatprep.subr.bf16.mxu0 %v17311_v23  ;;  %1366 = vmatprep.mubr.bf16.mxu1 %v15659_v13  ;;  %v15731_v13 = vld [vmem:[%s19220_s3 + $0xd4] ss:$8 sps:$4 sm:$0xff]  }
 0x1e0   : > { %14461 = vmatpush3.msk.msra.mxu1 %vm1941_vm1, %v1843_v2 }
 0x1e2   : > { %12761 = vmatpush3.bf16.msra.mxu0 %v17256_v57 }
 0x1e3   : > { %12762 = vmatprep.subr.bf16.mxu0 %v17329_v35 }
 0x1e5   : > { %1722 = vmatmul.mubr.bf16.gmra.mrb[36].mxu0 %v15634_v14  ;;  %1367 = vmatmul.mubr.bf16.gmra.mrb[4].mxu1 %v15663_v12  ;;  %v15688_v14 = vld [vmem:[%s19220_s3 + $0x1d0] ss:$8 sps:$4 sm:$0xff]  }
 0x1e6   : > { %12763 = vmatpush3.bf16.msra.mxu0 %v17285_v26  ;;  %1729 = vmatprep.mubr.bf16.mxu0 %v15635_v16  ;;  %v15735_v12 = vld [vmem:[%s19220_s3 + $0xd0] ss:$8 sps:$4 sm:$0xff]   ;;  %v15691_v16 = vld [vmem:[%s19220_s3 + $0x1e4] ss:$8 sps:$4 sm:$0xff]  }
 0x1e7   : > { %12764 = vmatprep.subr.bf16.mxu0 %v17325_v37  ;;  %1374 = vmatprep.mubr.bf16.mxu1 %v15665_v4  ;;  %v15737_v4 = vld [vmem:[%s19220_s3 + $0xe4] ss:$8 sps:$4 sm:$0xff]  }
 0x1ea   : > { %12765 = vmatpush3.bf16.msra.mxu0 %v17277_v15 }
 0x1eb   : > { %12766 = vmatprep.subr.bf16.mxu0 %v17345_v53 }
 0x1ed   : > { %1730 = vmatmul.mubr.bf16.gmra.mrb[40].mxu0 %v15637_v17  ;;  %1375 = vmatmul.mubr.bf16.gmra.mrb[8].mxu1 %v15669_v19  ;;  %v15694_v17 = vld [vmem:[%s19220_s3 + $0x1e0] ss:$8 sps:$4 sm:$0xff]  }
 0x1ee   : > { %12767 = vmatpush3.bf16.msra.mxu0 %v17301_v48  ;;  %1737 = vmatprep.mubr.bf16.mxu0 %v15638_v20  ;;  %v15741_v19 = vld [vmem:[%s19220_s3 + $0xe0] ss:$8 sps:$4 sm:$0xff]   ;;  %v15697_v20 = vld [vmem:[%s19220_s3 + $0x1f4] ss:$8 sps:$4 sm:$0xff]  }
 0x1ef   : > { %12768 = vmatprep.subr.bf16.mxu0 %v17341_v44  ;;  %1382 = vmatprep.mubr.bf16.mxu1 %v15671_v22  ;;  %v15743_v22 = vld [vmem:[%s19220_s3 + $0xf4] ss:$8 sps:$4 sm:$0xff]  }
 0x1f2   : > { %12769 = vmatpush3.bf16.msra.mxu0 %v17299_v38 }
 0x1f3   : > { %12770 = vmatprep.subr.bf16.mxu0 %v17361_v39 }
 0x1f5   : > { %1738 = vmatmul.mubr.bf16.gmra.mrb[44].mxu0 %v15640_v6  ;;  %1383 = vmatmul.mubr.bf16.gmra.mrb[12].mxu1 %v15675_v30  ;;  %v15700_v6 = vld [vmem:[%s19220_s3 + $0x1f0] ss:$8 sps:$4 sm:$0xff]  }
 0x1f6   : > { %12771 = vmatpush3.bf16.msra.mxu0 %v17305_v7  ;;  %1745 = vmatprep.mubr.bf16.mxu0 %v15641_v54  ;;  %v15747_v30 = vld [vmem:[%s19220_s3 + $0xf0] ss:$8 sps:$4 sm:$0xff]   ;;  %v15705_v54 = vld [vmem:[%s19220_s3 + $0x204] ss:$8 sps:$4 sm:$0xff]  }
 0x1f7   : > { %12772 = vmatprep.subr.bf16.mxu0 %v17357_v5  ;;  %1390 = vmatprep.mubr.bf16.mxu1 %v15677_v43  ;;  %v15703_v43 = vld [vmem:[%s19220_s3 + $0x200] ss:$8 sps:$4 sm:$0xff]  }
 0x1fa   : > { %12773 = vmatpush3.bf16.msra.mxu0 %v17303_v3 }
 0x1fb   : > { %12903 = vmatprep.subr.bf16.mxu0 %v17313_v27  ;;  %v15689_v27 = vld [vmem:[%s19220_s3 + $0x64] ss:$8 sps:$4 sm:$0xff]  }
 0x1fd   : > { %1746 = vmatmul.mubr.bf16.gmra.mrb[48].mxu0 %v15643_v32  ;;  %1391 = vmatmul.mubr.bf16.gmra.mrb[16].mxu1 %v15681_v47  ;;  %v15709_v32 = vld [vmem:[%s19220_s3 + $0x214] ss:$8 sps:$4 sm:$0xff]   ;;  %v15712_v47 = vld [vmem:[%s19220_s3 + $0x210] ss:$8 sps:$4 sm:$0xff]  }
 0x1fe   : > { %1753 = vmatprep.mubr.bf16.mxu0 %v15644_v55  ;;  %1398 = vmatprep.mubr.bf16.mxu1 %v15683_v33  ;;  %v15715_v55 = vld [vmem:[%s19220_s3 + $0x224] ss:$8 sps:$4 sm:$0xff]  }
 0x1ff   : > { %v15755_v33 = vld [vmem:[%s19220_s3 + $0x2a4] ss:$8 sps:$4 sm:$0xff]  }
 0x205   : > { %1754 = vmatmul.mubr.bf16.gmra.mrb[52].mxu0 %v15646_v10  ;;  %1399 = vmatmul.mubr.bf16.gmra.mrb[20].mxu1 %v15687_v63  ;;  %v15757_v10 = vld [vmem:[%s19220_s3 + $0x2a0] ss:$8 sps:$4 sm:$0xff]   ;;  %v15758_v63 = vld [vmem:[%s19220_s3 + $0x2b4] ss:$8 sps:$4 sm:$0xff]  }
 0x206   : > { %1761 = vmatprep.mubr.bf16.mxu0 %v15647_v34  ;;  %1406 = vmatprep.mubr.bf16.mxu1 %v15689_v27  ;;  %v1487_v34 = vld [vmem:[#allocation2] sm:$0xf] }
 0x207   : > { %14510 = vmatprep.subr.msk.mxu1 %vm1941_vm1, %v1487_v34 }
 0x20d   : > { %1762 = vmatmul.mubr.bf16.gmra.mrb[56].mxu0 %v15649_v36  ;;  %1407 = vmatmul.mubr.bf16.gmra.mrb[24].mxu1 %v15693_v11 }
 0x20e   : > { %1769 = vmatprep.mubr.bf16.mxu0 %v15650_v40  ;;  %1414 = vmatprep.mubr.bf16.mxu1 %v15695_v1  ;;  %v15760_v40 = vld [vmem:[%s19220_s3 + $0x2b0] ss:$8 sps:$4 sm:$0xff]  }
 0x215   : > { %1770 = vmatmul.mubr.bf16.gmra.mrb[60].mxu0 %v15652_v41  ;;  %1415 = vmatmul.mubr.bf16.gmra.mrb[28].mxu1 %v15699_v24 }
 0x216   : > { %1777 = vmatprep.mubr.bf16.mxu0 %v15656_v42  ;;  %1422 = vmatprep.mubr.bf16.mxu1 %v15701_v45  ;;  %v15761_v42 = vld [vmem:[%s19220_s3 + $0x2c4] ss:$8 sps:$4 sm:$0xff]  }
 0x21d   : > { %1778 = vmatmul.mubr.bf16.gmra.mrb[64].mxu0 %v15658_v46  ;;  %1423 = vmatmul.mubr.bf16.gmra.mrb[32].mxu1 %v15706_v28 }
 0x21e   : > { %1785 = vmatprep.mubr.bf16.mxu0 %v15661_v18  ;;  %1430 = vmatprep.mubr.bf16.mxu1 %v15707_v49 }
 0x225   : > { %1786 = vmatmul.mubr.bf16.gmra.mrb[68].mxu0 %v15664_v51  ;;  %1431 = vmatmul.mubr.bf16.gmra.mrb[36].mxu1 %v15711_v31 }
 0x226   : > { %1793 = vmatprep.mubr.bf16.mxu0 %v15667_v56  ;;  %1438 = vmatprep.mubr.bf16.mxu1 %v15713_v21 }
 0x22d   : > { %1794 = vmatmul.mubr.bf16.gmra.mrb[72].mxu0 %v15670_v58  ;;  %1439 = vmatmul.mubr.bf16.gmra.mrb[40].mxu1 %v15717_v59  ;;  %v15763_v58 = vld [vmem:[%s19220_s3 + $0x2c0] ss:$8 sps:$4 sm:$0xff]  }
 0x22e   : > { %1801 = vmatprep.mubr.bf16.mxu0 %v15673_v25  ;;  %1446 = vmatprep.mubr.bf16.mxu1 %v15719_v50 }
 0x235   : > { %1802 = vmatmul.mubr.bf16.gmra.mrb[76].mxu0 %v15676_v62  ;;  %1447 = vmatmul.mubr.bf16.gmra.mrb[44].mxu1 %v15723_v29  ;;  %v15764_v62 = vld [vmem:[%s19220_s3 + $0x2d4] ss:$8 sps:$4 sm:$0xff]  }
 0x236   : > { %1809 = vmatprep.mubr.bf16.mxu0 %v15679_v52  ;;  %1454 = vmatprep.mubr.bf16.mxu1 %v15725_v0 }
 0x23d   : > { %1810 = vmatmul.mubr.bf16.gmra.mrb[80].mxu0 %v15682_v60  ;;  %1455 = vmatmul.mubr.bf16.gmra.mrb[48].mxu1 %v15729_v8 }
 0x23e   : > { %1817 = vmatprep.mubr.bf16.mxu0 %v15685_v9  ;;  %1462 = vmatprep.mubr.bf16.mxu1 %v15731_v13 }
 0x245   : > { %1818 = vmatmul.mubr.bf16.gmra.mrb[84].mxu0 %v15688_v14  ;;  %1463 = vmatmul.mubr.bf16.gmra.mrb[52].mxu1 %v15735_v12  ;;  %v15766_v12 = vld [vmem:[%s19220_s3 + $0x2d0] ss:$8 sps:$4 sm:$0xff]  }
 0x246   : > { %1825 = vmatprep.mubr.bf16.mxu0 %v15691_v16  ;;  %1470 = vmatprep.mubr.bf16.mxu1 %v15737_v4 }
 0x24d   : > { %1826 = vmatmul.mubr.bf16.gmra.mrb[88].mxu0 %v15694_v17  ;;  %1471 = vmatmul.mubr.bf16.gmra.mrb[56].mxu1 %v15741_v19  ;;  %v15767_v19 = vld [vmem:[%s19220_s3 + $0x2e4] ss:$8 sps:$4 sm:$0xff]  }
 0x24e   : > { %1833 = vmatprep.mubr.bf16.mxu0 %v15697_v20  ;;  %1478 = vmatprep.mubr.bf16.mxu1 %v15743_v22 }
 0x255   : > { %1834 = vmatmul.mubr.bf16.gmra.mrb[92].mxu0 %v15700_v6  ;;  %1479 = vmatmul.mubr.bf16.gmra.mrb[60].mxu1 %v15747_v30 }
 0x256   : > { %2719 = vmatprep.mubr.bf16.mxu0 %v15705_v54 }
 0x25d   : > { %2720 = vmatmul.mubr.bf16.vlgmr.msra.gmra.mrb[96].mxu0 %v15703_v43 }
 0x25e   : > { %12904 = vmatpush3.bf16.msra.mxu0 %v17266_v61  ;;  %2727 = vmatprep.mubr.bf16.mxu0 %v15709_v32  ;;  %v15718_v61 = vld [vmem:[%s19220_s3 + $0x220] ss:$8 sps:$4 sm:$0xff]  }
 0x25f   : > { %12905 = vmatprep.subr.bf16.mxu0 %v17311_v23  ;;  %v15736_v23 = vld [vmem:[%s19220_s3 + $0x250] ss:$8 sps:$4 sm:$0xff]  }
 0x262   : > { %12906 = vmatpush3.bf16.msra.mxu0 %v17256_v57  ;;  %v15721_v57 = vld [vmem:[%s19220_s3 + $0x234] ss:$8 sps:$4 sm:$0xff]  }
 0x263   : > { %12907 = vmatprep.subr.bf16.mxu0 %v17329_v35  ;;  %v15748_v35 = vld [vmem:[%s19220_s3 + $0x270] ss:$8 sps:$4 sm:$0xff]  }
 0x265   : > { %2728 = vmatmul.mubr.bf16.gmra.mrb[100].mxu0 %v15712_v47 }
 0x266   : > { %12908 = vmatpush3.bf16.msra.mxu0 %v17285_v26  ;;  %2735 = vmatprep.mubr.bf16.mxu0 %v15715_v55  ;;  %v15724_v26 = vld [vmem:[%s19220_s3 + $0x230] ss:$8 sps:$4 sm:$0xff]  }
 0x267   : > { %12909 = vmatprep.subr.bf16.mxu0 %v17325_v37  ;;  %v15745_v37 = vld [vmem:[%s19220_s3 + $0x274] ss:$8 sps:$4 sm:$0xff]  }
 0x26a   : > { %12910 = vmatpush3.bf16.msra.mxu0 %v17277_v15  ;;  %v15727_v15 = vld [vmem:[%s19220_s3 + $0x244] ss:$8 sps:$4 sm:$0xff]  }
 0x26b   : > { %12911 = vmatprep.subr.bf16.mxu0 %v17345_v53  ;;  %v15751_v53 = vld [vmem:[%s19220_s3 + $0x280] ss:$8 sps:$4 sm:$0xff]  }
 0x26d   : > { %2736 = vmatmul.mubr.bf16.gmra.mrb[104].mxu0 %v15718_v61  ;;  %v15769_v61 = vld [vmem:[%s19220_s3 + $0x2e0] ss:$8 sps:$4 sm:$0xff]  }
 0x26e   : > { %12912 = vmatpush3.bf16.msra.mxu0 %v17301_v48  ;;  %2743 = vmatprep.mubr.bf16.mxu0 %v15721_v57  ;;  %v15730_v48 = vld [vmem:[%s19220_s3 + $0x240] ss:$8 sps:$4 sm:$0xff]  }
 0x26f   : > { %12913 = vmatprep.subr.bf16.mxu0 %v17341_v44  ;;  %v15749_v44 = vld [vmem:[%s19220_s3 + $0x284] ss:$8 sps:$4 sm:$0xff]  }
 0x272   : > { %12914 = vmatpush3.bf16.msra.mxu0 %v17299_v38  ;;  %v15733_v38 = vld [vmem:[%s19220_s3 + $0x254] ss:$8 sps:$4 sm:$0xff]  }
 0x273   : > { %12915 = vmatprep.subr.bf16.mxu0 %v17361_v39  ;;  %v15754_v39 = vld [vmem:[%s19220_s3 + $0x290] ss:$8 sps:$4 sm:$0xff]  }
 0x275   : > { %2744 = vmatmul.mubr.bf16.gmra.mrb[108].mxu0 %v15724_v26 }
 0x276   : > { %12916 = vmatpush3.bf16.msra.mxu0 %v17305_v7  ;;  %2751 = vmatprep.mubr.bf16.mxu0 %v15727_v15  ;;  %v15739_v7 = vld [vmem:[%s19220_s3 + $0x264] ss:$8 sps:$4 sm:$0xff]  }
 0x277   : > { %12917 = vmatprep.subr.bf16.mxu0 %v17357_v5  ;;  %v15752_v5 = vld [vmem:[%s19220_s3 + $0x294] ss:$8 sps:$4 sm:$0xff]  }
 0x27a   : > { %12918 = vmatpush3.bf16.msra.mxu0 %v17303_v3  ;;  %v15742_v3 = vld [vmem:[%s19220_s3 + $0x260] ss:$8 sps:$4 sm:$0xff]  }
 0x27d   : > { %2752 = vmatmul.mubr.bf16.gmra.mrb[112].mxu0 %v15730_v48  ;;  %v15770_v48 = vld [vmem:[%s19220_s3 + $0x2f4] ss:$8 sps:$4 sm:$0xff]  }
 0x27e   : > { %2759 = vmatprep.mubr.bf16.mxu0 %v15733_v38 }
 0x285   : > { %2760 = vmatmul.mubr.bf16.gmra.mrb[116].mxu0 %v15736_v23 }
 0x286   : > { %2767 = vmatprep.mubr.bf16.mxu0 %v15739_v7 }
 0x28d   : > { %2768 = vmatmul.mubr.bf16.gmra.mrb[120].mxu0 %v15742_v3 }
 0x28e   : > { %2775 = vmatprep.mubr.bf16.mxu0 %v15745_v37 }
 0x295   : > { %2776 = vmatmul.mubr.bf16.gmra.mrb[124].mxu0 %v15748_v35 }
 0x296   : > { %2783 = vmatprep.mubr.bf16.mxu0 %v15749_v44 }
 0x29d   : > { %2784 = vmatmul.mubr.bf16.gmra.mrb[128].mxu0 %v15751_v53 }
 0x29e   : > { %2791 = vmatprep.mubr.bf16.mxu0 %v15752_v5 }
 0x2a5   : > { %2792 = vmatmul.mubr.bf16.gmra.mrb[132].mxu0 %v15754_v39  ;;  %v15772_v39 = vld [vmem:[%s19220_s3 + $0x2f0] ss:$8 sps:$4 sm:$0xff]  }
 0x2a6   : > { %2799 = vmatprep.mubr.bf16.mxu0 %v15755_v33 }
 0x2ad   : > { %2800 = vmatmul.mubr.bf16.gmra.mrb[136].mxu0 %v15757_v10 }
 0x2ae   : > { %2807 = vmatprep.mubr.bf16.mxu0 %v15758_v63 }
 0x2b0   : > { %v12596_v27 = vpop.f32.mrb[32].mxu0  ;;  %v12484_v36 = vpop.f32.mrb[0].mxu1 }
 0x2b1   : > { %v12597_v11 = vpop.f32.mrb[33].mxu0  ;;  %v12485_v1 = vpop.f32.mrb[1].mxu1 }
 0x2b2   : > { %v12598_v41 = vadd.f32 %v12597_v11, %v12596_v27  ;;  %v12599_v24 = vpop.f32.mrb[34].mxu0  ;;  %v12487_v45 = vpop.f32.mrb[2].mxu1  ;;  %v17667_v46 = vadd.f32 %v12485_v1, %v12484_v36 }
 0x2b3   : > { %v12600_v28 = vpop.f32.mrb[35].mxu0  ;;  %v12488_v18 = vpop.f32.mrb[3].mxu1 }
 0x2b4   : > { %v12601_v49 = vadd.f32 %v12600_v28, %v12599_v24  ;;  %14462 = vmatprep.mubr.msk.f32.mxu1 %vm1844_vm2, %v12598_v41  ;;  %v17670_v51 = vadd.f32 %v12488_v18, %v12487_v45  ;;  %v15773_v28 = vld [vmem:[%s19220_s3 + $0x300] ss:$8 sps:$4 sm:$0xff]  }
 0x2b5   : > { %2808 = vmatmul.mubr.bf16.gmra.mrb[140].mxu0 %v15760_v40 }
 0x2b6   : > { %14463 = vmatmul.mubr.msk.f32.vlgmr.msra.gmra.mrb[64].mxu1 %vm1844_vm2, %v12601_v49  ;;  %2815 = vmatprep.mubr.bf16.mxu0 %v15761_v42 }
 0x2b7   : > { %14511 = vmatpush3.msk.msra.mxu1 %vm1941_vm1, %v1487_v34  ;;  %v15775_v34 = vld [vmem:[%s19220_s3 + $0x304] ss:$8 sps:$4 sm:$0xff]  }
 0x2b8   : > { %v12602_v31 = vpop.f32.mrb[36].mxu0  ;;  %v12490_v56 = vpop.f32.mrb[4].mxu1 }
 0x2b9   : > { %v12603_v21 = vpop.f32.mrb[37].mxu0  ;;  %v12491_v59 = vpop.f32.mrb[5].mxu1 }
 0x2ba   : > { %v12604_v25 = vadd.f32 %v12603_v21, %v12602_v31  ;;  %v12605_v50 = vpop.f32.mrb[38].mxu0  ;;  %v12493_v29 = vpop.f32.mrb[6].mxu1  ;;  %v17680_v52 = vadd.f32 %v12491_v59, %v12490_v56  ;;  %v15776_v56 = vld [vmem:[%s19220_s3 + $0x314] ss:$8 sps:$4 sm:$0xff]  }
 0x2bb   : > { %v12606_v0 = vpop.f32.mrb[39].mxu0  ;;  %v12494_v2 = vpop.f32.mrb[7].mxu1 }
 0x2bc   : > { %v12607_v60 = vadd.f32 %v12606_v0, %v12605_v50  ;;  %14465 = vmatprep.mubr.msk.f32.mxu1 %vm1844_vm2, %v12604_v25  ;;  %v17683_v8 = vadd.f32 %v12494_v2, %v12493_v29 }
 0x2bd   : > { %2816 = vmatmul.mubr.bf16.gmra.mrb[144].mxu0 %v15763_v58 }
 0x2be   : > { %14466 = vmatmul.mubr.msk.f32.gmra.mrb[66].mxu1 %vm1844_vm2, %v12607_v60  ;;  %2823 = vmatprep.mubr.bf16.mxu0 %v15764_v62  ;;  %v15778_v60 = vld [vmem:[%s19220_s3 + $0x310] ss:$8 sps:$4 sm:$0xff]  }
 0x2c0   : > { %v12608_v9 = vpop.f32.mrb[40].mxu0  ;;  %v12496_v13 = vpop.f32.mrb[8].mxu1 }
 0x2c1   : > { %v12609_v14 = vpop.f32.mrb[41].mxu0  ;;  %v12497_v16 = vpop.f32.mrb[9].mxu1 }
 0x2c2   : > { %v12610_v4 = vadd.f32 %v12609_v14, %v12608_v9  ;;  %v12611_v17 = vpop.f32.mrb[42].mxu0  ;;  %v12499_v20 = vpop.f32.mrb[10].mxu1  ;;  %v17692_v22 = vadd.f32 %v12497_v16, %v12496_v13 }
 0x2c3   : > { %v12612_v6 = vpop.f32.mrb[43].mxu0  ;;  %v12500_v30 = vpop.f32.mrb[11].mxu1 }
 0x2c4   : > { %v12613_v54 = vadd.f32 %v12612_v6, %v12611_v17  ;;  %14468 = vmatprep.mubr.msk.f32.mxu1 %vm1844_vm2, %v12610_v4  ;;  %v17695_v43 = vadd.f32 %v12500_v30, %v12499_v20 }
 0x2c5   : > { %2824 = vmatmul.mubr.bf16.gmra.mrb[148].mxu0 %v15766_v12  ;;  %v15779_v12 = vld [vmem:[%s19220_s3 + $0x324] ss:$8 sps:$4 sm:$0xff]  }
 0x2c6   : > { %14469 = vmatmul.mubr.msk.f32.gmra.mrb[68].mxu1 %vm1844_vm2, %v12613_v54  ;;  %2831 = vmatprep.mubr.bf16.mxu0 %v15767_v19 }
 0x2c8   : > { %v12614_v32 = vpop.f32.mrb[44].mxu0  ;;  %v12502_v47 = vpop.f32.mrb[12].mxu1 }
 0x2c9   : > { %v12615_v55 = vpop.f32.mrb[45].mxu0  ;;  %v12503_v57 = vpop.f32.mrb[13].mxu1 }
 0x2ca   : > { %v12616_v26 = vadd.f32 %v12615_v55, %v12614_v32  ;;  %v12617_v15 = vpop.f32.mrb[46].mxu0  ;;  %v12505_v38 = vpop.f32.mrb[14].mxu1  ;;  %v17704_v23 = vadd.f32 %v12503_v57, %v12502_v47  ;;  %v15781_v47 = vld [vmem:[%s19220_s3 + $0x320] ss:$8 sps:$4 sm:$0xff]  }
 0x2cb   : > { %v12618_v7 = vpop.f32.mrb[47].mxu0  ;;  %v12506_v3 = vpop.f32.mrb[15].mxu1 }
 0x2cc   : > { %v12619_v37 = vadd.f32 %v12618_v7, %v12617_v15  ;;  %14471 = vmatprep.mubr.msk.f32.mxu1 %vm1844_vm2, %v12616_v26  ;;  %v17707_v35 = vadd.f32 %v12506_v3, %v12505_v38  ;;  %v15782_v26 = vld [vmem:[%s19220_s3 + $0x334] ss:$8 sps:$4 sm:$0xff]  }
 0x2cd   : > { %2832 = vmatmul.mubr.bf16.gmra.mrb[152].mxu0 %v15769_v61 }
 0x2ce   : > { %14472 = vmatmul.mubr.msk.f32.gmra.mrb[70].mxu1 %vm1844_vm2, %v12619_v37  ;;  %2839 = vmatprep.mubr.bf16.mxu0 %v15770_v48 }
 0x2d0   : > { %v12620_v44 = vpop.f32.mrb[48].mxu0  ;;  %v12508_v53 = vpop.f32.mrb[16].mxu1 }
 0x2d1   : > { %v12621_v5 = vpop.f32.mrb[49].mxu0  ;;  %v12509_v33 = vpop.f32.mrb[17].mxu1 }
 0x2d2   : > { %v12622_v10 = vadd.f32 %v12621_v5, %v12620_v44  ;;  %v12623_v63 = vpop.f32.mrb[50].mxu0  ;;  %v12511_v27 = vpop.f32.mrb[18].mxu1  ;;  %v17716_v36 = vadd.f32 %v12509_v33, %v12508_v53  ;;  %v17758_v5 = vld [vmem:[#allocation2 + $0x8] sm:$0xf]  ;;  %v15784_v33 = vld [vmem:[%s19220_s3 + $0x330] ss:$8 sps:$4 sm:$0xff]  }
 0x2d3   : > { %v12624_v11 = vpop.f32.mrb[51].mxu0  ;;  %v12512_v40 = vpop.f32.mrb[19].mxu1  ;;  %14560 = vmatprep.subr.msk.mxu1 %vm1941_vm1, %v17758_v5 }
 0x2d4   : > { %v12625_v1 = vadd.f32 %v12624_v11, %v12623_v63  ;;  %14474 = vmatprep.mubr.msk.f32.mxu1 %vm1844_vm2, %v12622_v10  ;;  %v17719_v41 = vadd.f32 %v12512_v40, %v12511_v27  ;;  %v15785_v27 = vld [vmem:[%s19220_s3 + $0x344] ss:$8 sps:$4 sm:$0xff]  }
 0x2d5   : > { %2840 = vmatmul.mubr.bf16.gmra.mrb[156].mxu0 %v15772_v39 }
 0x2d6   : > { %14475 = vmatmul.mubr.msk.f32.gmra.mrb[72].mxu1 %vm1844_vm2, %v12625_v1  ;;  %3431 = vmatprep.mubr.bf16.mxu0 %v15775_v34 }
 0x2d8   : > { %v12626_v24 = vpop.f32.mrb[52].mxu0  ;;  %v12514_v42 = vpop.f32.mrb[20].mxu1 }
 0x2d9   : > { %v12627_v45 = vpop.f32.mrb[53].mxu0  ;;  %v12515_v18 = vpop.f32.mrb[21].mxu1 }
 0x2da   : > { %v12628_v49 = vadd.f32 %v12627_v45, %v12626_v24  ;;  %v12629_v31 = vpop.f32.mrb[54].mxu0  ;;  %v12517_v21 = vpop.f32.mrb[22].mxu1  ;;  %v17728_v58 = vadd.f32 %v12515_v18, %v12514_v42 }
 0x2db   : > { %v12630_v59 = vpop.f32.mrb[55].mxu0  ;;  %v12518_v25 = vpop.f32.mrb[23].mxu1 }
 0x2dc   : > { %v12631_v50 = vadd.f32 %v12630_v59, %v12629_v31  ;;  %14477 = vmatprep.mubr.msk.f32.mxu1 %vm1844_vm2, %v12628_v49  ;;  %v17731_v62 = vadd.f32 %v12518_v25, %v12517_v21  ;;  %v15787_v31 = vld [vmem:[%s19220_s3 + $0x340] ss:$8 sps:$4 sm:$0xff]   ;;  %v15788_v25 = vld [vmem:[%s19220_s3 + $0x354] ss:$8 sps:$4 sm:$0xff]  }
 0x2dd   : > { %3432 = vmatmul.mubr.bf16.vlgmr.msra.gmra.mrb[160].mxu0 %v15773_v28 }
 0x2de   : > { %14478 = vmatmul.mubr.msk.f32.gmra.mrb[74].mxu1 %vm1844_vm2, %v12631_v50  ;;  %3439 = vmatprep.mubr.bf16.mxu0 %v15776_v56 }
 0x2e0   : > { %v12632_v29 = vpop.f32.mrb[56].mxu0  ;;  %v12520_v0 = vpop.f32.mrb[24].mxu1 }
 0x2e1   : > { %v12633_v2 = vpop.f32.mrb[57].mxu0  ;;  %v12521_v9 = vpop.f32.mrb[25].mxu1 }
 0x2e2   : > { %v12634_v13 = vadd.f32 %v12633_v2, %v12632_v29  ;;  %v12635_v14 = vpop.f32.mrb[58].mxu0  ;;  %v12523_v16 = vpop.f32.mrb[26].mxu1  ;;  %v17740_v4 = vadd.f32 %v12521_v9, %v12520_v0 }
 0x2e3   : > { %v12636_v17 = vpop.f32.mrb[59].mxu0  ;;  %v12524_v19 = vpop.f32.mrb[27].mxu1 }
 0x2e4   : > { %v12637_v20 = vadd.f32 %v12636_v17, %v12635_v14  ;;  %14480 = vmatprep.mubr.msk.f32.mxu1 %vm1844_vm2, %v12634_v13  ;;  %v17743_v6 = vadd.f32 %v12524_v19, %v12523_v16  ;;  %v15790_v16 = vld [vmem:[%s19220_s3 + $0x350] ss:$8 sps:$4 sm:$0xff]  }
 0x2e5   : > { %3440 = vmatmul.mubr.bf16.gmra.mrb[164].mxu0 %v15778_v60 }
 0x2e6   : > { %14481 = vmatmul.mubr.msk.f32.gmra.mrb[76].mxu1 %vm1844_vm2, %v12637_v20  ;;  %3447 = vmatprep.mubr.bf16.mxu0 %v15779_v12 }
 0x2e8   : > { %v12638_v30 = vpop.f32.mrb[60].mxu0  ;;  %v12526_v54 = vpop.f32.mrb[28].mxu1 }
 0x2e9   : > { %v12639_v32 = vpop.f32.mrb[61].mxu0  ;;  %v12527_v55 = vpop.f32.mrb[29].mxu1 }
 0x2ea   : > { %v12640_v61 = vadd.f32 %v12639_v32, %v12638_v30  ;;  %v12641_v57 = vpop.f32.mrb[62].mxu0  ;;  %v12529_v15 = vpop.f32.mrb[30].mxu1  ;;  %v17752_v48 = vadd.f32 %v12527_v55, %v12526_v54  ;;  %v15791_v30 = vld [vmem:[%s19220_s3 + $0x364] ss:$8 sps:$4 sm:$0xff]  }
 0x2eb   : > { %v12642_v38 = vpop.f32.mrb[63].mxu0  ;;  %v12530_v7 = vpop.f32.mrb[31].mxu1 }
 0x2ec   : > { %v12643_v3 = vadd.f32 %v12642_v38, %v12641_v57  ;;  %14483 = vmatprep.mubr.msk.f32.mxu1 %vm1844_vm2, %v12640_v61  ;;  %v17755_v37 = vadd.f32 %v12530_v7, %v12529_v15  ;;  %v15793_v7 = vld [vmem:[%s19220_s3 + $0x360] ss:$8 sps:$4 sm:$0xff]  }
 0x2ed   : > { %3448 = vmatmul.mubr.bf16.gmra.mrb[168].mxu0 %v15781_v47 }
 0x2ee   : > { %14484 = vmatmul.mubr.msk.f32.gmra.mrb[78].mxu1 %vm1844_vm2, %v12643_v3  ;;  %3455 = vmatprep.mubr.bf16.mxu0 %v15782_v26 }
 0x2f0   : > { %v12644_v44 = vpop.f32.mrb[64].mxu0  ;;  %v12532_v53 = vpop.f32.mrb[32].mxu1 }
 0x2f1   : > { %v12645_v39 = vpop.f32.mrb[65].mxu0  ;;  %v12533_v10 = vpop.f32.mrb[33].mxu1 }
 0x2f2   : > { %v12646_v63 = vadd.f32 %v12645_v39, %v12644_v44  ;;  %v12647_v34 = vpop.f32.mrb[66].mxu0  ;;  %v17768_v11 = vadd.f32 %v12533_v10, %v12532_v53  ;;  %v12535_v40 = vpop.f32.mrb[34].mxu1  ;;  %v15794_v39 = vld [vmem:[%s19220_s3 + $0x374] ss:$8 sps:$4 sm:$0xff]  }
 0x2f3   : > { %v12648_v1 = vpop.f32.mrb[67].mxu0  ;;  %v12536_v24 = vpop.f32.mrb[35].mxu1 }
 0x2f4   : > { %v12649_v42 = vadd.f32 %v12648_v1, %v12647_v34  ;;  %14486 = vmatprep.mubr.msk.f32.mxu1 %vm1844_vm2, %v12646_v63  ;;  %v17771_v45 = vadd.f32 %v12536_v24, %v12535_v40 }
 0x2f5   : > { %3456 = vmatmul.mubr.bf16.gmra.mrb[172].mxu0 %v15784_v33 }
 0x2f6   : > { %14487 = vmatmul.mubr.msk.f32.gmra.mrb[80].mxu1 %vm1844_vm2, %v12649_v42  ;;  %3463 = vmatprep.mubr.bf16.mxu0 %v15785_v27 }
 0x2f8   : > { %v12650_v28 = vpop.f32.mrb[68].mxu0  ;;  %v12538_v18 = vpop.f32.mrb[36].mxu1 }
 0x2f9   : > { %v12651_v49 = vpop.f32.mrb[69].mxu0  ;;  %v12539_v56 = vpop.f32.mrb[37].mxu1 }
 0x2fa   : > { %v12652_v21 = vadd.f32 %v12651_v49, %v12650_v28  ;;  %v12653_v59 = vpop.f32.mrb[70].mxu0  ;;  %v17780_v50 = vadd.f32 %v12539_v56, %v12538_v18  ;;  %v12541_v29 = vpop.f32.mrb[38].mxu1  ;;  %v15796_v28 = vld [vmem:[%s19220_s3 + $0x370] ss:$8 sps:$4 sm:$0xff]   ;;  %v15797_v56 = vld [vmem:[%s19220_s3 + $0x384] ss:$8 sps:$4 sm:$0xff]  }
 0x2fb   : > { %v12654_v0 = vpop.f32.mrb[71].mxu0  ;;  %v12542_v2 = vpop.f32.mrb[39].mxu1 }
 0x2fc   : > { %v12655_v60 = vadd.f32 %v12654_v0, %v12653_v59  ;;  %14489 = vmatprep.mubr.msk.f32.mxu1 %vm1844_vm2, %v12652_v21  ;;  %v17783_v9 = vadd.f32 %v12542_v2, %v12541_v29 }
 0x2fd   : > { %3464 = vmatmul.mubr.bf16.gmra.mrb[176].mxu0 %v15787_v31 }
 0x2fe   : > { %14490 = vmatmul.mubr.msk.f32.gmra.mrb[82].mxu1 %vm1844_vm2, %v12655_v60  ;;  %3471 = vmatprep.mubr.bf16.mxu0 %v15788_v25 }
 0x300   : > { %v12656_v13 = vpop.f32.mrb[72].mxu0  ;;  %v12544_v14 = vpop.f32.mrb[40].mxu1 }
 0x301   : > { %v12657_v12 = vpop.f32.mrb[73].mxu0  ;;  %v12545_v17 = vpop.f32.mrb[41].mxu1 }
 0x302   : > { %v12658_v19 = vadd.f32 %v12657_v12, %v12656_v13  ;;  %v12659_v20 = vpop.f32.mrb[74].mxu0  ;;  %v17792_v54 = vadd.f32 %v12545_v17, %v12544_v14  ;;  %v12547_v32 = vpop.f32.mrb[42].mxu1  ;;  %v15799_v12 = vld [vmem:[%s19220_s3 + $0x380] ss:$8 sps:$4 sm:$0xff]  }
 0x303   : > { %v12660_v47 = vpop.f32.mrb[75].mxu0  ;;  %v12548_v55 = vpop.f32.mrb[43].mxu1 }
 0x304   : > { %v12661_v61 = vadd.f32 %v12660_v47, %v12659_v20  ;;  %14492 = vmatprep.mubr.msk.f32.mxu1 %vm1844_vm2, %v12658_v19  ;;  %v17795_v57 = vadd.f32 %v12548_v55, %v12547_v32  ;;  %v15800_v20 = vld [vmem:[%s19220_s3 + $0x394] ss:$8 sps:$4 sm:$0xff]  }
 0x305   : > { %3472 = vmatmul.mubr.bf16.gmra.mrb[180].mxu0 %v15790_v16 }
 0x306   : > { %14493 = vmatmul.mubr.msk.f32.gmra.mrb[84].mxu1 %vm1844_vm2, %v12661_v61  ;;  %3479 = vmatprep.mubr.bf16.mxu0 %v15791_v30 }
 0x308   : > { %v12662_v26 = vpop.f32.mrb[76].mxu0  ;;  %v12550_v15 = vpop.f32.mrb[44].mxu1 }
 0x309   : > { %v12663_v38 = vpop.f32.mrb[77].mxu0  ;;  %v12551_v3 = vpop.f32.mrb[45].mxu1 }
 0x30a   : > { %v12664_v44 = vadd.f32 %v12663_v38, %v12662_v26  ;;  %v12665_v53 = vpop.f32.mrb[78].mxu0  ;;  %v17804_v33 = vadd.f32 %v12551_v3, %v12550_v15  ;;  %v12553_v10 = vpop.f32.mrb[46].mxu1  ;;  %v15802_v3 = vld [vmem:[%s19220_s3 + $0x390] ss:$8 sps:$4 sm:$0xff]  }
 0x30b   : > { %v12666_v63 = vpop.f32.mrb[79].mxu0  ;;  %v12554_v34 = vpop.f32.mrb[47].mxu1 }
 0x30c   : > { %v12667_v27 = vadd.f32 %v12666_v63, %v12665_v53  ;;  %14495 = vmatprep.mubr.msk.f32.mxu1 %vm1844_vm2, %v12664_v44  ;;  %v17807_v40 = vadd.f32 %v12554_v34, %v12553_v10  ;;  %v15803_v10 = vld [vmem:[%s19220_s3 + $0x3a4] ss:$8 sps:$4 sm:$0xff]  }
 0x30d   : > { %3480 = vmatmul.mubr.bf16.gmra.mrb[184].mxu0 %v15793_v7 }
 0x30e   : > { %14496 = vmatmul.mubr.msk.f32.gmra.mrb[86].mxu1 %vm1844_vm2, %v12667_v27  ;;  %3487 = vmatprep.mubr.bf16.mxu0 %v15794_v39 }
 0x310   : > { %v12668_v1 = vpop.f32.mrb[80].mxu0  ;;  %v12556_v24 = vpop.f32.mrb[48].mxu1 }
 0x311   : > { %v12669_v42 = vpop.f32.mrb[81].mxu0  ;;  %v12557_v18 = vpop.f32.mrb[49].mxu1 }
 0x312   : > { %v12670_v49 = vadd.f32 %v12669_v42, %v12668_v1  ;;  %v12671_v31 = vpop.f32.mrb[82].mxu0  ;;  %v17816_v21 = vadd.f32 %v12557_v18, %v12556_v24  ;;  %v12559_v59 = vpop.f32.mrb[50].mxu1 }
 0x313   : > { %v12672_v25 = vpop.f32.mrb[83].mxu0  ;;  %v12560_v29 = vpop.f32.mrb[51].mxu1 }
 0x314   : > { %v12673_v0 = vadd.f32 %v12672_v25, %v12671_v31  ;;  %14498 = vmatprep.mubr.msk.f32.mxu1 %vm1844_vm2, %v12670_v49  ;;  %v17819_v2 = vadd.f32 %v12560_v29, %v12559_v59  ;;  %v15805_v31 = vld [vmem:[%s19220_s3 + $0x3a0] ss:$8 sps:$4 sm:$0xff]   ;;  %v15806_v29 = vld [vmem:[%s19220_s3 + $0x3b4] ss:$8 sps:$4 sm:$0xff]  }
 0x315   : > { %3488 = vmatmul.mubr.bf16.gmra.mrb[188].mxu0 %v15796_v28 }
 0x316   : > { %14499 = vmatmul.mubr.msk.f32.gmra.mrb[88].mxu1 %vm1844_vm2, %v12673_v0  ;;  %3495 = vmatprep.mubr.bf16.mxu0 %v15797_v56 }
 0x318   : > { %v12674_v60 = vpop.f32.mrb[84].mxu0  ;;  %v12562_v13 = vpop.f32.mrb[52].mxu1 }
 0x319   : > { %v12675_v14 = vpop.f32.mrb[85].mxu0  ;;  %v12563_v16 = vpop.f32.mrb[53].mxu1 }
 0x31a   : > { %v12676_v17 = vadd.f32 %v12675_v14, %v12674_v60  ;;  %v12677_v19 = vpop.f32.mrb[86].mxu0  ;;  %v17828_v30 = vadd.f32 %v12563_v16, %v12562_v13  ;;  %v12565_v32 = vpop.f32.mrb[54].mxu1 }
 0x31b   : > { %v12678_v47 = vpop.f32.mrb[87].mxu0  ;;  %v12566_v55 = vpop.f32.mrb[55].mxu1 }
 0x31c   : > { %v12679_v61 = vadd.f32 %v12678_v47, %v12677_v19  ;;  %14501 = vmatprep.mubr.msk.f32.mxu1 %vm1844_vm2, %v12676_v17  ;;  %v17831_v26 = vadd.f32 %v12566_v55, %v12565_v32  ;;  %v15809_v55 = vld [vmem:[%s19220_s3 + $0x3c4] ss:$8 sps:$4 sm:$0xff]  }
 0x31d   : > { %3496 = vmatmul.mubr.bf16.gmra.mrb[192].mxu0 %v15799_v12 }
 0x31e   : > { %14502 = vmatmul.mubr.msk.f32.gmra.mrb[90].mxu1 %vm1844_vm2, %v12679_v61  ;;  %3503 = vmatprep.mubr.bf16.mxu0 %v15800_v20  ;;  %v15808_v20 = vld [vmem:[%s19220_s3 + $0x3b0] ss:$8 sps:$4 sm:$0xff]  }
 0x320   : > { %v12680_v15 = vpop.f32.mrb[88].mxu0  ;;  %v12568_v38 = vpop.f32.mrb[56].mxu1 }
 0x321   : > { %v12681_v7 = vpop.f32.mrb[89].mxu0  ;;  %v12569_v44 = vpop.f32.mrb[57].mxu1 }
 0x322   : > { %v12682_v53 = vadd.f32 %v12681_v7, %v12680_v15  ;;  %v12683_v39 = vpop.f32.mrb[90].mxu0  ;;  %v17840_v63 = vadd.f32 %v12569_v44, %v12568_v38  ;;  %v12571_v34 = vpop.f32.mrb[58].mxu1  ;;  %v17876_v15 = vld [vmem:[#allocation2 + $0xc] sm:$0xf] }
 0x323   : > { %v12684_v27 = vpop.f32.mrb[91].mxu0  ;;  %v12572_v1 = vpop.f32.mrb[59].mxu1 }
 0x324   : > { %v12685_v24 = vadd.f32 %v12684_v27, %v12683_v39  ;;  %14504 = vmatprep.mubr.msk.f32.mxu1 %vm1844_vm2, %v12682_v53  ;;  %v17843_v42 = vadd.f32 %v12572_v1, %v12571_v34  ;;  %v15814_v53 = vld [vmem:[%s19220_s3 + $0x3d0] ss:$8 sps:$4 sm:$0xff]   ;;  %v15817_v27 = vld [vmem:[%s19220_s3 + $0x3e0] ss:$8 sps:$4 sm:$0xff]  }
 0x325   : > { %3504 = vmatmul.mubr.bf16.gmra.mrb[196].mxu0 %v15802_v3 }
 0x326   : > { %14505 = vmatmul.mubr.msk.f32.gmra.mrb[92].mxu1 %vm1844_vm2, %v12685_v24  ;;  %3511 = vmatprep.mubr.bf16.mxu0 %v15803_v10 }
 0x328   : > { %v12686_v28 = vpop.f32.mrb[92].mxu0  ;;  %v12574_v18 = vpop.f32.mrb[60].mxu1 }
 0x329   : > { %v12687_v49 = vpop.f32.mrb[93].mxu0  ;;  %v12575_v56 = vpop.f32.mrb[61].mxu1 }
 0x32a   : > { %v12688_v59 = vadd.f32 %v12687_v49, %v12686_v28  ;;  %v12689_v25 = vpop.f32.mrb[94].mxu0  ;;  %v17852_v0 = vadd.f32 %v12575_v56, %v12574_v18  ;;  %v12577_v60 = vpop.f32.mrb[62].mxu1  ;;  %v15820_v18 = vld [vmem:[%s19220_s3 + $0x3f0] ss:$8 sps:$4 sm:$0xff]  }
 0x32b   : > { %v12690_v13 = vpop.f32.mrb[95].mxu0  ;;  %v12578_v14 = vpop.f32.mrb[63].mxu1 }
 0x32c   : > { %v12691_v12 = vadd.f32 %v12690_v13, %v12689_v25  ;;  %14507 = vmatprep.mubr.msk.f32.mxu1 %vm1844_vm2, %v12688_v59  ;;  %v17855_v16 = vadd.f32 %v12578_v14, %v12577_v60 }
 0x32d   : > { %3512 = vmatmul.mubr.bf16.gmra.mrb[200].mxu0 %v15805_v31 }
 0x32e   : > { %14508 = vmatmul.mubr.msk.f32.gmra.mrb[94].mxu1 %vm1844_vm2, %v12691_v12  ;;  %3519 = vmatprep.mubr.bf16.mxu0 %v15806_v29 }
 0x32f   : > { %14512 = vmatprep.mubr.msk.f32.mxu1 %vm1844_vm2, %v17667_v46 }
 0x330   : > { %v12774_v17 = vpop.f32.mrb[96].mxu0 }
 0x331   : > { %v12775_v19 = vpop.f32.mrb[97].mxu0 }
 0x332   : > { %v17863_v32 = vadd.f32 %v12775_v19, %v12774_v17  ;;  %14513 = vmatmul.mubr.msk.f32.vlgmr.msra.gmra.mrb[64].mxu1 %vm1844_vm2, %v17670_v51  ;;  %v12777_v47 = vpop.f32.mrb[98].mxu0 }
 0x333   : > { %14515 = vmatprep.mubr.msk.f32.mxu1 %vm1844_vm2, %v17680_v52  ;;  %v12778_v46 = vpop.f32.mrb[99].mxu0  ;;  %14561 = vmatpush3.msk.msra.mxu1 %vm1941_vm1, %v17758_v5  ;;  %v15811_v5 = vld [vmem:[%s19220_s3 + $0x3c0] ss:$8 sps:$4 sm:$0xff]  }
 0x334   : > { %v17874_v61 = vadd.f32 %v12778_v46, %v12777_v47  ;;  %14610 = vmatprep.subr.msk.mxu1 %vm1941_vm1, %v17876_v15 }
 0x335   : > { %3520 = vmatmul.mubr.bf16.gmra.mrb[204].mxu0 %v15808_v20 }
 0x336   : > { %14516 = vmatmul.mubr.msk.f32.gmra.mrb[66].mxu1 %vm1844_vm2, %v17683_v8  ;;  %3527 = vmatprep.mubr.bf16.mxu0 %v15809_v55  ;;  %v15812_v8 = vld [vmem:[%s19220_s3 + $0x3d4] ss:$8 sps:$4 sm:$0xff]  }
 0x337   : > { %14518 = vmatprep.mubr.msk.f32.mxu1 %vm1844_vm2, %v17692_v22 }
 0x338   : > { %v12780_v51 = vpop.f32.mrb[100].mxu0 }
 0x339   : > { %v12781_v52 = vpop.f32.mrb[101].mxu0 }
 0x33a   : > { %v17887_v38 = vadd.f32 %v12781_v52, %v12780_v51  ;;  %14519 = vmatmul.mubr.msk.f32.gmra.mrb[68].mxu1 %vm1844_vm2, %v17695_v43  ;;  %v12783_v7 = vpop.f32.mrb[102].mxu0 }
 0x33b   : > { %14521 = vmatprep.mubr.msk.f32.mxu1 %vm1844_vm2, %v17704_v23  ;;  %v12784_v22 = vpop.f32.mrb[103].mxu0 }
 0x33c   : > { %v17896_v3 = vadd.f32 %v12784_v22, %v12783_v7 }
 0x33d   : > { %3528 = vmatmul.mubr.bf16.gmra.mrb[208].mxu0 %v15811_v5 }
 0x33e   : > { %14522 = vmatmul.mubr.msk.f32.gmra.mrb[70].mxu1 %vm1844_vm2, %v17707_v35  ;;  %3535 = vmatprep.mubr.bf16.mxu0 %v15812_v8  ;;  %v15815_v35 = vld [vmem:[%s19220_s3 + $0x3e4] ss:$8 sps:$4 sm:$0xff]  }
 0x33f   : > { %14524 = vmatprep.mubr.msk.f32.mxu1 %vm1844_vm2, %v17716_v36 }
 0x340   : > { %v12786_v43 = vpop.f32.mrb[104].mxu0 }
 0x341   : > { %v12787_v44 = vpop.f32.mrb[105].mxu0 }
 0x342   : > { %v17905_v39 = vadd.f32 %v12787_v44, %v12786_v43  ;;  %14525 = vmatmul.mubr.msk.f32.gmra.mrb[72].mxu1 %vm1844_vm2, %v17719_v41  ;;  %v12789_v23 = vpop.f32.mrb[106].mxu0 }
 0x343   : > { %14527 = vmatprep.mubr.msk.f32.mxu1 %vm1844_vm2, %v17728_v58  ;;  %v12790_v36 = vpop.f32.mrb[107].mxu0 }
 0x344   : > { %v17914_v10 = vadd.f32 %v12790_v36, %v12789_v23 }
 0x345   : > { %3536 = vmatmul.mubr.bf16.gmra.mrb[212].mxu0 %v15814_v53 }
 0x346   : > { %14528 = vmatmul.mubr.msk.f32.gmra.mrb[74].mxu1 %vm1844_vm2, %v17731_v62  ;;  %3543 = vmatprep.mubr.bf16.mxu0 %v15815_v35  ;;  %v15818_v62 = vld [vmem:[%s19220_s3 + $0x3f4] ss:$8 sps:$4 sm:$0xff]  }
 0x347   : > { %14530 = vmatprep.mubr.msk.f32.mxu1 %vm1844_vm2, %v17740_v4 }
 0x348   : > { %v12792_v41 = vpop.f32.mrb[108].mxu0 }
 0x349   : > { %v12793_v34 = vpop.f32.mrb[109].mxu0 }
 0x34a   : > { %v17923_v1 = vadd.f32 %v12793_v34, %v12792_v41  ;;  %14531 = vmatmul.mubr.msk.f32.gmra.mrb[76].mxu1 %vm1844_vm2, %v17743_v6  ;;  %v12795_v58 = vpop.f32.mrb[110].mxu0 }
 0x34b   : > { %v12796_v24 = vpop.f32.mrb[111].mxu0  ;;  %14533 = vmatprep.mubr.msk.f32.mxu1 %vm1844_vm2, %v17752_v48 }
 0x34c   : > { %v17932_v4 = vadd.f32 %v12796_v24, %v12795_v58 }
 0x34d   : > { %3544 = vmatmul.mubr.bf16.gmra.mrb[216].mxu0 %v15817_v27 }
 0x34e   : > { %14534 = vmatmul.mubr.msk.f32.gmra.mrb[78].mxu1 %vm1844_vm2, %v17755_v37  ;;  %3551 = vmatprep.mubr.bf16.mxu0 %v15818_v62 }
 0x34f   : > { %14536 = vmatprep.mubr.msk.f32.mxu1 %vm1844_vm2, %v17768_v11 }
 0x350   : > { %v12798_v6 = vpop.f32.mrb[112].mxu0 }
 0x351   : > { %v12799_v28 = vpop.f32.mrb[113].mxu0 }
 0x352   : > { %v12800_v49 = vadd.f32 %v12799_v28, %v12798_v6  ;;  %14537 = vmatmul.mubr.msk.f32.gmra.mrb[80].mxu1 %vm1844_vm2, %v17771_v45  ;;  %v12801_v48 = vpop.f32.mrb[114].mxu0 }
 0x353   : > { %v12802_v31 = vpop.f32.mrb[115].mxu0  ;;  %14539 = vmatprep.mubr.msk.f32.mxu1 %vm1844_vm2, %v17780_v50 }
 0x354   : > { %v12803_v37 = vadd.f32 %v12802_v31, %v12801_v48 }
 0x355   : > { %3552 = vmatmul.mubr.bf16.gmra.mrb[220].mxu0 %v15820_v18 }
 0x356   : > { %14540 = vmatmul.mubr.msk.f32.gmra.mrb[82].mxu1 %vm1844_vm2, %v17783_v9 }
 0x357   : > { %14542 = vmatprep.mubr.msk.f32.mxu1 %vm1844_vm2, %v17792_v54 }
 0x358   : > { %v12804_v11 = vpop.f32.mrb[116].mxu0 }
 0x359   : > { %v12805_v56 = vpop.f32.mrb[117].mxu0 }
 0x35a   : > { %v12806_v59 = vadd.f32 %v12805_v56, %v12804_v11  ;;  %14543 = vmatmul.mubr.msk.f32.gmra.mrb[84].mxu1 %vm1844_vm2, %v17795_v57  ;;  %v12807_v45 = vpop.f32.mrb[118].mxu0 }
 0x35b   : > { %v12808_v25 = vpop.f32.mrb[119].mxu0  ;;  %14545 = vmatprep.mubr.msk.f32.mxu1 %vm1844_vm2, %v17804_v33 }
 0x35c   : > { %v12809_v50 = vadd.f32 %v12808_v25, %v12807_v45 }
 0x35e   : > { %14546 = vmatmul.mubr.msk.f32.gmra.mrb[86].mxu1 %vm1844_vm2, %v17807_v40 }
 0x35f   : > { %14548 = vmatprep.mubr.msk.f32.mxu1 %vm1844_vm2, %v17816_v21 }
 0x360   : > { %v12810_v9 = vpop.f32.mrb[120].mxu0 }
 0x361   : > { %v12811_v54 = vpop.f32.mrb[121].mxu0 }
 0x362   : > { %v12812_v29 = vadd.f32 %v12811_v54, %v12810_v9  ;;  %14549 = vmatmul.mubr.msk.f32.gmra.mrb[88].mxu1 %vm1844_vm2, %v17819_v2  ;;  %v12813_v60 = vpop.f32.mrb[122].mxu0 }
 0x363   : > { %v12814_v57 = vpop.f32.mrb[123].mxu0  ;;  %14551 = vmatprep.mubr.msk.f32.mxu1 %vm1844_vm2, %v17828_v30 }
 0x364   : > { %v12815_v13 = vadd.f32 %v12814_v57, %v12813_v60 }
 0x366   : > { %14552 = vmatmul.mubr.msk.f32.gmra.mrb[90].mxu1 %vm1844_vm2, %v17831_v26 }
 0x367   : > { %14554 = vmatprep.mubr.msk.f32.mxu1 %vm1844_vm2, %v17840_v63 }
 0x368   : > { %v12816_v33 = vpop.f32.mrb[124].mxu0 }
 0x369   : > { %v12817_v40 = vpop.f32.mrb[125].mxu0 }
 0x36a   : > { %v12818_v21 = vadd.f32 %v12817_v40, %v12816_v33  ;;  %14555 = vmatmul.mubr.msk.f32.gmra.mrb[92].mxu1 %vm1844_vm2, %v17843_v42  ;;  %v12819_v14 = vpop.f32.mrb[126].mxu0 }
 0x36b   : > { %v12820_v2 = vpop.f32.mrb[127].mxu0  ;;  %14557 = vmatprep.mubr.msk.f32.mxu1 %vm1844_vm2, %v17852_v0 }
 0x36c   : > { %v12821_v12 = vadd.f32 %v12820_v2, %v12819_v14 }
 0x36e   : > { %14558 = vmatmul.mubr.msk.f32.gmra.mrb[94].mxu1 %vm1844_vm2, %v17855_v16 }
 0x36f   : > { %14562 = vmatprep.mubr.msk.f32.mxu1 %vm1844_vm2, %v17863_v32 }
 0x370   : > { %v12822_v30 = vpop.f32.mrb[128].mxu0 }
 0x371   : > { %v12823_v26 = vpop.f32.mrb[129].mxu0 }
 0x372   : > { %v12824_v63 = vadd.f32 %v12823_v26, %v12822_v30  ;;  %v12825_v17 = vpop.f32.mrb[130].mxu0  ;;  %14563 = vmatmul.mubr.msk.f32.vlgmr.msra.gmra.mrb[64].mxu1 %vm1844_vm2, %v17874_v61 }
 0x373   : > { %v12826_v42 = vpop.f32.mrb[131].mxu0  ;;  %14565 = vmatprep.mubr.msk.f32.mxu1 %vm1844_vm2, %v17887_v38  ;;  %14611 = vmatpush3.msk.msra.mxu1 %vm1941_vm1, %v17876_v15 }
 0x374   : > { %v12827_v0 = vadd.f32 %v12826_v42, %v12825_v17 }
 0x376   : > { %14566 = vmatmul.mubr.msk.f32.gmra.mrb[66].mxu1 %vm1844_vm2, %v17896_v3 }
 0x377   : > { %14568 = vmatprep.mubr.msk.f32.mxu1 %vm1844_vm2, %v17905_v39 }
 0x378   : > { %v12828_v16 = vpop.f32.mrb[132].mxu0 }
 0x379   : > { %v12829_v19 = vpop.f32.mrb[133].mxu0 }
 0x37a   : > { %v12830_v20 = vadd.f32 %v12829_v19, %v12828_v16  ;;  %v12831_v32 = vpop.f32.mrb[134].mxu0  ;;  %14569 = vmatmul.mubr.msk.f32.gmra.mrb[68].mxu1 %vm1844_vm2, %v17914_v10 }
 0x37b   : > { %v12832_v47 = vpop.f32.mrb[135].mxu0  ;;  %14571 = vmatprep.mubr.msk.f32.mxu1 %vm1844_vm2, %v17923_v1 }
 0x37c   : > { %v12833_v55 = vadd.f32 %v12832_v47, %v12831_v32 }
 0x37e   : > { %14572 = vmatmul.mubr.msk.f32.gmra.mrb[70].mxu1 %vm1844_vm2, %v17932_v4 }
 0x37f   : > { %14574 = vmatprep.mubr.msk.f32.mxu1 %vm1844_vm2, %v12800_v49 }
 0x380   : > { %v12834_v46 = vpop.f32.mrb[136].mxu0 }
 0x381   : > { %v12835_v61 = vpop.f32.mrb[137].mxu0 }
 0x382   : > { %v12836_v15 = vadd.f32 %v12835_v61, %v12834_v46  ;;  %v12837_v51 = vpop.f32.mrb[138].mxu0  ;;  %14575 = vmatmul.mubr.msk.f32.gmra.mrb[72].mxu1 %vm1844_vm2, %v12803_v37 }
 0x383   : > { %v12838_v52 = vpop.f32.mrb[139].mxu0  ;;  %14577 = vmatprep.mubr.msk.f32.mxu1 %vm1844_vm2, %v12806_v59 }
 0x384   : > { %v12839_v5 = vadd.f32 %v12838_v52, %v12837_v51 }
 0x386   : > { %14578 = vmatmul.mubr.msk.f32.gmra.mrb[74].mxu1 %vm1844_vm2, %v12809_v50 }
 0x387   : > { %14580 = vmatprep.mubr.msk.f32.mxu1 %vm1844_vm2, %v12812_v29 }
 0x388   : > { %v12840_v38 = vpop.f32.mrb[140].mxu0 }
 0x389   : > { %v12841_v7 = vpop.f32.mrb[141].mxu0 }
 0x38a   : > { %v12842_v8 = vadd.f32 %v12841_v7, %v12840_v38  ;;  %v12843_v22 = vpop.f32.mrb[142].mxu0  ;;  %14581 = vmatmul.mubr.msk.f32.gmra.mrb[76].mxu1 %vm1844_vm2, %v12815_v13 }
 0x38b   : > { %v12844_v3 = vpop.f32.mrb[143].mxu0  ;;  %14583 = vmatprep.mubr.msk.f32.mxu1 %vm1844_vm2, %v12818_v21 }
 0x38c   : > { %v12845_v43 = vadd.f32 %v12844_v3, %v12843_v22 }
 0x38e   : > { %14584 = vmatmul.mubr.msk.f32.gmra.mrb[78].mxu1 %vm1844_vm2, %v12821_v12 }
 0x38f   : > { %14586 = vmatprep.mubr.msk.f32.mxu1 %vm1844_vm2, %v12824_v63 }
 0x390   : > { %v12846_v44 = vpop.f32.mrb[144].mxu0 }
 0x391   : > { %v12847_v53 = vpop.f32.mrb[145].mxu0 }
 0x392   : > { %v12848_v39 = vadd.f32 %v12847_v53, %v12846_v44  ;;  %v12849_v23 = vpop.f32.mrb[146].mxu0  ;;  %14587 = vmatmul.mubr.msk.f32.gmra.mrb[80].mxu1 %vm1844_vm2, %v12827_v0 }
 0x393   : > { %v12850_v35 = vpop.f32.mrb[147].mxu0  ;;  %14589 = vmatprep.mubr.msk.f32.mxu1 %vm1844_vm2, %v12830_v20 }
 0x394   : > { %v12851_v36 = vadd.f32 %v12850_v35, %v12849_v23 }
 0x396   : > { %14590 = vmatmul.mubr.msk.f32.gmra.mrb[82].mxu1 %vm1844_vm2, %v12833_v55 }
 0x397   : > { %14592 = vmatprep.mubr.msk.f32.mxu1 %vm1844_vm2, %v12836_v15 }
 0x398   : > { %v12852_v10 = vpop.f32.mrb[148].mxu0 }
 0x399   : > { %v12853_v41 = vpop.f32.mrb[149].mxu0 }
 0x39a   : > { %v12854_v34 = vadd.f32 %v12853_v41, %v12852_v10  ;;  %v12855_v27 = vpop.f32.mrb[150].mxu0  ;;  %14593 = vmatmul.mubr.msk.f32.gmra.mrb[84].mxu1 %vm1844_vm2, %v12839_v5 }
 0x39b   : > { %v12856_v1 = vpop.f32.mrb[151].mxu0  ;;  %14595 = vmatprep.mubr.msk.f32.mxu1 %vm1844_vm2, %v12842_v8 }
 0x39c   : > { %v12857_v58 = vadd.f32 %v12856_v1, %v12855_v27 }
 0x39e   : > { %14596 = vmatmul.mubr.msk.f32.gmra.mrb[86].mxu1 %vm1844_vm2, %v12845_v43 }
 0x39f   : > { %14598 = vmatprep.mubr.msk.f32.mxu1 %vm1844_vm2, %v12848_v39 }
 0x3a0   : > { %v12858_v62 = vpop.f32.mrb[152].mxu0 }
 0x3a1   : > { %v12859_v24 = vpop.f32.mrb[153].mxu0 }
 0x3a2   : > { %v12860_v4 = vadd.f32 %v12859_v24, %v12858_v62  ;;  %v12861_v6 = vpop.f32.mrb[154].mxu0  ;;  %14599 = vmatmul.mubr.msk.f32.gmra.mrb[88].mxu1 %vm1844_vm2, %v12851_v36 }
 0x3a3   : > { %v12862_v28 = vpop.f32.mrb[155].mxu0  ;;  %14601 = vmatprep.mubr.msk.f32.mxu1 %vm1844_vm2, %v12854_v34 }
 0x3a4   : > { %v12863_v18 = vadd.f32 %v12862_v28, %v12861_v6 }
 0x3a6   : > { %14602 = vmatmul.mubr.msk.f32.gmra.mrb[90].mxu1 %vm1844_vm2, %v12857_v58 }
 0x3a7   : > { %14604 = vmatprep.mubr.msk.f32.mxu1 %vm1844_vm2, %v12860_v4 }
 0x3a8   : > { %v12864_v49 = vpop.f32.mrb[156].mxu0 }
 0x3a9   : > { %v12865_v48 = vpop.f32.mrb[157].mxu0 }
 0x3aa   : > { %v12866_v31 = vadd.f32 %v12865_v48, %v12864_v49  ;;  %v12867_v37 = vpop.f32.mrb[158].mxu0  ;;  %14605 = vmatmul.mubr.msk.f32.gmra.mrb[92].mxu1 %vm1844_vm2, %v12863_v18 }
 0x3ab   : > { %v12868_v11 = vpop.f32.mrb[159].mxu0 }
 0x3ac   : > { %v12869_v56 = vadd.f32 %v12868_v11, %v12867_v37  ;;  %14607 = vmatprep.mubr.msk.f32.mxu1 %vm1844_vm2, %v12866_v31 }
 0x3ae   : > { %14608 = vmatmul.mubr.msk.f32.gmra.mrb[94].mxu1 %vm1844_vm2, %v12869_v56 }
 0x3b0   : > { %v12919_v59 = vpop.f32.mrb[160].mxu0 }
 0x3b1   : > { %v12920_v45 = vpop.f32.mrb[161].mxu0 }
 0x3b2   : > { %v12921_v25 = vadd.f32 %v12920_v45, %v12919_v59  ;;  %v12922_v50 = vpop.f32.mrb[162].mxu0 }
 0x3b3   : > { %v12923_v9 = vpop.f32.mrb[163].mxu0 }
 0x3b4   : > { %v12924_v54 = vadd.f32 %v12923_v9, %v12922_v50  ;;  %14612 = vmatprep.mubr.msk.f32.mxu1 %vm1844_vm2, %v12921_v25 }
 0x3b6   : > { %14613 = vmatmul.mubr.msk.f32.vlgmr.msra.gmra.mrb[64].mxu1 %vm1844_vm2, %v12924_v54 }
 0x3b8   : > { %v12925_v29 = vpop.f32.mrb[164].mxu0 }
 0x3b9   : > { %v12926_v60 = vpop.f32.mrb[165].mxu0 }
 0x3ba   : > { %v12927_v57 = vadd.f32 %v12926_v60, %v12925_v29  ;;  %v12928_v13 = vpop.f32.mrb[166].mxu0 }
 0x3bb   : > { %v12929_v33 = vpop.f32.mrb[167].mxu0 }
 0x3bc   : > { %v12930_v40 = vadd.f32 %v12929_v33, %v12928_v13  ;;  %14615 = vmatprep.mubr.msk.f32.mxu1 %vm1844_vm2, %v12927_v57 }
 0x3be   : > { %14616 = vmatmul.mubr.msk.f32.gmra.mrb[66].mxu1 %vm1844_vm2, %v12930_v40 }
 0x3c0   : > { %v12931_v21 = vpop.f32.mrb[168].mxu0 }
 0x3c1   : > { %v12932_v14 = vpop.f32.mrb[169].mxu0 }
 0x3c2   : > { %v12933_v2 = vadd.f32 %v12932_v14, %v12931_v21  ;;  %v12934_v12 = vpop.f32.mrb[170].mxu0 }
 0x3c3   : > { %v12935_v30 = vpop.f32.mrb[171].mxu0 }
 0x3c4   : > { %v12936_v26 = vadd.f32 %v12935_v30, %v12934_v12  ;;  %14618 = vmatprep.mubr.msk.f32.mxu1 %vm1844_vm2, %v12933_v2 }
 0x3c6   : > { %14619 = vmatmul.mubr.msk.f32.gmra.mrb[68].mxu1 %vm1844_vm2, %v12936_v26 }
 0x3c8   : > { %v12937_v63 = vpop.f32.mrb[172].mxu0 }
 0x3c9   : > { %v12938_v17 = vpop.f32.mrb[173].mxu0 }
 0x3ca   : > { %v12939_v42 = vadd.f32 %v12938_v17, %v12937_v63  ;;  %v12940_v0 = vpop.f32.mrb[174].mxu0 }
 0x3cb   : > { %v12941_v16 = vpop.f32.mrb[175].mxu0 }
 0x3cc   : > { %v12942_v19 = vadd.f32 %v12941_v16, %v12940_v0  ;;  %14621 = vmatprep.mubr.msk.f32.mxu1 %vm1844_vm2, %v12939_v42 }
 0x3ce   : > { %14622 = vmatmul.mubr.msk.f32.gmra.mrb[70].mxu1 %vm1844_vm2, %v12942_v19 }
 0x3d0   : > { %v12943_v20 = vpop.f32.mrb[176].mxu0 }
 0x3d1   : > { %v12944_v32 = vpop.f32.mrb[177].mxu0 }
 0x3d2   : > { %v12945_v47 = vadd.f32 %v12944_v32, %v12943_v20  ;;  %v12946_v55 = vpop.f32.mrb[178].mxu0 }
 0x3d3   : > { %v12947_v46 = vpop.f32.mrb[179].mxu0 }
 0x3d4   : > { %v12948_v61 = vadd.f32 %v12947_v46, %v12946_v55  ;;  %14624 = vmatprep.mubr.msk.f32.mxu1 %vm1844_vm2, %v12945_v47 }
 0x3d6   : > { %14625 = vmatmul.mubr.msk.f32.gmra.mrb[72].mxu1 %vm1844_vm2, %v12948_v61 }
 0x3d8   : > { %v12949_v15 = vpop.f32.mrb[180].mxu0 }
 0x3d9   : > { %v12950_v51 = vpop.f32.mrb[181].mxu0 }
 0x3da   : > { %v12951_v52 = vadd.f32 %v12950_v51, %v12949_v15  ;;  %v12952_v5 = vpop.f32.mrb[182].mxu0 }
 0x3db   : > { %v12953_v38 = vpop.f32.mrb[183].mxu0 }
 0x3dc   : > { %v12954_v7 = vadd.f32 %v12953_v38, %v12952_v5  ;;  %14627 = vmatprep.mubr.msk.f32.mxu1 %vm1844_vm2, %v12951_v52  ;;  %v18045_v52 = vpop.permute.xlu1 %4037  ;;  %v18047_v5 = vpop.permute.xlu0 %4032 }
 0x3de   : > { %14628 = vmatmul.mubr.msk.f32.gmra.mrb[74].mxu1 %vm1844_vm2, %v12954_v7 }
 0x3e0   : > { %v12955_v8 = vpop.f32.mrb[184].mxu0  ;;  %v3958_v38 = vpop.permute.xlu1 %3957 }
 0x3e1   : > { %v12956_v22 = vpop.f32.mrb[185].mxu0  ;;  %v3953_v7 = vpop.permute.xlu0 %3952 }
 0x3e2   : > { %v12957_v3 = vadd.f32 %v12956_v22, %v12955_v8  ;;  %v12958_v43 = vpop.f32.mrb[186].mxu0 }
 0x3e3   : > { %v12959_v44 = vpop.f32.mrb[187].mxu0 }
 0x3e4   : > { %v12960_v53 = vadd.f32 %v12959_v44, %v12958_v43  ;;  %14630 = vmatprep.mubr.msk.f32.mxu1 %vm1844_vm2, %v12957_v3  ;;  %v18049_v8 = vpop.permute.xlu1 %4047 }
 0x3e5   : > { %v18051_v22 = vpop.permute.xlu0 %4042 }
 0x3e6   : > { %14631 = vmatmul.mubr.msk.f32.gmra.mrb[76].mxu1 %vm1844_vm2, %v12960_v53 }
 0x3e8   : > { %v12961_v39 = vpop.f32.mrb[188].mxu0  ;;  %v3968_v3 = vpop.permute.xlu1 %3967 }
 0x3e9   : > { %v12962_v23 = vpop.f32.mrb[189].mxu0  ;;  %v3963_v43 = vpop.permute.xlu0 %3962 }
 0x3ea   : > { %v12963_v35 = vadd.f32 %v12962_v23, %v12961_v39  ;;  %v12964_v36 = vpop.f32.mrb[190].mxu0 }
 0x3eb   : > { %v12965_v10 = vpop.f32.mrb[191].mxu0 }
 0x3ec   : > { %v12966_v41 = vadd.f32 %v12965_v10, %v12964_v36  ;;  %14633 = vmatprep.mubr.msk.f32.mxu1 %vm1844_vm2, %v12963_v35  ;;  %v18053_v44 = vpop.permute.xlu1 %4057 }
 0x3ed   : > { %v18055_v53 = vpop.permute.xlu0 %4052 }
 0x3ee   : > { %14634 = vmatmul.mubr.msk.f32.gmra.mrb[78].mxu1 %vm1844_vm2, %v12966_v41 }
 0x3f0   : > { %v12967_v34 = vpop.f32.mrb[192].mxu0  ;;  %v3978_v39 = vpop.permute.xlu1 %3977 }
 0x3f1   : > { %v12968_v27 = vpop.f32.mrb[193].mxu0  ;;  %v3973_v23 = vpop.permute.xlu0 %3972 }
 0x3f2   : > { %v12969_v1 = vadd.f32 %v12968_v27, %v12967_v34  ;;  %v12970_v58 = vpop.f32.mrb[194].mxu0  ;;  %v15823_v27 = vld [vmem:[#allocation5 + $0x104] ss:$8 sps:$4 sm:$0xff]  }
 0x3f3   : > { %v12971_v62 = vpop.f32.mrb[195].mxu0  ;;  %4769 = vmatprep.mubr.bf16.mxu0 %v15823_v27 }
 0x3f4   : > { %v12972_v24 = vadd.f32 %v12971_v62, %v12970_v58  ;;  %14636 = vmatprep.mubr.msk.f32.mxu1 %vm1844_vm2, %v12969_v1  ;;  %v18057_v41 = vpop.permute.xlu1 %4067 }
 0x3f5   : > { %v18059_v1 = vpop.permute.xlu0 %4062 }
 0x3f6   : > { %14637 = vmatmul.mubr.msk.f32.gmra.mrb[80].mxu1 %vm1844_vm2, %v12972_v24 }
 0x3f8   : > { %v12973_v4 = vpop.f32.mrb[196].mxu0 }
 0x3f9   : > { %v12974_v6 = vpop.f32.mrb[197].mxu0 }
 0x3fa   : > { %v12975_v28 = vadd.f32 %v12974_v6, %v12973_v4  ;;  %v12976_v18 = vpop.f32.mrb[198].mxu0  ;;  %v3988_v4 = vpop.permute.xlu1 %3987 }
 0x3fb   : > { %v12977_v49 = vpop.f32.mrb[199].mxu0 }
 0x3fc   : > { %v12978_v48 = vadd.f32 %v12977_v49, %v12976_v18  ;;  %14639 = vmatprep.mubr.msk.f32.mxu1 %vm1844_vm2, %v12975_v28  ;;  %v3983_v28 = vpop.permute.xlu0 %3982 }
 0x3fe   : > { %14640 = vmatmul.mubr.msk.f32.gmra.mrb[82].mxu1 %vm1844_vm2, %v12978_v48 }
 0x400   : > { %v12979_v31 = vpop.f32.mrb[200].mxu0 }
 0x401   : > { %v12980_v37 = vpop.f32.mrb[201].mxu0 }
 0x402   : > { %v12981_v11 = vadd.f32 %v12980_v37, %v12979_v31  ;;  %v12982_v56 = vpop.f32.mrb[202].mxu0 }
 0x403   : > { %v12983_v59 = vpop.f32.mrb[203].mxu0 }
 0x404   : > { %v12984_v45 = vadd.f32 %v12983_v59, %v12982_v56  ;;  %14642 = vmatprep.mubr.msk.f32.mxu1 %vm1844_vm2, %v12981_v11  ;;  %v18063_v11 = vpop.permute.xlu1 %4077  ;;  %v18067_v59 = vpop.permute.xlu0 %4072 }
 0x406   : > { %14643 = vmatmul.mubr.msk.f32.gmra.mrb[84].mxu1 %vm1844_vm2, %v12984_v45 }
 0x408   : > { %v12985_v25 = vpop.f32.mrb[204].mxu0 }
 0x409   : > { %v12986_v50 = vpop.f32.mrb[205].mxu0 }
 0x40a   : > { %v12987_v9 = vadd.f32 %v12986_v50, %v12985_v25  ;;  %v12988_v54 = vpop.f32.mrb[206].mxu0 }
 0x40b   : > { %v12989_v29 = vpop.f32.mrb[207].mxu0 }
 0x40c   : > { %v12990_v60 = vadd.f32 %v12989_v29, %v12988_v54  ;;  %14645 = vmatprep.mubr.msk.f32.mxu1 %vm1844_vm2, %v12987_v9  ;;  %v3998_v29 = vpop.permute.xlu1 %3997 }
 0x40e   : > { %14646 = vmatmul.mubr.msk.f32.gmra.mrb[86].mxu1 %vm1844_vm2, %v12990_v60 }
 0x410   : > { %v12991_v57 = vpop.f32.mrb[208].mxu0 }
 0x411   : > { %v12992_v13 = vpop.f32.mrb[209].mxu0 }
 0x412   : > { %v12993_v33 = vadd.f32 %v12992_v13, %v12991_v57  ;;  %v12994_v40 = vpop.f32.mrb[210].mxu0  ;;  %v3993_v57 = vpop.permute.xlu0 %3992 }
 0x413   : > { %v12995_v21 = vpop.f32.mrb[211].mxu0 }
 0x414   : > { %v12996_v14 = vadd.f32 %v12995_v21, %v12994_v40  ;;  %14648 = vmatprep.mubr.msk.f32.mxu1 %vm1844_vm2, %v12993_v33 }
 0x416   : > { %14649 = vmatmul.mubr.msk.f32.gmra.mrb[88].mxu1 %vm1844_vm2, %v12996_v14  ;;  %v18071_v14 = vpop.permute.xlu1 %4087 }
 0x418   : > { %v12997_v2 = vpop.f32.mrb[212].mxu0 }
 0x419   : > { %v12998_v12 = vpop.f32.mrb[213].mxu0 }
 0x41a   : > { %v12999_v30 = vadd.f32 %v12998_v12, %v12997_v2  ;;  %v13000_v26 = vpop.f32.mrb[214].mxu0  ;;  %v18073_v12 = vpop.permute.xlu0 %4082 }
 0x41b   : > { %v13001_v63 = vpop.f32.mrb[215].mxu0 }
 0x41c   : > { %v13002_v17 = vadd.f32 %v13001_v63, %v13000_v26  ;;  %14651 = vmatprep.mubr.msk.f32.mxu1 %vm1844_vm2, %v12999_v30 }
 0x41e   : > { %14652 = vmatmul.mubr.msk.f32.gmra.mrb[90].mxu1 %vm1844_vm2, %v13002_v17  ;;  %v4008_v17 = vpop.permute.xlu1 %4007 }
 0x420   : > { %v13003_v42 = vpop.f32.mrb[216].mxu0 }
 0x421   : > { %v13004_v0 = vpop.f32.mrb[217].mxu0 }
 0x422   : > { %v13005_v16 = vadd.f32 %v13004_v0, %v13003_v42  ;;  %v13006_v19 = vpop.f32.mrb[218].mxu0  ;;  %v4003_v0 = vpop.permute.xlu0 %4002 }
 0x423   : > { %v13007_v20 = vpop.f32.mrb[219].mxu0 }
 0x424   : > { %v13008_v32 = vadd.f32 %v13007_v20, %v13006_v19  ;;  %14654 = vmatprep.mubr.msk.f32.mxu1 %vm1844_vm2, %v13005_v16 }
 0x426   : > { %14655 = vmatmul.mubr.msk.f32.gmra.mrb[92].mxu1 %vm1844_vm2, %v13008_v32 }
 0x428   : > { %v13009_v47 = vpop.f32.mrb[220].mxu0 }
 0x429   : > { %v13010_v55 = vpop.f32.mrb[221].mxu0 }
 0x42a   : > { %v13011_v46 = vadd.f32 %v13010_v55, %v13009_v47  ;;  %v13012_v61 = vpop.f32.mrb[222].mxu0  ;;  %v18077_v55 = vpop.permute.xlu1 %4097 }
 0x42b   : > { %v13013_v15 = vpop.f32.mrb[223].mxu0 }
 0x42c   : > { %v13014_v51 = vadd.f32 %v13013_v15, %v13012_v61  ;;  %14657 = vmatprep.mubr.msk.f32.mxu1 %vm1844_vm2, %v13011_v46  ;;  %v18081_v61 = vpop.permute.xlu0 %4092 }
 0x42e   : > { %14658 = vmatmul.mubr.msk.f32.gmra.mrb[94].mxu1 %vm1844_vm2, %v13014_v51 }
 0x489   : > { %v14614_v35 = vpop.f32.mrb[64].mxu1 }
 0x48a   : > { %v4111_v36 = vadd.f32 %v14614_v35, %v3958_v38  ;;  %v3727_v10 = vpop.f32.mrb[65].mxu1 }
 0x48b   : > { %v4110_v34 = vadd.f32 %v3953_v7, %v3727_v10 }
 0x48c   : > { %v4143_v58 = vmax.f32 %v4111_v36, 0.0 }
 0x48d   : > { %v4142_v62 = vmax.f32 %v4110_v34, 0.0 }
 0x48f   : > { %v18061_v24 = vpack.c.bf16 %v4143_v58, %v4142_v62 }
 0x491   : > { %v14617_v6 = vpop.f32.mrb[66].mxu1 }
 0x492   : > { %v4113_v18 = vadd.f32 %v14617_v6, %v3968_v3  ;;  %v3737_v49 = vpop.f32.mrb[67].mxu1 }
 0x493   : > { %v4112_v48 = vadd.f32 %v3963_v43, %v3737_v49  ;;  %v4018_v43 = vpop.permute.xlu1 %4017 }
 0x494   : > { %v4145_v31 = vmax.f32 %v4113_v18, 0.0 }
 0x495   : > { %v4144_v37 = vmax.f32 %v4112_v48, 0.0 }
 0x497   : > { %v18065_v56 = vpack.c.bf16 %v4145_v31, %v4144_v37  ;;  %v18085_v27 = vpop.permute.xlu1 %4107 }
 0x499   : > { %v14620_v45 = vpop.f32.mrb[68].mxu1 }
 0x49a   : > { %v4115_v25 = vadd.f32 %v14620_v45, %v3978_v39  ;;  %v3747_v50 = vpop.f32.mrb[69].mxu1 }
 0x49b   : > { %v4114_v9 = vadd.f32 %v3973_v23, %v3747_v50  ;;  %v4013_v23 = vpop.permute.xlu0 %4012  ;;  %v4028_v18 = vpop.permute.xlu1 %4027 }
 0x49c   : > { %v4147_v54 = vmax.f32 %v4115_v25, 0.0 }
 0x49d   : > { %v4146_v60 = vmax.f32 %v4114_v9, 0.0  ;;  %v15847_v9 = vld [vmem:[#allocation5 + $0x4] ss:$8 sps:$4 sm:$0xff]  }
 0x49e   : > { %4414 = vmatprep.mubr.bf16.mxu1 %v15847_v9 }
 0x49f   : > { %v18069_v13 = vpack.c.bf16 %v4147_v54, %v4146_v60  ;;  %v18087_v62 = vpop.permute.xlu0 %4102 }
 0x4a1   : > { %v14623_v33 = vpop.f32.mrb[70].mxu1 }
 0x4a2   : > { %v4117_v40 = vadd.f32 %v14623_v33, %v3988_v4  ;;  %v3757_v21 = vpop.f32.mrb[71].mxu1 }
 0x4a3   : > { %v4116_v2 = vadd.f32 %v3983_v28, %v3757_v21  ;;  %v4023_v48 = vpop.permute.xlu0 %4022 }
 0x4a4   : > { %v4149_v30 = vmax.f32 %v4117_v40, 0.0 }
 0x4a5   : > { %v4148_v26 = vmax.f32 %v4116_v2, 0.0 }
 0x4a7   : > { %v18075_v63 = vpack.c.bf16 %v4149_v30, %v4148_v26 }
 0x4a9   : > { %v14626_v42 = vpop.f32.mrb[72].mxu1 }
 0x4aa   : > { %v4119_v16 = vadd.f32 %v14626_v42, %v3998_v29  ;;  %v3767_v19 = vpop.f32.mrb[73].mxu1 }
 0x4ab   : > { %v4118_v20 = vadd.f32 %v3993_v57, %v3767_v19 }
 0x4ac   : > { %v4151_v32 = vmax.f32 %v4119_v16, 0.0 }
 0x4ad   : > { %v4150_v47 = vmax.f32 %v4118_v20, 0.0 }
 0x4af   : > { %v18079_v46 = vpack.c.bf16 %v4151_v32, %v4150_v47 }
 0x4b1   : > { %v14629_v15 = vpop.f32.mrb[74].mxu1 }
 0x4b2   : > { %v4121_v51 = vadd.f32 %v14629_v15, %v4008_v17  ;;  %v3777_v38 = vpop.f32.mrb[75].mxu1 }
 0x4b3   : > { %v4120_v7 = vadd.f32 %v4003_v0, %v3777_v38 }
 0x4b4   : > { %v4153_v3 = vmax.f32 %v4121_v51, 0.0 }
 0x4b5   : > { %v4152_v39 = vmax.f32 %v4120_v7, 0.0 }
 0x4b7   : > { %v18083_v35 = vpack.c.bf16 %v4153_v3, %v4152_v39 }
 0x4b9   : > { %v14632_v36 = vpop.f32.mrb[76].mxu1 }
 0x4ba   : > { %v4123_v10 = vadd.f32 %v14632_v36, %v4018_v43  ;;  %v3787_v34 = vpop.f32.mrb[77].mxu1 }
 0x4bb   : > { %v4122_v58 = vadd.f32 %v4013_v23, %v3787_v34 }
 0x4bc   : > { %v4155_v4 = vmax.f32 %v4123_v10, 0.0 }
 0x4bd   : > { %v4154_v6 = vmax.f32 %v4122_v58, 0.0 }
 0x4bf   : > { %v18089_v28 = vpack.c.bf16 %v4155_v4, %v4154_v6 }
 0x4c1   : > { %v14635_v49 = vpop.f32.mrb[78].mxu1 }
 0x4c2   : > { %v4125_v31 = vadd.f32 %v14635_v49, %v4028_v18  ;;  %v3797_v37 = vpop.f32.mrb[79].mxu1 }
 0x4c3   : > { %v4124_v45 = vadd.f32 %v4023_v48, %v3797_v37 }
 0x4c4   : > { %v4157_v25 = vmax.f32 %v4125_v31, 0.0 }
 0x4c5   : > { %v4156_v50 = vmax.f32 %v4124_v45, 0.0 }
 0x4c7   : > { %v18091_v54 = vpack.c.bf16 %v4157_v25, %v4156_v50 }
 0x4c9   : > { %v14638_v29 = vpop.f32.mrb[80].mxu1 }
 0x4ca   : > { %v4127_v60 = vadd.f32 %v14638_v29, %v18045_v52  ;;  %v3807_v57 = vpop.f32.mrb[81].mxu1 }
 0x4cb   : > { %v4126_v33 = vadd.f32 %v18047_v5, %v3807_v57  ;;  %v15821_v57 = vld [vmem:[#allocation5 + $0x100] ss:$8 sps:$4 sm:$0xff]  }
 0x4cc   : > { %v4159_v40 = vmax.f32 %v4127_v60, 0.0 }
 0x4cd   : > { %v4158_v21 = vmax.f32 %v4126_v33, 0.0  ;;  %v15845_v33 = vld [vmem:[#allocation5] ss:$8 sps:$4 sm:$0xff]  }
 0x4cf   : > { %v18095_v2 = vpack.c.bf16 %v4159_v40, %v4158_v21  ;;  %v15851_v40 = vld [vmem:[#allocation5 + $0x14] ss:$8 sps:$4 sm:$0xff]   ;;  %v15856_v21 = vld [vmem:[#allocation5 + $0x10] ss:$8 sps:$4 sm:$0xff]  }
 0x4d1   : > { %v14641_v30 = vpop.f32.mrb[82].mxu1  ;;  %13048 = vmatprep.subr.bf16.mxu1 %v18095_v2  ;;  %13160 = vmatprep.subr.bf16.mxu0 %v18095_v2 }
 0x4d2   : > { %v4129_v26 = vadd.f32 %v14641_v30, %v18049_v8  ;;  %v3817_v17 = vpop.f32.mrb[83].mxu1  ;;  %13049 = vmatpush3.bf16.msra.mxu1 %v18061_v24  ;;  %13161 = vmatpush3.bf16.msra.mxu0 %v18061_v24  ;;  %v15827_v30 = vld [vmem:[#allocation5 + $0x124] ss:$8 sps:$4 sm:$0xff]  }
 0x4d3   : > { %v4128_v52 = vadd.f32 %v18051_v22, %v3817_v17  ;;  %v15829_v17 = vld [vmem:[#allocation5 + $0x120] ss:$8 sps:$4 sm:$0xff]  }
 0x4d4   : > { %v4161_v42 = vmax.f32 %v4129_v26, 0.0  ;;  %v15857_v26 = vld [vmem:[#allocation5 + $0x24] ss:$8 sps:$4 sm:$0xff]  }
 0x4d5   : > { %v4160_v5 = vmax.f32 %v4128_v52, 0.0  ;;  %v15862_v52 = vld [vmem:[#allocation5 + $0x20] ss:$8 sps:$4 sm:$0xff]  }
 0x4d7   : > { %v18103_v0 = vpack.c.bf16 %v4161_v42, %v4160_v5  ;;  %v15830_v42 = vld [vmem:[#allocation5 + $0x134] ss:$8 sps:$4 sm:$0xff]  }
 0x4d8   : > { %v15863_v5 = vld [vmem:[#allocation5 + $0x34] ss:$8 sps:$4 sm:$0xff]  }
 0x4d9   : > { %v14644_v16 = vpop.f32.mrb[84].mxu1  ;;  %13050 = vmatprep.subr.bf16.mxu1 %v18103_v0  ;;  %13162 = vmatprep.subr.bf16.mxu0 %v18103_v0 }
 0x4da   : > { %v4131_v19 = vadd.f32 %v14644_v16, %v18053_v44  ;;  %v3827_v20 = vpop.f32.mrb[85].mxu1  ;;  %13051 = vmatpush3.bf16.msra.mxu1 %v18065_v56  ;;  %13163 = vmatpush3.bf16.msra.mxu0 %v18065_v56  ;;  %v15832_v16 = vld [vmem:[#allocation5 + $0x130] ss:$8 sps:$4 sm:$0xff]  }
 0x4db   : > { %v4130_v8 = vadd.f32 %v18055_v53, %v3827_v20  ;;  %v15833_v20 = vld [vmem:[#allocation5 + $0x144] ss:$8 sps:$4 sm:$0xff]  }
 0x4dc   : > { %v4163_v32 = vmax.f32 %v4131_v19, 0.0  ;;  %v15868_v19 = vld [vmem:[#allocation5 + $0x30] ss:$8 sps:$4 sm:$0xff]  }
 0x4dd   : > { %v4162_v22 = vmax.f32 %v4130_v8, 0.0  ;;  %v15869_v8 = vld [vmem:[#allocation5 + $0x44] ss:$8 sps:$4 sm:$0xff]  }
 0x4df   : > { %v18111_v47 = vpack.c.bf16 %v4163_v32, %v4162_v22  ;;  %v15835_v32 = vld [vmem:[#allocation5 + $0x140] ss:$8 sps:$4 sm:$0xff]  }
 0x4e0   : > { %v15874_v22 = vld [vmem:[#allocation5 + $0x40] ss:$8 sps:$4 sm:$0xff]  }
 0x4e1   : > { %v14647_v15 = vpop.f32.mrb[86].mxu1  ;;  %13052 = vmatprep.subr.bf16.mxu1 %v18111_v47  ;;  %13164 = vmatprep.subr.bf16.mxu0 %v18111_v47 }
 0x4e2   : > { %v4133_v51 = vadd.f32 %v14647_v15, %v18057_v41  ;;  %v3837_v38 = vpop.f32.mrb[87].mxu1  ;;  %13053 = vmatpush3.bf16.msra.mxu1 %v18069_v13  ;;  %13165 = vmatpush3.bf16.msra.mxu0 %v18069_v13  ;;  %v15836_v15 = vld [vmem:[#allocation5 + $0x154] ss:$8 sps:$4 sm:$0xff]  }
 0x4e3   : > { %v4132_v44 = vadd.f32 %v18059_v1, %v3837_v38  ;;  %v15838_v38 = vld [vmem:[#allocation5 + $0x150] ss:$8 sps:$4 sm:$0xff]  }
 0x4e4   : > { %v4165_v7 = vmax.f32 %v4133_v51, 0.0  ;;  %v15875_v51 = vld [vmem:[#allocation5 + $0x54] ss:$8 sps:$4 sm:$0xff]  }
 0x4e5   : > { %v4164_v53 = vmax.f32 %v4132_v44, 0.0  ;;  %v15880_v44 = vld [vmem:[#allocation5 + $0x50] ss:$8 sps:$4 sm:$0xff]  }
 0x4e7   : > { %v18119_v3 = vpack.c.bf16 %v4165_v7, %v4164_v53  ;;  %v15839_v7 = vld [vmem:[#allocation5 + $0x164] ss:$8 sps:$4 sm:$0xff]  }
 0x4e8   : > { %v15881_v53 = vld [vmem:[#allocation5 + $0x64] ss:$8 sps:$4 sm:$0xff]  }
 0x4e9   : > { %v14650_v43 = vpop.f32.mrb[88].mxu1  ;;  %13054 = vmatprep.subr.bf16.mxu1 %v18119_v3  ;;  %13166 = vmatprep.subr.bf16.mxu0 %v18119_v3 }
 0x4ea   : > { %v4135_v39 = vadd.f32 %v14650_v43, %v18063_v11  ;;  %v3847_v23 = vpop.f32.mrb[89].mxu1  ;;  %13055 = vmatpush3.bf16.msra.mxu1 %v18075_v63  ;;  %13167 = vmatpush3.bf16.msra.mxu0 %v18075_v63  ;;  %v15841_v43 = vld [vmem:[#allocation5 + $0x160] ss:$8 sps:$4 sm:$0xff]  }
 0x4eb   : > { %v4134_v41 = vadd.f32 %v18067_v59, %v3847_v23  ;;  %v15842_v23 = vld [vmem:[#allocation5 + $0x174] ss:$8 sps:$4 sm:$0xff]  }
 0x4ec   : > { %v4167_v36 = vmax.f32 %v4135_v39, 0.0  ;;  %v15886_v39 = vld [vmem:[#allocation5 + $0x60] ss:$8 sps:$4 sm:$0xff]  }
 0x4ed   : > { %v4166_v1 = vmax.f32 %v4134_v41, 0.0  ;;  %v15887_v41 = vld [vmem:[#allocation5 + $0x74] ss:$8 sps:$4 sm:$0xff]  }
 0x4ef   : > { %v18127_v10 = vpack.c.bf16 %v4167_v36, %v4166_v1  ;;  %v15892_v36 = vld [vmem:[#allocation5 + $0x70] ss:$8 sps:$4 sm:$0xff]   ;;  %v15850_v1 = vld [vmem:[#allocation5 + $0x184] ss:$8 sps:$4 sm:$0xff]  }
 0x4f1   : > { %v14653_v34 = vpop.f32.mrb[90].mxu1  ;;  %13056 = vmatprep.subr.bf16.mxu1 %v18127_v10  ;;  %13168 = vmatprep.subr.bf16.mxu0 %v18127_v10 }
 0x4f2   : > { %v4137_v58 = vadd.f32 %v14653_v34, %v18071_v14  ;;  %v3857_v4 = vpop.f32.mrb[91].mxu1  ;;  %13057 = vmatpush3.bf16.msra.mxu1 %v18079_v46  ;;  %13169 = vmatpush3.bf16.msra.mxu0 %v18079_v46  ;;  %v15893_v34 = vld [vmem:[#allocation5 + $0x84] ss:$8 sps:$4 sm:$0xff]  }
 0x4f3   : > { %v4136_v11 = vadd.f32 %v18073_v12, %v3857_v4  ;;  %v15898_v4 = vld [vmem:[#allocation5 + $0x80] ss:$8 sps:$4 sm:$0xff]  }
 0x4f4   : > { %v4169_v6 = vmax.f32 %v4137_v58, 0.0  ;;  %v15848_v58 = vld [vmem:[#allocation5 + $0x180] ss:$8 sps:$4 sm:$0xff]  }
 0x4f5   : > { %v4168_v59 = vmax.f32 %v4136_v11, 0.0  ;;  %v15855_v11 = vld [vmem:[#allocation5 + $0x194] ss:$8 sps:$4 sm:$0xff]  }
 0x4f7   : > { %v18135_v18 = vpack.c.bf16 %v4169_v6, %v4168_v59  ;;  %v15899_v6 = vld [vmem:[#allocation5 + $0x94] ss:$8 sps:$4 sm:$0xff]   ;;  %v15853_v59 = vld [vmem:[#allocation5 + $0x190] ss:$8 sps:$4 sm:$0xff]  }
 0x4f9   : > { %v14656_v49 = vpop.f32.mrb[92].mxu1  ;;  %13058 = vmatprep.subr.bf16.mxu1 %v18135_v18  ;;  %13170 = vmatprep.subr.bf16.mxu0 %v18135_v18 }
 0x4fa   : > { %v4139_v48 = vadd.f32 %v14656_v49, %v18077_v55  ;;  %v3867_v31 = vpop.f32.mrb[93].mxu1  ;;  %13059 = vmatpush3.bf16.msra.mxu1 %v18083_v35  ;;  %13171 = vmatpush3.bf16.msra.mxu0 %v18083_v35  ;;  %v15904_v49 = vld [vmem:[#allocation5 + $0x90] ss:$8 sps:$4 sm:$0xff]  }
 0x4fb   : > { %v4138_v14 = vadd.f32 %v18081_v61, %v3867_v31  ;;  %v15905_v31 = vld [vmem:[#allocation5 + $0xa4] ss:$8 sps:$4 sm:$0xff]  }
 0x4fc   : > { %v4171_v37 = vmax.f32 %v4139_v48, 0.0  ;;  %v15861_v48 = vld [vmem:[#allocation5 + $0x1a4] ss:$8 sps:$4 sm:$0xff]  }
 0x4fd   : > { %v4170_v12 = vmax.f32 %v4138_v14, 0.0  ;;  %v15859_v14 = vld [vmem:[#allocation5 + $0x1a0] ss:$8 sps:$4 sm:$0xff]  }
 0x4ff   : > { %v18143_v45 = vpack.c.bf16 %v4171_v37, %v4170_v12  ;;  %v15910_v37 = vld [vmem:[#allocation5 + $0xa0] ss:$8 sps:$4 sm:$0xff]   ;;  %v15867_v12 = vld [vmem:[#allocation5 + $0x1b4] ss:$8 sps:$4 sm:$0xff]  }
 0x501   : > { %v14659_v25 = vpop.f32.mrb[94].mxu1  ;;  %13060 = vmatprep.subr.bf16.mxu1 %v18143_v45  ;;  %13172 = vmatprep.subr.bf16.mxu0 %v18143_v45 }
 0x502   : > { %v4141_v50 = vadd.f32 %v14659_v25, %v18085_v27  ;;  %v3877_v9 = vpop.f32.mrb[95].mxu1  ;;  %13061 = vmatpush3.bf16.msra.mxu1 %v18089_v28  ;;  %13173 = vmatpush3.bf16.msra.mxu0 %v18089_v28  ;;  %v15824_v27 = vld [vmem:[#allocation5 + $0x114] ss:$8 sps:$4 sm:$0xff]  }
 0x503   : > { %v4140_v55 = vadd.f32 %v18087_v62, %v3877_v9  ;;  %v15826_v62 = vld [vmem:[#allocation5 + $0x110] ss:$8 sps:$4 sm:$0xff]   ;;  %v15911_v25 = vld [vmem:[#allocation5 + $0xb4] ss:$8 sps:$4 sm:$0xff]  }
 0x504   : > { %v4173_v29 = vmax.f32 %v4141_v50, 0.0  ;;  %v15865_v50 = vld [vmem:[#allocation5 + $0x1b0] ss:$8 sps:$4 sm:$0xff]  }
 0x505   : > { %v4172_v61 = vmax.f32 %v4140_v55, 0.0  ;;  %v15916_v9 = vld [vmem:[#allocation5 + $0xb0] ss:$8 sps:$4 sm:$0xff]   ;;  %v15873_v55 = vld [vmem:[#allocation5 + $0x1c4] ss:$8 sps:$4 sm:$0xff]  }
 0x507   : > { %v18151_v60 = vpack.c.bf16 %v4173_v29, %v4172_v61  ;;  %v15917_v29 = vld [vmem:[#allocation5 + $0xc4] ss:$8 sps:$4 sm:$0xff]   ;;  %v11902_v61 = vld [vmem:[%s19224_s7 + $0x8] sm:$0xff] }
 0x509   : > { %13062 = vmatprep.subr.bf16.mxu1 %v18151_v60  ;;  %13174 = vmatprep.subr.bf16.mxu0 %v18151_v60 }
 0x50a   : > { %13063 = vmatpush3.bf16.msra.mxu1 %v18091_v54  ;;  %13175 = vmatpush3.bf16.msra.mxu0 %v18091_v54 }
 0x50b   : > { %13338 = vmatprep.subr.bf16.mxu0 %v18095_v2  ;;  %14660 = vmatprep.subr.mxu1 %v11902_v61 }
 0x50d   : > { %4770 = vmatmul.mubr.bf16.vlgmr.msra.gmra.mrb[224].mxu0 %v15821_v57  ;;  %4415 = vmatmul.mubr.bf16.vlgmr.msra.gmra.mrb[96].mxu1 %v15845_v33  ;;  %v15871_v57 = vld [vmem:[#allocation5 + $0x1c0] ss:$8 sps:$4 sm:$0xff]  }
 0x50e   : > { %13339 = vmatpush3.bf16.msra.mxu0 %v18061_v24  ;;  %4777 = vmatprep.mubr.bf16.mxu0 %v15824_v27  ;;  %v15922_v33 = vld [vmem:[#allocation5 + $0xc0] ss:$8 sps:$4 sm:$0xff]   ;;  %v15879_v27 = vld [vmem:[#allocation5 + $0x1d4] ss:$8 sps:$4 sm:$0xff]  }
 0x50f   : > { %13340 = vmatprep.subr.bf16.mxu0 %v18103_v0  ;;  %4422 = vmatprep.mubr.bf16.mxu1 %v15851_v40  ;;  %v15923_v40 = vld [vmem:[#allocation5 + $0xd4] ss:$8 sps:$4 sm:$0xff]  }
 0x510   : > { %14661 = vmatpush3.msra.mxu1 %v11902_v61 }
 0x512   : > { %13341 = vmatpush3.bf16.msra.mxu0 %v18065_v56 }
 0x513   : > { %13342 = vmatprep.subr.bf16.mxu0 %v18111_v47 }
 0x515   : > { %4778 = vmatmul.mubr.bf16.gmra.mrb[228].mxu0 %v15826_v62  ;;  %4423 = vmatmul.mubr.bf16.gmra.mrb[100].mxu1 %v15856_v21  ;;  %v15877_v62 = vld [vmem:[#allocation5 + $0x1d0] ss:$8 sps:$4 sm:$0xff]  }
 0x516   : > { %13343 = vmatpush3.bf16.msra.mxu0 %v18069_v13  ;;  %4785 = vmatprep.mubr.bf16.mxu0 %v15827_v30  ;;  %v15928_v21 = vld [vmem:[#allocation5 + $0xd0] ss:$8 sps:$4 sm:$0xff]   ;;  %v15885_v30 = vld [vmem:[#allocation5 + $0x1e4] ss:$8 sps:$4 sm:$0xff]  }
 0x517   : > { %13344 = vmatprep.subr.bf16.mxu0 %v18119_v3  ;;  %4430 = vmatprep.mubr.bf16.mxu1 %v15857_v26  ;;  %v15929_v26 = vld [vmem:[#allocation5 + $0xe4] ss:$8 sps:$4 sm:$0xff]  }
 0x51a   : > { %13345 = vmatpush3.bf16.msra.mxu0 %v18075_v63 }
 0x51b   : > { %13346 = vmatprep.subr.bf16.mxu0 %v18127_v10 }
 0x51d   : > { %4786 = vmatmul.mubr.bf16.gmra.mrb[232].mxu0 %v15829_v17  ;;  %4431 = vmatmul.mubr.bf16.gmra.mrb[104].mxu1 %v15862_v52  ;;  %v15883_v17 = vld [vmem:[#allocation5 + $0x1e0] ss:$8 sps:$4 sm:$0xff]  }
 0x51e   : > { %13347 = vmatpush3.bf16.msra.mxu0 %v18079_v46  ;;  %4793 = vmatprep.mubr.bf16.mxu0 %v15830_v42  ;;  %v15934_v52 = vld [vmem:[#allocation5 + $0xe0] ss:$8 sps:$4 sm:$0xff]   ;;  %v15891_v42 = vld [vmem:[#allocation5 + $0x1f4] ss:$8 sps:$4 sm:$0xff]  }
 0x51f   : > { %13348 = vmatprep.subr.bf16.mxu0 %v18135_v18  ;;  %4438 = vmatprep.mubr.bf16.mxu1 %v15863_v5  ;;  %v15935_v5 = vld [vmem:[#allocation5 + $0xf4] ss:$8 sps:$4 sm:$0xff]  }
 0x522   : > { %13349 = vmatpush3.bf16.msra.mxu0 %v18083_v35 }
 0x523   : > { %13350 = vmatprep.subr.bf16.mxu0 %v18143_v45 }
 0x525   : > { %4794 = vmatmul.mubr.bf16.gmra.mrb[236].mxu0 %v15832_v16  ;;  %4439 = vmatmul.mubr.bf16.gmra.mrb[108].mxu1 %v15868_v19  ;;  %v15889_v16 = vld [vmem:[#allocation5 + $0x1f0] ss:$8 sps:$4 sm:$0xff]  }
 0x526   : > { %13351 = vmatpush3.bf16.msra.mxu0 %v18089_v28  ;;  %4801 = vmatprep.mubr.bf16.mxu0 %v15833_v20  ;;  %v15940_v19 = vld [vmem:[#allocation5 + $0xf0] ss:$8 sps:$4 sm:$0xff]   ;;  %v15897_v20 = vld [vmem:[#allocation5 + $0x204] ss:$8 sps:$4 sm:$0xff]  }
 0x527   : > { %13352 = vmatprep.subr.bf16.mxu0 %v18151_v60  ;;  %4446 = vmatprep.mubr.bf16.mxu1 %v15869_v8  ;;  %v15895_v8 = vld [vmem:[#allocation5 + $0x200] ss:$8 sps:$4 sm:$0xff]  }
 0x52a   : > { %13353 = vmatpush3.bf16.msra.mxu0 %v18091_v54 }
 0x52b   : > { %13483 = vmatprep.subr.bf16.mxu0 %v18095_v2  ;;  %v15844_v2 = vld [vmem:[#allocation5 + $0x170] ss:$8 sps:$4 sm:$0xff]  }
 0x52d   : > { %4802 = vmatmul.mubr.bf16.gmra.mrb[240].mxu0 %v15835_v32  ;;  %4447 = vmatmul.mubr.bf16.gmra.mrb[112].mxu1 %v15874_v22  ;;  %v15903_v32 = vld [vmem:[#allocation5 + $0x214] ss:$8 sps:$4 sm:$0xff]   ;;  %v15901_v22 = vld [vmem:[#allocation5 + $0x210] ss:$8 sps:$4 sm:$0xff]  }
 0x52e   : > { %4809 = vmatprep.mubr.bf16.mxu0 %v15836_v15  ;;  %4454 = vmatprep.mubr.bf16.mxu1 %v15875_v51  ;;  %v15909_v15 = vld [vmem:[#allocation5 + $0x224] ss:$8 sps:$4 sm:$0xff]   ;;  %v15907_v51 = vld [vmem:[#allocation5 + $0x220] ss:$8 sps:$4 sm:$0xff]  }
 0x535   : > { %4810 = vmatmul.mubr.bf16.gmra.mrb[244].mxu0 %v15838_v38  ;;  %4455 = vmatmul.mubr.bf16.gmra.mrb[116].mxu1 %v15880_v44  ;;  %v15915_v38 = vld [vmem:[#allocation5 + $0x234] ss:$8 sps:$4 sm:$0xff]  }
 0x536   : > { %4817 = vmatprep.mubr.bf16.mxu0 %v15839_v7  ;;  %4462 = vmatprep.mubr.bf16.mxu1 %v15881_v53  ;;  %v15952_v44 = vld [vmem:[#allocation5 + $0x2b4] ss:$8 sps:$4 sm:$0xff]  }
 0x537   : > { %v4543_v7 = vld [vmem:[%s19224_s7] sm:$0xff] }
 0x538   : > { %14710 = vmatprep.subr.mxu1 %v4543_v7 }
 0x53d   : > { %4818 = vmatmul.mubr.bf16.gmra.mrb[248].mxu0 %v15841_v43  ;;  %4463 = vmatmul.mubr.bf16.gmra.mrb[120].mxu1 %v15886_v39 }
 0x53e   : > { %4825 = vmatprep.mubr.bf16.mxu0 %v15842_v23  ;;  %4470 = vmatprep.mubr.bf16.mxu1 %v15887_v41  ;;  %v15950_v23 = vld [vmem:[#allocation5 + $0x2b0] ss:$8 sps:$4 sm:$0xff]  }
 0x545   : > { %4826 = vmatmul.mubr.bf16.gmra.mrb[252].mxu0 %v15844_v2  ;;  %4471 = vmatmul.mubr.bf16.gmra.mrb[124].mxu1 %v15892_v36 }
 0x546   : > { %4833 = vmatprep.mubr.bf16.mxu0 %v15850_v1  ;;  %4478 = vmatprep.mubr.bf16.mxu1 %v15893_v34  ;;  %v15955_v1 = vld [vmem:[#allocation5 + $0x2c4] ss:$8 sps:$4 sm:$0xff]  }
 0x54d   : > { %4834 = vmatmul.mubr.bf16.gmra.mrb[0].mxu0 %v15848_v58  ;;  %4479 = vmatmul.mubr.bf16.gmra.mrb[128].mxu1 %v15898_v4 }
 0x54e   : > { %4841 = vmatprep.mubr.bf16.mxu0 %v15855_v11  ;;  %4486 = vmatprep.mubr.bf16.mxu1 %v15899_v6 }
 0x555   : > { %4842 = vmatmul.mubr.bf16.gmra.mrb[4].mxu0 %v15853_v59  ;;  %4487 = vmatmul.mubr.bf16.gmra.mrb[132].mxu1 %v15904_v49 }
 0x556   : > { %4849 = vmatprep.mubr.bf16.mxu0 %v15861_v48  ;;  %4494 = vmatprep.mubr.bf16.mxu1 %v15905_v31 }
 0x55d   : > { %4850 = vmatmul.mubr.bf16.gmra.mrb[8].mxu0 %v15859_v14  ;;  %4495 = vmatmul.mubr.bf16.gmra.mrb[136].mxu1 %v15910_v37  ;;  %v15953_v14 = vld [vmem:[#allocation5 + $0x2c0] ss:$8 sps:$4 sm:$0xff]  }
 0x55e   : > { %4857 = vmatprep.mubr.bf16.mxu0 %v15867_v12  ;;  %4502 = vmatprep.mubr.bf16.mxu1 %v15911_v25 }
 0x565   : > { %4858 = vmatmul.mubr.bf16.gmra.mrb[12].mxu0 %v15865_v50  ;;  %4503 = vmatmul.mubr.bf16.gmra.mrb[140].mxu1 %v15916_v9  ;;  %v15958_v50 = vld [vmem:[#allocation5 + $0x2d4] ss:$8 sps:$4 sm:$0xff]  }
 0x566   : > { %4865 = vmatprep.mubr.bf16.mxu0 %v15873_v55  ;;  %4510 = vmatprep.mubr.bf16.mxu1 %v15917_v29 }
 0x56d   : > { %4866 = vmatmul.mubr.bf16.gmra.mrb[16].mxu0 %v15871_v57  ;;  %4511 = vmatmul.mubr.bf16.gmra.mrb[144].mxu1 %v15922_v33 }
 0x56e   : > { %4873 = vmatprep.mubr.bf16.mxu0 %v15879_v27  ;;  %4518 = vmatprep.mubr.bf16.mxu1 %v15923_v40 }
 0x575   : > { %4874 = vmatmul.mubr.bf16.gmra.mrb[20].mxu0 %v15877_v62  ;;  %4519 = vmatmul.mubr.bf16.gmra.mrb[148].mxu1 %v15928_v21  ;;  %v15956_v21 = vld [vmem:[#allocation5 + $0x2d0] ss:$8 sps:$4 sm:$0xff]  }
 0x576   : > { %4881 = vmatprep.mubr.bf16.mxu0 %v15885_v30  ;;  %4526 = vmatprep.mubr.bf16.mxu1 %v15929_v26 }
 0x57d   : > { %4882 = vmatmul.mubr.bf16.gmra.mrb[24].mxu0 %v15883_v17  ;;  %4527 = vmatmul.mubr.bf16.gmra.mrb[152].mxu1 %v15934_v52  ;;  %v15961_v52 = vld [vmem:[#allocation5 + $0x2e4] ss:$8 sps:$4 sm:$0xff]  }
 0x57e   : > { %4889 = vmatprep.mubr.bf16.mxu0 %v15891_v42  ;;  %4534 = vmatprep.mubr.bf16.mxu1 %v15935_v5 }
 0x585   : > { %4890 = vmatmul.mubr.bf16.gmra.mrb[28].mxu0 %v15889_v16  ;;  %4535 = vmatmul.mubr.bf16.gmra.mrb[156].mxu1 %v15940_v19 }
 0x586   : > { %5768 = vmatprep.mubr.bf16.mxu0 %v15897_v20 }
 0x58d   : > { %5769 = vmatmul.mubr.bf16.vlgmr.msra.gmra.mrb[32].mxu0 %v15895_v8 }
 0x58e   : > { %13484 = vmatpush3.bf16.msra.mxu0 %v18061_v24  ;;  %5776 = vmatprep.mubr.bf16.mxu0 %v15903_v32  ;;  %v15913_v24 = vld [vmem:[#allocation5 + $0x230] ss:$8 sps:$4 sm:$0xff]  }
 0x58f   : > { %13485 = vmatprep.subr.bf16.mxu0 %v18103_v0  ;;  %v15933_v0 = vld [vmem:[#allocation5 + $0x264] ss:$8 sps:$4 sm:$0xff]  }
 0x592   : > { %13486 = vmatpush3.bf16.msra.mxu0 %v18065_v56  ;;  %v15921_v56 = vld [vmem:[#allocation5 + $0x244] ss:$8 sps:$4 sm:$0xff]  }
 0x593   : > { %13487 = vmatprep.subr.bf16.mxu0 %v18111_v47  ;;  %v15939_v47 = vld [vmem:[#allocation5 + $0x274] ss:$8 sps:$4 sm:$0xff]  }
 0x595   : > { %5777 = vmatmul.mubr.bf16.gmra.mrb[36].mxu0 %v15901_v22 }
 0x596   : > { %13488 = vmatpush3.bf16.msra.mxu0 %v18069_v13  ;;  %5784 = vmatprep.mubr.bf16.mxu0 %v15909_v15  ;;  %v15919_v13 = vld [vmem:[#allocation5 + $0x240] ss:$8 sps:$4 sm:$0xff]  }
 0x597   : > { %13489 = vmatprep.subr.bf16.mxu0 %v18119_v3  ;;  %v15937_v3 = vld [vmem:[#allocation5 + $0x270] ss:$8 sps:$4 sm:$0xff]  }
 0x59a   : > { %13490 = vmatpush3.bf16.msra.mxu0 %v18075_v63  ;;  %v15927_v63 = vld [vmem:[#allocation5 + $0x254] ss:$8 sps:$4 sm:$0xff]  }
 0x59b   : > { %13491 = vmatprep.subr.bf16.mxu0 %v18127_v10  ;;  %v15943_v10 = vld [vmem:[#allocation5 + $0x284] ss:$8 sps:$4 sm:$0xff]  }
 0x59d   : > { %5785 = vmatmul.mubr.bf16.gmra.mrb[40].mxu0 %v15907_v51  ;;  %v15959_v51 = vld [vmem:[#allocation5 + $0x2e0] ss:$8 sps:$4 sm:$0xff]  }
 0x59e   : > { %13492 = vmatpush3.bf16.msra.mxu0 %v18079_v46  ;;  %5792 = vmatprep.mubr.bf16.mxu0 %v15915_v38  ;;  %v15925_v46 = vld [vmem:[#allocation5 + $0x250] ss:$8 sps:$4 sm:$0xff]  }
 0x59f   : > { %13493 = vmatprep.subr.bf16.mxu0 %v18135_v18  ;;  %v15946_v18 = vld [vmem:[#allocation5 + $0x294] ss:$8 sps:$4 sm:$0xff]  }
 0x5a2   : > { %13494 = vmatpush3.bf16.msra.mxu0 %v18083_v35  ;;  %v15931_v35 = vld [vmem:[#allocation5 + $0x260] ss:$8 sps:$4 sm:$0xff]  }
 0x5a3   : > { %13495 = vmatprep.subr.bf16.mxu0 %v18143_v45  ;;  %v15949_v45 = vld [vmem:[#allocation5 + $0x2a4] ss:$8 sps:$4 sm:$0xff]  }
 0x5a5   : > { %5793 = vmatmul.mubr.bf16.gmra.mrb[44].mxu0 %v15913_v24 }
 0x5a6   : > { %13496 = vmatpush3.bf16.msra.mxu0 %v18089_v28  ;;  %5800 = vmatprep.mubr.bf16.mxu0 %v15921_v56  ;;  %v15941_v28 = vld [vmem:[#allocation5 + $0x280] ss:$8 sps:$4 sm:$0xff]  }
 0x5a7   : > { %13497 = vmatprep.subr.bf16.mxu0 %v18151_v60  ;;  %v15947_v60 = vld [vmem:[#allocation5 + $0x2a0] ss:$8 sps:$4 sm:$0xff]  }
 0x5aa   : > { %13498 = vmatpush3.bf16.msra.mxu0 %v18091_v54  ;;  %v15944_v54 = vld [vmem:[#allocation5 + $0x290] ss:$8 sps:$4 sm:$0xff]  }
 0x5ad   : > { %5801 = vmatmul.mubr.bf16.gmra.mrb[48].mxu0 %v15919_v13  ;;  %v15964_v13 = vld [vmem:[#allocation5 + $0x2f4] ss:$8 sps:$4 sm:$0xff]  }
 0x5ae   : > { %5808 = vmatprep.mubr.bf16.mxu0 %v15927_v63 }
 0x5b5   : > { %5809 = vmatmul.mubr.bf16.gmra.mrb[52].mxu0 %v15925_v46 }
 0x5b6   : > { %5816 = vmatprep.mubr.bf16.mxu0 %v15933_v0 }
 0x5bd   : > { %5817 = vmatmul.mubr.bf16.gmra.mrb[56].mxu0 %v15931_v35 }
 0x5be   : > { %5824 = vmatprep.mubr.bf16.mxu0 %v15939_v47 }
 0x5c5   : > { %5825 = vmatmul.mubr.bf16.gmra.mrb[60].mxu0 %v15937_v3 }
 0x5c6   : > { %5832 = vmatprep.mubr.bf16.mxu0 %v15943_v10 }
 0x5cd   : > { %5833 = vmatmul.mubr.bf16.gmra.mrb[64].mxu0 %v15941_v28 }
 0x5ce   : > { %5840 = vmatprep.mubr.bf16.mxu0 %v15946_v18 }
 0x5d5   : > { %5841 = vmatmul.mubr.bf16.gmra.mrb[68].mxu0 %v15944_v54  ;;  %v15962_v54 = vld [vmem:[#allocation5 + $0x2f0] ss:$8 sps:$4 sm:$0xff]  }
 0x5d6   : > { %5848 = vmatprep.mubr.bf16.mxu0 %v15949_v45 }
 0x5dd   : > { %5849 = vmatmul.mubr.bf16.gmra.mrb[72].mxu0 %v15947_v60 }
 0x5de   : > { %5856 = vmatprep.mubr.bf16.mxu0 %v15952_v44 }
 0x5e0   : > { %v13176_v53 = vpop.f32.mrb[224].mxu0  ;;  %v13064_v43 = vpop.f32.mrb[96].mxu1 }
 0x5e1   : > { %v13177_v39 = vpop.f32.mrb[225].mxu0  ;;  %v13065_v41 = vpop.f32.mrb[97].mxu1 }
 0x5e2   : > { %v13178_v2 = vadd.f32 %v13177_v39, %v13176_v53  ;;  %v13179_v36 = vpop.f32.mrb[226].mxu0  ;;  %v18195_v34 = vadd.f32 %v13065_v41, %v13064_v43  ;;  %v13067_v58 = vpop.f32.mrb[98].mxu1 }
 0x5e3   : > { %v13180_v4 = vpop.f32.mrb[227].mxu0  ;;  %v13068_v11 = vpop.f32.mrb[99].mxu1 }
 0x5e4   : > { %v13181_v6 = vadd.f32 %v13180_v4, %v13179_v36  ;;  %14662 = vmatprep.mubr.msk.f32.mxu1 %vm4900_vm3, %v13178_v2  ;;  %v18198_v59 = vadd.f32 %v13068_v11, %v13067_v58  ;;  %v15965_v4 = vld [vmem:[#allocation5 + $0x300] ss:$8 sps:$4 sm:$0xff]  }
 0x5e5   : > { %5857 = vmatmul.mubr.bf16.gmra.mrb[76].mxu0 %v15950_v23 }
 0x5e6   : > { %14663 = vmatmul.mubr.msk.f32.vlgmr.msra.gmra.mrb[160].mxu1 %vm4900_vm3, %v13181_v6  ;;  %5864 = vmatprep.mubr.bf16.mxu0 %v15955_v1 }
 0x5e7   : > { %14711 = vmatpush3.msra.mxu1 %v4543_v7  ;;  %v15967_v7 = vld [vmem:[#allocation5 + $0x304] ss:$8 sps:$4 sm:$0xff]  }
 0x5e8   : > { %v13182_v49 = vpop.f32.mrb[228].mxu0  ;;  %v13070_v48 = vpop.f32.mrb[100].mxu1 }
 0x5e9   : > { %v13183_v31 = vpop.f32.mrb[229].mxu0  ;;  %v13071_v37 = vpop.f32.mrb[101].mxu1 }
 0x5ea   : > { %v13184_v12 = vadd.f32 %v13183_v31, %v13182_v49  ;;  %v13185_v25 = vpop.f32.mrb[230].mxu0  ;;  %v18201_v9 = vadd.f32 %v13071_v37, %v13070_v48  ;;  %v13073_v55 = vpop.f32.mrb[102].mxu1  ;;  %v15970_v48 = vld [vmem:[#allocation5 + $0x314] ss:$8 sps:$4 sm:$0xff]  }
 0x5eb   : > { %v13186_v29 = vpop.f32.mrb[231].mxu0  ;;  %v13074_v61 = vpop.f32.mrb[103].mxu1 }
 0x5ec   : > { %v13187_v57 = vadd.f32 %v13186_v29, %v13185_v25  ;;  %14665 = vmatprep.mubr.msk.f32.mxu1 %vm4900_vm3, %v13184_v12  ;;  %v18204_v33 = vadd.f32 %v13074_v61, %v13073_v55 }
 0x5ed   : > { %5865 = vmatmul.mubr.bf16.gmra.mrb[80].mxu0 %v15953_v14 }
 0x5ee   : > { %14666 = vmatmul.mubr.msk.f32.gmra.mrb[162].mxu1 %vm4900_vm3, %v13187_v57  ;;  %5872 = vmatprep.mubr.bf16.mxu0 %v15958_v50  ;;  %v15968_v57 = vld [vmem:[#allocation5 + $0x310] ss:$8 sps:$4 sm:$0xff]  }
 0x5f0   : > { %v13188_v27 = vpop.f32.mrb[232].mxu0  ;;  %v13076_v40 = vpop.f32.mrb[104].mxu1 }
 0x5f1   : > { %v13189_v62 = vpop.f32.mrb[233].mxu0  ;;  %v13077_v30 = vpop.f32.mrb[105].mxu1 }
 0x5f2   : > { %v13190_v26 = vadd.f32 %v13189_v62, %v13188_v27  ;;  %v13191_v17 = vpop.f32.mrb[234].mxu0  ;;  %v18207_v42 = vadd.f32 %v13077_v30, %v13076_v40  ;;  %v13079_v5 = vpop.f32.mrb[106].mxu1 }
 0x5f3   : > { %v13192_v16 = vpop.f32.mrb[235].mxu0  ;;  %v13080_v19 = vpop.f32.mrb[107].mxu1 }
 0x5f4   : > { %v13193_v20 = vadd.f32 %v13192_v16, %v13191_v17  ;;  %14668 = vmatprep.mubr.msk.f32.mxu1 %vm4900_vm3, %v13190_v26  ;;  %v18210_v8 = vadd.f32 %v13080_v19, %v13079_v5 }
 0x5f5   : > { %5873 = vmatmul.mubr.bf16.gmra.mrb[84].mxu0 %v15956_v21  ;;  %v15973_v21 = vld [vmem:[#allocation5 + $0x324] ss:$8 sps:$4 sm:$0xff]  }
 0x5f6   : > { %14669 = vmatmul.mubr.msk.f32.gmra.mrb[164].mxu1 %vm4900_vm3, %v13193_v20  ;;  %5880 = vmatprep.mubr.bf16.mxu0 %v15961_v52 }
 0x5f8   : > { %v13194_v32 = vpop.f32.mrb[236].mxu0  ;;  %v13082_v22 = vpop.f32.mrb[108].mxu1 }
 0x5f9   : > { %v13195_v15 = vpop.f32.mrb[237].mxu0  ;;  %v13083_v38 = vpop.f32.mrb[109].mxu1 }
 0x5fa   : > { %v13196_v24 = vadd.f32 %v13195_v15, %v13194_v32  ;;  %v13197_v56 = vpop.f32.mrb[238].mxu0  ;;  %v18213_v63 = vadd.f32 %v13083_v38, %v13082_v22  ;;  %v13085_v46 = vpop.f32.mrb[110].mxu1  ;;  %v15971_v22 = vld [vmem:[#allocation5 + $0x320] ss:$8 sps:$4 sm:$0xff]  }
 0x5fb   : > { %v13198_v0 = vpop.f32.mrb[239].mxu0  ;;  %v13086_v35 = vpop.f32.mrb[111].mxu1 }
 0x5fc   : > { %v13199_v47 = vadd.f32 %v13198_v0, %v13197_v56  ;;  %14671 = vmatprep.mubr.msk.f32.mxu1 %vm4900_vm3, %v13196_v24  ;;  %v18216_v3 = vadd.f32 %v13086_v35, %v13085_v46  ;;  %v15976_v24 = vld [vmem:[#allocation5 + $0x334] ss:$8 sps:$4 sm:$0xff]  }
 0x5fd   : > { %5881 = vmatmul.mubr.bf16.gmra.mrb[88].mxu0 %v15959_v51 }
 0x5fe   : > { %14672 = vmatmul.mubr.msk.f32.gmra.mrb[166].mxu1 %vm4900_vm3, %v13199_v47  ;;  %5888 = vmatprep.mubr.bf16.mxu0 %v15964_v13 }
 0x600   : > { %v13200_v10 = vpop.f32.mrb[240].mxu0  ;;  %v13088_v28 = vpop.f32.mrb[112].mxu1 }
 0x601   : > { %v13201_v18 = vpop.f32.mrb[241].mxu0  ;;  %v13089_v45 = vpop.f32.mrb[113].mxu1 }
 0x602   : > { %v13202_v60 = vadd.f32 %v13201_v18, %v13200_v10  ;;  %v13203_v44 = vpop.f32.mrb[242].mxu0  ;;  %v18219_v53 = vadd.f32 %v13089_v45, %v13088_v28  ;;  %v13091_v43 = vpop.f32.mrb[114].mxu1  ;;  %v18246_v18 = vld [vmem:[%s19224_s7 + $0x10] sm:$0xff]  ;;  %v15974_v45 = vld [vmem:[#allocation5 + $0x330] ss:$8 sps:$4 sm:$0xff]  }
 0x603   : > { %v13204_v39 = vpop.f32.mrb[243].mxu0  ;;  %v13092_v23 = vpop.f32.mrb[115].mxu1  ;;  %14760 = vmatprep.subr.mxu1 %v18246_v18 }
 0x604   : > { %v13205_v41 = vadd.f32 %v13204_v39, %v13203_v44  ;;  %14674 = vmatprep.mubr.msk.f32.mxu1 %vm4900_vm3, %v13202_v60  ;;  %v18222_v2 = vadd.f32 %v13092_v23, %v13091_v43  ;;  %v15979_v43 = vld [vmem:[#allocation5 + $0x344] ss:$8 sps:$4 sm:$0xff]  }
 0x605   : > { %5889 = vmatmul.mubr.bf16.gmra.mrb[92].mxu0 %v15962_v54 }
 0x606   : > { %14675 = vmatmul.mubr.msk.f32.gmra.mrb[168].mxu1 %vm4900_vm3, %v13205_v41  ;;  %6477 = vmatprep.mubr.bf16.mxu0 %v15967_v7 }
 0x608   : > { %v13206_v36 = vpop.f32.mrb[244].mxu0  ;;  %v13094_v1 = vpop.f32.mrb[116].mxu1 }
 0x609   : > { %v13207_v58 = vpop.f32.mrb[245].mxu0  ;;  %v13095_v11 = vpop.f32.mrb[117].mxu1 }
 0x60a   : > { %v13208_v6 = vadd.f32 %v13207_v58, %v13206_v36  ;;  %v13209_v49 = vpop.f32.mrb[246].mxu0  ;;  %v18225_v31 = vadd.f32 %v13095_v11, %v13094_v1  ;;  %v13097_v14 = vpop.f32.mrb[118].mxu1 }
 0x60b   : > { %v13210_v37 = vpop.f32.mrb[247].mxu0  ;;  %v13098_v12 = vpop.f32.mrb[119].mxu1 }
 0x60c   : > { %v13211_v25 = vadd.f32 %v13210_v37, %v13209_v49  ;;  %14677 = vmatprep.mubr.msk.f32.mxu1 %vm4900_vm3, %v13208_v6  ;;  %v18228_v50 = vadd.f32 %v13098_v12, %v13097_v14  ;;  %v15977_v49 = vld [vmem:[#allocation5 + $0x340] ss:$8 sps:$4 sm:$0xff]   ;;  %v15982_v12 = vld [vmem:[#allocation5 + $0x354] ss:$8 sps:$4 sm:$0xff]  }
 0x60d   : > { %6478 = vmatmul.mubr.bf16.vlgmr.msra.gmra.mrb[96].mxu0 %v15965_v4 }
 0x60e   : > { %14678 = vmatmul.mubr.msk.f32.gmra.mrb[170].mxu1 %vm4900_vm3, %v13211_v25  ;;  %6485 = vmatprep.mubr.bf16.mxu0 %v15970_v48 }
 0x610   : > { %v13212_v55 = vpop.f32.mrb[248].mxu0  ;;  %v13100_v29 = vpop.f32.mrb[120].mxu1 }
 0x611   : > { %v13213_v61 = vpop.f32.mrb[249].mxu0  ;;  %v13101_v27 = vpop.f32.mrb[121].mxu1 }
 0x612   : > { %v13214_v40 = vadd.f32 %v13213_v61, %v13212_v55  ;;  %v13215_v62 = vpop.f32.mrb[250].mxu0  ;;  %v18231_v30 = vadd.f32 %v13101_v27, %v13100_v29  ;;  %v13103_v26 = vpop.f32.mrb[122].mxu1 }
 0x613   : > { %v13216_v17 = vpop.f32.mrb[251].mxu0  ;;  %v13104_v52 = vpop.f32.mrb[123].mxu1 }
 0x614   : > { %v13217_v5 = vadd.f32 %v13216_v17, %v13215_v62  ;;  %14680 = vmatprep.mubr.msk.f32.mxu1 %vm4900_vm3, %v13214_v40  ;;  %v18234_v16 = vadd.f32 %v13104_v52, %v13103_v26  ;;  %v15980_v26 = vld [vmem:[#allocation5 + $0x350] ss:$8 sps:$4 sm:$0xff]  }
 0x615   : > { %6486 = vmatmul.mubr.bf16.gmra.mrb[100].mxu0 %v15968_v57 }
 0x616   : > { %14681 = vmatmul.mubr.msk.f32.gmra.mrb[172].mxu1 %vm4900_vm3, %v13217_v5  ;;  %6493 = vmatprep.mubr.bf16.mxu0 %v15973_v21 }
 0x618   : > { %v13218_v19 = vpop.f32.mrb[252].mxu0  ;;  %v13106_v20 = vpop.f32.mrb[124].mxu1 }
 0x619   : > { %v13219_v32 = vpop.f32.mrb[253].mxu0  ;;  %v13107_v15 = vpop.f32.mrb[125].mxu1 }
 0x61a   : > { %v13220_v51 = vadd.f32 %v13219_v32, %v13218_v19  ;;  %v13221_v38 = vpop.f32.mrb[254].mxu0  ;;  %v18237_v56 = vadd.f32 %v13107_v15, %v13106_v20  ;;  %v13109_v13 = vpop.f32.mrb[126].mxu1  ;;  %v15985_v19 = vld [vmem:[#allocation5 + $0x364] ss:$8 sps:$4 sm:$0xff]  }
 0x61b   : > { %v13222_v46 = vpop.f32.mrb[255].mxu0  ;;  %v13110_v0 = vpop.f32.mrb[127].mxu1 }
 0x61c   : > { %v13223_v35 = vadd.f32 %v13222_v46, %v13221_v38  ;;  %14683 = vmatprep.mubr.msk.f32.mxu1 %vm4900_vm3, %v13220_v51  ;;  %v18240_v47 = vadd.f32 %v13110_v0, %v13109_v13  ;;  %v15983_v0 = vld [vmem:[#allocation5 + $0x360] ss:$8 sps:$4 sm:$0xff]  }
 0x61d   : > { %6494 = vmatmul.mubr.bf16.gmra.mrb[104].mxu0 %v15971_v22 }
 0x61e   : > { %14684 = vmatmul.mubr.msk.f32.gmra.mrb[174].mxu1 %vm4900_vm3, %v13223_v35  ;;  %6501 = vmatprep.mubr.bf16.mxu0 %v15976_v24 }
 0x620   : > { %v13224_v10 = vpop.f32.mrb[0].mxu0  ;;  %v13112_v28 = vpop.f32.mrb[128].mxu1 }
 0x621   : > { %v13225_v54 = vpop.f32.mrb[1].mxu0  ;;  %v13113_v60 = vpop.f32.mrb[129].mxu1 }
 0x622   : > { %v13226_v44 = vadd.f32 %v13225_v54, %v13224_v10  ;;  %v13227_v7 = vpop.f32.mrb[2].mxu0  ;;  %v18249_v39 = vadd.f32 %v13113_v60, %v13112_v28  ;;  %v13115_v23 = vpop.f32.mrb[130].mxu1  ;;  %v15988_v54 = vld [vmem:[#allocation5 + $0x374] ss:$8 sps:$4 sm:$0xff]  }
 0x623   : > { %v13228_v41 = vpop.f32.mrb[3].mxu0  ;;  %v13116_v36 = vpop.f32.mrb[131].mxu1 }
 0x624   : > { %v13229_v1 = vadd.f32 %v13228_v41, %v13227_v7  ;;  %14686 = vmatprep.mubr.msk.f32.mxu1 %vm4900_vm3, %v13226_v44  ;;  %v18252_v58 = vadd.f32 %v13116_v36, %v13115_v23 }
 0x625   : > { %6502 = vmatmul.mubr.bf16.gmra.mrb[108].mxu0 %v15974_v45 }
 0x626   : > { %14687 = vmatmul.mubr.msk.f32.gmra.mrb[176].mxu1 %vm4900_vm3, %v13229_v1  ;;  %6509 = vmatprep.mubr.bf16.mxu0 %v15979_v43 }
 0x628   : > { %v13230_v4 = vpop.f32.mrb[4].mxu0  ;;  %v13118_v11 = vpop.f32.mrb[132].mxu1 }
 0x629   : > { %v13231_v6 = vpop.f32.mrb[5].mxu0  ;;  %v13119_v48 = vpop.f32.mrb[133].mxu1 }
 0x62a   : > { %v13232_v14 = vadd.f32 %v13231_v6, %v13230_v4  ;;  %v13233_v37 = vpop.f32.mrb[6].mxu0  ;;  %v18255_v25 = vadd.f32 %v13119_v48, %v13118_v11  ;;  %v13121_v55 = vpop.f32.mrb[134].mxu1  ;;  %v15986_v4 = vld [vmem:[#allocation5 + $0x370] ss:$8 sps:$4 sm:$0xff]   ;;  %v15991_v48 = vld [vmem:[#allocation5 + $0x384] ss:$8 sps:$4 sm:$0xff]  }
 0x62b   : > { %v13234_v29 = vpop.f32.mrb[7].mxu0  ;;  %v13122_v61 = vpop.f32.mrb[135].mxu1 }
 0x62c   : > { %v13235_v57 = vadd.f32 %v13234_v29, %v13233_v37  ;;  %14689 = vmatprep.mubr.msk.f32.mxu1 %vm4900_vm3, %v13232_v14  ;;  %v18258_v27 = vadd.f32 %v13122_v61, %v13121_v55 }
 0x62d   : > { %6510 = vmatmul.mubr.bf16.gmra.mrb[112].mxu0 %v15977_v49 }
 0x62e   : > { %14690 = vmatmul.mubr.msk.f32.gmra.mrb[178].mxu1 %vm4900_vm3, %v13235_v57  ;;  %6517 = vmatprep.mubr.bf16.mxu0 %v15982_v12 }
 0x630   : > { %v13236_v40 = vpop.f32.mrb[8].mxu0  ;;  %v13124_v62 = vpop.f32.mrb[136].mxu1 }
 0x631   : > { %v13237_v21 = vpop.f32.mrb[9].mxu0  ;;  %v13125_v17 = vpop.f32.mrb[137].mxu1 }
 0x632   : > { %v13238_v52 = vadd.f32 %v13237_v21, %v13236_v40  ;;  %v13239_v5 = vpop.f32.mrb[10].mxu0  ;;  %v18261_v20 = vadd.f32 %v13125_v17, %v13124_v62  ;;  %v13127_v32 = vpop.f32.mrb[138].mxu1  ;;  %v15989_v21 = vld [vmem:[#allocation5 + $0x380] ss:$8 sps:$4 sm:$0xff]  }
 0x633   : > { %v13240_v22 = vpop.f32.mrb[11].mxu0  ;;  %v13128_v15 = vpop.f32.mrb[139].mxu1 }
 0x634   : > { %v13241_v51 = vadd.f32 %v13240_v22, %v13239_v5  ;;  %14692 = vmatprep.mubr.msk.f32.mxu1 %vm4900_vm3, %v13238_v52  ;;  %v18264_v38 = vadd.f32 %v13128_v15, %v13127_v32  ;;  %v15994_v5 = vld [vmem:[#allocation5 + $0x394] ss:$8 sps:$4 sm:$0xff]  }
 0x635   : > { %6518 = vmatmul.mubr.bf16.gmra.mrb[116].mxu0 %v15980_v26 }
 0x636   : > { %14693 = vmatmul.mubr.msk.f32.gmra.mrb[180].mxu1 %vm4900_vm3, %v13241_v51  ;;  %6525 = vmatprep.mubr.bf16.mxu0 %v15985_v19 }
 0x638   : > { %v13242_v24 = vpop.f32.mrb[12].mxu0  ;;  %v13130_v13 = vpop.f32.mrb[140].mxu1 }
 0x639   : > { %v13243_v46 = vpop.f32.mrb[13].mxu0  ;;  %v13131_v35 = vpop.f32.mrb[141].mxu1 }
 0x63a   : > { %v13244_v10 = vadd.f32 %v13243_v46, %v13242_v24  ;;  %v13245_v28 = vpop.f32.mrb[14].mxu0  ;;  %v18267_v45 = vadd.f32 %v13131_v35, %v13130_v13  ;;  %v13133_v60 = vpop.f32.mrb[142].mxu1  ;;  %v15992_v35 = vld [vmem:[#allocation5 + $0x390] ss:$8 sps:$4 sm:$0xff]  }
 0x63b   : > { %v13246_v44 = vpop.f32.mrb[15].mxu0  ;;  %v13134_v7 = vpop.f32.mrb[143].mxu1 }
 0x63c   : > { %v13247_v43 = vadd.f32 %v13246_v44, %v13245_v28  ;;  %14695 = vmatprep.mubr.msk.f32.mxu1 %vm4900_vm3, %v13244_v10  ;;  %v18270_v23 = vadd.f32 %v13134_v7, %v13133_v60  ;;  %v15997_v60 = vld [vmem:[#allocation5 + $0x3a4] ss:$8 sps:$4 sm:$0xff]  }
 0x63d   : > { %6526 = vmatmul.mubr.bf16.gmra.mrb[120].mxu0 %v15983_v0 }
 0x63e   : > { %14696 = vmatmul.mubr.msk.f32.gmra.mrb[182].mxu1 %vm4900_vm3, %v13247_v43  ;;  %6533 = vmatprep.mubr.bf16.mxu0 %v15988_v54 }
 0x640   : > { %v13248_v41 = vpop.f32.mrb[16].mxu0  ;;  %v13136_v36 = vpop.f32.mrb[144].mxu1 }
 0x641   : > { %v13249_v1 = vpop.f32.mrb[17].mxu0  ;;  %v13137_v11 = vpop.f32.mrb[145].mxu1 }
 0x642   : > { %v13250_v6 = vadd.f32 %v13249_v1, %v13248_v41  ;;  %v13251_v49 = vpop.f32.mrb[18].mxu0  ;;  %v18273_v14 = vadd.f32 %v13137_v11, %v13136_v36  ;;  %v13139_v37 = vpop.f32.mrb[146].mxu1 }
 0x643   : > { %v13252_v12 = vpop.f32.mrb[19].mxu0  ;;  %v13140_v55 = vpop.f32.mrb[147].mxu1 }
 0x644   : > { %v13253_v29 = vadd.f32 %v13252_v12, %v13251_v49  ;;  %14698 = vmatprep.mubr.msk.f32.mxu1 %vm4900_vm3, %v13250_v6  ;;  %v18276_v61 = vadd.f32 %v13140_v55, %v13139_v37  ;;  %v15995_v49 = vld [vmem:[#allocation5 + $0x3a0] ss:$8 sps:$4 sm:$0xff]   ;;  %v16000_v55 = vld [vmem:[#allocation5 + $0x3b4] ss:$8 sps:$4 sm:$0xff]  }
 0x645   : > { %6534 = vmatmul.mubr.bf16.gmra.mrb[124].mxu0 %v15986_v4 }
 0x646   : > { %14699 = vmatmul.mubr.msk.f32.gmra.mrb[184].mxu1 %vm4900_vm3, %v13253_v29  ;;  %6541 = vmatprep.mubr.bf16.mxu0 %v15991_v48 }
 0x648   : > { %v13254_v57 = vpop.f32.mrb[20].mxu0  ;;  %v13142_v40 = vpop.f32.mrb[148].mxu1 }
 0x649   : > { %v13255_v62 = vpop.f32.mrb[21].mxu0  ;;  %v13143_v26 = vpop.f32.mrb[149].mxu1 }
 0x64a   : > { %v13256_v17 = vadd.f32 %v13255_v62, %v13254_v57  ;;  %v13257_v52 = vpop.f32.mrb[22].mxu0  ;;  %v18279_v19 = vadd.f32 %v13143_v26, %v13142_v40  ;;  %v13145_v32 = vpop.f32.mrb[150].mxu1 }
 0x64b   : > { %v13258_v22 = vpop.f32.mrb[23].mxu0  ;;  %v13146_v15 = vpop.f32.mrb[151].mxu1 }
 0x64c   : > { %v13259_v51 = vadd.f32 %v13258_v22, %v13257_v52  ;;  %14701 = vmatprep.mubr.msk.f32.mxu1 %vm4900_vm3, %v13256_v17  ;;  %v18282_v24 = vadd.f32 %v13146_v15, %v13145_v32  ;;  %v16003_v15 = vld [vmem:[#allocation5 + $0x3c4] ss:$8 sps:$4 sm:$0xff]  }
 0x64d   : > { %6542 = vmatmul.mubr.bf16.gmra.mrb[128].mxu0 %v15989_v21 }
 0x64e   : > { %14702 = vmatmul.mubr.msk.f32.gmra.mrb[186].mxu1 %vm4900_vm3, %v13259_v51  ;;  %6549 = vmatprep.mubr.bf16.mxu0 %v15994_v5  ;;  %v15998_v5 = vld [vmem:[#allocation5 + $0x3b0] ss:$8 sps:$4 sm:$0xff]  }
 0x650   : > { %v13260_v13 = vpop.f32.mrb[24].mxu0  ;;  %v13148_v46 = vpop.f32.mrb[152].mxu1 }
 0x651   : > { %v13261_v0 = vpop.f32.mrb[25].mxu0  ;;  %v13149_v10 = vpop.f32.mrb[153].mxu1 }
 0x652   : > { %v13262_v28 = vadd.f32 %v13261_v0, %v13260_v13  ;;  %v13263_v54 = vpop.f32.mrb[26].mxu0  ;;  %v18285_v44 = vadd.f32 %v13149_v10, %v13148_v46  ;;  %v13151_v7 = vpop.f32.mrb[154].mxu1 }
 0x653   : > { %v13264_v43 = vpop.f32.mrb[27].mxu0  ;;  %v13152_v41 = vpop.f32.mrb[155].mxu1 }
 0x654   : > { %v13265_v36 = vadd.f32 %v13264_v43, %v13263_v54  ;;  %14704 = vmatprep.mubr.msk.f32.mxu1 %vm4900_vm3, %v13262_v28  ;;  %v18288_v1 = vadd.f32 %v13152_v41, %v13151_v7  ;;  %v16004_v54 = vld [vmem:[#allocation5 + $0x3d0] ss:$8 sps:$4 sm:$0xff]   ;;  %v16007_v41 = vld [vmem:[#allocation5 + $0x3e0] ss:$8 sps:$4 sm:$0xff]  }
 0x655   : > { %6550 = vmatmul.mubr.bf16.gmra.mrb[132].mxu0 %v15992_v35  ;;  %v16006_v35 = vld [vmem:[#allocation5 + $0x3d4] ss:$8 sps:$4 sm:$0xff]  }
 0x656   : > { %14705 = vmatmul.mubr.msk.f32.gmra.mrb[188].mxu1 %vm4900_vm3, %v13265_v36  ;;  %6557 = vmatprep.mubr.bf16.mxu0 %v15997_v60  ;;  %v16009_v60 = vld [vmem:[#allocation5 + $0x3e4] ss:$8 sps:$4 sm:$0xff]   ;;  %v16012_v36 = vld [vmem:[#allocation5 + $0x3f4] ss:$8 sps:$4 sm:$0xff]  }
 0x658   : > { %v13266_v4 = vpop.f32.mrb[28].mxu0  ;;  %v13154_v11 = vpop.f32.mrb[156].mxu1 }
 0x659   : > { %v13267_v6 = vpop.f32.mrb[29].mxu0  ;;  %v13155_v48 = vpop.f32.mrb[157].mxu1 }
 0x65a   : > { %v13268_v37 = vadd.f32 %v13267_v6, %v13266_v4  ;;  %v13269_v12 = vpop.f32.mrb[30].mxu0  ;;  %v18291_v29 = vadd.f32 %v13155_v48, %v13154_v11  ;;  %v13157_v57 = vpop.f32.mrb[158].mxu1  ;;  %v16010_v6 = vld [vmem:[#allocation5 + $0x3f0] ss:$8 sps:$4 sm:$0xff]  }
 0x65b   : > { %v13270_v40 = vpop.f32.mrb[31].mxu0  ;;  %v13158_v62 = vpop.f32.mrb[159].mxu1 }
 0x65c   : > { %v13271_v21 = vadd.f32 %v13270_v40, %v13269_v12  ;;  %14707 = vmatprep.mubr.msk.f32.mxu1 %vm4900_vm3, %v13268_v37  ;;  %v18294_v26 = vadd.f32 %v13158_v62, %v13157_v57 }
 0x65d   : > { %6558 = vmatmul.mubr.bf16.gmra.mrb[136].mxu0 %v15995_v49 }
 0x65e   : > { %14708 = vmatmul.mubr.msk.f32.gmra.mrb[190].mxu1 %vm4900_vm3, %v13271_v21  ;;  %6565 = vmatprep.mubr.bf16.mxu0 %v16000_v55 }
 0x65f   : > { %14712 = vmatprep.mubr.msk.f32.mxu1 %vm4900_vm3, %v18195_v34  ;;  %v18311_v34 = vld [vmem:[%s19224_s7 + $0x18] sm:$0xff] }
 0x660   : > { %v13354_v17 = vpop.f32.mrb[32].mxu0 }
 0x661   : > { %v13355_v52 = vpop.f32.mrb[33].mxu0 }
 0x662   : > { %v18299_v32 = vadd.f32 %v13355_v52, %v13354_v17  ;;  %14713 = vmatmul.mubr.msk.f32.vlgmr.msra.gmra.mrb[160].mxu1 %vm4900_vm3, %v18198_v59  ;;  %v13357_v22 = vpop.f32.mrb[34].mxu0 }
 0x663   : > { %14715 = vmatprep.mubr.msk.f32.mxu1 %vm4900_vm3, %v18201_v9  ;;  %v13358_v51 = vpop.f32.mrb[35].mxu0  ;;  %14761 = vmatpush3.msra.mxu1 %v18246_v18  ;;  %v16001_v18 = vld [vmem:[#allocation5 + $0x3c0] ss:$8 sps:$4 sm:$0xff]  }
 0x664   : > { %v18306_v13 = vadd.f32 %v13358_v51, %v13357_v22  ;;  %14810 = vmatprep.subr.mxu1 %v18311_v34 }
 0x665   : > { %6566 = vmatmul.mubr.bf16.gmra.mrb[140].mxu0 %v15998_v5 }
 0x666   : > { %14716 = vmatmul.mubr.msk.f32.gmra.mrb[162].mxu1 %vm4900_vm3, %v18204_v33  ;;  %6573 = vmatprep.mubr.bf16.mxu0 %v16003_v15 }
 0x667   : > { %14718 = vmatprep.mubr.msk.f32.mxu1 %vm4900_vm3, %v18207_v42 }
 0x668   : > { %v13360_v59 = vpop.f32.mrb[36].mxu0 }
 0x669   : > { %v13361_v9 = vpop.f32.mrb[37].mxu0 }
 0x66a   : > { %v18318_v46 = vadd.f32 %v13361_v9, %v13360_v59  ;;  %14719 = vmatmul.mubr.msk.f32.gmra.mrb[164].mxu1 %vm4900_vm3, %v18210_v8  ;;  %v13363_v0 = vpop.f32.mrb[38].mxu0 }
 0x66b   : > { %14721 = vmatprep.mubr.msk.f32.mxu1 %vm4900_vm3, %v18213_v63  ;;  %v13364_v10 = vpop.f32.mrb[39].mxu0 }
 0x66c   : > { %v18324_v28 = vadd.f32 %v13364_v10, %v13363_v0 }
 0x66d   : > { %6574 = vmatmul.mubr.bf16.gmra.mrb[144].mxu0 %v16001_v18 }
 0x66e   : > { %14722 = vmatmul.mubr.msk.f32.gmra.mrb[166].mxu1 %vm4900_vm3, %v18216_v3  ;;  %6581 = vmatprep.mubr.bf16.mxu0 %v16006_v35 }
 0x66f   : > { %14724 = vmatprep.mubr.msk.f32.mxu1 %vm4900_vm3, %v18219_v53 }
 0x670   : > { %v13366_v33 = vpop.f32.mrb[40].mxu0 }
 0x671   : > { %v13367_v42 = vpop.f32.mrb[41].mxu0 }
 0x672   : > { %v18330_v8 = vadd.f32 %v13367_v42, %v13366_v33  ;;  %14725 = vmatmul.mubr.msk.f32.gmra.mrb[168].mxu1 %vm4900_vm3, %v18222_v2  ;;  %v13369_v63 = vpop.f32.mrb[42].mxu0 }
 0x673   : > { %14727 = vmatprep.mubr.msk.f32.mxu1 %vm4900_vm3, %v18225_v31  ;;  %v13370_v7 = vpop.f32.mrb[43].mxu0 }
 0x674   : > { %v18336_v43 = vadd.f32 %v13370_v7, %v13369_v63 }
 0x675   : > { %6582 = vmatmul.mubr.bf16.gmra.mrb[148].mxu0 %v16004_v54 }
 0x676   : > { %14728 = vmatmul.mubr.msk.f32.gmra.mrb[170].mxu1 %vm4900_vm3, %v18228_v50  ;;  %6589 = vmatprep.mubr.bf16.mxu0 %v16009_v60 }
 0x677   : > { %14730 = vmatprep.mubr.msk.f32.mxu1 %vm4900_vm3, %v18231_v30 }
 0x678   : > { %v13372_v3 = vpop.f32.mrb[44].mxu0 }
 0x679   : > { %v13373_v53 = vpop.f32.mrb[45].mxu0 }
 0x67a   : > { %v18342_v2 = vadd.f32 %v13373_v53, %v13372_v3  ;;  %14731 = vmatmul.mubr.msk.f32.gmra.mrb[172].mxu1 %vm4900_vm3, %v18234_v16  ;;  %v13375_v31 = vpop.f32.mrb[46].mxu0 }
 0x67b   : > { %v13376_v4 = vpop.f32.mrb[47].mxu0  ;;  %14733 = vmatprep.mubr.msk.f32.mxu1 %vm4900_vm3, %v18237_v56 }
 0x67c   : > { %v18348_v11 = vadd.f32 %v13376_v4, %v13375_v31 }
 0x67d   : > { %6590 = vmatmul.mubr.bf16.gmra.mrb[152].mxu0 %v16007_v41 }
 0x67e   : > { %14734 = vmatmul.mubr.msk.f32.gmra.mrb[174].mxu1 %vm4900_vm3, %v18240_v47  ;;  %6597 = vmatprep.mubr.bf16.mxu0 %v16012_v36 }
 0x67f   : > { %14736 = vmatprep.mubr.msk.f32.mxu1 %vm4900_vm3, %v18249_v39 }
 0x680   : > { %v13378_v50 = vpop.f32.mrb[48].mxu0 }
 0x681   : > { %v13379_v30 = vpop.f32.mrb[49].mxu0 }
 0x682   : > { %v13380_v16 = vadd.f32 %v13379_v30, %v13378_v50  ;;  %14737 = vmatmul.mubr.msk.f32.gmra.mrb[176].mxu1 %vm4900_vm3, %v18252_v58  ;;  %v13381_v49 = vpop.f32.mrb[50].mxu0 }
 0x683   : > { %v13382_v48 = vpop.f32.mrb[51].mxu0  ;;  %14739 = vmatprep.mubr.msk.f32.mxu1 %vm4900_vm3, %v18255_v25 }
 0x684   : > { %v13383_v56 = vadd.f32 %v13382_v48, %v13381_v49 }
 0x685   : > { %6598 = vmatmul.mubr.bf16.gmra.mrb[156].mxu0 %v16010_v6 }
 0x686   : > { %14740 = vmatmul.mubr.msk.f32.gmra.mrb[178].mxu1 %vm4900_vm3, %v18258_v27 }
 0x687   : > { %14742 = vmatprep.mubr.msk.f32.mxu1 %vm4900_vm3, %v18261_v20 }
 0x688   : > { %v13384_v47 = vpop.f32.mrb[52].mxu0 }
 0x689   : > { %v13385_v39 = vpop.f32.mrb[53].mxu0 }
 0x68a   : > { %v13386_v37 = vadd.f32 %v13385_v39, %v13384_v47  ;;  %14743 = vmatmul.mubr.msk.f32.gmra.mrb[180].mxu1 %vm4900_vm3, %v18264_v38  ;;  %v13387_v58 = vpop.f32.mrb[54].mxu0 }
 0x68b   : > { %v13388_v12 = vpop.f32.mrb[55].mxu0  ;;  %14745 = vmatprep.mubr.msk.f32.mxu1 %vm4900_vm3, %v18267_v45 }
 0x68c   : > { %v13389_v25 = vadd.f32 %v13388_v12, %v13387_v58 }
 0x68e   : > { %14746 = vmatmul.mubr.msk.f32.gmra.mrb[182].mxu1 %vm4900_vm3, %v18270_v23 }
 0x68f   : > { %14748 = vmatprep.mubr.msk.f32.mxu1 %vm4900_vm3, %v18273_v14 }
 0x690   : > { %v13390_v27 = vpop.f32.mrb[56].mxu0 }
 0x691   : > { %v13391_v20 = vpop.f32.mrb[57].mxu0 }
 0x692   : > { %v13392_v55 = vadd.f32 %v13391_v20, %v13390_v27  ;;  %14749 = vmatmul.mubr.msk.f32.gmra.mrb[184].mxu1 %vm4900_vm3, %v18276_v61  ;;  %v13393_v57 = vpop.f32.mrb[58].mxu0 }
 0x693   : > { %v13394_v38 = vpop.f32.mrb[59].mxu0  ;;  %14751 = vmatprep.mubr.msk.f32.mxu1 %vm4900_vm3, %v18279_v19 }
 0x694   : > { %v13395_v40 = vadd.f32 %v13394_v38, %v13393_v57 }
 0x696   : > { %14752 = vmatmul.mubr.msk.f32.gmra.mrb[186].mxu1 %vm4900_vm3, %v18282_v24 }
 0x697   : > { %14754 = vmatprep.mubr.msk.f32.mxu1 %vm4900_vm3, %v18285_v44 }
 0x698   : > { %v13396_v45 = vpop.f32.mrb[60].mxu0 }
 0x699   : > { %v13397_v23 = vpop.f32.mrb[61].mxu0 }
 0x69a   : > { %v13398_v14 = vadd.f32 %v13397_v23, %v13396_v45  ;;  %14755 = vmatmul.mubr.msk.f32.gmra.mrb[188].mxu1 %vm4900_vm3, %v18288_v1  ;;  %v13399_v62 = vpop.f32.mrb[62].mxu0 }
 0x69b   : > { %v13400_v61 = vpop.f32.mrb[63].mxu0  ;;  %14757 = vmatprep.mubr.msk.f32.mxu1 %vm4900_vm3, %v18291_v29 }
 0x69c   : > { %v13401_v21 = vadd.f32 %v13400_v61, %v13399_v62 }
 0x69e   : > { %14758 = vmatmul.mubr.msk.f32.gmra.mrb[190].mxu1 %vm4900_vm3, %v18294_v26 }
 0x69f   : > { %14762 = vmatprep.mubr.msk.f32.mxu1 %vm4900_vm3, %v18299_v32 }
 0x6a0   : > { %v13402_v19 = vpop.f32.mrb[64].mxu0 }
 0x6a1   : > { %v13403_v24 = vpop.f32.mrb[65].mxu0 }
 0x6a2   : > { %v13404_v44 = vadd.f32 %v13403_v24, %v13402_v19  ;;  %v13405_v17 = vpop.f32.mrb[66].mxu0  ;;  %14763 = vmatmul.mubr.msk.f32.vlgmr.msra.gmra.mrb[160].mxu1 %vm4900_vm3, %v18306_v13 }
 0x6a3   : > { %v13406_v1 = vpop.f32.mrb[67].mxu0  ;;  %14765 = vmatprep.mubr.msk.f32.mxu1 %vm4900_vm3, %v18318_v46  ;;  %14811 = vmatpush3.msra.mxu1 %v18311_v34 }
 0x6a4   : > { %v13407_v29 = vadd.f32 %v13406_v1, %v13405_v17 }
 0x6a6   : > { %14766 = vmatmul.mubr.msk.f32.gmra.mrb[162].mxu1 %vm4900_vm3, %v18324_v28 }
 0x6a7   : > { %14768 = vmatprep.mubr.msk.f32.mxu1 %vm4900_vm3, %v18330_v8 }
 0x6a8   : > { %v13408_v26 = vpop.f32.mrb[68].mxu0 }
 0x6a9   : > { %v13409_v52 = vpop.f32.mrb[69].mxu0 }
 0x6aa   : > { %v13410_v5 = vadd.f32 %v13409_v52, %v13408_v26  ;;  %v13411_v32 = vpop.f32.mrb[70].mxu0  ;;  %14769 = vmatmul.mubr.msk.f32.gmra.mrb[164].mxu1 %vm4900_vm3, %v18336_v43 }
 0x6ab   : > { %v13412_v22 = vpop.f32.mrb[71].mxu0  ;;  %14771 = vmatprep.mubr.msk.f32.mxu1 %vm4900_vm3, %v18342_v2 }
 0x6ac   : > { %v13413_v15 = vadd.f32 %v13412_v22, %v13411_v32 }
 0x6ae   : > { %14772 = vmatmul.mubr.msk.f32.gmra.mrb[166].mxu1 %vm4900_vm3, %v18348_v11 }
 0x6af   : > { %14774 = vmatprep.mubr.msk.f32.mxu1 %vm4900_vm3, %v13380_v16 }
 0x6b0   : > { %v13414_v51 = vpop.f32.mrb[72].mxu0 }
 0x6b1   : > { %v13415_v13 = vpop.f32.mrb[73].mxu0 }
 0x6b2   : > { %v13416_v34 = vadd.f32 %v13415_v13, %v13414_v51  ;;  %v13417_v59 = vpop.f32.mrb[74].mxu0  ;;  %14775 = vmatmul.mubr.msk.f32.gmra.mrb[168].mxu1 %vm4900_vm3, %v13383_v56 }
 0x6b3   : > { %v13418_v9 = vpop.f32.mrb[75].mxu0  ;;  %14777 = vmatprep.mubr.msk.f32.mxu1 %vm4900_vm3, %v13386_v37 }
 0x6b4   : > { %v13419_v18 = vadd.f32 %v13418_v9, %v13417_v59 }
 0x6b6   : > { %14778 = vmatmul.mubr.msk.f32.gmra.mrb[170].mxu1 %vm4900_vm3, %v13389_v25 }
 0x6b7   : > { %14780 = vmatprep.mubr.msk.f32.mxu1 %vm4900_vm3, %v13392_v55 }
 0x6b8   : > { %v13420_v46 = vpop.f32.mrb[76].mxu0 }
 0x6b9   : > { %v13421_v0 = vpop.f32.mrb[77].mxu0 }
 0x6ba   : > { %v13422_v35 = vadd.f32 %v13421_v0, %v13420_v46  ;;  %v13423_v10 = vpop.f32.mrb[78].mxu0  ;;  %14781 = vmatmul.mubr.msk.f32.gmra.mrb[172].mxu1 %vm4900_vm3, %v13395_v40 }
 0x6bb   : > { %v13424_v28 = vpop.f32.mrb[79].mxu0  ;;  %14783 = vmatprep.mubr.msk.f32.mxu1 %vm4900_vm3, %v13398_v14 }
 0x6bc   : > { %v13425_v33 = vadd.f32 %v13424_v28, %v13423_v10 }
 0x6be   : > { %14784 = vmatmul.mubr.msk.f32.gmra.mrb[174].mxu1 %vm4900_vm3, %v13401_v21 }
 0x6bf   : > { %14786 = vmatprep.mubr.msk.f32.mxu1 %vm4900_vm3, %v13404_v44 }
 0x6c0   : > { %v13426_v42 = vpop.f32.mrb[80].mxu0 }
 0x6c1   : > { %v13427_v54 = vpop.f32.mrb[81].mxu0 }
 0x6c2   : > { %v13428_v8 = vadd.f32 %v13427_v54, %v13426_v42  ;;  %v13429_v63 = vpop.f32.mrb[82].mxu0  ;;  %14787 = vmatmul.mubr.msk.f32.gmra.mrb[176].mxu1 %vm4900_vm3, %v13407_v29 }
 0x6c3   : > { %v13430_v60 = vpop.f32.mrb[83].mxu0  ;;  %14789 = vmatprep.mubr.msk.f32.mxu1 %vm4900_vm3, %v13410_v5 }
 0x6c4   : > { %v13431_v7 = vadd.f32 %v13430_v60, %v13429_v63 }
 0x6c6   : > { %14790 = vmatmul.mubr.msk.f32.gmra.mrb[178].mxu1 %vm4900_vm3, %v13413_v15 }
 0x6c7   : > { %14792 = vmatprep.mubr.msk.f32.mxu1 %vm4900_vm3, %v13416_v34 }
 0x6c8   : > { %v13432_v43 = vpop.f32.mrb[84].mxu0 }
 0x6c9   : > { %v13433_v3 = vpop.f32.mrb[85].mxu0 }
 0x6ca   : > { %v13434_v53 = vadd.f32 %v13433_v3, %v13432_v43  ;;  %v13435_v41 = vpop.f32.mrb[86].mxu0  ;;  %14793 = vmatmul.mubr.msk.f32.gmra.mrb[180].mxu1 %vm4900_vm3, %v13419_v18 }
 0x6cb   : > { %v13436_v2 = vpop.f32.mrb[87].mxu0  ;;  %14795 = vmatprep.mubr.msk.f32.mxu1 %vm4900_vm3, %v13422_v35 }
 0x6cc   : > { %v13437_v31 = vadd.f32 %v13436_v2, %v13435_v41 }
 0x6ce   : > { %14796 = vmatmul.mubr.msk.f32.gmra.mrb[182].mxu1 %vm4900_vm3, %v13425_v33 }
 0x6cf   : > { %14798 = vmatprep.mubr.msk.f32.mxu1 %vm4900_vm3, %v13428_v8 }
 0x6d0   : > { %v13438_v36 = vpop.f32.mrb[88].mxu0 }
 0x6d1   : > { %v13439_v4 = vpop.f32.mrb[89].mxu0 }
 0x6d2   : > { %v13440_v11 = vadd.f32 %v13439_v4, %v13438_v36  ;;  %v13441_v50 = vpop.f32.mrb[90].mxu0  ;;  %14799 = vmatmul.mubr.msk.f32.gmra.mrb[184].mxu1 %vm4900_vm3, %v13431_v7 }
 0x6d3   : > { %v13442_v30 = vpop.f32.mrb[91].mxu0  ;;  %14801 = vmatprep.mubr.msk.f32.mxu1 %vm4900_vm3, %v13434_v53 }
 0x6d4   : > { %v13443_v6 = vadd.f32 %v13442_v30, %v13441_v50 }
 0x6d6   : > { %14802 = vmatmul.mubr.msk.f32.gmra.mrb[186].mxu1 %vm4900_vm3, %v13437_v31 }
 0x6d7   : > { %14804 = vmatprep.mubr.msk.f32.mxu1 %vm4900_vm3, %v13440_v11 }
 0x6d8   : > { %v13444_v16 = vpop.f32.mrb[92].mxu0 }
 0x6d9   : > { %v13445_v49 = vpop.f32.mrb[93].mxu0 }
 0x6da   : > { %v13446_v48 = vadd.f32 %v13445_v49, %v13444_v16  ;;  %v13447_v56 = vpop.f32.mrb[94].mxu0  ;;  %14805 = vmatmul.mubr.msk.f32.gmra.mrb[188].mxu1 %vm4900_vm3, %v13443_v6 }
 0x6db   : > { %v13448_v47 = vpop.f32.mrb[95].mxu0 }
 0x6dc   : > { %v13449_v39 = vadd.f32 %v13448_v47, %v13447_v56  ;;  %14807 = vmatprep.mubr.msk.f32.mxu1 %vm4900_vm3, %v13446_v48 }
 0x6de   : > { %14808 = vmatmul.mubr.msk.f32.gmra.mrb[190].mxu1 %vm4900_vm3, %v13449_v39 }
 0x6e0   : > { %v13499_v37 = vpop.f32.mrb[96].mxu0 }
 0x6e1   : > { %v13500_v58 = vpop.f32.mrb[97].mxu0 }
 0x6e2   : > { %v13501_v12 = vadd.f32 %v13500_v58, %v13499_v37  ;;  %v13502_v25 = vpop.f32.mrb[98].mxu0 }
 0x6e3   : > { %v13503_v27 = vpop.f32.mrb[99].mxu0 }
 0x6e4   : > { %v13504_v20 = vadd.f32 %v13503_v27, %v13502_v25  ;;  %14812 = vmatprep.mubr.msk.f32.mxu1 %vm4900_vm3, %v13501_v12 }
 0x6e6   : > { %14813 = vmatmul.mubr.msk.f32.vlgmr.msra.gmra.mrb[160].mxu1 %vm4900_vm3, %v13504_v20 }
 0x6e8   : > { %v13505_v55 = vpop.f32.mrb[100].mxu0 }
 0x6e9   : > { %v13506_v57 = vpop.f32.mrb[101].mxu0 }
 0x6ea   : > { %v13508_v38 = vpop.f32.mrb[102].mxu0  ;;  %v13507_v40 = vadd.f32 %v13506_v57, %v13505_v55 }
 0x6eb   : > { %v13509_v45 = vpop.f32.mrb[103].mxu0 }
 0x6ec   : > { %14815 = vmatprep.mubr.msk.f32.mxu1 %vm4900_vm3, %v13507_v40  ;;  %v13510_v23 = vadd.f32 %v13509_v45, %v13508_v38 }
 0x6ee   : > { %14816 = vmatmul.mubr.msk.f32.gmra.mrb[162].mxu1 %vm4900_vm3, %v13510_v23 }
 0x6f0   : > { %v13511_v14 = vpop.f32.mrb[104].mxu0 }
 0x6f1   : > { %v13512_v62 = vpop.f32.mrb[105].mxu0 }
 0x6f2   : > { %v13514_v61 = vpop.f32.mrb[106].mxu0  ;;  %v13513_v21 = vadd.f32 %v13512_v62, %v13511_v14 }
 0x6f3   : > { %v13515_v19 = vpop.f32.mrb[107].mxu0 }
 0x6f4   : > { %14818 = vmatprep.mubr.msk.f32.mxu1 %vm4900_vm3, %v13513_v21  ;;  %v13516_v24 = vadd.f32 %v13515_v19, %v13514_v61 }
 0x6f6   : > { %14819 = vmatmul.mubr.msk.f32.gmra.mrb[164].mxu1 %vm4900_vm3, %v13516_v24 }
 0x6f8   : > { %v13517_v44 = vpop.f32.mrb[108].mxu0 }
 0x6f9   : > { %v13518_v17 = vpop.f32.mrb[109].mxu0 }
 0x6fa   : > { %v13519_v1 = vadd.f32 %v13518_v17, %v13517_v44  ;;  %v13520_v29 = vpop.f32.mrb[110].mxu0 }
 0x6fb   : > { %v13521_v26 = vpop.f32.mrb[111].mxu0 }
 0x6fc   : > { %v13522_v52 = vadd.f32 %v13521_v26, %v13520_v29  ;;  %14821 = vmatprep.mubr.msk.f32.mxu1 %vm4900_vm3, %v13519_v1 }
 0x6fe   : > { %14822 = vmatmul.mubr.msk.f32.gmra.mrb[166].mxu1 %vm4900_vm3, %v13522_v52 }
 0x700   : > { %v13523_v5 = vpop.f32.mrb[112].mxu0 }
 0x701   : > { %v13524_v32 = vpop.f32.mrb[113].mxu0 }
 0x702   : > { %v13525_v22 = vadd.f32 %v13524_v32, %v13523_v5  ;;  %v13526_v15 = vpop.f32.mrb[114].mxu0 }
 0x703   : > { %v13527_v51 = vpop.f32.mrb[115].mxu0 }
 0x704   : > { %v13528_v13 = vadd.f32 %v13527_v51, %v13526_v15  ;;  %14824 = vmatprep.mubr.msk.f32.mxu1 %vm4900_vm3, %v13525_v22 }
 0x706   : > { %14825 = vmatmul.mubr.msk.f32.gmra.mrb[168].mxu1 %vm4900_vm3, %v13528_v13 }
 0x708   : > { %v13529_v34 = vpop.f32.mrb[116].mxu0 }
 0x709   : > { %v13530_v59 = vpop.f32.mrb[117].mxu0 }
 0x70a   : > { %v13531_v9 = vadd.f32 %v13530_v59, %v13529_v34  ;;  %v13532_v18 = vpop.f32.mrb[118].mxu0 }
 0x70b   : > { %v13533_v46 = vpop.f32.mrb[119].mxu0 }
 0x70c   : > { %v13534_v0 = vadd.f32 %v13533_v46, %v13532_v18  ;;  %14827 = vmatprep.mubr.msk.f32.mxu1 %vm4900_vm3, %v13531_v9  ;;  %v18457_v9 = vpop.permute.xlu1 %7080  ;;  %v18459_v18 = vpop.permute.xlu0 %7075 }
 0x70e   : > { %14828 = vmatmul.mubr.msk.f32.gmra.mrb[170].mxu1 %vm4900_vm3, %v13534_v0 }
 0x710   : > { %v13535_v35 = vpop.f32.mrb[120].mxu0  ;;  %v7001_v46 = vpop.permute.xlu1 %7000 }
 0x711   : > { %v13536_v10 = vpop.f32.mrb[121].mxu0  ;;  %v6996_v0 = vpop.permute.xlu0 %6995 }
 0x712   : > { %v13537_v28 = vadd.f32 %v13536_v10, %v13535_v35  ;;  %v13538_v33 = vpop.f32.mrb[122].mxu0 }
 0x713   : > { %v13539_v42 = vpop.f32.mrb[123].mxu0 }
 0x714   : > { %v13540_v54 = vadd.f32 %v13539_v42, %v13538_v33  ;;  %14830 = vmatprep.mubr.msk.f32.mxu1 %vm4900_vm3, %v13537_v28  ;;  %v18461_v35 = vpop.permute.xlu1 %7090 }
 0x715   : > { %v18463_v10 = vpop.permute.xlu0 %7085 }
 0x716   : > { %14831 = vmatmul.mubr.msk.f32.gmra.mrb[172].mxu1 %vm4900_vm3, %v13540_v54 }
 0x718   : > { %v13541_v8 = vpop.f32.mrb[124].mxu0  ;;  %v7011_v28 = vpop.permute.xlu1 %7010 }
 0x719   : > { %v13542_v63 = vpop.f32.mrb[125].mxu0  ;;  %v7006_v33 = vpop.permute.xlu0 %7005 }
 0x71a   : > { %v13543_v60 = vadd.f32 %v13542_v63, %v13541_v8  ;;  %v13544_v7 = vpop.f32.mrb[126].mxu0 }
 0x71b   : > { %v13545_v43 = vpop.f32.mrb[127].mxu0 }
 0x71c   : > { %v13546_v3 = vadd.f32 %v13545_v43, %v13544_v7  ;;  %14833 = vmatprep.mubr.msk.f32.mxu1 %vm4900_vm3, %v13543_v60  ;;  %v18465_v42 = vpop.permute.xlu1 %7100 }
 0x71d   : > { %v18467_v54 = vpop.permute.xlu0 %7095 }
 0x71e   : > { %14834 = vmatmul.mubr.msk.f32.gmra.mrb[174].mxu1 %vm4900_vm3, %v13546_v3 }
 0x720   : > { %v13547_v53 = vpop.f32.mrb[128].mxu0  ;;  %v7021_v8 = vpop.permute.xlu1 %7020 }
 0x721   : > { %v13548_v41 = vpop.f32.mrb[129].mxu0  ;;  %v7016_v63 = vpop.permute.xlu0 %7015 }
 0x722   : > { %v13549_v2 = vadd.f32 %v13548_v41, %v13547_v53  ;;  %v13550_v31 = vpop.f32.mrb[130].mxu0  ;;  %v16015_v41 = vld [vmem:[#allocation7 + $0x104] ss:$8 sps:$4 sm:$0xff]  }
 0x723   : > { %v13551_v36 = vpop.f32.mrb[131].mxu0  ;;  %7813 = vmatprep.mubr.bf16.mxu0 %v16015_v41 }
 0x724   : > { %v13552_v4 = vadd.f32 %v13551_v36, %v13550_v31  ;;  %14836 = vmatprep.mubr.msk.f32.mxu1 %vm4900_vm3, %v13549_v2  ;;  %v18469_v3 = vpop.permute.xlu1 %7110 }
 0x725   : > { %v18471_v2 = vpop.permute.xlu0 %7105 }
 0x726   : > { %14837 = vmatmul.mubr.msk.f32.gmra.mrb[176].mxu1 %vm4900_vm3, %v13552_v4 }
 0x728   : > { %v13553_v11 = vpop.f32.mrb[132].mxu0 }
 0x729   : > { %v13554_v50 = vpop.f32.mrb[133].mxu0 }
 0x72a   : > { %v13555_v30 = vadd.f32 %v13554_v50, %v13553_v11  ;;  %v13556_v6 = vpop.f32.mrb[134].mxu0  ;;  %v7031_v11 = vpop.permute.xlu1 %7030 }
 0x72b   : > { %v13557_v16 = vpop.f32.mrb[135].mxu0 }
 0x72c   : > { %v13558_v49 = vadd.f32 %v13557_v16, %v13556_v6  ;;  %14839 = vmatprep.mubr.msk.f32.mxu1 %vm4900_vm3, %v13555_v30  ;;  %v7026_v30 = vpop.permute.xlu0 %7025 }
 0x72e   : > { %14840 = vmatmul.mubr.msk.f32.gmra.mrb[178].mxu1 %vm4900_vm3, %v13558_v49 }
 0x730   : > { %v13559_v48 = vpop.f32.mrb[136].mxu0 }
 0x731   : > { %v13560_v56 = vpop.f32.mrb[137].mxu0 }
 0x732   : > { %v13561_v47 = vadd.f32 %v13560_v56, %v13559_v48  ;;  %v13562_v39 = vpop.f32.mrb[138].mxu0 }
 0x733   : > { %v13563_v37 = vpop.f32.mrb[139].mxu0 }
 0x734   : > { %v13564_v58 = vadd.f32 %v13563_v37, %v13562_v39  ;;  %14842 = vmatprep.mubr.msk.f32.mxu1 %vm4900_vm3, %v13561_v47  ;;  %v18475_v47 = vpop.permute.xlu1 %7120  ;;  %v18479_v37 = vpop.permute.xlu0 %7115 }
 0x736   : > { %14843 = vmatmul.mubr.msk.f32.gmra.mrb[180].mxu1 %vm4900_vm3, %v13564_v58 }
 0x738   : > { %v13565_v12 = vpop.f32.mrb[140].mxu0 }
 0x739   : > { %v13566_v25 = vpop.f32.mrb[141].mxu0 }
 0x73a   : > { %v13567_v27 = vadd.f32 %v13566_v25, %v13565_v12  ;;  %v13568_v20 = vpop.f32.mrb[142].mxu0 }
 0x73b   : > { %v13569_v55 = vpop.f32.mrb[143].mxu0 }
 0x73c   : > { %v13570_v57 = vadd.f32 %v13569_v55, %v13568_v20  ;;  %14845 = vmatprep.mubr.msk.f32.mxu1 %vm4900_vm3, %v13567_v27  ;;  %v7041_v55 = vpop.permute.xlu1 %7040 }
 0x73e   : > { %14846 = vmatmul.mubr.msk.f32.gmra.mrb[182].mxu1 %vm4900_vm3, %v13570_v57 }
 0x740   : > { %v13571_v38 = vpop.f32.mrb[144].mxu0 }
 0x741   : > { %v13572_v40 = vpop.f32.mrb[145].mxu0 }
 0x742   : > { %v13573_v45 = vadd.f32 %v13572_v40, %v13571_v38  ;;  %v13574_v23 = vpop.f32.mrb[146].mxu0  ;;  %v7036_v38 = vpop.permute.xlu0 %7035 }
 0x743   : > { %v13575_v14 = vpop.f32.mrb[147].mxu0 }
 0x744   : > { %v13576_v62 = vadd.f32 %v13575_v14, %v13574_v23  ;;  %14848 = vmatprep.mubr.msk.f32.mxu1 %vm4900_vm3, %v13573_v45 }
 0x746   : > { %14849 = vmatmul.mubr.msk.f32.gmra.mrb[184].mxu1 %vm4900_vm3, %v13576_v62  ;;  %v18483_v62 = vpop.permute.xlu1 %7130 }
 0x748   : > { %v13577_v61 = vpop.f32.mrb[148].mxu0 }
 0x749   : > { %v13578_v21 = vpop.f32.mrb[149].mxu0 }
 0x74a   : > { %v13579_v19 = vadd.f32 %v13578_v21, %v13577_v61  ;;  %v13580_v24 = vpop.f32.mrb[150].mxu0  ;;  %v18485_v21 = vpop.permute.xlu0 %7125 }
 0x74b   : > { %v13581_v44 = vpop.f32.mrb[151].mxu0 }
 0x74c   : > { %v13582_v17 = vadd.f32 %v13581_v44, %v13580_v24  ;;  %14851 = vmatprep.mubr.msk.f32.mxu1 %vm4900_vm3, %v13579_v19 }
 0x74e   : > { %14852 = vmatmul.mubr.msk.f32.gmra.mrb[186].mxu1 %vm4900_vm3, %v13582_v17  ;;  %v7051_v17 = vpop.permute.xlu1 %7050 }
 0x750   : > { %v13583_v1 = vpop.f32.mrb[152].mxu0 }
 0x751   : > { %v13584_v29 = vpop.f32.mrb[153].mxu0 }
 0x752   : > { %v13585_v26 = vadd.f32 %v13584_v29, %v13583_v1  ;;  %v13586_v52 = vpop.f32.mrb[154].mxu0  ;;  %v7046_v29 = vpop.permute.xlu0 %7045 }
 0x753   : > { %v13587_v5 = vpop.f32.mrb[155].mxu0 }
 0x754   : > { %v13588_v32 = vadd.f32 %v13587_v5, %v13586_v52  ;;  %14854 = vmatprep.mubr.msk.f32.mxu1 %vm4900_vm3, %v13585_v26 }
 0x756   : > { %14855 = vmatmul.mubr.msk.f32.gmra.mrb[188].mxu1 %vm4900_vm3, %v13588_v32 }
 0x758   : > { %v13589_v22 = vpop.f32.mrb[156].mxu0 }
 0x759   : > { %v13590_v15 = vpop.f32.mrb[157].mxu0 }
 0x75a   : > { %v13591_v51 = vadd.f32 %v13590_v15, %v13589_v22  ;;  %v13592_v13 = vpop.f32.mrb[158].mxu0  ;;  %v18489_v15 = vpop.permute.xlu1 %7140 }
 0x75b   : > { %v13593_v34 = vpop.f32.mrb[159].mxu0 }
 0x75c   : > { %v13594_v59 = vadd.f32 %v13593_v34, %v13592_v13  ;;  %14857 = vmatprep.mubr.msk.f32.mxu1 %vm4900_vm3, %v13591_v51  ;;  %v18493_v13 = vpop.permute.xlu0 %7135 }
 0x75e   : > { %14858 = vmatmul.mubr.msk.f32.gmra.mrb[190].mxu1 %vm4900_vm3, %v13594_v59 }
 0x7b9   : > { %v14814_v60 = vpop.f32.mrb[160].mxu1 }
 0x7ba   : > { %v7154_v7 = vadd.f32 %v14814_v60, %v7001_v46  ;;  %v6770_v43 = vpop.f32.mrb[161].mxu1 }
 0x7bb   : > { %v7153_v53 = vadd.f32 %v6996_v0, %v6770_v43 }
 0x7bc   : > { %v7186_v31 = vmax.f32 %v7154_v7, 0.0 }
 0x7bd   : > { %v7185_v36 = vmax.f32 %v7153_v53, 0.0 }
 0x7bf   : > { %v18473_v4 = vpack.c.bf16 %v7186_v31, %v7185_v36 }
 0x7c1   : > { %v14817_v50 = vpop.f32.mrb[162].mxu1 }
 0x7c2   : > { %v7156_v6 = vadd.f32 %v14817_v50, %v7011_v28  ;;  %v6780_v16 = vpop.f32.mrb[163].mxu1 }
 0x7c3   : > { %v7155_v49 = vadd.f32 %v7006_v33, %v6780_v16  ;;  %v7061_v33 = vpop.permute.xlu1 %7060 }
 0x7c4   : > { %v7188_v48 = vmax.f32 %v7156_v6, 0.0 }
 0x7c5   : > { %v7187_v56 = vmax.f32 %v7155_v49, 0.0 }
 0x7c7   : > { %v18477_v39 = vpack.c.bf16 %v7188_v48, %v7187_v56  ;;  %v18497_v41 = vpop.permute.xlu1 %7150 }
 0x7c9   : > { %v14820_v58 = vpop.f32.mrb[164].mxu1 }
 0x7ca   : > { %v7158_v12 = vadd.f32 %v14820_v58, %v7021_v8  ;;  %v6790_v25 = vpop.f32.mrb[165].mxu1 }
 0x7cb   : > { %v7157_v27 = vadd.f32 %v7016_v63, %v6790_v25  ;;  %v7056_v63 = vpop.permute.xlu0 %7055  ;;  %v7071_v6 = vpop.permute.xlu1 %7070 }
 0x7cc   : > { %v7190_v20 = vmax.f32 %v7158_v12, 0.0 }
 0x7cd   : > { %v7189_v57 = vmax.f32 %v7157_v27, 0.0  ;;  %v16039_v27 = vld [vmem:[#allocation7 + $0x4] ss:$8 sps:$4 sm:$0xff]  }
 0x7ce   : > { %7457 = vmatprep.mubr.bf16.mxu1 %v16039_v27 }
 0x7cf   : > { %v18481_v40 = vpack.c.bf16 %v7190_v20, %v7189_v57  ;;  %v18499_v36 = vpop.permute.xlu0 %7145 }
 0x7d1   : > { %v14823_v45 = vpop.f32.mrb[166].mxu1 }
 0x7d2   : > { %v7160_v23 = vadd.f32 %v14823_v45, %v7031_v11  ;;  %v6800_v14 = vpop.f32.mrb[167].mxu1 }
 0x7d3   : > { %v7159_v61 = vadd.f32 %v7026_v30, %v6800_v14  ;;  %v7066_v49 = vpop.permute.xlu0 %7065 }
 0x7d4   : > { %v7192_v19 = vmax.f32 %v7160_v23, 0.0 }
 0x7d5   : > { %v7191_v24 = vmax.f32 %v7159_v61, 0.0 }
 0x7d7   : > { %v18487_v44 = vpack.c.bf16 %v7192_v19, %v7191_v24 }
 0x7d9   : > { %v14826_v1 = vpop.f32.mrb[168].mxu1 }
 0x7da   : > { %v7162_v26 = vadd.f32 %v14826_v1, %v7041_v55  ;;  %v6810_v52 = vpop.f32.mrb[169].mxu1 }
 0x7db   : > { %v7161_v5 = vadd.f32 %v7036_v38, %v6810_v52 }
 0x7dc   : > { %v7194_v32 = vmax.f32 %v7162_v26, 0.0 }
 0x7dd   : > { %v7193_v22 = vmax.f32 %v7161_v5, 0.0 }
 0x7df   : > { %v18491_v51 = vpack.c.bf16 %v7194_v32, %v7193_v22 }
 0x7e1   : > { %v14829_v34 = vpop.f32.mrb[170].mxu1 }
 0x7e2   : > { %v7164_v59 = vadd.f32 %v14829_v34, %v7051_v17  ;;  %v6820_v46 = vpop.f32.mrb[171].mxu1 }
 0x7e3   : > { %v7163_v0 = vadd.f32 %v7046_v29, %v6820_v46 }
 0x7e4   : > { %v7196_v28 = vmax.f32 %v7164_v59, 0.0 }
 0x7e5   : > { %v7195_v8 = vmax.f32 %v7163_v0, 0.0 }
 0x7e7   : > { %v18495_v60 = vpack.c.bf16 %v7196_v28, %v7195_v8 }
 0x7e9   : > { %v14832_v7 = vpop.f32.mrb[172].mxu1 }
 0x7ea   : > { %v7166_v43 = vadd.f32 %v14832_v7, %v7061_v33  ;;  %v6830_v53 = vpop.f32.mrb[173].mxu1 }
 0x7eb   : > { %v7165_v31 = vadd.f32 %v7056_v63, %v6830_v53 }
 0x7ec   : > { %v7198_v11 = vmax.f32 %v7166_v43, 0.0 }
 0x7ed   : > { %v7197_v50 = vmax.f32 %v7165_v31, 0.0 }
 0x7ef   : > { %v18501_v30 = vpack.c.bf16 %v7198_v11, %v7197_v50 }
 0x7f1   : > { %v14835_v16 = vpop.f32.mrb[174].mxu1 }
 0x7f2   : > { %v7168_v48 = vadd.f32 %v14835_v16, %v7071_v6  ;;  %v6840_v56 = vpop.f32.mrb[175].mxu1 }
 0x7f3   : > { %v7167_v58 = vadd.f32 %v7066_v49, %v6840_v56 }
 0x7f4   : > { %v7200_v12 = vmax.f32 %v7168_v48, 0.0 }
 0x7f5   : > { %v7199_v25 = vmax.f32 %v7167_v58, 0.0 }
 0x7f7   : > { %v18503_v20 = vpack.c.bf16 %v7200_v12, %v7199_v25 }
 0x7f9   : > { %v14838_v55 = vpop.f32.mrb[176].mxu1 }
 0x7fa   : > { %v7170_v57 = vadd.f32 %v14838_v55, %v18457_v9  ;;  %v6850_v38 = vpop.f32.mrb[177].mxu1 }
 0x7fb   : > { %v7169_v45 = vadd.f32 %v18459_v18, %v6850_v38  ;;  %v16013_v38 = vld [vmem:[#allocation7 + $0x100] ss:$8 sps:$4 sm:$0xff]  }
 0x7fc   : > { %v7202_v23 = vmax.f32 %v7170_v57, 0.0 }
 0x7fd   : > { %v7201_v14 = vmax.f32 %v7169_v45, 0.0  ;;  %v16037_v45 = vld [vmem:[#allocation7] ss:$8 sps:$4 sm:$0xff]  }
 0x7ff   : > { %v18507_v61 = vpack.c.bf16 %v7202_v23, %v7201_v14  ;;  %v16043_v23 = vld [vmem:[#allocation7 + $0x14] ss:$8 sps:$4 sm:$0xff]   ;;  %v16048_v14 = vld [vmem:[#allocation7 + $0x10] ss:$8 sps:$4 sm:$0xff]  }
 0x801   : > { %v14841_v19 = vpop.f32.mrb[178].mxu1  ;;  %13628 = vmatprep.subr.bf16.mxu1 %v18507_v61  ;;  %13740 = vmatprep.subr.bf16.mxu0 %v18507_v61 }
 0x802   : > { %v7172_v24 = vadd.f32 %v14841_v19, %v18461_v35  ;;  %v6860_v17 = vpop.f32.mrb[179].mxu1  ;;  %13629 = vmatpush3.bf16.msra.mxu1 %v18473_v4  ;;  %13741 = vmatpush3.bf16.msra.mxu0 %v18473_v4  ;;  %v16021_v19 = vld [vmem:[#allocation7 + $0x124] ss:$8 sps:$4 sm:$0xff]  }
 0x803   : > { %v7171_v9 = vadd.f32 %v18463_v10, %v6860_v17  ;;  %v16019_v17 = vld [vmem:[#allocation7 + $0x120] ss:$8 sps:$4 sm:$0xff]  }
 0x804   : > { %v7204_v1 = vmax.f32 %v7172_v24, 0.0  ;;  %v16049_v24 = vld [vmem:[#allocation7 + $0x24] ss:$8 sps:$4 sm:$0xff]  }
 0x805   : > { %v7203_v18 = vmax.f32 %v7171_v9, 0.0  ;;  %v16054_v9 = vld [vmem:[#allocation7 + $0x20] ss:$8 sps:$4 sm:$0xff]  }
 0x807   : > { %v18515_v29 = vpack.c.bf16 %v7204_v1, %v7203_v18  ;;  %v16024_v1 = vld [vmem:[#allocation7 + $0x134] ss:$8 sps:$4 sm:$0xff]  }
 0x808   : > { %v16055_v18 = vld [vmem:[#allocation7 + $0x34] ss:$8 sps:$4 sm:$0xff]  }
 0x809   : > { %v14844_v26 = vpop.f32.mrb[180].mxu1  ;;  %13630 = vmatprep.subr.bf16.mxu1 %v18515_v29  ;;  %13742 = vmatprep.subr.bf16.mxu0 %v18515_v29 }
 0x80a   : > { %v7174_v52 = vadd.f32 %v14844_v26, %v18465_v42  ;;  %v6870_v5 = vpop.f32.mrb[181].mxu1  ;;  %13631 = vmatpush3.bf16.msra.mxu1 %v18477_v39  ;;  %13743 = vmatpush3.bf16.msra.mxu0 %v18477_v39  ;;  %v16022_v26 = vld [vmem:[#allocation7 + $0x130] ss:$8 sps:$4 sm:$0xff]  }
 0x80b   : > { %v7173_v35 = vadd.f32 %v18467_v54, %v6870_v5  ;;  %v16027_v5 = vld [vmem:[#allocation7 + $0x144] ss:$8 sps:$4 sm:$0xff]  }
 0x80c   : > { %v7206_v32 = vmax.f32 %v7174_v52, 0.0  ;;  %v16060_v52 = vld [vmem:[#allocation7 + $0x30] ss:$8 sps:$4 sm:$0xff]  }
 0x80d   : > { %v7205_v10 = vmax.f32 %v7173_v35, 0.0  ;;  %v16061_v35 = vld [vmem:[#allocation7 + $0x44] ss:$8 sps:$4 sm:$0xff]  }
 0x80f   : > { %v18523_v22 = vpack.c.bf16 %v7206_v32, %v7205_v10  ;;  %v16025_v32 = vld [vmem:[#allocation7 + $0x140] ss:$8 sps:$4 sm:$0xff]  }
 0x810   : > { %v16066_v10 = vld [vmem:[#allocation7 + $0x40] ss:$8 sps:$4 sm:$0xff]  }
 0x811   : > { %v14847_v34 = vpop.f32.mrb[182].mxu1  ;;  %13632 = vmatprep.subr.bf16.mxu1 %v18523_v22  ;;  %13744 = vmatprep.subr.bf16.mxu0 %v18523_v22 }
 0x812   : > { %v7176_v59 = vadd.f32 %v14847_v34, %v18469_v3  ;;  %v6880_v46 = vpop.f32.mrb[183].mxu1  ;;  %13633 = vmatpush3.bf16.msra.mxu1 %v18481_v40  ;;  %13745 = vmatpush3.bf16.msra.mxu0 %v18481_v40  ;;  %v16030_v34 = vld [vmem:[#allocation7 + $0x154] ss:$8 sps:$4 sm:$0xff]  }
 0x813   : > { %v7175_v42 = vadd.f32 %v18471_v2, %v6880_v46  ;;  %v16028_v46 = vld [vmem:[#allocation7 + $0x150] ss:$8 sps:$4 sm:$0xff]  }
 0x814   : > { %v7208_v0 = vmax.f32 %v7176_v59, 0.0  ;;  %v16067_v59 = vld [vmem:[#allocation7 + $0x54] ss:$8 sps:$4 sm:$0xff]  }
 0x815   : > { %v7207_v54 = vmax.f32 %v7175_v42, 0.0  ;;  %v16072_v42 = vld [vmem:[#allocation7 + $0x50] ss:$8 sps:$4 sm:$0xff]  }
 0x817   : > { %v18531_v28 = vpack.c.bf16 %v7208_v0, %v7207_v54  ;;  %v16033_v0 = vld [vmem:[#allocation7 + $0x164] ss:$8 sps:$4 sm:$0xff]  }
 0x818   : > { %v16073_v54 = vld [vmem:[#allocation7 + $0x64] ss:$8 sps:$4 sm:$0xff]  }
 0x819   : > { %v14850_v33 = vpop.f32.mrb[184].mxu1  ;;  %13634 = vmatprep.subr.bf16.mxu1 %v18531_v28  ;;  %13746 = vmatprep.subr.bf16.mxu0 %v18531_v28 }
 0x81a   : > { %v7178_v8 = vadd.f32 %v14850_v33, %v18475_v47  ;;  %v6890_v63 = vpop.f32.mrb[185].mxu1  ;;  %13635 = vmatpush3.bf16.msra.mxu1 %v18487_v44  ;;  %13747 = vmatpush3.bf16.msra.mxu0 %v18487_v44  ;;  %v16031_v33 = vld [vmem:[#allocation7 + $0x160] ss:$8 sps:$4 sm:$0xff]  }
 0x81b   : > { %v7177_v3 = vadd.f32 %v18479_v37, %v6890_v63  ;;  %v16036_v63 = vld [vmem:[#allocation7 + $0x174] ss:$8 sps:$4 sm:$0xff]  }
 0x81c   : > { %v7210_v7 = vmax.f32 %v7178_v8, 0.0  ;;  %v16078_v8 = vld [vmem:[#allocation7 + $0x60] ss:$8 sps:$4 sm:$0xff]  }
 0x81d   : > { %v7209_v2 = vmax.f32 %v7177_v3, 0.0  ;;  %v16079_v3 = vld [vmem:[#allocation7 + $0x74] ss:$8 sps:$4 sm:$0xff]  }
 0x81f   : > { %v18539_v43 = vpack.c.bf16 %v7210_v7, %v7209_v2  ;;  %v16084_v7 = vld [vmem:[#allocation7 + $0x70] ss:$8 sps:$4 sm:$0xff]   ;;  %v16042_v2 = vld [vmem:[#allocation7 + $0x184] ss:$8 sps:$4 sm:$0xff]  }
 0x821   : > { %v14853_v53 = vpop.f32.mrb[186].mxu1  ;;  %13636 = vmatprep.subr.bf16.mxu1 %v18539_v43  ;;  %13748 = vmatprep.subr.bf16.mxu0 %v18539_v43 }
 0x822   : > { %v7180_v31 = vadd.f32 %v14853_v53, %v18483_v62  ;;  %v6900_v11 = vpop.f32.mrb[187].mxu1  ;;  %13637 = vmatpush3.bf16.msra.mxu1 %v18491_v51  ;;  %13749 = vmatpush3.bf16.msra.mxu0 %v18491_v51  ;;  %v16085_v53 = vld [vmem:[#allocation7 + $0x84] ss:$8 sps:$4 sm:$0xff]  }
 0x823   : > { %v7179_v47 = vadd.f32 %v18485_v21, %v6900_v11  ;;  %v16090_v11 = vld [vmem:[#allocation7 + $0x80] ss:$8 sps:$4 sm:$0xff]  }
 0x824   : > { %v7212_v50 = vmax.f32 %v7180_v31, 0.0  ;;  %v16040_v31 = vld [vmem:[#allocation7 + $0x180] ss:$8 sps:$4 sm:$0xff]  }
 0x825   : > { %v7211_v37 = vmax.f32 %v7179_v47, 0.0  ;;  %v16047_v47 = vld [vmem:[#allocation7 + $0x194] ss:$8 sps:$4 sm:$0xff]  }
 0x827   : > { %v18547_v6 = vpack.c.bf16 %v7212_v50, %v7211_v37  ;;  %v16091_v50 = vld [vmem:[#allocation7 + $0x94] ss:$8 sps:$4 sm:$0xff]   ;;  %v16045_v37 = vld [vmem:[#allocation7 + $0x190] ss:$8 sps:$4 sm:$0xff]  }
 0x829   : > { %v14856_v16 = vpop.f32.mrb[188].mxu1  ;;  %13638 = vmatprep.subr.bf16.mxu1 %v18547_v6  ;;  %13750 = vmatprep.subr.bf16.mxu0 %v18547_v6 }
 0x82a   : > { %v7182_v49 = vadd.f32 %v14856_v16, %v18489_v15  ;;  %v6910_v48 = vpop.f32.mrb[189].mxu1  ;;  %13639 = vmatpush3.bf16.msra.mxu1 %v18495_v60  ;;  %13751 = vmatpush3.bf16.msra.mxu0 %v18495_v60  ;;  %v16096_v16 = vld [vmem:[#allocation7 + $0x90] ss:$8 sps:$4 sm:$0xff]  }
 0x82b   : > { %v7181_v62 = vadd.f32 %v18493_v13, %v6910_v48  ;;  %v16097_v48 = vld [vmem:[#allocation7 + $0xa4] ss:$8 sps:$4 sm:$0xff]  }
 0x82c   : > { %v7214_v56 = vmax.f32 %v7182_v49, 0.0  ;;  %v16053_v49 = vld [vmem:[#allocation7 + $0x1a4] ss:$8 sps:$4 sm:$0xff]  }
 0x82d   : > { %v7213_v21 = vmax.f32 %v7181_v62, 0.0  ;;  %v16051_v62 = vld [vmem:[#allocation7 + $0x1a0] ss:$8 sps:$4 sm:$0xff]  }
 0x82f   : > { %v18555_v58 = vpack.c.bf16 %v7214_v56, %v7213_v21  ;;  %v16102_v56 = vld [vmem:[#allocation7 + $0xa0] ss:$8 sps:$4 sm:$0xff]   ;;  %v16059_v21 = vld [vmem:[#allocation7 + $0x1b4] ss:$8 sps:$4 sm:$0xff]  }
 0x831   : > { %v14859_v12 = vpop.f32.mrb[190].mxu1  ;;  %13640 = vmatprep.subr.bf16.mxu1 %v18555_v58  ;;  %13752 = vmatprep.subr.bf16.mxu0 %v18555_v58 }
 0x832   : > { %v7184_v25 = vadd.f32 %v14859_v12, %v18497_v41  ;;  %v6920_v27 = vpop.f32.mrb[191].mxu1  ;;  %13641 = vmatpush3.bf16.msra.mxu1 %v18501_v30  ;;  %13753 = vmatpush3.bf16.msra.mxu0 %v18501_v30  ;;  %v16018_v41 = vld [vmem:[#allocation7 + $0x114] ss:$8 sps:$4 sm:$0xff]  }
 0x833   : > { %v7183_v15 = vadd.f32 %v18499_v36, %v6920_v27  ;;  %v16016_v36 = vld [vmem:[#allocation7 + $0x110] ss:$8 sps:$4 sm:$0xff]   ;;  %v16103_v12 = vld [vmem:[#allocation7 + $0xb4] ss:$8 sps:$4 sm:$0xff]  }
 0x834   : > { %v7216_v55 = vmax.f32 %v7184_v25, 0.0  ;;  %v7943_v25 = vld [vmem:[#allocation8 + $0x10] sm:$0xff]  ;;  %v7944_v27 = vld [vmem:[#allocation8 + $0x18] sm:$0xff] }
 0x835   : > { %v7215_v13 = vmax.f32 %v7183_v15, 0.0  ;;  %v16057_v15 = vld [vmem:[#allocation7 + $0x1b0] ss:$8 sps:$4 sm:$0xff]  }
 0x837   : > { %v18563_v57 = vpack.c.bf16 %v7216_v55, %v7215_v13  ;;  %v16108_v55 = vld [vmem:[#allocation7 + $0xb0] ss:$8 sps:$4 sm:$0xff]   ;;  %v15148_v13 = vpack.c.bf16 %v7944_v27, %v7943_v25 }
 0x839   : > { %13642 = vmatprep.subr.bf16.mxu1 %v18563_v57  ;;  %13754 = vmatprep.subr.bf16.mxu0 %v18563_v57 }
 0x83a   : > { %13643 = vmatpush3.bf16.msra.mxu1 %v18503_v20  ;;  %13755 = vmatpush3.bf16.msra.mxu0 %v18503_v20 }
 0x83b   : > { %13920 = vmatprep.subr.bf16.mxu0 %v18507_v61  ;;  %15149 = vmatprep.subr.bf16.mxu1 %v15148_v13 }
 0x83d   : > { %7814 = vmatmul.mubr.bf16.vlgmr.msra.gmra.mrb[160].mxu0 %v16013_v38  ;;  %7458 = vmatmul.mubr.bf16.vlgmr.msra.gmra.mrb[192].mxu1 %v16037_v45  ;;  %v16065_v38 = vld [vmem:[#allocation7 + $0x1c4] ss:$8 sps:$4 sm:$0xff]  }
 0x83e   : > { %13921 = vmatpush3.bf16.msra.mxu0 %v18473_v4  ;;  %7821 = vmatprep.mubr.bf16.mxu0 %v16018_v41  ;;  %v16109_v45 = vld [vmem:[#allocation7 + $0xc4] ss:$8 sps:$4 sm:$0xff]   ;;  %v16063_v41 = vld [vmem:[#allocation7 + $0x1c0] ss:$8 sps:$4 sm:$0xff]  }
 0x83f   : > { %13922 = vmatprep.subr.bf16.mxu0 %v18515_v29  ;;  %7465 = vmatprep.mubr.bf16.mxu1 %v16043_v23  ;;  %v16114_v23 = vld [vmem:[#allocation7 + $0xc0] ss:$8 sps:$4 sm:$0xff]  }
 0x840   : > { %15151 = vmatpush3.bf16.msra.mxu1 %v15148_v13 }
 0x842   : > { %13923 = vmatpush3.bf16.msra.mxu0 %v18477_v39 }
 0x843   : > { %13924 = vmatprep.subr.bf16.mxu0 %v18523_v22 }
 0x845   : > { %7822 = vmatmul.mubr.bf16.gmra.mrb[164].mxu0 %v16016_v36  ;;  %7466 = vmatmul.mubr.bf16.gmra.mrb[196].mxu1 %v16048_v14  ;;  %v16071_v36 = vld [vmem:[#allocation7 + $0x1d4] ss:$8 sps:$4 sm:$0xff]  }
 0x846   : > { %13925 = vmatpush3.bf16.msra.mxu0 %v18481_v40  ;;  %7829 = vmatprep.mubr.bf16.mxu0 %v16021_v19  ;;  %v16115_v14 = vld [vmem:[#allocation7 + $0xd4] ss:$8 sps:$4 sm:$0xff]   ;;  %v16069_v19 = vld [vmem:[#allocation7 + $0x1d0] ss:$8 sps:$4 sm:$0xff]  }
 0x847   : > { %13926 = vmatprep.subr.bf16.mxu0 %v18531_v28  ;;  %7473 = vmatprep.mubr.bf16.mxu1 %v16049_v24  ;;  %v16120_v24 = vld [vmem:[#allocation7 + $0xd0] ss:$8 sps:$4 sm:$0xff]  }
 0x84a   : > { %13927 = vmatpush3.bf16.msra.mxu0 %v18487_v44 }
 0x84b   : > { %13928 = vmatprep.subr.bf16.mxu0 %v18539_v43 }
 0x84d   : > { %7830 = vmatmul.mubr.bf16.gmra.mrb[168].mxu0 %v16019_v17  ;;  %7474 = vmatmul.mubr.bf16.gmra.mrb[200].mxu1 %v16054_v9  ;;  %v16077_v17 = vld [vmem:[#allocation7 + $0x1e4] ss:$8 sps:$4 sm:$0xff]  }
 0x84e   : > { %13929 = vmatpush3.bf16.msra.mxu0 %v18491_v51  ;;  %7837 = vmatprep.mubr.bf16.mxu0 %v16024_v1  ;;  %v16121_v9 = vld [vmem:[#allocation7 + $0xe4] ss:$8 sps:$4 sm:$0xff]   ;;  %v16075_v1 = vld [vmem:[#allocation7 + $0x1e0] ss:$8 sps:$4 sm:$0xff]  }
 0x84f   : > { %13930 = vmatprep.subr.bf16.mxu0 %v18547_v6  ;;  %7481 = vmatprep.mubr.bf16.mxu1 %v16055_v18  ;;  %v16126_v18 = vld [vmem:[#allocation7 + $0xe0] ss:$8 sps:$4 sm:$0xff]  }
 0x852   : > { %13931 = vmatpush3.bf16.msra.mxu0 %v18495_v60 }
 0x853   : > { %13932 = vmatprep.subr.bf16.mxu0 %v18555_v58 }
 0x855   : > { %7838 = vmatmul.mubr.bf16.gmra.mrb[172].mxu0 %v16022_v26  ;;  %7482 = vmatmul.mubr.bf16.gmra.mrb[204].mxu1 %v16060_v52  ;;  %v16083_v26 = vld [vmem:[#allocation7 + $0x1f4] ss:$8 sps:$4 sm:$0xff]  }
 0x856   : > { %13933 = vmatpush3.bf16.msra.mxu0 %v18501_v30  ;;  %7845 = vmatprep.mubr.bf16.mxu0 %v16027_v5  ;;  %v16127_v52 = vld [vmem:[#allocation7 + $0xf4] ss:$8 sps:$4 sm:$0xff]   ;;  %v16081_v5 = vld [vmem:[#allocation7 + $0x1f0] ss:$8 sps:$4 sm:$0xff]  }
 0x857   : > { %13934 = vmatprep.subr.bf16.mxu0 %v18563_v57  ;;  %7489 = vmatprep.mubr.bf16.mxu1 %v16061_v35  ;;  %v16132_v35 = vld [vmem:[#allocation7 + $0xf0] ss:$8 sps:$4 sm:$0xff]  }
 0x85a   : > { %13935 = vmatpush3.bf16.msra.mxu0 %v18503_v20 }
 0x85b   : > { %14066 = vmatprep.subr.bf16.mxu0 %v18507_v61  ;;  %v16034_v61 = vld [vmem:[#allocation7 + $0x170] ss:$8 sps:$4 sm:$0xff]  }
 0x85d   : > { %7846 = vmatmul.mubr.bf16.gmra.mrb[176].mxu0 %v16025_v32  ;;  %7490 = vmatmul.mubr.bf16.gmra.mrb[208].mxu1 %v16066_v10  ;;  %v16089_v32 = vld [vmem:[#allocation7 + $0x204] ss:$8 sps:$4 sm:$0xff]   ;;  %v16087_v10 = vld [vmem:[#allocation7 + $0x200] ss:$8 sps:$4 sm:$0xff]  }
 0x85e   : > { %7853 = vmatprep.mubr.bf16.mxu0 %v16030_v34  ;;  %7497 = vmatprep.mubr.bf16.mxu1 %v16067_v59  ;;  %v16095_v34 = vld [vmem:[#allocation7 + $0x214] ss:$8 sps:$4 sm:$0xff]   ;;  %v16093_v59 = vld [vmem:[#allocation7 + $0x210] ss:$8 sps:$4 sm:$0xff]  }
 0x865   : > { %7854 = vmatmul.mubr.bf16.gmra.mrb[180].mxu0 %v16028_v46  ;;  %7498 = vmatmul.mubr.bf16.gmra.mrb[212].mxu1 %v16072_v42  ;;  %v16101_v46 = vld [vmem:[#allocation7 + $0x224] ss:$8 sps:$4 sm:$0xff]   ;;  %v16099_v42 = vld [vmem:[#allocation7 + $0x220] ss:$8 sps:$4 sm:$0xff]  }
 0x866   : > { %7861 = vmatprep.mubr.bf16.mxu0 %v16033_v0  ;;  %7505 = vmatprep.mubr.bf16.mxu1 %v16073_v54  ;;  %v16107_v0 = vld [vmem:[#allocation7 + $0x234] ss:$8 sps:$4 sm:$0xff]  }
 0x867   : > { %v16144_v54 = vld [vmem:[#allocation7 + $0x2b4] ss:$8 sps:$4 sm:$0xff]  }
 0x86d   : > { %7862 = vmatmul.mubr.bf16.gmra.mrb[184].mxu0 %v16031_v33  ;;  %7506 = vmatmul.mubr.bf16.gmra.mrb[216].mxu1 %v16078_v8  ;;  %v7586_v33 = vld [vmem:[#allocation8] sm:$0xff]  ;;  %v7587_v8 = vld [vmem:[#allocation8 + $0x8] sm:$0xff] }
 0x86e   : > { %7869 = vmatprep.mubr.bf16.mxu0 %v16036_v63  ;;  %7513 = vmatprep.mubr.bf16.mxu1 %v16079_v3  ;;  %v15152_v63 = vpack.c.bf16 %v7587_v8, %v7586_v33  ;;  %v16159_v33 = vld [vmem:[#allocation7 + $0x304] ss:$8 sps:$4 sm:$0xff]  }
 0x870   : > { %15153 = vmatprep.subr.bf16.mxu1 %v15152_v63 }
 0x875   : > { %7870 = vmatmul.mubr.bf16.gmra.mrb[188].mxu0 %v16034_v61  ;;  %7514 = vmatmul.mubr.bf16.gmra.mrb[220].mxu1 %v16084_v7  ;;  %v16142_v7 = vld [vmem:[#allocation7 + $0x2b0] ss:$8 sps:$4 sm:$0xff]  }
 0x876   : > { %7877 = vmatprep.mubr.bf16.mxu0 %v16042_v2  ;;  %7521 = vmatprep.mubr.bf16.mxu1 %v16085_v53 }
 0x87d   : > { %7878 = vmatmul.mubr.bf16.gmra.mrb[192].mxu0 %v16040_v31  ;;  %7522 = vmatmul.mubr.bf16.gmra.mrb[224].mxu1 %v16090_v11  ;;  %v16147_v31 = vld [vmem:[#allocation7 + $0x2c4] ss:$8 sps:$4 sm:$0xff]  }
 0x87e   : > { %7885 = vmatprep.mubr.bf16.mxu0 %v16047_v47  ;;  %7529 = vmatprep.mubr.bf16.mxu1 %v16091_v50 }
 0x885   : > { %7886 = vmatmul.mubr.bf16.gmra.mrb[196].mxu0 %v16045_v37  ;;  %7530 = vmatmul.mubr.bf16.gmra.mrb[228].mxu1 %v16096_v16 }
 0x886   : > { %7893 = vmatprep.mubr.bf16.mxu0 %v16053_v49  ;;  %7537 = vmatprep.mubr.bf16.mxu1 %v16097_v48 }
 0x88d   : > { %7894 = vmatmul.mubr.bf16.gmra.mrb[200].mxu0 %v16051_v62  ;;  %7538 = vmatmul.mubr.bf16.gmra.mrb[232].mxu1 %v16102_v56 }
 0x88e   : > { %7901 = vmatprep.mubr.bf16.mxu0 %v16059_v21  ;;  %7545 = vmatprep.mubr.bf16.mxu1 %v16103_v12  ;;  %v16145_v12 = vld [vmem:[#allocation7 + $0x2c0] ss:$8 sps:$4 sm:$0xff]  }
 0x895   : > { %7902 = vmatmul.mubr.bf16.gmra.mrb[204].mxu0 %v16057_v15  ;;  %7546 = vmatmul.mubr.bf16.gmra.mrb[236].mxu1 %v16108_v55  ;;  %v16150_v15 = vld [vmem:[#allocation7 + $0x2d4] ss:$8 sps:$4 sm:$0xff]  }
 0x896   : > { %7909 = vmatprep.mubr.bf16.mxu0 %v16065_v38  ;;  %7553 = vmatprep.mubr.bf16.mxu1 %v16109_v45 }
 0x89d   : > { %7910 = vmatmul.mubr.bf16.gmra.mrb[208].mxu0 %v16063_v41  ;;  %7554 = vmatmul.mubr.bf16.gmra.mrb[240].mxu1 %v16114_v23 }
 0x89e   : > { %7917 = vmatprep.mubr.bf16.mxu0 %v16071_v36  ;;  %7561 = vmatprep.mubr.bf16.mxu1 %v16115_v14 }
 0x8a5   : > { %7918 = vmatmul.mubr.bf16.gmra.mrb[212].mxu0 %v16069_v19  ;;  %7562 = vmatmul.mubr.bf16.gmra.mrb[244].mxu1 %v16120_v24 }
 0x8a6   : > { %7925 = vmatprep.mubr.bf16.mxu0 %v16077_v17  ;;  %7569 = vmatprep.mubr.bf16.mxu1 %v16121_v9  ;;  %v16148_v17 = vld [vmem:[#allocation7 + $0x2d0] ss:$8 sps:$4 sm:$0xff]  }
 0x8ad   : > { %7926 = vmatmul.mubr.bf16.gmra.mrb[216].mxu0 %v16075_v1  ;;  %7570 = vmatmul.mubr.bf16.gmra.mrb[248].mxu1 %v16126_v18  ;;  %v16153_v18 = vld [vmem:[#allocation7 + $0x2e4] ss:$8 sps:$4 sm:$0xff]  }
 0x8ae   : > { %7933 = vmatprep.mubr.bf16.mxu0 %v16083_v26  ;;  %7577 = vmatprep.mubr.bf16.mxu1 %v16127_v52 }
 0x8b5   : > { %7934 = vmatmul.mubr.bf16.gmra.mrb[220].mxu0 %v16081_v5  ;;  %7578 = vmatmul.mubr.bf16.gmra.mrb[252].mxu1 %v16132_v35 }
 0x8b6   : > { %8813 = vmatprep.mubr.bf16.mxu0 %v16089_v32 }
 0x8bd   : > { %8814 = vmatmul.mubr.bf16.vlgmr.msra.gmra.mrb[224].mxu0 %v16087_v10 }
 0x8be   : > { %14067 = vmatpush3.bf16.msra.mxu0 %v18473_v4  ;;  %8821 = vmatprep.mubr.bf16.mxu0 %v16095_v34  ;;  %v16105_v4 = vld [vmem:[#allocation7 + $0x230] ss:$8 sps:$4 sm:$0xff]  }
 0x8bf   : > { %14068 = vmatprep.subr.bf16.mxu0 %v18515_v29  ;;  %v16125_v29 = vld [vmem:[#allocation7 + $0x264] ss:$8 sps:$4 sm:$0xff]  }
 0x8c2   : > { %14069 = vmatpush3.bf16.msra.mxu0 %v18477_v39  ;;  %v16113_v39 = vld [vmem:[#allocation7 + $0x244] ss:$8 sps:$4 sm:$0xff]  }
 0x8c3   : > { %14070 = vmatprep.subr.bf16.mxu0 %v18523_v22  ;;  %v16131_v22 = vld [vmem:[#allocation7 + $0x274] ss:$8 sps:$4 sm:$0xff]  }
 0x8c5   : > { %8822 = vmatmul.mubr.bf16.gmra.mrb[228].mxu0 %v16093_v59 }
 0x8c6   : > { %14071 = vmatpush3.bf16.msra.mxu0 %v18481_v40  ;;  %8829 = vmatprep.mubr.bf16.mxu0 %v16101_v46  ;;  %v16111_v40 = vld [vmem:[#allocation7 + $0x240] ss:$8 sps:$4 sm:$0xff]  }
 0x8c7   : > { %14072 = vmatprep.subr.bf16.mxu0 %v18531_v28  ;;  %v16129_v28 = vld [vmem:[#allocation7 + $0x270] ss:$8 sps:$4 sm:$0xff]  }
 0x8ca   : > { %14073 = vmatpush3.bf16.msra.mxu0 %v18487_v44  ;;  %v16119_v44 = vld [vmem:[#allocation7 + $0x254] ss:$8 sps:$4 sm:$0xff]  }
 0x8cb   : > { %14074 = vmatprep.subr.bf16.mxu0 %v18539_v43  ;;  %v16135_v43 = vld [vmem:[#allocation7 + $0x284] ss:$8 sps:$4 sm:$0xff]  }
 0x8cd   : > { %8830 = vmatmul.mubr.bf16.gmra.mrb[232].mxu0 %v16099_v42 }
 0x8ce   : > { %14075 = vmatpush3.bf16.msra.mxu0 %v18491_v51  ;;  %8837 = vmatprep.mubr.bf16.mxu0 %v16107_v0  ;;  %v16117_v51 = vld [vmem:[#allocation7 + $0x250] ss:$8 sps:$4 sm:$0xff]   ;;  %v16151_v0 = vld [vmem:[#allocation7 + $0x2e0] ss:$8 sps:$4 sm:$0xff]  }
 0x8cf   : > { %14076 = vmatprep.subr.bf16.mxu0 %v18547_v6  ;;  %v16138_v6 = vld [vmem:[#allocation7 + $0x294] ss:$8 sps:$4 sm:$0xff]  }
 0x8d2   : > { %14077 = vmatpush3.bf16.msra.mxu0 %v18495_v60  ;;  %v16123_v60 = vld [vmem:[#allocation7 + $0x260] ss:$8 sps:$4 sm:$0xff]  }
 0x8d3   : > { %14078 = vmatprep.subr.bf16.mxu0 %v18555_v58  ;;  %v16141_v58 = vld [vmem:[#allocation7 + $0x2a4] ss:$8 sps:$4 sm:$0xff]  }
 0x8d5   : > { %8838 = vmatmul.mubr.bf16.gmra.mrb[236].mxu0 %v16105_v4 }
 0x8d6   : > { %14079 = vmatpush3.bf16.msra.mxu0 %v18501_v30  ;;  %8845 = vmatprep.mubr.bf16.mxu0 %v16113_v39  ;;  %v16133_v30 = vld [vmem:[#allocation7 + $0x280] ss:$8 sps:$4 sm:$0xff]  }
 0x8d7   : > { %14080 = vmatprep.subr.bf16.mxu0 %v18563_v57  ;;  %v16139_v57 = vld [vmem:[#allocation7 + $0x2a0] ss:$8 sps:$4 sm:$0xff]  }
 0x8da   : > { %14081 = vmatpush3.bf16.msra.mxu0 %v18503_v20  ;;  %v16136_v20 = vld [vmem:[#allocation7 + $0x290] ss:$8 sps:$4 sm:$0xff]  }
 0x8dd   : > { %8846 = vmatmul.mubr.bf16.gmra.mrb[240].mxu0 %v16111_v40  ;;  %v16156_v40 = vld [vmem:[#allocation7 + $0x2f4] ss:$8 sps:$4 sm:$0xff]  }
 0x8de   : > { %8853 = vmatprep.mubr.bf16.mxu0 %v16119_v44 }
 0x8e5   : > { %8854 = vmatmul.mubr.bf16.gmra.mrb[244].mxu0 %v16117_v51 }
 0x8e6   : > { %8861 = vmatprep.mubr.bf16.mxu0 %v16125_v29 }
 0x8ed   : > { %8862 = vmatmul.mubr.bf16.gmra.mrb[248].mxu0 %v16123_v60 }
 0x8ee   : > { %8869 = vmatprep.mubr.bf16.mxu0 %v16131_v22 }
 0x8f5   : > { %8870 = vmatmul.mubr.bf16.gmra.mrb[252].mxu0 %v16129_v28 }
 0x8f6   : > { %8877 = vmatprep.mubr.bf16.mxu0 %v16135_v43 }
 0x8fd   : > { %8878 = vmatmul.mubr.bf16.gmra.mrb[0].mxu0 %v16133_v30 }
 0x8fe   : > { %8885 = vmatprep.mubr.bf16.mxu0 %v16138_v6 }
 0x905   : > { %8886 = vmatmul.mubr.bf16.gmra.mrb[4].mxu0 %v16136_v20 }
 0x906   : > { %8893 = vmatprep.mubr.bf16.mxu0 %v16141_v58  ;;  %v16154_v58 = vld [vmem:[#allocation7 + $0x2f0] ss:$8 sps:$4 sm:$0xff]  }
 0x90d   : > { %8894 = vmatmul.mubr.bf16.gmra.mrb[8].mxu0 %v16139_v57 }
 0x90e   : > { %8901 = vmatprep.mubr.bf16.mxu0 %v16144_v54 }
 0x910   : > { %v13756_v3 = vpop.f32.mrb[160].mxu0  ;;  %v13644_v61 = vpop.f32.mrb[192].mxu1 }
 0x911   : > { %v13757_v2 = vpop.f32.mrb[161].mxu0  ;;  %v13645_v53 = vpop.f32.mrb[193].mxu1 }
 0x912   : > { %v13758_v11 = vadd.f32 %v13757_v2, %v13756_v3  ;;  %v13759_v47 = vpop.f32.mrb[162].mxu0  ;;  %v18601_v50 = vadd.f32 %v13645_v53, %v13644_v61  ;;  %v13647_v37 = vpop.f32.mrb[194].mxu1 }
 0x913   : > { %v13760_v16 = vpop.f32.mrb[163].mxu0  ;;  %v13648_v49 = vpop.f32.mrb[195].mxu1 }
 0x914   : > { %v13761_v48 = vadd.f32 %v13760_v16, %v13759_v47  ;;  %14864 = vmatprep.mubr.msk.f32.mxu1 %vm7945_vm4, %v13758_v11  ;;  %v18604_v62 = vadd.f32 %v13648_v49, %v13647_v37  ;;  %v16157_v37 = vld [vmem:[#allocation7 + $0x300] ss:$8 sps:$4 sm:$0xff]  }
 0x915   : > { %8902 = vmatmul.mubr.bf16.gmra.mrb[12].mxu0 %v16142_v7 }
 0x916   : > { %8909 = vmatprep.mubr.bf16.mxu0 %v16147_v31  ;;  %14865 = vmatmul.mubr.msk.f32.vlgmr.msra.gmra.mrb[0].mxu1 %vm7945_vm4, %v13761_v48  ;;  %v16162_v48 = vld [vmem:[#allocation7 + $0x314] ss:$8 sps:$4 sm:$0xff]  }
 0x917   : > { %15155 = vmatpush3.bf16.msra.mxu1 %v15152_v63 }
 0x918   : > { %v13762_v56 = vpop.f32.mrb[164].mxu0  ;;  %v13650_v21 = vpop.f32.mrb[196].mxu1 }
 0x919   : > { %v13763_v25 = vpop.f32.mrb[165].mxu0  ;;  %v13651_v27 = vpop.f32.mrb[197].mxu1 }
 0x91a   : > { %v13764_v55 = vadd.f32 %v13763_v25, %v13762_v56  ;;  %v13765_v13 = vpop.f32.mrb[166].mxu0  ;;  %v18607_v38 = vadd.f32 %v13651_v27, %v13650_v21  ;;  %v13653_v45 = vpop.f32.mrb[198].mxu1 }
 0x91b   : > { %v13766_v41 = vpop.f32.mrb[167].mxu0  ;;  %v13654_v23 = vpop.f32.mrb[199].mxu1 }
 0x91c   : > { %v13767_v36 = vadd.f32 %v13766_v41, %v13765_v13  ;;  %14867 = vmatprep.mubr.msk.f32.mxu1 %vm7945_vm4, %v13764_v55  ;;  %v18610_v14 = vadd.f32 %v13654_v23, %v13653_v45  ;;  %v16160_v23 = vld [vmem:[#allocation7 + $0x310] ss:$8 sps:$4 sm:$0xff]  }
 0x91d   : > { %8910 = vmatmul.mubr.bf16.gmra.mrb[16].mxu0 %v16145_v12 }
 0x91e   : > { %8917 = vmatprep.mubr.bf16.mxu0 %v16150_v15  ;;  %14868 = vmatmul.mubr.msk.f32.gmra.mrb[2].mxu1 %vm7945_vm4, %v13767_v36 }
 0x920   : > { %v13768_v19 = vpop.f32.mrb[168].mxu0  ;;  %v13656_v24 = vpop.f32.mrb[200].mxu1 }
 0x921   : > { %v13769_v9 = vpop.f32.mrb[169].mxu0  ;;  %v13657_v1 = vpop.f32.mrb[201].mxu1 }
 0x922   : > { %v13770_v26 = vadd.f32 %v13769_v9, %v13768_v19  ;;  %v13771_v52 = vpop.f32.mrb[170].mxu0  ;;  %v18613_v5 = vadd.f32 %v13657_v1, %v13656_v24  ;;  %v13659_v35 = vpop.f32.mrb[202].mxu1  ;;  %v16165_v24 = vld [vmem:[#allocation7 + $0x324] ss:$8 sps:$4 sm:$0xff]  }
 0x923   : > { %v13772_v32 = vpop.f32.mrb[171].mxu0  ;;  %v13660_v10 = vpop.f32.mrb[203].mxu1 }
 0x924   : > { %v13773_v34 = vadd.f32 %v13772_v32, %v13771_v52  ;;  %14870 = vmatprep.mubr.msk.f32.mxu1 %vm7945_vm4, %v13770_v26  ;;  %v18616_v59 = vadd.f32 %v13660_v10, %v13659_v35 }
 0x925   : > { %8918 = vmatmul.mubr.bf16.gmra.mrb[20].mxu0 %v16148_v17 }
 0x926   : > { %8925 = vmatprep.mubr.bf16.mxu0 %v16153_v18  ;;  %14871 = vmatmul.mubr.msk.f32.gmra.mrb[4].mxu1 %vm7945_vm4, %v13773_v34 }
 0x928   : > { %v13774_v46 = vpop.f32.mrb[172].mxu0  ;;  %v13662_v42 = vpop.f32.mrb[204].mxu1 }
 0x929   : > { %v13775_v4 = vpop.f32.mrb[173].mxu0  ;;  %v13663_v39 = vpop.f32.mrb[205].mxu1 }
 0x92a   : > { %v13776_v44 = vadd.f32 %v13775_v4, %v13774_v46  ;;  %v13777_v51 = vpop.f32.mrb[174].mxu0  ;;  %v18619_v29 = vadd.f32 %v13663_v39, %v13662_v42  ;;  %v13665_v60 = vpop.f32.mrb[206].mxu1  ;;  %v16163_v46 = vld [vmem:[#allocation7 + $0x320] ss:$8 sps:$4 sm:$0xff]   ;;  %v16168_v4 = vld [vmem:[#allocation7 + $0x334] ss:$8 sps:$4 sm:$0xff]  }
 0x92b   : > { %v13778_v22 = vpop.f32.mrb[175].mxu0  ;;  %v13666_v28 = vpop.f32.mrb[207].mxu1 }
 0x92c   : > { %v13779_v43 = vadd.f32 %v13778_v22, %v13777_v51  ;;  %14873 = vmatprep.mubr.msk.f32.mxu1 %vm7945_vm4, %v13776_v44  ;;  %v18622_v30 = vadd.f32 %v13666_v28, %v13665_v60 }
 0x92d   : > { %8926 = vmatmul.mubr.bf16.gmra.mrb[24].mxu0 %v16151_v0 }
 0x92e   : > { %8933 = vmatprep.mubr.bf16.mxu0 %v16156_v40  ;;  %14874 = vmatmul.mubr.msk.f32.gmra.mrb[6].mxu1 %vm7945_vm4, %v13779_v43 }
 0x930   : > { %v13780_v6 = vpop.f32.mrb[176].mxu0  ;;  %v13668_v20 = vpop.f32.mrb[208].mxu1 }
 0x931   : > { %v13781_v57 = vpop.f32.mrb[177].mxu0  ;;  %v13669_v54 = vpop.f32.mrb[209].mxu1 }
 0x932   : > { %v13782_v8 = vadd.f32 %v13781_v57, %v13780_v6  ;;  %v13783_v63 = vpop.f32.mrb[178].mxu0  ;;  %v18625_v3 = vadd.f32 %v13669_v54, %v13668_v20  ;;  %v13671_v61 = vpop.f32.mrb[210].mxu1  ;;  %v8943_v6 = vld [vmem:[#allocation8 + $0x20] sm:$0xff]  ;;  %v8944_v20 = vld [vmem:[#allocation8 + $0x28] sm:$0xff] }
 0x933   : > { %v13784_v7 = vpop.f32.mrb[179].mxu0  ;;  %v13672_v2 = vpop.f32.mrb[211].mxu1 }
 0x934   : > { %v13785_v53 = vadd.f32 %v13784_v7, %v13783_v63  ;;  %14876 = vmatprep.mubr.msk.f32.mxu1 %vm7945_vm4, %v13782_v8  ;;  %v18628_v31 = vadd.f32 %v13672_v2, %v13671_v61  ;;  %v16171_v61 = vld [vmem:[#allocation7 + $0x344] ss:$8 sps:$4 sm:$0xff]  }
 0x935   : > { %8934 = vmatmul.mubr.bf16.gmra.mrb[28].mxu0 %v16154_v58  ;;  %v18648_v58 = vpack.c.bf16 %v8944_v20, %v8943_v6 }
 0x936   : > { %9523 = vmatprep.mubr.bf16.mxu0 %v16159_v33  ;;  %14877 = vmatmul.mubr.msk.f32.gmra.mrb[8].mxu1 %vm7945_vm4, %v13785_v53  ;;  %v16166_v33 = vld [vmem:[#allocation7 + $0x330] ss:$8 sps:$4 sm:$0xff]  }
 0x937   : > { %15157 = vmatprep.subr.bf16.mxu1 %v18648_v58 }
 0x938   : > { %v13786_v11 = vpop.f32.mrb[180].mxu0  ;;  %v13674_v47 = vpop.f32.mrb[212].mxu1 }
 0x939   : > { %v13787_v16 = vpop.f32.mrb[181].mxu0  ;;  %v13675_v49 = vpop.f32.mrb[213].mxu1 }
 0x93a   : > { %v13788_v56 = vadd.f32 %v13787_v16, %v13786_v11  ;;  %v13789_v21 = vpop.f32.mrb[182].mxu0  ;;  %v18631_v12 = vadd.f32 %v13675_v49, %v13674_v47  ;;  %v13677_v25 = vpop.f32.mrb[214].mxu1 }
 0x93b   : > { %v13790_v27 = vpop.f32.mrb[183].mxu0  ;;  %v13678_v15 = vpop.f32.mrb[215].mxu1 }
 0x93c   : > { %v13791_v55 = vadd.f32 %v13790_v27, %v13789_v21  ;;  %14879 = vmatprep.mubr.msk.f32.mxu1 %vm7945_vm4, %v13788_v56  ;;  %v18634_v13 = vadd.f32 %v13678_v15, %v13677_v25  ;;  %v16169_v21 = vld [vmem:[#allocation7 + $0x340] ss:$8 sps:$4 sm:$0xff]   ;;  %v16174_v15 = vld [vmem:[#allocation7 + $0x354] ss:$8 sps:$4 sm:$0xff]  }
 0x93d   : > { %9524 = vmatmul.mubr.bf16.vlgmr.msra.gmra.mrb[32].mxu0 %v16157_v37 }
 0x93e   : > { %9531 = vmatprep.mubr.bf16.mxu0 %v16162_v48  ;;  %14880 = vmatmul.mubr.msk.f32.gmra.mrb[10].mxu1 %vm7945_vm4, %v13791_v55 }
 0x940   : > { %v13792_v45 = vpop.f32.mrb[184].mxu0  ;;  %v13680_v41 = vpop.f32.mrb[216].mxu1 }
 0x941   : > { %v13793_v36 = vpop.f32.mrb[185].mxu0  ;;  %v13681_v19 = vpop.f32.mrb[217].mxu1 }
 0x942   : > { %v13794_v17 = vadd.f32 %v13793_v36, %v13792_v45  ;;  %v13795_v9 = vpop.f32.mrb[186].mxu0  ;;  %v18637_v1 = vadd.f32 %v13681_v19, %v13680_v41  ;;  %v13683_v18 = vpop.f32.mrb[218].mxu1 }
 0x943   : > { %v13796_v26 = vpop.f32.mrb[187].mxu0  ;;  %v13684_v52 = vpop.f32.mrb[219].mxu1 }
 0x944   : > { %v13797_v35 = vadd.f32 %v13796_v26, %v13795_v9  ;;  %14882 = vmatprep.mubr.msk.f32.mxu1 %vm7945_vm4, %v13794_v17  ;;  %v18640_v32 = vadd.f32 %v13684_v52, %v13683_v18  ;;  %v16172_v26 = vld [vmem:[#allocation7 + $0x350] ss:$8 sps:$4 sm:$0xff]  }
 0x945   : > { %9532 = vmatmul.mubr.bf16.gmra.mrb[36].mxu0 %v16160_v23 }
 0x946   : > { %9539 = vmatprep.mubr.bf16.mxu0 %v16165_v24  ;;  %14883 = vmatmul.mubr.msk.f32.gmra.mrb[12].mxu1 %vm7945_vm4, %v13797_v35 }
 0x948   : > { %v13798_v10 = vpop.f32.mrb[188].mxu0  ;;  %v13686_v34 = vpop.f32.mrb[220].mxu1 }
 0x949   : > { %v13799_v42 = vpop.f32.mrb[189].mxu0  ;;  %v13687_v0 = vpop.f32.mrb[221].mxu1 }
 0x94a   : > { %v13800_v39 = vadd.f32 %v13799_v42, %v13798_v10  ;;  %v13801_v40 = vpop.f32.mrb[190].mxu0  ;;  %v18643_v44 = vadd.f32 %v13687_v0, %v13686_v34  ;;  %v13689_v51 = vpop.f32.mrb[222].mxu1  ;;  %v16177_v10 = vld [vmem:[#allocation7 + $0x364] ss:$8 sps:$4 sm:$0xff]  }
 0x94b   : > { %v13802_v60 = vpop.f32.mrb[191].mxu0  ;;  %v13690_v22 = vpop.f32.mrb[223].mxu1 }
 0x94c   : > { %v13803_v28 = vadd.f32 %v13802_v60, %v13801_v40  ;;  %14885 = vmatprep.mubr.msk.f32.mxu1 %vm7945_vm4, %v13800_v39  ;;  %v18646_v43 = vadd.f32 %v13690_v22, %v13689_v51 }
 0x94d   : > { %9540 = vmatmul.mubr.bf16.gmra.mrb[40].mxu0 %v16163_v46 }
 0x94e   : > { %9547 = vmatprep.mubr.bf16.mxu0 %v16168_v4  ;;  %14886 = vmatmul.mubr.msk.f32.gmra.mrb[14].mxu1 %vm7945_vm4, %v13803_v28  ;;  %v16175_v28 = vld [vmem:[#allocation7 + $0x360] ss:$8 sps:$4 sm:$0xff]  }
 0x950   : > { %v13804_v57 = vpop.f32.mrb[192].mxu0  ;;  %v13692_v54 = vpop.f32.mrb[224].mxu1 }
 0x951   : > { %v13805_v8 = vpop.f32.mrb[193].mxu0  ;;  %v13693_v63 = vpop.f32.mrb[225].mxu1 }
 0x952   : > { %v13806_v7 = vadd.f32 %v13805_v8, %v13804_v57  ;;  %v13807_v2 = vpop.f32.mrb[194].mxu0  ;;  %v18652_v53 = vadd.f32 %v13693_v63, %v13692_v54  ;;  %v13695_v11 = vpop.f32.mrb[226].mxu1  ;;  %v16180_v57 = vld [vmem:[#allocation7 + $0x374] ss:$8 sps:$4 sm:$0xff]  }
 0x953   : > { %v13808_v47 = vpop.f32.mrb[195].mxu0  ;;  %v13696_v37 = vpop.f32.mrb[227].mxu1 }
 0x954   : > { %v13809_v16 = vadd.f32 %v13808_v47, %v13807_v2  ;;  %14888 = vmatprep.mubr.msk.f32.mxu1 %vm7945_vm4, %v13806_v7  ;;  %v18655_v49 = vadd.f32 %v13696_v37, %v13695_v11 }
 0x955   : > { %9548 = vmatmul.mubr.bf16.gmra.mrb[44].mxu0 %v16166_v33 }
 0x956   : > { %9555 = vmatprep.mubr.bf16.mxu0 %v16171_v61  ;;  %14889 = vmatmul.mubr.msk.f32.gmra.mrb[16].mxu1 %vm7945_vm4, %v13809_v16  ;;  %v16178_v16 = vld [vmem:[#allocation7 + $0x370] ss:$8 sps:$4 sm:$0xff]  }
 0x958   : > { %v13810_v48 = vpop.f32.mrb[196].mxu0  ;;  %v13698_v56 = vpop.f32.mrb[228].mxu1 }
 0x959   : > { %v13811_v25 = vpop.f32.mrb[197].mxu0  ;;  %v13699_v27 = vpop.f32.mrb[229].mxu1 }
 0x95a   : > { %v13812_v55 = vadd.f32 %v13811_v25, %v13810_v48  ;;  %v13813_v45 = vpop.f32.mrb[198].mxu0  ;;  %v18658_v41 = vadd.f32 %v13699_v27, %v13698_v56  ;;  %v13701_v23 = vpop.f32.mrb[230].mxu1 }
 0x95b   : > { %v13814_v36 = vpop.f32.mrb[199].mxu0  ;;  %v13702_v19 = vpop.f32.mrb[231].mxu1 }
 0x95c   : > { %v13815_v24 = vadd.f32 %v13814_v36, %v13813_v45  ;;  %14891 = vmatprep.mubr.msk.f32.mxu1 %vm7945_vm4, %v13812_v55  ;;  %v18661_v17 = vadd.f32 %v13702_v19, %v13701_v23 }
 0x95d   : > { %9556 = vmatmul.mubr.bf16.gmra.mrb[48].mxu0 %v16169_v21  ;;  %v16183_v21 = vld [vmem:[#allocation7 + $0x384] ss:$8 sps:$4 sm:$0xff]  }
 0x95e   : > { %9563 = vmatprep.mubr.bf16.mxu0 %v16174_v15  ;;  %14892 = vmatmul.mubr.msk.f32.gmra.mrb[18].mxu1 %vm7945_vm4, %v13815_v24 }
 0x960   : > { %v13816_v9 = vpop.f32.mrb[200].mxu0  ;;  %v13704_v18 = vpop.f32.mrb[232].mxu1 }
 0x961   : > { %v13817_v52 = vpop.f32.mrb[201].mxu0  ;;  %v13705_v35 = vpop.f32.mrb[233].mxu1 }
 0x962   : > { %v13818_v34 = vadd.f32 %v13817_v52, %v13816_v9  ;;  %v13819_v46 = vpop.f32.mrb[202].mxu0  ;;  %v18664_v42 = vadd.f32 %v13705_v35, %v13704_v18  ;;  %v13707_v0 = vpop.f32.mrb[234].mxu1  ;;  %v16181_v18 = vld [vmem:[#allocation7 + $0x380] ss:$8 sps:$4 sm:$0xff]  }
 0x963   : > { %v13820_v4 = vpop.f32.mrb[203].mxu0  ;;  %v13708_v39 = vpop.f32.mrb[235].mxu1 }
 0x964   : > { %v13821_v40 = vadd.f32 %v13820_v4, %v13819_v46  ;;  %14894 = vmatprep.mubr.msk.f32.mxu1 %vm7945_vm4, %v13818_v34  ;;  %v18667_v51 = vadd.f32 %v13708_v39, %v13707_v0  ;;  %v16186_v34 = vld [vmem:[#allocation7 + $0x394] ss:$8 sps:$4 sm:$0xff]  }
 0x965   : > { %9564 = vmatmul.mubr.bf16.gmra.mrb[52].mxu0 %v16172_v26 }
 0x966   : > { %9571 = vmatprep.mubr.bf16.mxu0 %v16177_v10  ;;  %14895 = vmatmul.mubr.msk.f32.gmra.mrb[20].mxu1 %vm7945_vm4, %v13821_v40 }
 0x968   : > { %v13822_v60 = vpop.f32.mrb[204].mxu0  ;;  %v13710_v22 = vpop.f32.mrb[236].mxu1 }
 0x969   : > { %v13823_v6 = vpop.f32.mrb[205].mxu0  ;;  %v13711_v20 = vpop.f32.mrb[237].mxu1 }
 0x96a   : > { %v13824_v54 = vadd.f32 %v13823_v6, %v13822_v60  ;;  %v13825_v33 = vpop.f32.mrb[206].mxu0  ;;  %v18670_v8 = vadd.f32 %v13711_v20, %v13710_v22  ;;  %v13713_v63 = vpop.f32.mrb[238].mxu1  ;;  %v16184_v6 = vld [vmem:[#allocation7 + $0x390] ss:$8 sps:$4 sm:$0xff]  }
 0x96b   : > { %v13826_v61 = vpop.f32.mrb[207].mxu0  ;;  %v13714_v7 = vpop.f32.mrb[239].mxu1 }
 0x96c   : > { %v13827_v2 = vadd.f32 %v13826_v61, %v13825_v33  ;;  %14897 = vmatprep.mubr.msk.f32.mxu1 %vm7945_vm4, %v13824_v54  ;;  %v18673_v11 = vadd.f32 %v13714_v7, %v13713_v63  ;;  %v16189_v63 = vld [vmem:[#allocation7 + $0x3a4] ss:$8 sps:$4 sm:$0xff]  }
 0x96d   : > { %9572 = vmatmul.mubr.bf16.gmra.mrb[56].mxu0 %v16175_v28 }
 0x96e   : > { %9579 = vmatprep.mubr.bf16.mxu0 %v16180_v57  ;;  %14898 = vmatmul.mubr.msk.f32.gmra.mrb[22].mxu1 %vm7945_vm4, %v13827_v2 }
 0x970   : > { %v13828_v47 = vpop.f32.mrb[208].mxu0  ;;  %v13716_v37 = vpop.f32.mrb[240].mxu1 }
 0x971   : > { %v13829_v48 = vpop.f32.mrb[209].mxu0  ;;  %v13717_v56 = vpop.f32.mrb[241].mxu1 }
 0x972   : > { %v13830_v25 = vadd.f32 %v13829_v48, %v13828_v47  ;;  %v13831_v27 = vpop.f32.mrb[210].mxu0  ;;  %v18676_v15 = vadd.f32 %v13717_v56, %v13716_v37  ;;  %v13719_v55 = vpop.f32.mrb[242].mxu1 }
 0x973   : > { %v13832_v45 = vpop.f32.mrb[211].mxu0  ;;  %v13720_v23 = vpop.f32.mrb[243].mxu1 }
 0x974   : > { %v13833_v36 = vadd.f32 %v13832_v45, %v13831_v27  ;;  %14900 = vmatprep.mubr.msk.f32.mxu1 %vm7945_vm4, %v13830_v25  ;;  %v18679_v19 = vadd.f32 %v13720_v23, %v13719_v55  ;;  %v16187_v25 = vld [vmem:[#allocation7 + $0x3a0] ss:$8 sps:$4 sm:$0xff]   ;;  %v16192_v23 = vld [vmem:[#allocation7 + $0x3b4] ss:$8 sps:$4 sm:$0xff]  }
 0x975   : > { %9580 = vmatmul.mubr.bf16.gmra.mrb[60].mxu0 %v16178_v16 }
 0x976   : > { %9587 = vmatprep.mubr.bf16.mxu0 %v16183_v21  ;;  %14901 = vmatmul.mubr.msk.f32.gmra.mrb[24].mxu1 %vm7945_vm4, %v13833_v36 }
 0x978   : > { %v13834_v24 = vpop.f32.mrb[212].mxu0  ;;  %v13722_v9 = vpop.f32.mrb[244].mxu1 }
 0x979   : > { %v13835_v26 = vpop.f32.mrb[213].mxu0  ;;  %v13723_v52 = vpop.f32.mrb[245].mxu1 }
 0x97a   : > { %v13836_v35 = vadd.f32 %v13835_v26, %v13834_v24  ;;  %v13837_v10 = vpop.f32.mrb[214].mxu0  ;;  %v18682_v46 = vadd.f32 %v13723_v52, %v13722_v9  ;;  %v13725_v0 = vpop.f32.mrb[246].mxu1 }
 0x97b   : > { %v13838_v4 = vpop.f32.mrb[215].mxu0  ;;  %v13726_v39 = vpop.f32.mrb[247].mxu1 }
 0x97c   : > { %v13839_v40 = vadd.f32 %v13838_v4, %v13837_v10  ;;  %14903 = vmatprep.mubr.msk.f32.mxu1 %vm7945_vm4, %v13836_v35  ;;  %v18685_v60 = vadd.f32 %v13726_v39, %v13725_v0  ;;  %v9653_v10 = vld [vmem:[#allocation8 + $0x30] sm:$0xff] }
 0x97d   : > { %9588 = vmatmul.mubr.bf16.gmra.mrb[64].mxu0 %v16181_v18  ;;  %v16190_v0 = vld [vmem:[#allocation7 + $0x3b0] ss:$8 sps:$4 sm:$0xff]  }
 0x97e   : > { %9595 = vmatprep.mubr.bf16.mxu0 %v16186_v34  ;;  %14904 = vmatmul.mubr.msk.f32.gmra.mrb[26].mxu1 %vm7945_vm4, %v13839_v40  ;;  %v9654_v34 = vld [vmem:[#allocation8 + $0x38] sm:$0xff]  ;;  %v16195_v40 = vld [vmem:[#allocation7 + $0x3c4] ss:$8 sps:$4 sm:$0xff]  }
 0x97f   : > { %v18702_v39 = vpack.c.bf16 %v9654_v34, %v9653_v10 }
 0x980   : > { %v13840_v22 = vpop.f32.mrb[216].mxu0  ;;  %v13728_v28 = vpop.f32.mrb[248].mxu1 }
 0x981   : > { %v13841_v20 = vpop.f32.mrb[217].mxu0  ;;  %v13729_v57 = vpop.f32.mrb[249].mxu1  ;;  %15161 = vmatprep.subr.bf16.mxu0 %v18702_v39 }
 0x982   : > { %v13842_v54 = vadd.f32 %v13841_v20, %v13840_v22  ;;  %v13843_v33 = vpop.f32.mrb[218].mxu0  ;;  %v18688_v61 = vadd.f32 %v13729_v57, %v13728_v28  ;;  %v13731_v7 = vpop.f32.mrb[250].mxu1  ;;  %15163 = vmatpush3.bf16.msra.mxu0 %v18702_v39 }
 0x983   : > { %v13844_v2 = vpop.f32.mrb[219].mxu0  ;;  %v13732_v47 = vpop.f32.mrb[251].mxu1 }
 0x984   : > { %v13845_v37 = vadd.f32 %v13844_v2, %v13843_v33  ;;  %14906 = vmatprep.mubr.msk.f32.mxu1 %vm7945_vm4, %v13842_v54  ;;  %v18691_v16 = vadd.f32 %v13732_v47, %v13731_v7  ;;  %v16201_v7 = vld [vmem:[#allocation7 + $0x3e4] ss:$8 sps:$4 sm:$0xff]  }
 0x985   : > { %9596 = vmatmul.mubr.bf16.gmra.mrb[68].mxu0 %v16184_v6 }
 0x986   : > { %14907 = vmatmul.mubr.msk.f32.gmra.mrb[28].mxu1 %vm7945_vm4, %v13845_v37  ;;  %9603 = vmatprep.mubr.bf16.mxu0 %v16189_v63 }
 0x988   : > { %v13846_v48 = vpop.f32.mrb[220].mxu0  ;;  %v13734_v56 = vpop.f32.mrb[252].mxu1 }
 0x989   : > { %v13847_v21 = vpop.f32.mrb[221].mxu0  ;;  %v13735_v27 = vpop.f32.mrb[253].mxu1 }
 0x98a   : > { %v13848_v55 = vadd.f32 %v13847_v21, %v13846_v48  ;;  %v13849_v45 = vpop.f32.mrb[222].mxu0  ;;  %v18694_v36 = vadd.f32 %v13735_v27, %v13734_v56  ;;  %v13737_v24 = vpop.f32.mrb[254].mxu1  ;;  %v16204_v48 = vld [vmem:[#allocation7 + $0x3f4] ss:$8 sps:$4 sm:$0xff]  }
 0x98b   : > { %v13850_v9 = vpop.f32.mrb[223].mxu0  ;;  %v13738_v18 = vpop.f32.mrb[255].mxu1 }
 0x98c   : > { %v13851_v26 = vadd.f32 %v13850_v9, %v13849_v45  ;;  %14909 = vmatprep.mubr.msk.f32.mxu1 %vm7945_vm4, %v13848_v55  ;;  %v18697_v52 = vadd.f32 %v13738_v18, %v13737_v24 }
 0x98d   : > { %9604 = vmatmul.mubr.bf16.gmra.mrb[72].mxu0 %v16187_v25 }
 0x98e   : > { %14910 = vmatmul.mubr.msk.f32.gmra.mrb[30].mxu1 %vm7945_vm4, %v13851_v26  ;;  %9611 = vmatprep.mubr.bf16.mxu0 %v16192_v23 }
 0x98f   : > { %14916 = vmatprep.mubr.msk.f32.mxu1 %vm7945_vm4, %v18601_v50 }
 0x990   : > { %v13936_v35 = vpop.f32.mrb[224].mxu0 }
 0x991   : > { %v13937_v4 = vpop.f32.mrb[225].mxu0 }
 0x992   : > { %14917 = vmatmul.mubr.msk.f32.vlgmr.msra.gmra.mrb[0].mxu1 %vm7945_vm4, %v18604_v62  ;;  %v18706_v22 = vadd.f32 %v13937_v4, %v13936_v35  ;;  %v13939_v28 = vpop.f32.mrb[226].mxu0 }
 0x993   : > { %14919 = vmatprep.mubr.msk.f32.mxu1 %vm7945_vm4, %v18607_v38  ;;  %v13940_v6 = vpop.f32.mrb[227].mxu0  ;;  %15159 = vmatpush3.bf16.msra.mxu1 %v18648_v58  ;;  %v16193_v38 = vld [vmem:[#allocation7 + $0x3c0] ss:$8 sps:$4 sm:$0xff]   ;;  %v16198_v58 = vld [vmem:[#allocation7 + $0x3d4] ss:$8 sps:$4 sm:$0xff]  }
 0x994   : > { %v18711_v50 = vadd.f32 %v13940_v6, %v13939_v28  ;;  %15196 = vmatprep.subr.bf16.mxu1 %v18702_v39 }
 0x995   : > { %9612 = vmatmul.mubr.bf16.gmra.mrb[76].mxu0 %v16190_v0 }
 0x996   : > { %14920 = vmatmul.mubr.msk.f32.gmra.mrb[2].mxu1 %vm7945_vm4, %v18610_v14  ;;  %9619 = vmatprep.mubr.bf16.mxu0 %v16195_v40 }
 0x997   : > { %14922 = vmatprep.mubr.msk.f32.mxu1 %vm7945_vm4, %v18613_v5 }
 0x998   : > { %v13942_v62 = vpop.f32.mrb[228].mxu0 }
 0x999   : > { %v13943_v20 = vpop.f32.mrb[229].mxu0 }
 0x99a   : > { %14923 = vmatmul.mubr.msk.f32.gmra.mrb[4].mxu1 %vm7945_vm4, %v18616_v59  ;;  %v18722_v57 = vadd.f32 %v13943_v20, %v13942_v62  ;;  %v13945_v54 = vpop.f32.mrb[230].mxu0  ;;  %v16196_v59 = vld [vmem:[#allocation7 + $0x3d0] ss:$8 sps:$4 sm:$0xff]  }
 0x99b   : > { %14925 = vmatprep.mubr.msk.f32.mxu1 %vm7945_vm4, %v18619_v29  ;;  %v13946_v14 = vpop.f32.mrb[231].mxu0 }
 0x99c   : > { %v18726_v33 = vadd.f32 %v13946_v14, %v13945_v54 }
 0x99d   : > { %9620 = vmatmul.mubr.bf16.gmra.mrb[80].mxu0 %v16193_v38 }
 0x99e   : > { %14926 = vmatmul.mubr.msk.f32.gmra.mrb[6].mxu1 %vm7945_vm4, %v18622_v30  ;;  %9627 = vmatprep.mubr.bf16.mxu0 %v16198_v58 }
 0x99f   : > { %14928 = vmatprep.mubr.msk.f32.mxu1 %vm7945_vm4, %v18625_v3  ;;  %v16199_v3 = vld [vmem:[#allocation7 + $0x3e0] ss:$8 sps:$4 sm:$0xff]  }
 0x9a0   : > { %v13948_v5 = vpop.f32.mrb[232].mxu0 }
 0x9a1   : > { %v13949_v63 = vpop.f32.mrb[233].mxu0 }
 0x9a2   : > { %14929 = vmatmul.mubr.msk.f32.gmra.mrb[8].mxu1 %vm7945_vm4, %v18628_v31  ;;  %v18734_v2 = vadd.f32 %v13949_v63, %v13948_v5  ;;  %v13951_v29 = vpop.f32.mrb[234].mxu0 }
 0x9a3   : > { %14931 = vmatprep.mubr.msk.f32.mxu1 %vm7945_vm4, %v18631_v12  ;;  %v13952_v47 = vpop.f32.mrb[235].mxu0 }
 0x9a4   : > { %v18738_v37 = vadd.f32 %v13952_v47, %v13951_v29 }
 0x9a5   : > { %9628 = vmatmul.mubr.bf16.gmra.mrb[84].mxu0 %v16196_v59 }
 0x9a6   : > { %14932 = vmatmul.mubr.msk.f32.gmra.mrb[10].mxu1 %vm7945_vm4, %v18634_v13  ;;  %9635 = vmatprep.mubr.bf16.mxu0 %v16201_v7 }
 0x9a7   : > { %14934 = vmatprep.mubr.msk.f32.mxu1 %vm7945_vm4, %v18637_v1  ;;  %v16202_v1 = vld [vmem:[#allocation7 + $0x3f0] ss:$8 sps:$4 sm:$0xff]  }
 0x9a8   : > { %v13954_v30 = vpop.f32.mrb[236].mxu0 }
 0x9a9   : > { %v13955_v31 = vpop.f32.mrb[237].mxu0 }
 0x9aa   : > { %14935 = vmatmul.mubr.msk.f32.gmra.mrb[12].mxu1 %vm7945_vm4, %v18640_v32  ;;  %v18746_v56 = vadd.f32 %v13955_v31, %v13954_v30  ;;  %v13957_v12 = vpop.f32.mrb[238].mxu0 }
 0x9ab   : > { %14937 = vmatprep.mubr.msk.f32.mxu1 %vm7945_vm4, %v18643_v44  ;;  %v13958_v21 = vpop.f32.mrb[239].mxu0 }
 0x9ac   : > { %v18750_v25 = vadd.f32 %v13958_v21, %v13957_v12 }
 0x9ad   : > { %9636 = vmatmul.mubr.bf16.gmra.mrb[88].mxu0 %v16199_v3 }
 0x9ae   : > { %14938 = vmatmul.mubr.msk.f32.gmra.mrb[14].mxu1 %vm7945_vm4, %v18646_v43  ;;  %9643 = vmatprep.mubr.bf16.mxu0 %v16204_v48 }
 0x9af   : > { %14940 = vmatprep.mubr.msk.f32.mxu1 %vm7945_vm4, %v18652_v53 }
 0x9b0   : > { %v13960_v13 = vpop.f32.mrb[240].mxu0 }
 0x9b1   : > { %v13961_v32 = vpop.f32.mrb[241].mxu0 }
 0x9b2   : > { %14941 = vmatmul.mubr.msk.f32.gmra.mrb[16].mxu1 %vm7945_vm4, %v18655_v49  ;;  %v13962_v27 = vadd.f32 %v13961_v32, %v13960_v13  ;;  %v13963_v55 = vpop.f32.mrb[242].mxu0 }
 0x9b3   : > { %14943 = vmatprep.mubr.msk.f32.mxu1 %vm7945_vm4, %v18658_v41  ;;  %v13964_v44 = vpop.f32.mrb[243].mxu0 }
 0x9b4   : > { %v13965_v45 = vadd.f32 %v13964_v44, %v13963_v55 }
 0x9b5   : > { %9644 = vmatmul.mubr.bf16.gmra.mrb[92].mxu0 %v16202_v1 }
 0x9b6   : > { %14944 = vmatmul.mubr.msk.f32.gmra.mrb[18].mxu1 %vm7945_vm4, %v18661_v17 }
 0x9b7   : > { %14946 = vmatprep.mubr.msk.f32.mxu1 %vm7945_vm4, %v18664_v42 }
 0x9b8   : > { %v13966_v43 = vpop.f32.mrb[244].mxu0 }
 0x9b9   : > { %v13967_v53 = vpop.f32.mrb[245].mxu0 }
 0x9ba   : > { %14947 = vmatmul.mubr.msk.f32.gmra.mrb[20].mxu1 %vm7945_vm4, %v18667_v51  ;;  %v13968_v49 = vadd.f32 %v13967_v53, %v13966_v43  ;;  %v13969_v23 = vpop.f32.mrb[246].mxu0 }
 0x9bb   : > { %14949 = vmatprep.mubr.msk.f32.mxu1 %vm7945_vm4, %v18670_v8  ;;  %v13970_v41 = vpop.f32.mrb[247].mxu0 }
 0x9bc   : > { %v13971_v24 = vadd.f32 %v13970_v41, %v13969_v23 }
 0x9be   : > { %14950 = vmatmul.mubr.msk.f32.gmra.mrb[22].mxu1 %vm7945_vm4, %v18673_v11 }
 0x9bf   : > { %14952 = vmatprep.mubr.msk.f32.mxu1 %vm7945_vm4, %v18676_v15 }
 0x9c0   : > { %v13972_v17 = vpop.f32.mrb[248].mxu0 }
 0x9c1   : > { %v13973_v42 = vpop.f32.mrb[249].mxu0 }
 0x9c2   : > { %14953 = vmatmul.mubr.msk.f32.gmra.mrb[24].mxu1 %vm7945_vm4, %v18679_v19  ;;  %v13974_v9 = vadd.f32 %v13973_v42, %v13972_v17  ;;  %v13975_v51 = vpop.f32.mrb[250].mxu0 }
 0x9c3   : > { %14955 = vmatprep.mubr.msk.f32.mxu1 %vm7945_vm4, %v18682_v46  ;;  %v13976_v18 = vpop.f32.mrb[251].mxu0 }
 0x9c4   : > { %v13977_v8 = vadd.f32 %v13976_v18, %v13975_v51 }
 0x9c6   : > { %14956 = vmatmul.mubr.msk.f32.gmra.mrb[26].mxu1 %vm7945_vm4, %v18685_v60 }
 0x9c7   : > { %14958 = vmatprep.mubr.msk.f32.mxu1 %vm7945_vm4, %v18688_v61 }
 0x9c8   : > { %v13978_v11 = vpop.f32.mrb[252].mxu0 }
 0x9c9   : > { %v13979_v15 = vpop.f32.mrb[253].mxu0 }
 0x9ca   : > { %14959 = vmatmul.mubr.msk.f32.gmra.mrb[28].mxu1 %vm7945_vm4, %v18691_v16  ;;  %v13980_v26 = vadd.f32 %v13979_v15, %v13978_v11  ;;  %v13981_v19 = vpop.f32.mrb[254].mxu0 }
 0x9cb   : > { %14961 = vmatprep.mubr.msk.f32.mxu1 %vm7945_vm4, %v18694_v36  ;;  %v13982_v35 = vpop.f32.mrb[255].mxu0 }
 0x9cc   : > { %v13983_v46 = vadd.f32 %v13982_v35, %v13981_v19 }
 0x9ce   : > { %14962 = vmatmul.mubr.msk.f32.gmra.mrb[30].mxu1 %vm7945_vm4, %v18697_v52 }
 0x9cf   : > { %14968 = vmatprep.mubr.msk.f32.mxu1 %vm7945_vm4, %v18706_v22 }
 0x9d0   : > { %v13984_v60 = vpop.f32.mrb[0].mxu0 }
 0x9d1   : > { %v13985_v61 = vpop.f32.mrb[1].mxu0 }
 0x9d2   : > { %14969 = vmatmul.mubr.msk.f32.vlgmr.msra.gmra.mrb[0].mxu1 %vm7945_vm4, %v18711_v50  ;;  %v13986_v10 = vadd.f32 %v13985_v61, %v13984_v60  ;;  %v13987_v16 = vpop.f32.mrb[2].mxu0 }
 0x9d3   : > { %14971 = vmatprep.mubr.msk.f32.mxu1 %vm7945_vm4, %v18722_v57  ;;  %v13988_v34 = vpop.f32.mrb[3].mxu0  ;;  %15197 = vmatpush3.bf16.msra.mxu1 %v18702_v39 }
 0x9d4   : > { %v13989_v36 = vadd.f32 %v13988_v34, %v13987_v16 }
 0x9d6   : > { %14972 = vmatmul.mubr.msk.f32.gmra.mrb[2].mxu1 %vm7945_vm4, %v18726_v33 }
 0x9d7   : > { %14974 = vmatprep.mubr.msk.f32.mxu1 %vm7945_vm4, %v18734_v2 }
 0x9d8   : > { %v13990_v52 = vpop.f32.mrb[4].mxu0 }
 0x9d9   : > { %v13991_v0 = vpop.f32.mrb[5].mxu0 }
 0x9da   : > { %14975 = vmatmul.mubr.msk.f32.gmra.mrb[4].mxu1 %vm7945_vm4, %v18738_v37  ;;  %v13992_v4 = vadd.f32 %v13991_v0, %v13990_v52  ;;  %v13993_v40 = vpop.f32.mrb[6].mxu0 }
 0x9db   : > { %14977 = vmatprep.mubr.msk.f32.mxu1 %vm7945_vm4, %v18746_v56  ;;  %v13994_v22 = vpop.f32.mrb[7].mxu0 }
 0x9dc   : > { %v13995_v28 = vadd.f32 %v13994_v22, %v13993_v40 }
 0x9de   : > { %14978 = vmatmul.mubr.msk.f32.gmra.mrb[6].mxu1 %vm7945_vm4, %v18750_v25 }
 0x9df   : > { %14980 = vmatprep.mubr.msk.f32.mxu1 %vm7945_vm4, %v13962_v27 }
 0x9e0   : > { %v13996_v39 = vpop.f32.mrb[8].mxu0 }
 0x9e1   : > { %v13997_v6 = vpop.f32.mrb[9].mxu0 }
 0x9e2   : > { %14981 = vmatmul.mubr.msk.f32.gmra.mrb[8].mxu1 %vm7945_vm4, %v13965_v45  ;;  %v13998_v50 = vadd.f32 %v13997_v6, %v13996_v39  ;;  %v13999_v62 = vpop.f32.mrb[10].mxu0 }
 0x9e3   : > { %14983 = vmatprep.mubr.msk.f32.mxu1 %vm7945_vm4, %v13968_v49  ;;  %v14000_v38 = vpop.f32.mrb[11].mxu0 }
 0x9e4   : > { %v14001_v20 = vadd.f32 %v14000_v38, %v13999_v62 }
 0x9e6   : > { %14984 = vmatmul.mubr.msk.f32.gmra.mrb[10].mxu1 %vm7945_vm4, %v13971_v24 }
 0x9e7   : > { %14986 = vmatprep.mubr.msk.f32.mxu1 %vm7945_vm4, %v13974_v9 }
 0x9e8   : > { %v14002_v58 = vpop.f32.mrb[12].mxu0 }
 0x9e9   : > { %v14003_v57 = vpop.f32.mrb[13].mxu0 }
 0x9ea   : > { %v14004_v54 = vadd.f32 %v14003_v57, %v14002_v58  ;;  %v14005_v14 = vpop.f32.mrb[14].mxu0  ;;  %14987 = vmatmul.mubr.msk.f32.gmra.mrb[12].mxu1 %vm7945_vm4, %v13977_v8 }
 0x9eb   : > { %v14006_v33 = vpop.f32.mrb[15].mxu0  ;;  %14989 = vmatprep.mubr.msk.f32.mxu1 %vm7945_vm4, %v13980_v26 }
 0x9ec   : > { %v14007_v5 = vadd.f32 %v14006_v33, %v14005_v14 }
 0x9ee   : > { %14990 = vmatmul.mubr.msk.f32.gmra.mrb[14].mxu1 %vm7945_vm4, %v13983_v46 }
 0x9ef   : > { %14992 = vmatprep.mubr.msk.f32.mxu1 %vm7945_vm4, %v13986_v10 }
 0x9f0   : > { %v14008_v59 = vpop.f32.mrb[16].mxu0 }
 0x9f1   : > { %v14009_v63 = vpop.f32.mrb[17].mxu0 }
 0x9f2   : > { %v14010_v7 = vadd.f32 %v14009_v63, %v14008_v59  ;;  %v14011_v2 = vpop.f32.mrb[18].mxu0  ;;  %14993 = vmatmul.mubr.msk.f32.gmra.mrb[16].mxu1 %vm7945_vm4, %v13989_v36 }
 0x9f3   : > { %v14012_v29 = vpop.f32.mrb[19].mxu0  ;;  %14995 = vmatprep.mubr.msk.f32.mxu1 %vm7945_vm4, %v13992_v4 }
 0x9f4   : > { %v14013_v47 = vadd.f32 %v14012_v29, %v14011_v2 }
 0x9f6   : > { %14996 = vmatmul.mubr.msk.f32.gmra.mrb[18].mxu1 %vm7945_vm4, %v13995_v28 }
 0x9f7   : > { %14998 = vmatprep.mubr.msk.f32.mxu1 %vm7945_vm4, %v13998_v50 }
 0x9f8   : > { %v14014_v37 = vpop.f32.mrb[20].mxu0 }
 0x9f9   : > { %v14015_v30 = vpop.f32.mrb[21].mxu0 }
 0x9fa   : > { %v14016_v3 = vadd.f32 %v14015_v30, %v14014_v37  ;;  %v14017_v31 = vpop.f32.mrb[22].mxu0  ;;  %14999 = vmatmul.mubr.msk.f32.gmra.mrb[20].mxu1 %vm7945_vm4, %v14001_v20 }
 0x9fb   : > { %v14018_v48 = vpop.f32.mrb[23].mxu0  ;;  %15001 = vmatprep.mubr.msk.f32.mxu1 %vm7945_vm4, %v14004_v54 }
 0x9fc   : > { %v14019_v56 = vadd.f32 %v14018_v48, %v14017_v31 }
 0x9fe   : > { %15002 = vmatmul.mubr.msk.f32.gmra.mrb[22].mxu1 %vm7945_vm4, %v14007_v5 }
 0x9ff   : > { %15004 = vmatprep.mubr.msk.f32.mxu1 %vm7945_vm4, %v14010_v7 }
 0xa00   : > { %v14020_v12 = vpop.f32.mrb[24].mxu0 }
 0xa01   : > { %v14021_v21 = vpop.f32.mrb[25].mxu0 }
 0xa02   : > { %v14022_v25 = vadd.f32 %v14021_v21, %v14020_v12  ;;  %v14023_v13 = vpop.f32.mrb[26].mxu0  ;;  %15005 = vmatmul.mubr.msk.f32.gmra.mrb[24].mxu1 %vm7945_vm4, %v14013_v47 }
 0xa03   : > { %v14024_v1 = vpop.f32.mrb[27].mxu0  ;;  %15007 = vmatprep.mubr.msk.f32.mxu1 %vm7945_vm4, %v14016_v3 }
 0xa04   : > { %v14025_v32 = vadd.f32 %v14024_v1, %v14023_v13 }
 0xa06   : > { %15008 = vmatmul.mubr.msk.f32.gmra.mrb[26].mxu1 %vm7945_vm4, %v14019_v56 }
 0xa07   : > { %15010 = vmatprep.mubr.msk.f32.mxu1 %vm7945_vm4, %v14022_v25 }
 0xa08   : > { %v14026_v27 = vpop.f32.mrb[28].mxu0 }
 0xa09   : > { %v14027_v55 = vpop.f32.mrb[29].mxu0 }
 0xa0a   : > { %v14028_v44 = vadd.f32 %v14027_v55, %v14026_v27  ;;  %v14029_v45 = vpop.f32.mrb[30].mxu0  ;;  %15011 = vmatmul.mubr.msk.f32.gmra.mrb[28].mxu1 %vm7945_vm4, %v14025_v32 }
 0xa0b   : > { %v14030_v43 = vpop.f32.mrb[31].mxu0 }
 0xa0c   : > { %v14031_v53 = vadd.f32 %v14030_v43, %v14029_v45  ;;  %15013 = vmatprep.mubr.msk.f32.mxu1 %vm7945_vm4, %v14028_v44 }
 0xa0e   : > { %15014 = vmatmul.mubr.msk.f32.gmra.mrb[30].mxu1 %vm7945_vm4, %v14031_v53 }
 0xa10   : > { %v14082_v49 = vpop.f32.mrb[32].mxu0 }
 0xa11   : > { %v14083_v23 = vpop.f32.mrb[33].mxu0 }
 0xa12   : > { %v14084_v41 = vadd.f32 %v14083_v23, %v14082_v49  ;;  %v14085_v24 = vpop.f32.mrb[34].mxu0 }
 0xa13   : > { %v14086_v17 = vpop.f32.mrb[35].mxu0 }
 0xa14   : > { %v14087_v42 = vadd.f32 %v14086_v17, %v14085_v24  ;;  %15020 = vmatprep.mubr.msk.f32.mxu0 %vm7945_vm4, %v14084_v41 }
 0xa16   : > { %15021 = vmatmul.mubr.msk.f32.vlgmr.msra.gmra.mrb[96].mxu0 %vm7945_vm4, %v14087_v42 }
 0xa18   : > { %v14088_v9 = vpop.f32.mrb[36].mxu0 }
 0xa19   : > { %v14089_v51 = vpop.f32.mrb[37].mxu0 }
 0xa1a   : > { %v14090_v18 = vadd.f32 %v14089_v51, %v14088_v9  ;;  %v14091_v8 = vpop.f32.mrb[38].mxu0 }
 0xa1b   : > { %v14092_v11 = vpop.f32.mrb[39].mxu0 }
 0xa1c   : > { %v14093_v15 = vadd.f32 %v14092_v11, %v14091_v8  ;;  %15023 = vmatprep.mubr.msk.f32.mxu0 %vm7945_vm4, %v14090_v18 }
 0xa1e   : > { %15024 = vmatmul.mubr.msk.f32.gmra.mrb[98].mxu0 %vm7945_vm4, %v14093_v15 }
 0xa20   : > { %v14094_v26 = vpop.f32.mrb[40].mxu0 }
 0xa21   : > { %v14095_v19 = vpop.f32.mrb[41].mxu0 }
 0xa22   : > { %v14096_v35 = vadd.f32 %v14095_v19, %v14094_v26  ;;  %v14097_v46 = vpop.f32.mrb[42].mxu0 }
 0xa23   : > { %v14098_v60 = vpop.f32.mrb[43].mxu0 }
 0xa24   : > { %v14099_v61 = vadd.f32 %v14098_v60, %v14097_v46  ;;  %15026 = vmatprep.mubr.msk.f32.mxu1 %vm7945_vm4, %v14096_v35 }
 0xa26   : > { %15027 = vmatmul.mubr.msk.f32.vlgmr.msra.gmra.mrb[4].mxu1 %vm7945_vm4, %v14099_v61 }
 0xa28   : > { %v14100_v10 = vpop.f32.mrb[44].mxu0 }
 0xa29   : > { %v14101_v16 = vpop.f32.mrb[45].mxu0 }
 0xa2a   : > { %v14102_v34 = vadd.f32 %v14101_v16, %v14100_v10  ;;  %v14103_v36 = vpop.f32.mrb[46].mxu0 }
 0xa2b   : > { %v14104_v52 = vpop.f32.mrb[47].mxu0 }
 0xa2c   : > { %v14105_v0 = vadd.f32 %v14104_v52, %v14103_v36  ;;  %15029 = vmatprep.mubr.msk.f32.mxu1 %vm7945_vm4, %v14102_v34 }
 0xa2e   : > { %15030 = vmatmul.mubr.msk.f32.gmra.mrb[6].mxu1 %vm7945_vm4, %v14105_v0 }
 0xa30   : > { %v14106_v4 = vpop.f32.mrb[48].mxu0 }
 0xa31   : > { %v14107_v40 = vpop.f32.mrb[49].mxu0 }
 0xa32   : > { %v14108_v22 = vadd.f32 %v14107_v40, %v14106_v4  ;;  %v14109_v28 = vpop.f32.mrb[50].mxu0 }
 0xa33   : > { %v14110_v39 = vpop.f32.mrb[51].mxu0 }
 0xa34   : > { %v14111_v6 = vadd.f32 %v14110_v39, %v14109_v28  ;;  %15032 = vmatprep.mubr.msk.f32.mxu1 %vm7945_vm4, %v14108_v22 }
 0xa36   : > { %15033 = vmatmul.mubr.msk.f32.gmra.mrb[8].mxu1 %vm7945_vm4, %v14111_v6 }
 0xa38   : > { %v14112_v50 = vpop.f32.mrb[52].mxu0 }
 0xa39   : > { %v14113_v62 = vpop.f32.mrb[53].mxu0 }
 0xa3a   : > { %v14114_v38 = vadd.f32 %v14113_v62, %v14112_v50  ;;  %v14115_v20 = vpop.f32.mrb[54].mxu0 }
 0xa3b   : > { %v14116_v58 = vpop.f32.mrb[55].mxu0 }
 0xa3c   : > { %v14117_v57 = vadd.f32 %v14116_v58, %v14115_v20  ;;  %15035 = vmatprep.mubr.msk.f32.mxu1 %vm7945_vm4, %v14114_v38 }
 0xa3e   : > { %15036 = vmatmul.mubr.msk.f32.gmra.mrb[10].mxu1 %vm7945_vm4, %v14117_v57 }
 0xa40   : > { %v14118_v54 = vpop.f32.mrb[56].mxu0 }
 0xa41   : > { %v14119_v14 = vpop.f32.mrb[57].mxu0 }
 0xa42   : > { %v14120_v33 = vadd.f32 %v14119_v14, %v14118_v54  ;;  %v14121_v5 = vpop.f32.mrb[58].mxu0  ;;  %v18859_v54 = vpop.permute.xlu1 %10127 }
 0xa43   : > { %v14122_v59 = vpop.f32.mrb[59].mxu0  ;;  %v18861_v14 = vpop.permute.xlu0 %10122 }
 0xa44   : > { %v14123_v63 = vadd.f32 %v14122_v59, %v14121_v5  ;;  %15038 = vmatprep.mubr.msk.f32.mxu1 %vm7945_vm4, %v14120_v33 }
 0xa46   : > { %15039 = vmatmul.mubr.msk.f32.gmra.mrb[12].mxu1 %vm7945_vm4, %v14123_v63  ;;  %v10048_v33 = vpop.permute.xlu1 %10047 }
 0xa47   : > { %v10043_v5 = vpop.permute.xlu0 %10042 }
 0xa48   : > { %v14124_v7 = vpop.f32.mrb[60].mxu0 }
 0xa49   : > { %v14125_v2 = vpop.f32.mrb[61].mxu0 }
 0xa4a   : > { %v14126_v29 = vadd.f32 %v14125_v2, %v14124_v7  ;;  %v14127_v47 = vpop.f32.mrb[62].mxu0  ;;  %v18863_v59 = vpop.permute.xlu1 %10137 }
 0xa4b   : > { %v14128_v37 = vpop.f32.mrb[63].mxu0  ;;  %v18865_v63 = vpop.permute.xlu0 %10132 }
 0xa4c   : > { %v14129_v30 = vadd.f32 %v14128_v37, %v14127_v47  ;;  %15041 = vmatprep.mubr.msk.f32.mxu1 %vm7945_vm4, %v14126_v29 }
 0xa4e   : > { %15042 = vmatmul.mubr.msk.f32.gmra.mrb[14].mxu1 %vm7945_vm4, %v14129_v30  ;;  %v10058_v7 = vpop.permute.xlu1 %10057 }
 0xa4f   : > { %v10053_v2 = vpop.permute.xlu0 %10052 }
 0xa50   : > { %v14130_v3 = vpop.f32.mrb[64].mxu0 }
 0xa51   : > { %v14131_v31 = vpop.f32.mrb[65].mxu0 }
 0xa52   : > { %v14132_v48 = vadd.f32 %v14131_v31, %v14130_v3  ;;  %v14133_v56 = vpop.f32.mrb[66].mxu0  ;;  %v18867_v29 = vpop.permute.xlu1 %10147 }
 0xa53   : > { %v14134_v12 = vpop.f32.mrb[67].mxu0  ;;  %v18869_v47 = vpop.permute.xlu0 %10142 }
 0xa54   : > { %v14135_v21 = vadd.f32 %v14134_v12, %v14133_v56  ;;  %15044 = vmatprep.mubr.msk.f32.mxu1 %vm7945_vm4, %v14132_v48 }
 0xa56   : > { %15045 = vmatmul.mubr.msk.f32.gmra.mrb[16].mxu1 %vm7945_vm4, %v14135_v21  ;;  %v10068_v37 = vpop.permute.xlu1 %10067  ;;  %v16207_v21 = vld [vmem:[%s19279_s20 + $0x4] ss:$8 sps:$4 sm:$0xff]  }
 0xa57   : > { %v10063_v30 = vpop.permute.xlu0 %10062 }
 0xa58   : > { %v14136_v25 = vpop.f32.mrb[68].mxu0 }
 0xa59   : > { %v14137_v13 = vpop.f32.mrb[69].mxu0 }
 0xa5a   : > { %v14138_v1 = vadd.f32 %v14137_v13, %v14136_v25  ;;  %v14139_v32 = vpop.f32.mrb[70].mxu0  ;;  %v18871_v56 = vpop.permute.xlu1 %10157 }
 0xa5b   : > { %v14140_v27 = vpop.f32.mrb[71].mxu0  ;;  %v18876_v25 = vpop.permute.xlu0 %10152 }
 0xa5c   : > { %v14141_v55 = vadd.f32 %v14140_v27, %v14139_v32  ;;  %15047 = vmatprep.mubr.msk.f32.mxu1 %vm7945_vm4, %v14138_v1 }
 0xa5e   : > { %15048 = vmatmul.mubr.msk.f32.gmra.mrb[18].mxu1 %vm7945_vm4, %v14141_v55  ;;  %v10078_v55 = vpop.permute.xlu1 %10077 }
 0xa60   : > { %v14142_v44 = vpop.f32.mrb[72].mxu0 }
 0xa61   : > { %v14143_v45 = vpop.f32.mrb[73].mxu0 }
 0xa62   : > { %v14144_v43 = vadd.f32 %v14143_v45, %v14142_v44  ;;  %v14145_v53 = vpop.f32.mrb[74].mxu0 }
 0xa63   : > { %v14146_v49 = vpop.f32.mrb[75].mxu0 }
 0xa64   : > { %v14147_v23 = vadd.f32 %v14146_v49, %v14145_v53  ;;  %15050 = vmatprep.mubr.msk.f32.mxu1 %vm7945_vm4, %v14144_v43  ;;  %v10073_v43 = vpop.permute.xlu0 %10072 }
 0xa66   : > { %15051 = vmatmul.mubr.msk.f32.gmra.mrb[20].mxu1 %vm7945_vm4, %v14147_v23 }
 0xa68   : > { %v14148_v41 = vpop.f32.mrb[76].mxu0 }
 0xa69   : > { %v14149_v24 = vpop.f32.mrb[77].mxu0 }
 0xa6a   : > { %v14150_v17 = vadd.f32 %v14149_v24, %v14148_v41  ;;  %v14151_v42 = vpop.f32.mrb[78].mxu0 }
 0xa6b   : > { %v14152_v9 = vpop.f32.mrb[79].mxu0 }
 0xa6c   : > { %v14153_v51 = vadd.f32 %v14152_v9, %v14151_v42  ;;  %15053 = vmatprep.mubr.msk.f32.mxu1 %vm7945_vm4, %v14150_v17  ;;  %v18880_v42 = vpop.permute.xlu1 %10167 }
 0xa6e   : > { %15054 = vmatmul.mubr.msk.f32.gmra.mrb[22].mxu1 %vm7945_vm4, %v14153_v51  ;;  %v18882_v51 = vpop.permute.xlu0 %10162 }
 0xa70   : > { %v14154_v18 = vpop.f32.mrb[80].mxu0 }
 0xa71   : > { %v14155_v8 = vpop.f32.mrb[81].mxu0 }
 0xa72   : > { %v14156_v11 = vadd.f32 %v14155_v8, %v14154_v18  ;;  %v14157_v15 = vpop.f32.mrb[82].mxu0 }
 0xa73   : > { %v14158_v26 = vpop.f32.mrb[83].mxu0 }
 0xa74   : > { %v14159_v19 = vadd.f32 %v14158_v26, %v14157_v15  ;;  %15056 = vmatprep.mubr.msk.f32.mxu1 %vm7945_vm4, %v14156_v11 }
 0xa76   : > { %15057 = vmatmul.mubr.msk.f32.gmra.mrb[24].mxu1 %vm7945_vm4, %v14159_v19 }
 0xa78   : > { %v14160_v35 = vpop.f32.mrb[84].mxu0 }
 0xa79   : > { %v14161_v46 = vpop.f32.mrb[85].mxu0 }
 0xa7a   : > { %v14162_v60 = vadd.f32 %v14161_v46, %v14160_v35  ;;  %v14163_v61 = vpop.f32.mrb[86].mxu0  ;;  %v10088_v35 = vpop.permute.xlu1 %10087 }
 0xa7b   : > { %v14164_v10 = vpop.f32.mrb[87].mxu0 }
 0xa7c   : > { %v14165_v16 = vadd.f32 %v14164_v10, %v14163_v61  ;;  %15059 = vmatprep.mubr.msk.f32.mxu1 %vm7945_vm4, %v14162_v60  ;;  %v10083_v60 = vpop.permute.xlu0 %10082 }
 0xa7e   : > { %15060 = vmatmul.mubr.msk.f32.gmra.mrb[26].mxu1 %vm7945_vm4, %v14165_v16 }
 0xa80   : > { %v14166_v34 = vpop.f32.mrb[88].mxu0 }
 0xa81   : > { %v14167_v36 = vpop.f32.mrb[89].mxu0 }
 0xa82   : > { %v14168_v52 = vadd.f32 %v14167_v36, %v14166_v34  ;;  %v14169_v0 = vpop.f32.mrb[90].mxu0  ;;  %v18888_v36 = vpop.permute.xlu1 %10177 }
 0xa83   : > { %v14170_v4 = vpop.f32.mrb[91].mxu0 }
 0xa84   : > { %v14171_v40 = vadd.f32 %v14170_v4, %v14169_v0  ;;  %15062 = vmatprep.mubr.msk.f32.mxu1 %vm7945_vm4, %v14168_v52  ;;  %v18890_v0 = vpop.permute.xlu0 %10172 }
 0xa86   : > { %15063 = vmatmul.mubr.msk.f32.gmra.mrb[28].mxu1 %vm7945_vm4, %v14171_v40 }
 0xa88   : > { %v14172_v22 = vpop.f32.mrb[92].mxu0 }
 0xa89   : > { %v14173_v28 = vpop.f32.mrb[93].mxu0 }
 0xa8a   : > { %v14174_v39 = vadd.f32 %v14173_v28, %v14172_v22  ;;  %v14175_v6 = vpop.f32.mrb[94].mxu0  ;;  %v10098_v28 = vpop.permute.xlu1 %10097 }
 0xa8b   : > { %v14176_v50 = vpop.f32.mrb[95].mxu0 }
 0xa8c   : > { %v14177_v62 = vadd.f32 %v14176_v50, %v14175_v6  ;;  %15065 = vmatprep.mubr.msk.f32.mxu1 %vm7945_vm4, %v14174_v39  ;;  %v10093_v6 = vpop.permute.xlu0 %10092 }
 0xa8e   : > { %15066 = vmatmul.mubr.msk.f32.gmra.mrb[30].mxu1 %vm7945_vm4, %v14177_v62 }
 0xa8f   : > { %10360 = vmatprep.mubr.bf16.mxu1 %v16207_v21 }
 0xaa5   : > { %v14970_v38 = vpop.f32.mrb[0].mxu1 }
 0xaa6   : > { %v9107_v20 = vpop.f32.mrb[1].mxu1 }
 0xaa9   : > { %v14973_v58 = vpop.f32.mrb[2].mxu1 }
 0xaaa   : > { %v9117_v57 = vpop.f32.mrb[3].mxu1 }
 0xae9   : > { %v15022_v3 = vpop.f32.mrb[96].mxu0 }
 0xaea   : > { %v15198_v31 = vadd.f32 %v15022_v3, %v14970_v38  ;;  %v9817_v48 = vpop.f32.mrb[97].mxu0 }
 0xaeb   : > { %v15199_v12 = vadd.f32 %v9817_v48, %v9107_v20 }
 0xaec   : > { %v10201_v13 = vadd.f32 %v15198_v31, %v10048_v33 }
 0xaed   : > { %v10200_v1 = vadd.f32 %v15199_v12, %v10043_v5  ;;  %v18898_v5 = vpop.permute.xlu0 %10182 }
 0xaee   : > { %v10233_v32 = vmax.f32 %v10201_v13, 0.0 }
 0xaef   : > { %v10232_v27 = vmax.f32 %v10200_v1, 0.0 }
 0xaf1   : > { %v18878_v44 = vpack.c.bf16 %v10233_v32, %v10232_v27  ;;  %v15025_v45 = vpop.f32.mrb[98].mxu0  ;;  %v10103_v12 = vpop.permute.xlu0 %10102 }
 0xaf2   : > { %v15200_v53 = vadd.f32 %v15025_v45, %v14973_v58  ;;  %v9827_v49 = vpop.f32.mrb[99].mxu0 }
 0xaf3   : > { %v15201_v23 = vadd.f32 %v9827_v49, %v9117_v57  ;;  %v18894_v57 = vpop.permute.xlu1 %10187 }
 0xaf4   : > { %v10203_v41 = vadd.f32 %v15200_v53, %v10058_v7 }
 0xaf5   : > { %v10202_v24 = vadd.f32 %v15201_v23, %v10053_v2  ;;  %v18904_v45 = vpop.permute.xlu0 %10192 }
 0xaf6   : > { %v10235_v17 = vmax.f32 %v10203_v41, 0.0 }
 0xaf7   : > { %v10234_v9 = vmax.f32 %v10202_v24, 0.0  ;;  %v10108_v31 = vpop.permute.xlu1 %10107 }
 0xaf9   : > { %v18884_v18 = vpack.c.bf16 %v10235_v17, %v10234_v9  ;;  %v15028_v8 = vpop.f32.mrb[4].mxu1  ;;  %v10113_v24 = vpop.permute.xlu0 %10112 }
 0xafa   : > { %v10205_v11 = vadd.f32 %v15028_v8, %v10068_v37  ;;  %v9837_v15 = vpop.f32.mrb[5].mxu1 }
 0xafb   : > { %v10204_v26 = vadd.f32 %v10063_v30, %v9837_v15  ;;  %v18902_v27 = vpop.permute.xlu1 %10197 }
 0xafc   : > { %v10237_v19 = vmax.f32 %v10205_v11, 0.0 }
 0xafd   : > { %v10236_v46 = vmax.f32 %v10204_v26, 0.0 }
 0xaff   : > { %v18886_v61 = vpack.c.bf16 %v10237_v19, %v10236_v46  ;;  %v10118_v23 = vpop.permute.xlu1 %10117 }
 0xb01   : > { %v15031_v10 = vpop.f32.mrb[6].mxu1 }
 0xb02   : > { %v10207_v16 = vadd.f32 %v15031_v10, %v10078_v55  ;;  %v9847_v34 = vpop.f32.mrb[7].mxu1 }
 0xb03   : > { %v10206_v52 = vadd.f32 %v10073_v43, %v9847_v34 }
 0xb04   : > { %v10239_v4 = vmax.f32 %v10207_v16, 0.0 }
 0xb05   : > { %v10238_v40 = vmax.f32 %v10206_v52, 0.0 }
 0xb07   : > { %v18892_v22 = vpack.c.bf16 %v10239_v4, %v10238_v40 }
 0xb09   : > { %v15034_v39 = vpop.f32.mrb[8].mxu1 }
 0xb0a   : > { %v10209_v50 = vadd.f32 %v15034_v39, %v10088_v35  ;;  %v9857_v62 = vpop.f32.mrb[9].mxu1 }
 0xb0b   : > { %v10208_v38 = vadd.f32 %v10083_v60, %v9857_v62 }
 0xb0c   : > { %v10241_v20 = vmax.f32 %v10209_v50, 0.0 }
 0xb0d   : > { %v10240_v58 = vmax.f32 %v10208_v38, 0.0 }
 0xb0f   : > { %v18896_v33 = vpack.c.bf16 %v10241_v20, %v10240_v58 }
 0xb11   : > { %v15037_v7 = vpop.f32.mrb[10].mxu1 }
 0xb12   : > { %v10211_v2 = vadd.f32 %v15037_v7, %v10098_v28  ;;  %v9867_v37 = vpop.f32.mrb[11].mxu1 }
 0xb13   : > { %v10210_v30 = vadd.f32 %v10093_v6, %v9867_v37 }
 0xb14   : > { %v10243_v3 = vmax.f32 %v10211_v2, 0.0 }
 0xb15   : > { %v10242_v48 = vmax.f32 %v10210_v30, 0.0 }
 0xb17   : > { %v18900_v21 = vpack.c.bf16 %v10243_v3, %v10242_v48 }
 0xb19   : > { %v15040_v13 = vpop.f32.mrb[12].mxu1 }
 0xb1a   : > { %v10213_v1 = vadd.f32 %v15040_v13, %v10108_v31  ;;  %v9877_v32 = vpop.f32.mrb[13].mxu1 }
 0xb1b   : > { %v10212_v55 = vadd.f32 %v10103_v12, %v9877_v32 }
 0xb1c   : > { %v10245_v43 = vmax.f32 %v10213_v1, 0.0 }
 0xb1d   : > { %v10244_v53 = vmax.f32 %v10212_v55, 0.0 }
 0xb1f   : > { %v18906_v49 = vpack.c.bf16 %v10245_v43, %v10244_v53 }
 0xb21   : > { %v15043_v41 = vpop.f32.mrb[14].mxu1 }
 0xb22   : > { %v10215_v17 = vadd.f32 %v15043_v41, %v10118_v23  ;;  %v9887_v9 = vpop.f32.mrb[15].mxu1 }
 0xb23   : > { %v10214_v8 = vadd.f32 %v10113_v24, %v9887_v9 }
 0xb24   : > { %v10247_v11 = vmax.f32 %v10215_v17, 0.0 }
 0xb25   : > { %v10246_v15 = vmax.f32 %v10214_v8, 0.0 }
 0xb27   : > { %v18908_v26 = vpack.c.bf16 %v10247_v11, %v10246_v15 }
 0xb29   : > { %v15046_v19 = vpop.f32.mrb[16].mxu1 }
 0xb2a   : > { %v10217_v35 = vadd.f32 %v15046_v19, %v18859_v54  ;;  %v9897_v46 = vpop.f32.mrb[17].mxu1 }
 0xb2b   : > { %v10216_v60 = vadd.f32 %v18861_v14, %v9897_v46 }
 0xb2c   : > { %v10249_v10 = vmax.f32 %v10217_v35, 0.0 }
 0xb2d   : > { %v10248_v16 = vmax.f32 %v10216_v60, 0.0  ;;  %v16213_v60 = vld [vmem:[%s19279_s20 + $0x24] ss:$8 sps:$4 sm:$0xff]  }
 0xb2f   : > { %v18912_v34 = vpack.c.bf16 %v10249_v10, %v10248_v16  ;;  %v16211_v10 = vld [vmem:[%s19279_s20 + $0x20] ss:$8 sps:$4 sm:$0xff]   ;;  %v16216_v16 = vld [vmem:[%s19279_s20 + $0x34] ss:$8 sps:$4 sm:$0xff]  }
 0xb31   : > { %v15049_v52 = vpop.f32.mrb[18].mxu1  ;;  %14212 = vmatprep.subr.bf16.mxu1 %v18912_v34 }
 0xb32   : > { %v10219_v4 = vadd.f32 %v15049_v52, %v18863_v59  ;;  %v9907_v40 = vpop.f32.mrb[19].mxu1  ;;  %14213 = vmatpush3.bf16.msra.mxu1 %v18878_v44  ;;  %v16214_v52 = vld [vmem:[%s19279_s20 + $0x30] ss:$8 sps:$4 sm:$0xff]  }
 0xb33   : > { %v10218_v28 = vadd.f32 %v18865_v63, %v9907_v40  ;;  %v16217_v40 = vld [vmem:[%s19279_s20 + $0x40] ss:$8 sps:$4 sm:$0xff]  }
 0xb34   : > { %v10251_v39 = vmax.f32 %v10219_v4, 0.0  ;;  %v16219_v4 = vld [vmem:[%s19279_s20 + $0x44] ss:$8 sps:$4 sm:$0xff]  }
 0xb35   : > { %v10250_v6 = vmax.f32 %v10218_v28, 0.0  ;;  %v16222_v28 = vld [vmem:[%s19279_s20 + $0x54] ss:$8 sps:$4 sm:$0xff]  }
 0xb37   : > { %v18918_v54 = vpack.c.bf16 %v10251_v39, %v10250_v6  ;;  %v16220_v39 = vld [vmem:[%s19279_s20 + $0x50] ss:$8 sps:$4 sm:$0xff]   ;;  %v16225_v6 = vld [vmem:[%s19279_s20 + $0x64] ss:$8 sps:$4 sm:$0xff]  }
 0xb39   : > { %v15052_v50 = vpop.f32.mrb[20].mxu1  ;;  %14214 = vmatprep.subr.bf16.mxu1 %v18918_v54 }
 0xb3a   : > { %v10221_v14 = vadd.f32 %v15052_v50, %v18867_v29  ;;  %v9917_v62 = vpop.f32.mrb[21].mxu1  ;;  %14215 = vmatpush3.bf16.msra.mxu1 %v18884_v18  ;;  %v16223_v50 = vld [vmem:[%s19279_s20 + $0x60] ss:$8 sps:$4 sm:$0xff]  }
 0xb3b   : > { %v10220_v38 = vadd.f32 %v18869_v47, %v9917_v62  ;;  %v16226_v62 = vld [vmem:[%s19279_s20 + $0x70] ss:$8 sps:$4 sm:$0xff]  }
 0xb3c   : > { %v10253_v59 = vmax.f32 %v10221_v14, 0.0  ;;  %v16228_v14 = vld [vmem:[%s19279_s20 + $0x74] ss:$8 sps:$4 sm:$0xff]  }
 0xb3d   : > { %v10252_v20 = vmax.f32 %v10220_v38, 0.0  ;;  %v16231_v38 = vld [vmem:[%s19279_s20 + $0x84] ss:$8 sps:$4 sm:$0xff]  }
 0xb3f   : > { %v18924_v58 = vpack.c.bf16 %v10253_v59, %v10252_v20  ;;  %v16229_v59 = vld [vmem:[%s19279_s20 + $0x80] ss:$8 sps:$4 sm:$0xff]   ;;  %v16234_v20 = vld [vmem:[%s19279_s20 + $0x94] ss:$8 sps:$4 sm:$0xff]  }
 0xb41   : > { %v15055_v7 = vpop.f32.mrb[22].mxu1  ;;  %14216 = vmatprep.subr.bf16.mxu1 %v18924_v58 }
 0xb42   : > { %v10223_v63 = vadd.f32 %v15055_v7, %v18871_v56  ;;  %v9927_v2 = vpop.f32.mrb[23].mxu1  ;;  %14217 = vmatpush3.bf16.msra.mxu1 %v18886_v61  ;;  %v16232_v7 = vld [vmem:[%s19279_s20 + $0x90] ss:$8 sps:$4 sm:$0xff]  }
 0xb43   : > { %v10222_v37 = vadd.f32 %v18876_v25, %v9927_v2  ;;  %v10513_v2 = vld [vmem:[#allocation10 + $0x28] sm:$0xff] }
 0xb44   : > { %v10255_v29 = vmax.f32 %v10223_v63, 0.0  ;;  %v16237_v63 = vld [vmem:[%s19279_s20 + $0xa4] ss:$8 sps:$4 sm:$0xff]  }
 0xb45   : > { %v10254_v30 = vmax.f32 %v10222_v37, 0.0 }
 0xb47   : > { %v18930_v3 = vpack.c.bf16 %v10255_v29, %v10254_v30  ;;  %v10514_v29 = vld [vmem:[#allocation10 + $0x30] sm:$0xff]  ;;  %v10515_v30 = vld [vmem:[#allocation10 + $0x38] sm:$0xff] }
 0xb49   : > { %v15058_v31 = vpop.f32.mrb[24].mxu1  ;;  %14218 = vmatprep.subr.bf16.mxu1 %v18930_v3 }
 0xb4a   : > { %v10225_v47 = vadd.f32 %v15058_v31, %v18880_v42  ;;  %v9937_v48 = vpop.f32.mrb[25].mxu1  ;;  %14219 = vmatpush3.bf16.msra.mxu1 %v18892_v22  ;;  %v15168_v31 = vpack.c.bf16 %v10515_v30, %v10514_v29 }
 0xb4b   : > { %v10224_v12 = vadd.f32 %v18882_v51, %v9937_v48  ;;  %v10394_v48 = vld [vmem:[#allocation10 + $0x8] sm:$0xff] }
 0xb4c   : > { %v10257_v56 = vmax.f32 %v10225_v47, 0.0  ;;  %v10393_v47 = vld [vmem:[#allocation10] sm:$0xff] }
 0xb4d   : > { %v10256_v13 = vmax.f32 %v10224_v12, 0.0  ;;  %v15172_v12 = vpack.c.bf16 %v10394_v48, %v10393_v47 }
 0xb4f   : > { %v18936_v1 = vpack.c.bf16 %v10257_v56, %v10256_v13 }
 0xb51   : > { %v15061_v32 = vpop.f32.mrb[26].mxu1  ;;  %14220 = vmatprep.subr.bf16.mxu1 %v18936_v1 }
 0xb52   : > { %v10227_v25 = vadd.f32 %v15061_v32, %v18888_v36  ;;  %v9947_v55 = vpop.f32.mrb[27].mxu1  ;;  %14221 = vmatpush3.bf16.msra.mxu1 %v18896_v33 }
 0xb53   : > { %v10226_v43 = vadd.f32 %v18890_v0, %v9947_v55 }
 0xb54   : > { %v10259_v42 = vmax.f32 %v10227_v25, 0.0 }
 0xb55   : > { %v10258_v53 = vmax.f32 %v10226_v43, 0.0 }
 0xb57   : > { %v18942_v23 = vpack.c.bf16 %v10259_v42, %v10258_v53 }
 0xb59   : > { %v15064_v41 = vpop.f32.mrb[28].mxu1  ;;  %14222 = vmatprep.subr.bf16.mxu1 %v18942_v23 }
 0xb5a   : > { %v10229_v51 = vadd.f32 %v15064_v41, %v18894_v57  ;;  %v9957_v24 = vpop.f32.mrb[29].mxu1  ;;  %14223 = vmatpush3.bf16.msra.mxu1 %v18900_v21 }
 0xb5b   : > { %v10228_v17 = vadd.f32 %v18898_v5, %v9957_v24  ;;  %v16205_v5 = vld [vmem:[%s19279_s20] ss:$8 sps:$4 sm:$0xff]  }
 0xb5c   : > { %v10261_v36 = vmax.f32 %v10229_v51, 0.0 }
 0xb5d   : > { %v10260_v9 = vmax.f32 %v10228_v17, 0.0 }
 0xb5f   : > { %v18948_v8 = vpack.c.bf16 %v10261_v36, %v10260_v9 }
 0xb61   : > { %v15067_v11 = vpop.f32.mrb[30].mxu1  ;;  %14224 = vmatprep.subr.bf16.mxu1 %v18948_v8 }
 0xb62   : > { %v10231_v0 = vadd.f32 %v15067_v11, %v18902_v27  ;;  %v9967_v15 = vpop.f32.mrb[31].mxu1  ;;  %14225 = vmatpush3.bf16.msra.mxu1 %v18906_v49  ;;  %v16210_v27 = vld [vmem:[%s19279_s20 + $0x14] ss:$8 sps:$4 sm:$0xff]  }
 0xb63   : > { %v10230_v19 = vadd.f32 %v18904_v45, %v9967_v15  ;;  %v16208_v45 = vld [vmem:[%s19279_s20 + $0x10] ss:$8 sps:$4 sm:$0xff]  }
 0xb64   : > { %v10263_v57 = vmax.f32 %v10231_v0, 0.0 }
 0xb65   : > { %v10262_v35 = vmax.f32 %v10230_v19, 0.0 }
 0xb67   : > { %v18954_v46 = vpack.c.bf16 %v10263_v57, %v10262_v35 }
 0xb69   : > { %14226 = vmatprep.subr.bf16.mxu1 %v18954_v46 }
 0xb6a   : > { %14227 = vmatpush3.bf16.msra.mxu1 %v18908_v26 }
 0xb6b   : > { %14252 = vmatprep.subr.bf16.mxu1 %v18912_v34 }
 0xb6d   : > { %10361 = vmatmul.mubr.bf16.vlgmr.msra.gmra.mrb[32].mxu1 %v16205_v5 }
 0xb6e   : > { %14253 = vmatpush3.bf16.msra.mxu1 %v18878_v44  ;;  %10368 = vmatprep.mubr.bf16.mxu1 %v16210_v27 }
 0xb6f   : > { %14254 = vmatprep.subr.bf16.mxu1 %v18918_v54 }
 0xb72   : > { %14255 = vmatpush3.bf16.msra.mxu1 %v18884_v18 }
 0xb73   : > { %14256 = vmatprep.subr.bf16.mxu1 %v18924_v58 }
 0xb75   : > { %10369 = vmatmul.mubr.bf16.gmra.mrb[36].mxu1 %v16208_v45  ;;  %v10395_v45 = vld [vmem:[#allocation10 + $0x10] sm:$0xff] }
 0xb76   : > { %14257 = vmatpush3.bf16.msra.mxu1 %v18886_v61  ;;  %10376 = vmatprep.mubr.bf16.mxu1 %v16213_v60  ;;  %v10396_v60 = vld [vmem:[#allocation10 + $0x18] sm:$0xff] }
 0xb77   : > { %14258 = vmatprep.subr.bf16.mxu1 %v18930_v3 }
 0xb7a   : > { %14259 = vmatpush3.bf16.msra.mxu1 %v18892_v22 }
 0xb7b   : > { %14260 = vmatprep.subr.bf16.mxu1 %v18936_v1 }
 0xb7d   : > { %10377 = vmatmul.mubr.bf16.gmra.mrb[40].mxu1 %v16211_v10 }
 0xb7e   : > { %14261 = vmatpush3.bf16.msra.mxu1 %v18896_v33  ;;  %10384 = vmatprep.mubr.bf16.mxu1 %v16216_v16 }
 0xb7f   : > { %14262 = vmatprep.subr.bf16.mxu1 %v18942_v23 }
 0xb82   : > { %14263 = vmatpush3.bf16.msra.mxu1 %v18900_v21 }
 0xb83   : > { %14264 = vmatprep.subr.bf16.mxu1 %v18948_v8 }
 0xb85   : > { %10385 = vmatmul.mubr.bf16.gmra.mrb[44].mxu1 %v16214_v52 }
 0xb86   : > { %14265 = vmatpush3.bf16.msra.mxu1 %v18906_v49  ;;  %10478 = vmatprep.mubr.bf16.mxu1 %v16219_v4 }
 0xb87   : > { %14266 = vmatprep.subr.bf16.mxu1 %v18954_v46 }
 0xb8a   : > { %14267 = vmatpush3.bf16.msra.mxu1 %v18908_v26 }
 0xb8b   : > { %14316 = vmatprep.subr.bf16.mxu1 %v18912_v34 }
 0xb8d   : > { %10479 = vmatmul.mubr.bf16.vlgmr.msra.gmra.mrb[48].mxu1 %v16217_v40  ;;  %v15176_v40 = vpack.c.bf16 %v10396_v60, %v10395_v45 }
 0xb8e   : > { %14317 = vmatpush3.bf16.msra.mxu1 %v18878_v44  ;;  %10486 = vmatprep.mubr.bf16.mxu1 %v16222_v28  ;;  %v10890_v28 = vld [vmem:[#allocation10 + $0x40] sm:$0xff] }
 0xb8f   : > { %14318 = vmatprep.subr.bf16.mxu1 %v18918_v54 }
 0xb92   : > { %14319 = vmatpush3.bf16.msra.mxu1 %v18884_v18 }
 0xb93   : > { %14320 = vmatprep.subr.bf16.mxu1 %v18924_v58 }
 0xb95   : > { %10487 = vmatmul.mubr.bf16.gmra.mrb[52].mxu1 %v16220_v39  ;;  %v10891_v39 = vld [vmem:[#allocation10 + $0x48] sm:$0xff] }
 0xb96   : > { %14321 = vmatpush3.bf16.msra.mxu1 %v18886_v61  ;;  %10494 = vmatprep.mubr.bf16.mxu1 %v16225_v6 }
 0xb97   : > { %14322 = vmatprep.subr.bf16.mxu1 %v18930_v3 }
 0xb9a   : > { %14323 = vmatpush3.bf16.msra.mxu1 %v18892_v22 }
 0xb9b   : > { %14324 = vmatprep.subr.bf16.mxu1 %v18936_v1 }
 0xb9d   : > { %10495 = vmatmul.mubr.bf16.gmra.mrb[56].mxu1 %v16223_v50  ;;  %v15180_v50 = vpack.c.bf16 %v10891_v39, %v10890_v28 }
 0xb9e   : > { %14325 = vmatpush3.bf16.msra.mxu1 %v18896_v33  ;;  %10502 = vmatprep.mubr.bf16.mxu1 %v16228_v14 }
 0xb9f   : > { %14326 = vmatprep.subr.bf16.mxu1 %v18942_v23 }
 0xba2   : > { %14327 = vmatpush3.bf16.msra.mxu1 %v18900_v21 }
 0xba3   : > { %14328 = vmatprep.subr.bf16.mxu1 %v18948_v8 }
 0xba5   : > { %10503 = vmatmul.mubr.bf16.gmra.mrb[60].mxu1 %v16226_v62 }
 0xba6   : > { %14329 = vmatpush3.bf16.msra.mxu1 %v18906_v49  ;;  %10856 = vmatprep.mubr.bf16.mxu1 %v16231_v38 }
 0xba7   : > { %14330 = vmatprep.subr.bf16.mxu1 %v18954_v46 }
 0xbaa   : > { %14331 = vmatpush3.bf16.msra.mxu1 %v18908_v26 }
 0xbab   : > { %14368 = vmatprep.subr.bf16.mxu1 %v18912_v34  ;;  %v16244_v34 = vld [vmem:[%s19279_s20 + $0xd0] ss:$8 sps:$4 sm:$0xff]  }
 0xbad   : > { %10857 = vmatmul.mubr.bf16.vlgmr.msra.gmra.mrb[64].mxu1 %v16229_v59 }
 0xbae   : > { %14369 = vmatpush3.bf16.msra.mxu1 %v18878_v44  ;;  %10864 = vmatprep.mubr.bf16.mxu1 %v16234_v20  ;;  %v16235_v44 = vld [vmem:[%s19279_s20 + $0xa0] ss:$8 sps:$4 sm:$0xff]  }
 0xbaf   : > { %14370 = vmatprep.subr.bf16.mxu1 %v18918_v54  ;;  %v16252_v54 = vld [vmem:[%s19279_s20 + $0xf4] ss:$8 sps:$4 sm:$0xff]  }
 0xbb2   : > { %14371 = vmatpush3.bf16.msra.mxu1 %v18884_v18  ;;  %v16240_v18 = vld [vmem:[%s19279_s20 + $0xb4] ss:$8 sps:$4 sm:$0xff]  }
 0xbb3   : > { %14372 = vmatprep.subr.bf16.mxu1 %v18924_v58  ;;  %v10512_v58 = vld [vmem:[#allocation10 + $0x20] sm:$0xff] }
 0xbb4   : > { %v15164_v37 = vpack.c.bf16 %v10513_v2, %v10512_v58  ;;  %v10892_v58 = vld [vmem:[#allocation10 + $0x50] sm:$0xff]  ;;  %v10893_v2 = vld [vmem:[#allocation10 + $0x58] sm:$0xff] }
 0xbb5   : > { %10865 = vmatmul.mubr.bf16.gmra.mrb[68].mxu1 %v16232_v7  ;;  %v15184_v29 = vpack.c.bf16 %v10893_v2, %v10892_v58 }
 0xbb6   : > { %14373 = vmatpush3.bf16.msra.mxu1 %v18886_v61  ;;  %10872 = vmatprep.mubr.bf16.mxu1 %v16237_v63  ;;  %v16238_v61 = vld [vmem:[%s19279_s20 + $0xb0] ss:$8 sps:$4 sm:$0xff]  }
 0xbb7   : > { %14374 = vmatprep.subr.bf16.mxu1 %v18930_v3  ;;  %15165 = vmatprep.subr.bf16.mxu0 %v15164_v37  ;;  %v16250_v3 = vld [vmem:[%s19279_s20 + $0xf0] ss:$8 sps:$4 sm:$0xff]  }
 0xbb8   : > { %15167 = vmatpush3.bf16.msra.mxu0 %v15164_v37 }
 0xbb9   : > { %15169 = vmatprep.subr.bf16.mxu0 %v15168_v31 }
 0xbba   : > { %14375 = vmatpush3.bf16.msra.mxu1 %v18892_v22  ;;  %v16243_v22 = vld [vmem:[%s19279_s20 + $0xc4] ss:$8 sps:$4 sm:$0xff]  }
 0xbbb   : > { %14376 = vmatprep.subr.bf16.mxu1 %v18936_v1 }
 0xbbc   : > { %15171 = vmatpush3.bf16.msra.mxu0 %v15168_v31  ;;  %v11147_v31 = vld [vmem:[#allocation10 + $0x68] sm:$0xff] }
 0xbbd   : > { %10873 = vmatmul.mubr.bf16.gmra.mrb[72].mxu1 %v16235_v44  ;;  %15173 = vmatprep.subr.bf16.mxu0 %v15172_v12 }
 0xbbe   : > { %14377 = vmatpush3.bf16.msra.mxu1 %v18896_v33  ;;  %10880 = vmatprep.mubr.bf16.mxu1 %v16240_v18  ;;  %v16241_v33 = vld [vmem:[%s19279_s20 + $0xc0] ss:$8 sps:$4 sm:$0xff]  }
 0xbbf   : > { %14378 = vmatprep.subr.bf16.mxu1 %v18942_v23 }
 0xbc2   : > { %14379 = vmatpush3.bf16.msra.mxu1 %v18900_v21  ;;  %v16246_v21 = vld [vmem:[%s19279_s20 + $0xd4] ss:$8 sps:$4 sm:$0xff]  }
 0xbc3   : > { %14380 = vmatprep.subr.bf16.mxu1 %v18948_v8 }
 0xbc5   : > { %10881 = vmatmul.mubr.bf16.gmra.mrb[76].mxu1 %v16238_v61 }
 0xbc6   : > { %14381 = vmatpush3.bf16.msra.mxu1 %v18906_v49  ;;  %11112 = vmatprep.mubr.bf16.mxu1 %v16243_v22  ;;  %v16249_v49 = vld [vmem:[%s19279_s20 + $0xe4] ss:$8 sps:$4 sm:$0xff]  }
 0xbc7   : > { %14382 = vmatprep.subr.bf16.mxu1 %v18954_v46 }
 0xbca   : > { %14383 = vmatpush3.bf16.msra.mxu1 %v18908_v26  ;;  %v16247_v26 = vld [vmem:[%s19279_s20 + $0xe0] ss:$8 sps:$4 sm:$0xff]  }
 0xbcd   : > { %11113 = vmatmul.mubr.bf16.vlgmr.msra.gmra.mrb[80].mxu1 %v16241_v33 }
 0xbce   : > { %11120 = vmatprep.mubr.bf16.mxu1 %v16246_v21 }
 0xbd5   : > { %11121 = vmatmul.mubr.bf16.gmra.mrb[84].mxu1 %v16244_v34 }
 0xbd6   : > { %11128 = vmatprep.mubr.bf16.mxu1 %v16249_v49 }
 0xbdd   : > { %11129 = vmatmul.mubr.bf16.gmra.mrb[88].mxu1 %v16247_v26 }
 0xbde   : > { %11136 = vmatprep.mubr.bf16.mxu1 %v16252_v54 }
 0xbe5   : > { %11137 = vmatmul.mubr.bf16.gmra.mrb[92].mxu1 %v16250_v3  ;;  %v11146_v3 = vld [vmem:[#allocation10 + $0x60] sm:$0xff] }
 0xc40   : > { %v14228_v56 = vpop.f32.mrb[32].mxu1 }
 0xc41   : > { %v14229_v13 = vpop.f32.mrb[33].mxu1 }
 0xc42   : > { %v19099_v1 = vadd.f32 %v14229_v13, %v14228_v56  ;;  %v14231_v32 = vpop.f32.mrb[34].mxu1  ;;  %v15188_v13 = vpack.c.bf16 %v11147_v31, %v11146_v3 }
 0xc43   : > { %v14232_v25 = vpop.f32.mrb[35].mxu1 }
 0xc44   : > { %v19101_v55 = vadd.f32 %v14232_v25, %v14231_v32 }
 0xc48   : > { %v14234_v43 = vpop.f32.mrb[36].mxu1 }
 0xc49   : > { %v14235_v42 = vpop.f32.mrb[37].mxu1 }
 0xc4a   : > { %v19103_v53 = vadd.f32 %v14235_v42, %v14234_v43  ;;  %v14237_v23 = vpop.f32.mrb[38].mxu1 }
 0xc4b   : > { %v14238_v41 = vpop.f32.mrb[39].mxu1 }
 0xc4c   : > { %v19105_v51 = vadd.f32 %v14238_v41, %v14237_v23  ;;  %v11149_v23 = vld [vmem:[#allocation10 + $0x78] sm:$0xff] }
 0xc50   : > { %v14240_v24 = vpop.f32.mrb[40].mxu1 }
 0xc51   : > { %v14241_v17 = vpop.f32.mrb[41].mxu1 }
 0xc52   : > { %v19107_v36 = vadd.f32 %v14241_v17, %v14240_v24  ;;  %v14243_v9 = vpop.f32.mrb[42].mxu1 }
 0xc53   : > { %v14244_v8 = vpop.f32.mrb[43].mxu1 }
 0xc54   : > { %v19109_v11 = vadd.f32 %v14244_v8, %v14243_v9 }
 0xc58   : > { %v14246_v0 = vpop.f32.mrb[44].mxu1 }
 0xc59   : > { %v14247_v15 = vpop.f32.mrb[45].mxu1 }
 0xc5a   : > { %v19111_v19 = vadd.f32 %v14247_v15, %v14246_v0  ;;  %v14249_v57 = vpop.f32.mrb[46].mxu1 }
 0xc5b   : > { %v14250_v35 = vpop.f32.mrb[47].mxu1 }
 0xc5c   : > { %v19113_v46 = vadd.f32 %v14250_v35, %v14249_v57 }
 0xc60   : > { %v14268_v5 = vpop.f32.mrb[48].mxu1 }
 0xc61   : > { %v14269_v27 = vpop.f32.mrb[49].mxu1 }
 0xc62   : > { %v14270_v10 = vadd.f32 %v14269_v27, %v14268_v5  ;;  %v14271_v16 = vpop.f32.mrb[50].mxu1 }
 0xc63   : > { %v14272_v52 = vpop.f32.mrb[51].mxu1 }
 0xc64   : > { %v14273_v4 = vadd.f32 %v14272_v52, %v14271_v16  ;;  %15076 = vmatprep.mubr.msk.f32.mxu0 %vm10516_vm5, %v14270_v10 }
 0xc66   : > { %15077 = vmatmul.mubr.msk.f32.vlgmr.msra.gmra.mrb[100].mxu0 %vm10516_vm5, %v14273_v4 }
 0xc67   : > { %15175 = vmatpush3.bf16.msra.mxu0 %v15172_v12 }
 0xc68   : > { %v14274_v6 = vpop.f32.mrb[52].mxu1  ;;  %15177 = vmatprep.subr.bf16.mxu0 %v15176_v40 }
 0xc69   : > { %v14275_v14 = vpop.f32.mrb[53].mxu1 }
 0xc6a   : > { %v14276_v62 = vadd.f32 %v14275_v14, %v14274_v6  ;;  %v14277_v38 = vpop.f32.mrb[54].mxu1 }
 0xc6b   : > { %v14278_v59 = vpop.f32.mrb[55].mxu1  ;;  %15179 = vmatpush3.bf16.msra.mxu0 %v15176_v40 }
 0xc6c   : > { %v14279_v20 = vadd.f32 %v14278_v59, %v14277_v38  ;;  %15079 = vmatprep.mubr.msk.f32.mxu0 %vm10516_vm5, %v14276_v62  ;;  %15181 = vmatprep.subr.bf16.mxu0 %v15180_v50 }
 0xc6e   : > { %15080 = vmatmul.mubr.msk.f32.gmra.mrb[102].mxu0 %vm10516_vm5, %v14279_v20 }
 0xc70   : > { %v14280_v7 = vpop.f32.mrb[56].mxu1 }
 0xc71   : > { %v14281_v63 = vpop.f32.mrb[57].mxu1 }
 0xc72   : > { %v14282_v44 = vadd.f32 %v14281_v63, %v14280_v7  ;;  %v14283_v18 = vpop.f32.mrb[58].mxu1 }
 0xc73   : > { %v14284_v61 = vpop.f32.mrb[59].mxu1 }
 0xc74   : > { %v14285_v22 = vadd.f32 %v14284_v61, %v14283_v18  ;;  %15082 = vmatprep.mubr.msk.f32.mxu0 %vm10516_vm5, %v14282_v44 }
 0xc76   : > { %15083 = vmatmul.mubr.msk.f32.gmra.mrb[104].mxu0 %vm10516_vm5, %v14285_v22 }
 0xc78   : > { %v14286_v33 = vpop.f32.mrb[60].mxu1 }
 0xc79   : > { %v14287_v21 = vpop.f32.mrb[61].mxu1 }
 0xc7a   : > { %v14288_v34 = vadd.f32 %v14287_v21, %v14286_v33  ;;  %v14289_v49 = vpop.f32.mrb[62].mxu1 }
 0xc7b   : > { %v14290_v26 = vpop.f32.mrb[63].mxu1 }
 0xc7c   : > { %v14291_v54 = vadd.f32 %v14290_v26, %v14289_v49  ;;  %15085 = vmatprep.mubr.msk.f32.mxu0 %vm10516_vm5, %v14288_v34 }
 0xc7e   : > { %15086 = vmatmul.mubr.msk.f32.gmra.mrb[106].mxu0 %vm10516_vm5, %v14291_v54 }
 0xc7f   : > { %15096 = vmatprep.mubr.msk.f32.mxu0 %vm10516_vm5, %v19099_v1 }
 0xc80   : > { %v14332_v37 = vpop.f32.mrb[64].mxu1 }
 0xc81   : > { %v14333_v30 = vpop.f32.mrb[65].mxu1 }
 0xc82   : > { %15097 = vmatmul.mubr.msk.f32.vlgmr.msra.gmra.mrb[100].mxu0 %vm10516_vm5, %v19101_v55  ;;  %v14334_v47 = vadd.f32 %v14333_v30, %v14332_v37  ;;  %v14335_v48 = vpop.f32.mrb[66].mxu1 }
 0xc83   : > { %15099 = vmatprep.mubr.msk.f32.mxu0 %vm10516_vm5, %v19103_v53  ;;  %15183 = vmatpush3.bf16.msra.mxu0 %v15180_v50  ;;  %v14336_v12 = vpop.f32.mrb[67].mxu1  ;;  %v11148_v53 = vld [vmem:[#allocation10 + $0x70] sm:$0xff] }
 0xc84   : > { %15185 = vmatprep.subr.bf16.mxu0 %v15184_v29  ;;  %v14337_v56 = vadd.f32 %v14336_v12, %v14335_v48 }
 0xc86   : > { %15100 = vmatmul.mubr.msk.f32.gmra.mrb[102].mxu0 %vm10516_vm5, %v19105_v51  ;;  %v15192_v51 = vpack.c.bf16 %v11149_v23, %v11148_v53 }
 0xc87   : > { %15102 = vmatprep.mubr.msk.f32.mxu0 %vm10516_vm5, %v19107_v36  ;;  %15187 = vmatpush3.bf16.msra.mxu0 %v15184_v29 }
 0xc88   : > { %v14338_v1 = vpop.f32.mrb[68].mxu1  ;;  %15189 = vmatprep.subr.bf16.mxu0 %v15188_v13 }
 0xc89   : > { %v14339_v32 = vpop.f32.mrb[69].mxu1 }
 0xc8a   : > { %15103 = vmatmul.mubr.msk.f32.gmra.mrb[104].mxu0 %vm10516_vm5, %v19109_v11  ;;  %v14340_v25 = vadd.f32 %v14339_v32, %v14338_v1  ;;  %v14341_v55 = vpop.f32.mrb[70].mxu1 }
 0xc8b   : > { %15105 = vmatprep.mubr.msk.f32.mxu0 %vm10516_vm5, %v19111_v19  ;;  %v14342_v43 = vpop.f32.mrb[71].mxu1 }
 0xc8c   : > { %v14343_v42 = vadd.f32 %v14342_v43, %v14341_v55 }
 0xc8e   : > { %15106 = vmatmul.mubr.msk.f32.gmra.mrb[106].mxu0 %vm10516_vm5, %v19113_v46 }
 0xc8f   : > { %15116 = vmatprep.mubr.msk.f32.mxu0 %vm10516_vm5, %v14334_v47 }
 0xc90   : > { %v14344_v41 = vpop.f32.mrb[72].mxu1 }
 0xc91   : > { %v14345_v24 = vpop.f32.mrb[73].mxu1 }
 0xc92   : > { %15117 = vmatmul.mubr.msk.f32.vlgmr.msra.gmra.mrb[100].mxu0 %vm10516_vm5, %v14337_v56  ;;  %v14346_v17 = vadd.f32 %v14345_v24, %v14344_v41  ;;  %v14347_v36 = vpop.f32.mrb[74].mxu1 }
 0xc93   : > { %15119 = vmatprep.mubr.msk.f32.mxu0 %vm10516_vm5, %v14340_v25  ;;  %v14348_v9 = vpop.f32.mrb[75].mxu1  ;;  %15191 = vmatpush3.bf16.msra.mxu0 %v15188_v13 }
 0xc94   : > { %v14349_v8 = vadd.f32 %v14348_v9, %v14347_v36  ;;  %15193 = vmatprep.subr.bf16.mxu0 %v15192_v51 }
 0xc96   : > { %15120 = vmatmul.mubr.msk.f32.gmra.mrb[102].mxu0 %vm10516_vm5, %v14343_v42 }
 0xc97   : > { %15122 = vmatprep.mubr.msk.f32.mxu0 %vm10516_vm5, %v14346_v17  ;;  %15195 = vmatpush3.bf16.msra.mxu0 %v15192_v51 }
 0xc98   : > { %v14350_v11 = vpop.f32.mrb[76].mxu1 }
 0xc99   : > { %v14351_v0 = vpop.f32.mrb[77].mxu1 }
 0xc9a   : > { %v14352_v15 = vadd.f32 %v14351_v0, %v14350_v11  ;;  %v14353_v19 = vpop.f32.mrb[78].mxu1  ;;  %15123 = vmatmul.mubr.msk.f32.gmra.mrb[104].mxu0 %vm10516_vm5, %v14349_v8 }
 0xc9b   : > { %v14354_v57 = vpop.f32.mrb[79].mxu1 }
 0xc9c   : > { %v14355_v35 = vadd.f32 %v14354_v57, %v14353_v19  ;;  %15125 = vmatprep.mubr.msk.f32.mxu0 %vm10516_vm5, %v14352_v15 }
 0xc9e   : > { %15126 = vmatmul.mubr.msk.f32.gmra.mrb[106].mxu0 %vm10516_vm5, %v14355_v35 }
 0xca0   : > { %v14384_v46 = vpop.f32.mrb[80].mxu1 }
 0xca1   : > { %v14385_v5 = vpop.f32.mrb[81].mxu1 }
 0xca2   : > { %v14386_v27 = vadd.f32 %v14385_v5, %v14384_v46  ;;  %v14387_v45 = vpop.f32.mrb[82].mxu1 }
 0xca3   : > { %v14388_v60 = vpop.f32.mrb[83].mxu1 }
 0xca4   : > { %v14389_v10 = vadd.f32 %v14388_v60, %v14387_v45  ;;  %15136 = vmatprep.mubr.msk.f32.mxu0 %vm10516_vm5, %v14386_v27 }
 0xca6   : > { %15137 = vmatmul.mubr.msk.f32.vlgmr.msra.gmra.mrb[100].mxu0 %vm10516_vm5, %v14389_v10 }
 0xca8   : > { %v14390_v16 = vpop.f32.mrb[84].mxu1 }
 0xca9   : > { %v14391_v52 = vpop.f32.mrb[85].mxu1 }
 0xcaa   : > { %v14392_v4 = vadd.f32 %v14391_v52, %v14390_v16  ;;  %v14393_v40 = vpop.f32.mrb[86].mxu1 }
 0xcab   : > { %v14394_v28 = vpop.f32.mrb[87].mxu1 }
 0xcac   : > { %v14395_v39 = vadd.f32 %v14394_v28, %v14393_v40  ;;  %15139 = vmatprep.mubr.msk.f32.mxu0 %vm10516_vm5, %v14392_v4 }
 0xcae   : > { %15140 = vmatmul.mubr.msk.f32.gmra.mrb[102].mxu0 %vm10516_vm5, %v14395_v39 }
 0xcb0   : > { %v14396_v6 = vpop.f32.mrb[88].mxu1 }
 0xcb1   : > { %v14397_v50 = vpop.f32.mrb[89].mxu1 }
 0xcb2   : > { %v14398_v14 = vadd.f32 %v14397_v50, %v14396_v6  ;;  %v14399_v62 = vpop.f32.mrb[90].mxu1 }
 0xcb3   : > { %v14400_v38 = vpop.f32.mrb[91].mxu1 }
 0xcb4   : > { %v14401_v59 = vadd.f32 %v14400_v38, %v14399_v62  ;;  %15142 = vmatprep.mubr.msk.f32.mxu0 %vm10516_vm5, %v14398_v14 }
 0xcb6   : > { %15143 = vmatmul.mubr.msk.f32.gmra.mrb[104].mxu0 %vm10516_vm5, %v14401_v59 }
 0xcb8   : > { %v14402_v20 = vpop.f32.mrb[92].mxu1 }
 0xcb9   : > { %v14403_v7 = vpop.f32.mrb[93].mxu1 }
 0xcba   : > { %v14404_v63 = vadd.f32 %v14403_v7, %v14402_v20  ;;  %v14405_v44 = vpop.f32.mrb[94].mxu1 }
 0xcbb   : > { %v14406_v18 = vpop.f32.mrb[95].mxu1 }
 0xcbc   : > { %v14407_v61 = vadd.f32 %v14406_v18, %v14405_v44  ;;  %15145 = vmatprep.mubr.msk.f32.mxu0 %vm10516_vm5, %v14404_v63 }
 0xcbe   : > { %15146 = vmatmul.mubr.msk.f32.gmra.mrb[106].mxu0 %vm10516_vm5, %v14407_v61 }
 0xd79   : > { %v15138_v22 = vpop.f32.mrb[100].mxu0 }
 0xd7a   : > { %16253 = vtanh.f32 %v15138_v22  ;;  %v11240_v33 = vpop.f32.mrb[101].mxu0 }
 0xd7b   : > { %16255 = vtanh.f32 %v11240_v33 }
 0xd81   : > { %v15141_v21 = vpop.f32.mrb[102].mxu0 }
 0xd82   : > { %16257 = vtanh.f32 %v15141_v21  ;;  %v11250_v34 = vpop.f32.mrb[103].mxu0 }
 0xd83   : > { %16259 = vtanh.f32 %v11250_v34 }
 0xd84   : > { %v16254_v49 = vpop.eup %16253 }
 0xd85   : > { %v16256_v26 = vpop.eup %16255  ;;  %11296 = vst.msk [vmem:[%s533_s25 + $0x8] sm:$0xff] %vm876_vm0, %v16254_v49 }
 0xd86   : > { %11295 = vst.msk [vmem:[%s533_s25] sm:$0xff] %vm876_vm0, %v16256_v26 }
 0xd89   : > { %v15144_v54 = vpop.f32.mrb[104].mxu0 }
 0xd8a   : > { %16261 = vtanh.f32 %v15144_v54  ;;  %v11260_v58 = vpop.f32.mrb[105].mxu0 }
 0xd8b   : > { %16263 = vtanh.f32 %v11260_v58 }
 0xd8c   : > { %v16258_v2 = vpop.eup %16257 }
 0xd8d   : > { %v16260_v37 = vpop.eup %16259  ;;  %11298 = vst.msk [vmem:[%s533_s25 + $0x18] sm:$0xff] %vm876_vm0, %v16258_v2 }
 0xd8e   : > { %11297 = vst.msk [vmem:[%s533_s25 + $0x10] sm:$0xff] %vm876_vm0, %v16260_v37 }
 0xd91   : > { %v15147_v29 = vpop.f32.mrb[106].mxu0 }
 0xd92   : > { %16265 = vtanh.f32 %v15147_v29  ;;  %v11270_v30 = vpop.f32.mrb[107].mxu0 }
 0xd93   : > { %16267 = vtanh.f32 %v11270_v30 }
 0xd94   : > { %v16262_v3 = vpop.eup %16261 }
 0xd95   : > { %v16264_v31 = vpop.eup %16263  ;;  %11300 = vst.msk [vmem:[%s533_s25 + $0x28] sm:$0xff] %vm876_vm0, %v16262_v3 }
 0xd96   : > { %11299 = vst.msk [vmem:[%s533_s25 + $0x20] sm:$0xff] %vm876_vm0, %v16264_v31 }
 0xd9c   : > { %v16266_v47 = vpop.eup %16265 }
 0xd9d   : > { %v16268_v48 = vpop.eup %16267  ;;  %11302 = vst.msk [vmem:[%s533_s25 + $0x38] sm:$0xff] %vm876_vm0, %v16266_v47 }
 0xd9e   : > { %11301 = vst.msk [vmem:[%s533_s25 + $0x30] sm:$0xff] %vm876_vm0, %v16268_v48 }
 0xd9f   : > { %16422 = shalt.err (!%p16419_p0)
}
 0xda0   : > { %s16423_s26 = scalar_lea.hbm %s19168_s12, 1024  ;;  %s16427_s24 = scalar_lea.hbm %s19282_s10, 2048 }
 0xda1   : > { %p16424_p10 = scmp.ne.s32.totalorder %s19168_s12, %s16423_s26  ;;  %p16428_p4 = scmp.lt.u32.totalorder %s19168_s12, %s19282_s10 }
 0xda2   : > { %p16429_p12 = scmp.lt.u32.totalorder %s16427_s24, %s16423_s26  ;;  %p16431_p8 = scmp.lt.u32.totalorder %s16423_s26, %s19168_s12 }
 0xda3   : > { %p16425_p2 = pnand %p16424_p10, %p19283_p11 }
 0xda4   : > { %p16430_p7 = por %p16429_p12, %p16428_p4 }
 0xda5   : > { %p16426_p3 = pneg %p16425_p2 }
 0xda6   : > { %p16432_p13 = por %p16431_p8, %p16430_p7 }
 0xda8   : > { %p16433_p1 = pnand %p16432_p13, %p16426_p3 }
 0xdaa   : > { %16436 = shalt.err (!%p16433_p1)
}
 0xdab   : > { %s16496_s25 = smov 128   ;;  %s16497_s18 = smov 8  }
 0xdac   : > { %15530 = dma.vmem_to_hbm [thread:$0]  (%p19283_p11), %s19170_s15, 1024, %s19168_s12, %s19176_s22, %s16496_s25, %s16496_s25, %s16497_s18  }
 0xdad PF: > { %s19284_s19 = sld [smem:[#allocation19_spill]]  ;;  %s19285_s6 = sld [smem:[#allocation16_spill]] }
 0xdae   : > { %s19286_s17 = sld [smem:[#allocation23_spill]] }
 0xdb3   : > { %p15562_p6 = scmp.ge.s32.totalorder %s19284_s19, 2  ;;  %s11332_s14 = sand.u32 1, %s19285_s6  }
 0xdb4   : > { %p19287_p9 = scmp.ne.s32.totalorder %s19286_s17, 0  ;;  %s11333_s30 = scalar_lea.sflag [#allocation4], %s11332_s14 }
 0xdb6   : > { %p15549_p5 = pnand %p15562_p6, %p19287_p9 }
 0xdb8   : > { %16466 = dma.done.wait (!%p15549_p5), %s11333_s30, 1024  }
 0xdb9   : > { %16468 = vsyncadd (!%p15549_p5), %s11333_s30, 4294966272  ;;  %s19288_s16 = sld [smem:[#allocation20_spill]]  ;;  %s19289_s29 = sld [smem:[#allocation17_spill]] }
 0xdba   : > { %s19290_s30 = sld [smem:[#allocation18_spill]]  ;;  %s19291_s15 = sld [smem:[#allocation21_spill]] }
 0xdbf   : > { %p27_p0 = scmp.ge.s32.totalorder %s19288_s16, 4  }
 0xdc1   :  { %29 = sbr.rel (!%p27_p0) target bundleno = 11 (0xb), region = 156 }
 0xdc8   :  { %11338 = vsyncpa [#allocation3], 1 }
 0xdc9   :  { %11340 = vsyncpa [#allocation3 + $0x1], 1 }
 0xdca   :  { %11341 = vsyncpa [#allocation6], 1 }
 0xdcb   :  { %11342 = vsyncpa [#allocation9], 1 }
 0xdcc   :  { %11343 = vsyncpa [#allocation4], 1 }
 0xdcd   :  { %11345 = vsyncpa [#allocation4 + $0x1], 1 }

</bundles_post_ra>
